<compile_context>
chip_gen: v7x
topology: tpu7x:2x2x1
jax: 0.10.0
libtpu: 0.0.40
codegen_flags: <defaults>
</compile_context>

<pallas_src>
import functools

import jax
import jax.numpy as jnp
from jax.experimental import pallas as pl
from jax.experimental.pallas import tpu as pltpu

LEAKY_SLOPE = 0.2


# ----------------------------------------------------------------------------
# Pallas kernels
# ----------------------------------------------------------------------------
def _mm_lrelu_kernel(a_ref, w_ref, o_ref, *, slope):
    """o = leaky_relu(a @ w); bf16 operands, f32 MXU accumulation/activation."""
    acc = jnp.dot(a_ref[...], w_ref[...], preferred_element_type=jnp.float32)
    acc = jnp.where(acc > 0, acc, slope * acc)
    o_ref[...] = acc.astype(o_ref.dtype)


def matmul_lrelu(a, w, *, slope=LEAKY_SLOPE, out_dtype=jnp.bfloat16):
    """(M,K) @ (K,N) with fused LeakyReLU.

    At most 2 grid steps (split M if large, else split N) so a megacore part
    (v7x) gets one tile per TensorCore while per-step overhead stays minimal;
    every tile fits comfortably in VMEM at these sizes.
    """
    M, K = a.shape
    K2, N = w.shape
    assert K == K2
    if M >= 512 and M % 2 == 0 and (M // 2) % 8 == 0:
        tm, tn = M // 2, N          # conv1 / conv2: split M into 2 tiles
    elif N >= 256 and N % 2 == 0 and (N // 2) % 128 == 0:
        tm, tn = M, N // 2          # conv3: split N into 2 lane-aligned halves
    else:
        tm, tn = M, N               # tiny problem: single full-array block
    grid = (M // tm, N // tn)
    kernel = functools.partial(_mm_lrelu_kernel, slope=slope)
    return pl.pallas_call(
        kernel,
        out_shape=jax.ShapeDtypeStruct((M, N), out_dtype),
        grid=grid,
        in_specs=[
            pl.BlockSpec((tm, K), lambda i, j: (i, 0)),
            pl.BlockSpec((K, tn), lambda i, j: (0, j)),
        ],
        out_specs=pl.BlockSpec((tm, tn), lambda i, j: (i, j)),
        compiler_params=pltpu.CompilerParams(
            dimension_semantics=("parallel", "parallel"),
        ),
    )(a, w)


def _conv4_d2_kernel(a_ref, w_ref, wd2x_ref, emb_ref, wd2e_ref,
                     o_ref, s_ref, *, slope, batch):
    """conv4 (as matmul) + LeakyReLU with netD_2 + batch-mean fused epilogue.

    a_ref    : (B*16, 4096) bf16  im2col rows of conv3 output
    w_ref    : (4096, 512)  bf16  conv4 weight matrix
    wd2x_ref : (16, 512)    f32   netD_2 weight (image part), row = ho*4+wo
    emb_ref  : (B, E)       f32   embed (E <= 64)
    wd2e_ref : (1, E)       f32   netD_2 weight (embed part), 4x4 taps pre-summed
    o_ref    : (B*16, 512)  f32   x_intermediate rows (NHWC flattened)
    s_ref    : (1, 1)       f32   netD_2(cat(x, embed_map)).mean(0)
    """
    out = jnp.dot(a_ref[...], w_ref[...], preferred_element_type=jnp.float32)
    out = jnp.where(out > 0, out, slope * out)
    o_ref[...] = out
    # netD_2 image part: broadcast the (16, 512) weight over the batch in VMEM
    # instead of tiling it in XLA / HBM.
    wd2x = jnp.concatenate([wd2x_ref[...]] * batch, axis=0)      # (B*16, 512)
    d2 = jnp.sum(out * wd2x)
    # netD_2 embed part: the embed map is spatially constant, so the 4x4 taps
    # of the weight were pre-summed; truncating to E columns == zero padding.
    d2 = d2 + jnp.sum(emb_ref[...] * wd2e_ref[...])
    s_ref[...] = (d2 * (1.0 / batch)).reshape(1, 1)


def conv4_with_netd2(a, w, wd2x, embed, wd2e):
    M = a.shape[0]
    N = w.shape[1]
    batch = embed.shape[0]
    kernel = functools.partial(_conv4_d2_kernel, slope=LEAKY_SLOPE, batch=batch)
    return pl.pallas_call(
        kernel,
        out_shape=(
            jax.ShapeDtypeStruct((M, N), jnp.float32),
            jax.ShapeDtypeStruct((1, 1), jnp.float32),
        ),
    )(a, w, wd2x, embed, wd2e)


# ----------------------------------------------------------------------------
# Glue: im2col / one-time weight preparation (plain JAX)
# ----------------------------------------------------------------------------
def im2col(x_nhwc, ksize, stride, pad):
    """4x4 stride-2 patch rows, (N*Ho*Wo, k*k*C), flattened (kh, kw, c)."""
    x = jnp.pad(x_nhwc, ((0, 0), (pad, pad), (pad, pad), (0, 0)))
    N, H, W, C = x.shape
    Ho = (H - ksize) // stride + 1
    Wo = (W - ksize) // stride + 1
    taps = [
        x[:, kh:kh + Ho * stride:stride, kw:kw + Wo * stride:stride, :]
        for kh in range(ksize) for kw in range(ksize)
    ]
    p = jnp.concatenate(taps, axis=-1)          # (N, Ho, Wo, k*k*C)
    return p.reshape(N * Ho * Wo, ksize * ksize * C), (N, Ho, Wo)


def conv_weight_to_mat(w):
    # torch conv weight (Cout, Cin, kh, kw) -> (kh*kw*Cin, Cout); matches
    # im2col's (kh, kw, cin) flattening order.
    Cout, Cin, kh, kw = w.shape
    return jnp.transpose(w, (2, 3, 1, 0)).reshape(kh * kw * Cin, Cout)


def prepare_params(raw):
    """One-time (outside jit) weight layout + dtype preparation."""
    p = {}
    for name in ("conv1", "conv2", "conv3", "conv4"):
        p[name] = conv_weight_to_mat(raw[name]).astype(jnp.bfloat16)
    wd2 = raw["convD2"].astype(jnp.float32)           # (1, 576, 4, 4)
    ndf8 = wd2.shape[1] - 64                          # 512
    # image part: row index = ho*4+wo (matches NHWC-flattened conv4 rows)
    p["wd2x"] = jnp.transpose(wd2[0, :ndf8], (1, 2, 0)).reshape(16, ndf8)
    # embed part: embed map is spatially constant -> pre-sum over the 4x4 taps
    p["wd2e"] = jnp.sum(wd2[0, ndf8:], axis=(1, 2)).reshape(1, 64)
    return p


# ----------------------------------------------------------------------------
# Discriminator forward
# ----------------------------------------------------------------------------
def discriminator_forward(params, inp_nchw, embed):
    B = inp_nchw.shape[0]
    E = embed.shape[1]
    # NCHW -> NHWC, bf16 for the MXU path
    x = jnp.transpose(inp_nchw, (0, 2, 3, 1)).astype(jnp.bfloat16)

    # netD_1 convs 1-3: 4x4 stride-2 pad-1, fused LeakyReLU(0.2), bf16 outputs
    for name in ("conv1", "conv2", "conv3"):
        w = params[name]
        a, (N, Ho, Wo) = im2col(x, 4, 2, 1)
        x = matmul_lrelu(a, w).reshape(N, Ho, Wo, w.shape[1])

    # conv4 + (youtubers / project=False / concat=True) netD_2 + mean(0), fused
    a4, _ = im2col(x, 4, 2, 1)                                    # (B*16, 4096)
    # truncating the pre-summed embed weight == zero-padding embed to 64 chans;
    # this slice only depends on params, so it is off the activation path.
    wd2e = params["wd2e"][:, :E]                                  # (1, E)
    out_rows, out11 = conv4_with_netd2(
        a4, params["conv4"], params["wd2x"], embed.astype(jnp.float32), wd2e)

    x_intermediate_nhwc = out_rows.reshape(B, 4, 4, -1)           # (B,4,4,512)
    x_out = out11.reshape(1)
    x_intermediate_nchw = jnp.transpose(x_intermediate_nhwc, (0, 3, 1, 2))
    return x_out, x_intermediate_nchw


def init_params(key):
    ndf = 64
    ks = jax.random.split(key, 5)

    def w(k, shape):
        return 0.02 * jax.random.normal(k, shape, dtype=jnp.float32)

    return {
        "conv1": w(ks[0], (ndf, 3, 4, 4)),
        "conv2": w(ks[1], (ndf * 2, ndf, 4, 4)),
        "conv3": w(ks[2], (ndf * 4, ndf * 2, 4, 4)),
        "conv4": w(ks[3], (ndf * 8, ndf * 4, 4, 4)),
        "convD2": w(ks[4], (1, ndf * 8 + 64, 4, 4)),
    }


if __name__ == "__main__":
    key = jax.random.PRNGKey(0)
    kp, kx, ke = jax.random.split(key, 3)

    raw = init_params(kp)
    params = prepare_params(raw)   # weight reshape/cast done once, outside jit

    # the conv stack requires 64x64 inputs; batch=2, embed dim 32 (padded to 64)
    inp = jax.random.normal(kx, (2, 3, 64, 64), dtype=jnp.float32)   # NCHW
    embed = jax.random.normal(ke, (2, 32), dtype=jnp.float32)

    fwd = jax.jit(discriminator_forward)
    x_out, x_intermediate = fwd(params, inp, embed)
    jax.block_until_ready((x_out, x_intermediate))

    assert x_out.shape == (1,)
    assert x_intermediate.shape == (2, 512, 4, 4)
    print("KERNEL_OK")
</pallas_src>

<mosaic_0001>
module attributes {stable_mosaic.version = 11 : i64} {
  func.func @_mm_lrelu_kernel(%arg0: i32, %arg1: i32, %arg2: memref<1024x48xbf16, #tpu.memory_space<vmem>>, %arg3: memref<48x64xbf16, #tpu.memory_space<vmem>>, %arg4: memref<1024x64xbf16, #tpu.memory_space<vmem>>) attributes {dimension_semantics = [#tpu.dimension_semantics<parallel>, #tpu.dimension_semantics<parallel>], iteration_bounds = array<i64: 2, 1>, scalar_prefetch = 0 : i64, scratch_operands = 0 : i64, tpu.core_type = #tpu.core_type<tc>, window_params = [{transform_indices = @transform_0, window_bounds = array<i64: 1024, 48>}, {transform_indices = @transform_1, window_bounds = array<i64: 48, 64>}, {transform_indices = @transform_2, window_bounds = array<i64: 1024, 64>}]} {
    %c0 = arith.constant 0 : index
    %c0_0 = arith.constant 0 : index
    %0 = vector.load %arg2[%c0, %c0_0] : memref<1024x48xbf16, #tpu.memory_space<vmem>>, vector<1024x48xbf16>
    %c0_1 = arith.constant 0 : index
    %c0_2 = arith.constant 0 : index
    %1 = vector.load %arg3[%c0_1, %c0_2] : memref<48x64xbf16, #tpu.memory_space<vmem>>, vector<48x64xbf16>
    %cst = arith.constant dense<0.000000e+00> : vector<1024x64xf32>
    %2 = tpu.matmul %0, %1, %cst {dimension_numbers = #tpu.dot_dimension_numbers<[1], [0], [0], [1], [0, 0, 1, 1], [], []>} : vector<1024x48xbf16>, vector<48x64xbf16>, vector<1024x64xf32> -> vector<1024x64xf32>
    %cst_3 = arith.constant 0.000000e+00 : f32
    %3 = vector.broadcast %cst_3 : f32 to vector<1024x64xf32>
    %4 = arith.cmpf ogt, %2, %3 : vector<1024x64xf32>
    %cst_4 = arith.constant 2.000000e-01 : f32
    %5 = vector.broadcast %cst_4 : f32 to vector<1024x64xf32>
    %6 = arith.mulf %5, %2 : vector<1024x64xf32>
    %7 = arith.select %4, %2, %6 : vector<1024x64xi1>, vector<1024x64xf32>
    %8 = arith.truncf %7 : vector<1024x64xf32> to vector<1024x64xbf16>
    %c0_5 = arith.constant 0 : index
    %c0_6 = arith.constant 0 : index
    %9 = vector.load %arg4[%c0_5, %c0_6] : memref<1024x64xbf16, #tpu.memory_space<vmem>>, vector<1024x64xbf16>
    tpu.vector_store %arg4[%c0_5, %c0_6], %8 {strides = array<i32>} : memref<1024x64xbf16, #tpu.memory_space<vmem>>, vector<1024x64xbf16>,
    return
  }
  func.func @transform_0(%arg0: i32, %arg1: i32) -> (i32, i32) {
    %c0_i32 = arith.constant 0 : i32
    %c0_i32_0 = arith.constant 0 : i32
    return %arg0, %c0_i32 : i32, i32
  }
  func.func @transform_1(%arg0: i32, %arg1: i32) -> (i32, i32) {
    %c0_i32 = arith.constant 0 : i32
    %c0_i32_0 = arith.constant 0 : i32
    return %c0_i32, %arg1 : i32, i32
  }
  func.func @transform_2(%arg0: i32, %arg1: i32) -> (i32, i32) {
    %c0_i32 = arith.constant 0 : i32
    return %arg0, %arg1 : i32, i32
  }
}

module attributes {stable_mosaic.version = 11 : i64} {
  func.func @_mm_lrelu_kernel(%arg0: i32, %arg1: i32, %arg2: memref<256x1024xbf16, #tpu.memory_space<vmem>>, %arg3: memref<1024x128xbf16, #tpu.memory_space<vmem>>, %arg4: memref<256x128xbf16, #tpu.memory_space<vmem>>) attributes {dimension_semantics = [#tpu.dimension_semantics<parallel>, #tpu.dimension_semantics<parallel>], iteration_bounds = array<i64: 2, 1>, scalar_prefetch = 0 : i64, scratch_operands = 0 : i64, tpu.core_type = #tpu.core_type<tc>, window_params = [{transform_indices = @transform_0, window_bounds = array<i64: 256, 1024>}, {transform_indices = @transform_1, window_bounds = array<i64: 1024, 128>}, {transform_indices = @transform_2, window_bounds = array<i64: 256, 128>}]} {
    %c0 = arith.constant 0 : index
    %c0_0 = arith.constant 0 : index
    %0 = vector.load %arg2[%c0, %c0_0] : memref<256x1024xbf16, #tpu.memory_space<vmem>>, vector<256x1024xbf16>
    %c0_1 = arith.constant 0 : index
    %c0_2 = arith.constant 0 : index
    %1 = vector.load %arg3[%c0_1, %c0_2] : memref<1024x128xbf16, #tpu.memory_space<vmem>>, vector<1024x128xbf16>
    %cst = arith.constant dense<0.000000e+00> : vector<256x128xf32>
    %2 = tpu.matmul %0, %1, %cst {dimension_numbers = #tpu.dot_dimension_numbers<[1], [0], [0], [1], [0, 0, 1, 1], [], []>} : vector<256x1024xbf16>, vector<1024x128xbf16>, vector<256x128xf32> -> vector<256x128xf32>
    %cst_3 = arith.constant 0.000000e+00 : f32
    %3 = vector.broadcast %cst_3 : f32 to vector<256x128xf32>
    %4 = arith.cmpf ogt, %2, %3 : vector<256x128xf32>
    %cst_4 = arith.constant 2.000000e-01 : f32
    %5 = vector.broadcast %cst_4 : f32 to vector<256x128xf32>
    %6 = arith.mulf %5, %2 : vector<256x128xf32>
    %7 = arith.select %4, %2, %6 : vector<256x128xi1>, vector<256x128xf32>
    %8 = arith.truncf %7 : vector<256x128xf32> to vector<256x128xbf16>
    %c0_5 = arith.constant 0 : index
    %c0_6 = arith.constant 0 : index
    %9 = vector.load %arg4[%c0_5, %c0_6] : memref<256x128xbf16, #tpu.memory_space<vmem>>, vector<256x128xbf16>
    tpu.vector_store %arg4[%c0_5, %c0_6], %8 {strides = array<i32>} : memref<256x128xbf16, #tpu.memory_space<vmem>>, vector<256x128xbf16>,
    return
  }
  func.func @transform_0(%arg0: i32, %arg1: i32) -> (i32, i32) {
    %c0_i32 = arith.constant 0 : i32
    %c0_i32_0 = arith.constant 0 : i32
    return %arg0, %c0_i32 : i32, i32
  }
  func.func @transform_1(%arg0: i32, %arg1: i32) -> (i32, i32) {
    %c0_i32 = arith.constant 0 : i32
    %c0_i32_0 = arith.constant 0 : i32
    return %c0_i32, %arg1 : i32, i32
  }
  func.func @transform_2(%arg0: i32, %arg1: i32) -> (i32, i32) {
    %c0_i32 = arith.constant 0 : i32
    return %arg0, %arg1 : i32, i32
  }
}

module attributes {stable_mosaic.version = 11 : i64} {
  func.func @_mm_lrelu_kernel(%arg0: i32, %arg1: i32, %arg2: memref<128x2048xbf16, #tpu.memory_space<vmem>>, %arg3: memref<2048x128xbf16, #tpu.memory_space<vmem>>, %arg4: memref<128x128xbf16, #tpu.memory_space<vmem>>) attributes {dimension_semantics = [#tpu.dimension_semantics<parallel>, #tpu.dimension_semantics<parallel>], iteration_bounds = array<i64: 1, 2>, scalar_prefetch = 0 : i64, scratch_operands = 0 : i64, tpu.core_type = #tpu.core_type<tc>, window_params = [{transform_indices = @transform_0, window_bounds = array<i64: 128, 2048>}, {transform_indices = @transform_1, window_bounds = array<i64: 2048, 128>}, {transform_indices = @transform_2, window_bounds = array<i64: 128, 128>}]} {
    %c0 = arith.constant 0 : index
    %c0_0 = arith.constant 0 : index
    %0 = vector.load %arg2[%c0, %c0_0] : memref<128x2048xbf16, #tpu.memory_space<vmem>>, vector<128x2048xbf16>
    %c0_1 = arith.constant 0 : index
    %c0_2 = arith.constant 0 : index
    %1 = vector.load %arg3[%c0_1, %c0_2] : memref<2048x128xbf16, #tpu.memory_space<vmem>>, vector<2048x128xbf16>
    %cst = arith.constant dense<0.000000e+00> : vector<128x128xf32>
    %2 = tpu.matmul %0, %1, %cst {dimension_numbers = #tpu.dot_dimension_numbers<[1], [0], [0], [1], [0, 0, 1, 1], [], []>} : vector<128x2048xbf16>, vector<2048x128xbf16>, vector<128x128xf32> -> vector<128x128xf32>
    %cst_3 = arith.constant 0.000000e+00 : f32
    %3 = vector.broadcast %cst_3 : f32 to vector<128x128xf32>
    %4 = arith.cmpf ogt, %2, %3 : vector<128x128xf32>
    %cst_4 = arith.constant 2.000000e-01 : f32
    %5 = vector.broadcast %cst_4 : f32 to vector<128x128xf32>
    %6 = arith.mulf %5, %2 : vector<128x128xf32>
    %7 = arith.select %4, %2, %6 : vector<128x128xi1>, vector<128x128xf32>
    %8 = arith.truncf %7 : vector<128x128xf32> to vector<128x128xbf16>
    %c0_5 = arith.constant 0 : index
    %c0_6 = arith.constant 0 : index
    %9 = vector.load %arg4[%c0_5, %c0_6] : memref<128x128xbf16, #tpu.memory_space<vmem>>, vector<128x128xbf16>
    tpu.vector_store %arg4[%c0_5, %c0_6], %8 {strides = array<i32>} : memref<128x128xbf16, #tpu.memory_space<vmem>>, vector<128x128xbf16>,
    return
  }
  func.func @transform_0(%arg0: i32, %arg1: i32) -> (i32, i32) {
    %c0_i32 = arith.constant 0 : i32
    %c0_i32_0 = arith.constant 0 : i32
    return %arg0, %c0_i32 : i32, i32
  }
  func.func @transform_1(%arg0: i32, %arg1: i32) -> (i32, i32) {
    %c0_i32 = arith.constant 0 : i32
    %c0_i32_0 = arith.constant 0 : i32
    return %c0_i32, %arg1 : i32, i32
  }
  func.func @transform_2(%arg0: i32, %arg1: i32) -> (i32, i32) {
    %c0_i32 = arith.constant 0 : i32
    return %arg0, %arg1 : i32, i32
  }
}

module attributes {stable_mosaic.version = 11 : i64} {
  func.func @_conv4_d2_kernel(%arg0: memref<32x4096xbf16, #tpu.memory_space<vmem>>, %arg1: memref<4096x512xbf16, #tpu.memory_space<vmem>>, %arg2: memref<16x512xf32, #tpu.memory_space<vmem>>, %arg3: memref<2x32xf32, #tpu.memory_space<vmem>>, %arg4: memref<1x32xf32, #tpu.memory_space<vmem>>, %arg5: memref<32x512xf32, #tpu.memory_space<vmem>>, %arg6: memref<1x1xf32, #tpu.memory_space<vmem>>) attributes {dimension_semantics = [], scalar_prefetch = 0 : i64, scratch_operands = 0 : i64, tpu.core_type = #tpu.core_type<tc>} {
    %c0 = arith.constant 0 : index
    %c0_0 = arith.constant 0 : index
    %0 = vector.load %arg0[%c0, %c0_0] : memref<32x4096xbf16, #tpu.memory_space<vmem>>, vector<32x4096xbf16>
    %c0_1 = arith.constant 0 : index
    %c0_2 = arith.constant 0 : index
    %1 = vector.load %arg1[%c0_1, %c0_2] : memref<4096x512xbf16, #tpu.memory_space<vmem>>, vector<4096x512xbf16>
    %cst = arith.constant dense<0.000000e+00> : vector<32x512xf32>
    %2 = tpu.matmul %0, %1, %cst {dimension_numbers = #tpu.dot_dimension_numbers<[1], [0], [0], [1], [0, 0, 1, 1], [], []>} : vector<32x4096xbf16>, vector<4096x512xbf16>, vector<32x512xf32> -> vector<32x512xf32>
    %cst_3 = arith.constant 0.000000e+00 : f32
    %3 = vector.broadcast %cst_3 : f32 to vector<32x512xf32>
    %4 = arith.cmpf ogt, %2, %3 : vector<32x512xf32>
    %cst_4 = arith.constant 2.000000e-01 : f32
    %5 = vector.broadcast %cst_4 : f32 to vector<32x512xf32>
    %6 = arith.mulf %5, %2 : vector<32x512xf32>
    %7 = arith.select %4, %2, %6 : vector<32x512xi1>, vector<32x512xf32>
    %c0_5 = arith.constant 0 : index
    %c0_6 = arith.constant 0 : index
    %8 = vector.load %arg5[%c0_5, %c0_6] : memref<32x512xf32, #tpu.memory_space<vmem>>, vector<32x512xf32>
    tpu.vector_store %arg5[%c0_5, %c0_6], %7 {strides = array<i32>} : memref<32x512xf32, #tpu.memory_space<vmem>>, vector<32x512xf32>,
    %c0_7 = arith.constant 0 : index
    %c0_8 = arith.constant 0 : index
    %9 = vector.load %arg2[%c0_7, %c0_8] : memref<16x512xf32, #tpu.memory_space<vmem>>, vector<16x512xf32>
    %10 = tpu.concatenate %9, %9 in 0 : vector<16x512xf32>, vector<16x512xf32> -> vector<32x512xf32>
    %11 = arith.mulf %7, %10 : vector<32x512xf32>
    %12 = vector.shape_cast %11 : vector<32x512xf32> to vector<1x32x512xf32>
    %cst_9 = arith.constant dense<0.000000e+00> : vector<1xf32>
    %13 = vector.multi_reduction <add>, %12, %cst_9 [1, 2] : vector<1x32x512xf32> to vector<1xf32>
    %14 = vector.shape_cast %13 : vector<1xf32> to vector<1x1x1xf32>
    %15 = vector.extract %14[0, 0, 0] : f32 from vector<1x1x1xf32>
    %c0_10 = arith.constant 0 : index
    %c0_11 = arith.constant 0 : index
    %16 = vector.load %arg3[%c0_10, %c0_11] : memref<2x32xf32, #tpu.memory_space<vmem>>, vector<2x32xf32>
    %c0_12 = arith.constant 0 : index
    %c0_13 = arith.constant 0 : index
    %17 = vector.load %arg4[%c0_12, %c0_13] : memref<1x32xf32, #tpu.memory_space<vmem>>, vector<1x32xf32>
    %18 = vector.broadcast %17 : vector<1x32xf32> to vector<2x32xf32>
    %19 = arith.mulf %16, %18 : vector<2x32xf32>
    %20 = vector.shape_cast %19 : vector<2x32xf32> to vector<1x2x32xf32>
    %cst_14 = arith.constant dense<0.000000e+00> : vector<1xf32>
    %21 = vector.multi_reduction <add>, %20, %cst_14 [1, 2] : vector<1x2x32xf32> to vector<1xf32>
    %22 = vector.shape_cast %21 : vector<1xf32> to vector<1x1x1xf32>
    %23 = vector.extract %22[0, 0, 0] : f32 from vector<1x1x1xf32>
    %24 = arith.addf %15, %23 : f32
    %cst_15 = arith.constant 5.000000e-01 : f32
    %25 = arith.mulf %24, %cst_15 : f32
    %26 = vector.broadcast %25 : f32 to vector<1x1xf32>
    %c0_16 = arith.constant 0 : index
    %c0_17 = arith.constant 0 : index
    %27 = vector.load %arg6[%c0_16, %c0_17] : memref<1x1xf32, #tpu.memory_space<vmem>>, vector<1x1xf32>
    tpu.vector_store %arg6[%c0_16, %c0_17], %26 {strides = array<i32>} : memref<1x1xf32, #tpu.memory_space<vmem>>, vector<1x1xf32>,
    return
  }
}

</mosaic_0001>

<bundles_post_ra>
// kernel: discriminator_forward.4
= control target key start
LH: loop header
LB: loop body
LE: loop exit
PB: predicated region body
PF: predicated region fallthrough
CT: control target
= control target key end

     0   :  { %s3246_s9 = smov 0   ;;  %s3248_s10 = smov 0   ;;  %s3684_s0 = inlined_call_operand.vmem [shape: bf16[2048,48], index: 0, kind: input, shape index: {}]   ;;  %s3685_s1 = inlined_call_operand.vmem [shape: bf16[48,64], index: 1, kind: input, shape index: {}]   ;;  %s3686_s2 = inlined_call_operand.vmem [shape: bf16[2048,64], index: 2, kind: output, shape index: {}]  }
   0x1   :  { %s3250_s11 = smov 0  }
   0x2 LB: > { %s24_s12 = sadd.s32 1, %s3225_s10  ;;  %p2515_p0 = scmp.ge.s32.totalorder %s3229_s11, 1  ;;  %s3229_s11 = sphi %s3250_s11, %s12_s11   ;;  %s3225_s10 = sphi %s3248_s10, %s3688_s10   ;;  %s3221_s9 = sphi %s3246_s9, %s3687_s9  }
   0x3   : > { %p26_p1 = scmp.ge.s32.totalorder %s24_s12, 2  ;;  %p136_p2 = scmp.lt.s32.totalorder %s3229_s11, 3 }
   0x5   : > { %s3690_s12 = smov (%p26_p1, %s24_s12), 0  ;;  %p137_p3 = pnand %p2515_p0, %p136_p2 }
   0x6   : > { %v3140_v0 = vld [vmem:[%s3685_s1] sm:$0xff] (!%p137_p3)   ;;  %s2516_s15 = sshll.u32 (!%p137_p3), %s3221_s9, 7  ;;  %v3141_v1 = vld [vmem:[%s3685_s1 + $0x8] sm:$0xff] (!%p137_p3)   ;;  %v3142_v2 = vld [vmem:[%s3685_s1 + $0x10] sm:$0xff] (!%p137_p3)   ;;  %vm657_vm0 = vcmask (!%p137_p3), 392192   ;;  %vm2291_vm3 = vcmask (!%p137_p3), 519168  }
   0x7   : > { %140 = sbr.rel (%p137_p3) target bundleno = 367 (0x16f), region = 28  ;;  %p166_p4 = scmp.lt.s32.totalorder (!%p137_p3), %s2516_s15, 255  ;;  %2976 = vmatprep.subr.bf16.mxu0 (!%p137_p3), %v3140_v0  ;;  %3110 = vmatprep.subr.bf16.mxu1 (!%p137_p3), %v3140_v0 }
   0x8   : > { %2977 = vmatpush3.bf16.msra.mxu0 (!%p137_p3), %v3140_v0  ;;  %3113 = vmatpush3.bf16.msra.mxu1 (!%p137_p3), %v3140_v0 }
   0x9   : > { %2978 = vmatprep.subr.bf16.mxu0 (!%p137_p3), %v3141_v1  ;;  %3111 = vmatprep.subr.bf16.mxu1 (!%p137_p3), %v3141_v1 }
   0xc   : > { %2979 = vmatpush3.bf16.msra.mxu0 (!%p137_p3), %v3141_v1  ;;  %3114 = vmatpush3.bf16.msra.mxu1 (!%p137_p3), %v3141_v1 }
   0xd   : > { %2980 = vmatprep.subr.bf16.mxu0 (!%p137_p3), %v3142_v2  ;;  %3112 = vmatprep.subr.bf16.mxu1 (!%p137_p3), %v3142_v2 }
   0xe   : > { %s3692_s15 = smov (!%p166_p4, %s2516_s15), 255 }
   0xf   : > { %s2517_s20 = sshll.u32 %s3692_s15, 2 }
  0x10   : > { %s3281_s23 = scalar_lea.vmem %s3684_s0, %s2517_s20  ;;  %2981 = vmatpush3.bf16.msra.mxu0 %v3142_v2  ;;  %3115 = vmatpush3.bf16.msra.mxu1 %v3142_v2  ;;  %s3416_s26 = scalar_lea.vmem %s3686_s2, %s2517_s20 }
  0x11   : > { %v3143_v3 = vld [vmem:[%s3281_s23] sm:$0xff]   ;;  %v3145_v5 = vld [vmem:[%s3281_s23 + $0x8] sm:$0xff]   ;;  %v3147_v7 = vld [vmem:[%s3281_s23 + $0x10] sm:$0xff]  }
  0x12   : > { %v3144_v4 = vld [vmem:[%s3281_s23 + $0x100] sm:$0xff]   ;;  %2982 = vmatprep.mubr.msk.bf16.mxu0 %vm657_vm0, %v3143_v3  ;;  %v3146_v6 = vld [vmem:[%s3281_s23 + $0x108] sm:$0xff]   ;;  %v3148_v8 = vld [vmem:[%s3281_s23 + $0x110] sm:$0xff]  }
  0x13   : > { %3046 = vmatprep.mubr.msk.bf16.mxu1 %vm657_vm0, %v3144_v4  ;;  %2983 = vmatmul.mubr.msk.bf16.vlgmr.msra.gmra.mrb[0].mxu0 %vm657_vm0, %v3145_v5  ;;  %v3149_v9 = vld [vmem:[%s3281_s23 + $0x18] sm:$0xff]   ;;  %v3151_v11 = vld [vmem:[%s3281_s23 + $0x20] sm:$0xff]   ;;  %v3153_v13 = vld [vmem:[%s3281_s23 + $0x28] sm:$0xff]  }
  0x14   : > { %3047 = vmatmul.mubr.msk.bf16.vlgmr.msra.gmra.mrb[0].mxu1 %vm657_vm0, %v3146_v6  ;;  %2986 = vmatprep.mubr.msk.bf16.mxu0 %vm657_vm0, %v3147_v7  ;;  %v3150_v10 = vld [vmem:[%s3281_s23 + $0x118] sm:$0xff]   ;;  %v3152_v12 = vld [vmem:[%s3281_s23 + $0x120] sm:$0xff]   ;;  %v3154_v14 = vld [vmem:[%s3281_s23 + $0x128] sm:$0xff]  }
  0x15   : > { %3050 = vmatprep.mubr.msk.bf16.mxu1 %vm657_vm0, %v3148_v8  ;;  %v3155_v15 = vld [vmem:[%s3281_s23 + $0x30] sm:$0xff]   ;;  %v3157_v17 = vld [vmem:[%s3281_s23 + $0x38] sm:$0xff]   ;;  %v3159_v19 = vld [vmem:[%s3281_s23 + $0x40] sm:$0xff]  }
  0x16   : > { %v3156_v16 = vld [vmem:[%s3281_s23 + $0x130] sm:$0xff]   ;;  %v3158_v18 = vld [vmem:[%s3281_s23 + $0x138] sm:$0xff]   ;;  %v3160_v20 = vld [vmem:[%s3281_s23 + $0x140] sm:$0xff]  }
  0x17   : > { %v3161_v21 = vld [vmem:[%s3281_s23 + $0x48] sm:$0xff]   ;;  %v3163_v23 = vld [vmem:[%s3281_s23 + $0x50] sm:$0xff]   ;;  %v3165_v25 = vld [vmem:[%s3281_s23 + $0x58] sm:$0xff]  }
  0x18   : > { %v3162_v22 = vld [vmem:[%s3281_s23 + $0x148] sm:$0xff]   ;;  %v3164_v24 = vld [vmem:[%s3281_s23 + $0x150] sm:$0xff]   ;;  %v3166_v26 = vld [vmem:[%s3281_s23 + $0x158] sm:$0xff]  }
  0x19   : > { %v3167_v27 = vld [vmem:[%s3281_s23 + $0x60] sm:$0xff]   ;;  %v3169_v29 = vld [vmem:[%s3281_s23 + $0x68] sm:$0xff]   ;;  %v3171_v31 = vld [vmem:[%s3281_s23 + $0x70] sm:$0xff]  }
  0x1a   : > { %v3168_v28 = vld [vmem:[%s3281_s23 + $0x160] sm:$0xff]   ;;  %v3170_v30 = vld [vmem:[%s3281_s23 + $0x168] sm:$0xff]   ;;  %v3172_v32 = vld [vmem:[%s3281_s23 + $0x170] sm:$0xff]  }
  0x1b   : > { %2987 = vmatmul.mubr.msk.bf16.gmra.mrb[4].mxu0 %vm657_vm0, %v3149_v9  ;;  %v3173_v33 = vld [vmem:[%s3281_s23 + $0x78] sm:$0xff]   ;;  %v3175_v35 = vld [vmem:[%s3281_s23 + $0x80] sm:$0xff]   ;;  %v3177_v37 = vld [vmem:[%s3281_s23 + $0x88] sm:$0xff]  }
  0x1c   : > { %3051 = vmatmul.mubr.msk.bf16.gmra.mrb[4].mxu1 %vm657_vm0, %v3150_v10  ;;  %2990 = vmatprep.mubr.msk.bf16.mxu0 %vm657_vm0, %v3151_v11  ;;  %v3174_v34 = vld [vmem:[%s3281_s23 + $0x178] sm:$0xff]   ;;  %v3176_v36 = vld [vmem:[%s3281_s23 + $0x180] sm:$0xff]   ;;  %v3178_v38 = vld [vmem:[%s3281_s23 + $0x188] sm:$0xff]  }
  0x1d   : > { %3054 = vmatprep.mubr.msk.bf16.mxu1 %vm657_vm0, %v3152_v12  ;;  %v3179_v39 = vld [vmem:[%s3281_s23 + $0x90] sm:$0xff]   ;;  %v3181_v41 = vld [vmem:[%s3281_s23 + $0x98] sm:$0xff]   ;;  %v3183_v43 = vld [vmem:[%s3281_s23 + $0xa0] sm:$0xff]  }
  0x1e   : > { %v3180_v40 = vld [vmem:[%s3281_s23 + $0x190] sm:$0xff]   ;;  %v3182_v42 = vld [vmem:[%s3281_s23 + $0x198] sm:$0xff]   ;;  %v3184_v44 = vld [vmem:[%s3281_s23 + $0x1a0] sm:$0xff]  }
  0x1f   : > { %v3185_v45 = vld [vmem:[%s3281_s23 + $0xa8] sm:$0xff]   ;;  %v3187_v47 = vld [vmem:[%s3281_s23 + $0xb0] sm:$0xff]   ;;  %v3189_v49 = vld [vmem:[%s3281_s23 + $0xb8] sm:$0xff]  }
  0x20   : > { %v3186_v46 = vld [vmem:[%s3281_s23 + $0x1a8] sm:$0xff]   ;;  %v3188_v48 = vld [vmem:[%s3281_s23 + $0x1b0] sm:$0xff]   ;;  %v3190_v50 = vld [vmem:[%s3281_s23 + $0x1b8] sm:$0xff]  }
  0x21   : > { %v3191_v51 = vld [vmem:[%s3281_s23 + $0xc0] sm:$0xff]   ;;  %v3193_v53 = vld [vmem:[%s3281_s23 + $0xc8] sm:$0xff]   ;;  %v3195_v55 = vld [vmem:[%s3281_s23 + $0xd0] sm:$0xff]  }
  0x22   : > { %v3192_v52 = vld [vmem:[%s3281_s23 + $0x1c0] sm:$0xff]   ;;  %v3194_v54 = vld [vmem:[%s3281_s23 + $0x1c8] sm:$0xff]   ;;  %v3196_v56 = vld [vmem:[%s3281_s23 + $0x1d0] sm:$0xff]  }
  0x23   : > { %2991 = vmatmul.mubr.msk.bf16.gmra.mrb[8].mxu0 %vm657_vm0, %v3153_v13  ;;  %v3197_v57 = vld [vmem:[%s3281_s23 + $0xd8] sm:$0xff]   ;;  %v3199_v59 = vld [vmem:[%s3281_s23 + $0xe0] sm:$0xff]   ;;  %v3201_v61 = vld [vmem:[%s3281_s23 + $0xe8] sm:$0xff]  }
  0x24   : > { %3055 = vmatmul.mubr.msk.bf16.gmra.mrb[8].mxu1 %vm657_vm0, %v3154_v14  ;;  %2994 = vmatprep.mubr.msk.bf16.mxu0 %vm657_vm0, %v3155_v15  ;;  %v3198_v58 = vld [vmem:[%s3281_s23 + $0x1d8] sm:$0xff]   ;;  %v3200_v60 = vld [vmem:[%s3281_s23 + $0x1e0] sm:$0xff]   ;;  %v3202_v62 = vld [vmem:[%s3281_s23 + $0x1e8] sm:$0xff]  }
  0x25   : > { %3058 = vmatprep.mubr.msk.bf16.mxu1 %vm657_vm0, %v3156_v16  ;;  %v3203_v63 = vld [vmem:[%s3281_s23 + $0xf0] sm:$0xff]   ;;  %v3205_v1 = vld [vmem:[%s3281_s23 + $0xf8] sm:$0xff]  }
  0x26   : > { %v3204_v0 = vld [vmem:[%s3281_s23 + $0x1f0] sm:$0xff]   ;;  %v3206_v2 = vld [vmem:[%s3281_s23 + $0x1f8] sm:$0xff]  }
  0x2b   : > { %2995 = vmatmul.mubr.msk.bf16.gmra.mrb[12].mxu0 %vm657_vm0, %v3157_v17 }
  0x2c   : > { %3059 = vmatmul.mubr.msk.bf16.gmra.mrb[12].mxu1 %vm657_vm0, %v3158_v18  ;;  %2998 = vmatprep.mubr.msk.bf16.mxu0 %vm657_vm0, %v3159_v19 }
  0x2d   : > { %3062 = vmatprep.mubr.msk.bf16.mxu1 %vm657_vm0, %v3160_v20 }
  0x33   : > { %2999 = vmatmul.mubr.msk.bf16.gmra.mrb[16].mxu0 %vm657_vm0, %v3161_v21 }
  0x34   : > { %3063 = vmatmul.mubr.msk.bf16.gmra.mrb[16].mxu1 %vm657_vm0, %v3162_v22  ;;  %3002 = vmatprep.mubr.msk.bf16.mxu0 %vm657_vm0, %v3163_v23 }
  0x35   : > { %3066 = vmatprep.mubr.msk.bf16.mxu1 %vm657_vm0, %v3164_v24 }
  0x3b   : > { %3003 = vmatmul.mubr.msk.bf16.gmra.mrb[20].mxu0 %vm657_vm0, %v3165_v25 }
  0x3c   : > { %3067 = vmatmul.mubr.msk.bf16.gmra.mrb[20].mxu1 %vm657_vm0, %v3166_v26  ;;  %3006 = vmatprep.mubr.msk.bf16.mxu0 %vm657_vm0, %v3167_v27 }
  0x3d   : > { %3070 = vmatprep.mubr.msk.bf16.mxu1 %vm657_vm0, %v3168_v28 }
  0x43   : > { %3007 = vmatmul.mubr.msk.bf16.gmra.mrb[24].mxu0 %vm657_vm0, %v3169_v29 }
  0x44   : > { %3071 = vmatmul.mubr.msk.bf16.gmra.mrb[24].mxu1 %vm657_vm0, %v3170_v30  ;;  %3010 = vmatprep.mubr.msk.bf16.mxu0 %vm657_vm0, %v3171_v31 }
  0x45   : > { %3074 = vmatprep.mubr.msk.bf16.mxu1 %vm657_vm0, %v3172_v32 }
  0x4b   : > { %3011 = vmatmul.mubr.msk.bf16.gmra.mrb[28].mxu0 %vm657_vm0, %v3173_v33 }
  0x4c   : > { %3075 = vmatmul.mubr.msk.bf16.gmra.mrb[28].mxu1 %vm657_vm0, %v3174_v34  ;;  %3014 = vmatprep.mubr.msk.bf16.mxu0 %vm657_vm0, %v3175_v35 }
  0x4d   : > { %3078 = vmatprep.mubr.msk.bf16.mxu1 %vm657_vm0, %v3176_v36 }
  0x53   : > { %3015 = vmatmul.mubr.msk.bf16.gmra.mrb[32].mxu0 %vm657_vm0, %v3177_v37 }
  0x54   : > { %3079 = vmatmul.mubr.msk.bf16.gmra.mrb[32].mxu1 %vm657_vm0, %v3178_v38  ;;  %3018 = vmatprep.mubr.msk.bf16.mxu0 %vm657_vm0, %v3179_v39 }
  0x55   : > { %3082 = vmatprep.mubr.msk.bf16.mxu1 %vm657_vm0, %v3180_v40 }
  0x5b   : > { %3019 = vmatmul.mubr.msk.bf16.gmra.mrb[36].mxu0 %vm657_vm0, %v3181_v41 }
  0x5c   : > { %3083 = vmatmul.mubr.msk.bf16.gmra.mrb[36].mxu1 %vm657_vm0, %v3182_v42  ;;  %3022 = vmatprep.mubr.msk.bf16.mxu0 %vm657_vm0, %v3183_v43 }
  0x5d   : > { %3086 = vmatprep.mubr.msk.bf16.mxu1 %vm657_vm0, %v3184_v44 }
  0x63   : > { %3023 = vmatmul.mubr.msk.bf16.gmra.mrb[40].mxu0 %vm657_vm0, %v3185_v45 }
  0x64   : > { %3087 = vmatmul.mubr.msk.bf16.gmra.mrb[40].mxu1 %vm657_vm0, %v3186_v46  ;;  %3026 = vmatprep.mubr.msk.bf16.mxu0 %vm657_vm0, %v3187_v47 }
  0x65   : > { %3090 = vmatprep.mubr.msk.bf16.mxu1 %vm657_vm0, %v3188_v48 }
  0x6b   : > { %3027 = vmatmul.mubr.msk.bf16.gmra.mrb[44].mxu0 %vm657_vm0, %v3189_v49 }
  0x6c   : > { %3091 = vmatmul.mubr.msk.bf16.gmra.mrb[44].mxu1 %vm657_vm0, %v3190_v50  ;;  %3030 = vmatprep.mubr.msk.bf16.mxu0 %vm657_vm0, %v3191_v51 }
  0x6d   : > { %3094 = vmatprep.mubr.msk.bf16.mxu1 %vm657_vm0, %v3192_v52 }
  0x73   : > { %3031 = vmatmul.mubr.msk.bf16.gmra.mrb[48].mxu0 %vm657_vm0, %v3193_v53 }
  0x74   : > { %3095 = vmatmul.mubr.msk.bf16.gmra.mrb[48].mxu1 %vm657_vm0, %v3194_v54  ;;  %3034 = vmatprep.mubr.msk.bf16.mxu0 %vm657_vm0, %v3195_v55 }
  0x75   : > { %3098 = vmatprep.mubr.msk.bf16.mxu1 %vm657_vm0, %v3196_v56 }
  0x7b   : > { %3035 = vmatmul.mubr.msk.bf16.gmra.mrb[52].mxu0 %vm657_vm0, %v3197_v57 }
  0x7c   : > { %3099 = vmatmul.mubr.msk.bf16.gmra.mrb[52].mxu1 %vm657_vm0, %v3198_v58  ;;  %3038 = vmatprep.mubr.msk.bf16.mxu0 %vm657_vm0, %v3199_v59 }
  0x7d   : > { %3102 = vmatprep.mubr.msk.bf16.mxu1 %vm657_vm0, %v3200_v60 }
  0x83   : > { %3039 = vmatmul.mubr.msk.bf16.gmra.mrb[56].mxu0 %vm657_vm0, %v3201_v61 }
  0x84   : > { %3103 = vmatmul.mubr.msk.bf16.gmra.mrb[56].mxu1 %vm657_vm0, %v3202_v62  ;;  %3042 = vmatprep.mubr.msk.bf16.mxu0 %vm657_vm0, %v3203_v63 }
  0x85   : > { %3106 = vmatprep.mubr.msk.bf16.mxu1 %vm657_vm0, %v3204_v0 }
  0x8b   : > { %3043 = vmatmul.mubr.msk.bf16.gmra.mrb[60].mxu0 %vm657_vm0, %v3205_v1 }
  0x8c   : > { %3107 = vmatmul.mubr.msk.bf16.gmra.mrb[60].mxu1 %vm657_vm0, %v3206_v2 }
  0xe6   : > { %v2984_v3 = vpop.f32.mrb[0].mxu0 }
  0xe7   : > { %v3048_v4 = vpop.f32.mrb[0].mxu1  ;;  %vm1397_vm1 = vcmp.gt.f32.partialorder %v2984_v3, 0.0  ;;  %v1525_v5 = vmul.f32 0.2, %v2984_v3  ;;  %v884_v7 = vpop.f32.mrb[1].mxu0 }
  0xe8   : > { %vm1461_vm2 = vcmp.gt.f32.partialorder %v3048_v4, 0.0  ;;  %v1589_v6 = vmul.f32 0.2, %v3048_v4  ;;  %v1140_v8 = vpop.f32.mrb[1].mxu1  ;;  %vm1395_vm4 = vcmp.gt.f32.partialorder %v884_v7, 0.0  ;;  %v2985_v12 = vpop.f32.mrb[2].mxu0 }
  0xe9   : > { %v1653_v9 = vsel %vm1397_vm1, %v2984_v3, %v1525_v5  ;;  %v1523_v11 = vmul.f32 0.2, %v884_v7  ;;  %v3049_v13 = vpop.f32.mrb[2].mxu1  ;;  %vm1459_vm5 = vcmp.gt.f32.partialorder %v1140_v8, 0.0  ;;  %v1587_v16 = vmul.f32 0.2, %v1140_v8 }
  0xea   : > { %v1717_v10 = vsel %vm1461_vm2, %v3048_v4, %v1589_v6  ;;  %v2783_v14 = vpack.c.bf16 %v1653_v9, %v1653_v9  ;;  %v887_v17 = vpop.f32.mrb[3].mxu0  ;;  %v1143_v18 = vpop.f32.mrb[3].mxu1  ;;  %vm1398_vm6 = vcmp.gt.f32.partialorder %v2985_v12, 0.0  ;;  %v1526_v20 = vmul.f32 0.2, %v2985_v12 }
  0xeb   : > { %v2847_v15 = vpack.c.bf16 %v1717_v10, %v1717_v10  ;;  %v1651_v19 = vsel %vm1395_vm4, %v884_v7, %v1523_v11  ;;  %vm1462_vm7 = vcmp.gt.f32.partialorder %v3049_v13, 0.0  ;;  %v1715_v22 = vsel %vm1459_vm5, %v1140_v8, %v1587_v16 }
  0xec   : > { %2294 = vst.msk [vmem:[%s3416_s26 + $0x8] sm:$0xf] %vm2291_vm3, %v2783_v14  ;;  %v2781_v21 = vpack.c.bf16 %v1651_v19, %v1651_v19  ;;  %v1590_v23 = vmul.f32 0.2, %v3049_v13  ;;  %vm1396_vm8 = vcmp.gt.f32.partialorder %v887_v17, 0.0  ;;  %v2845_v24 = vpack.c.bf16 %v1715_v22, %v1715_v22 }
  0xed   : > { %2358 = vst.msk [vmem:[%s3416_s26 + $0x108] sm:$0xf] %vm2291_vm3, %v2847_v15  ;;  %v1654_v25 = vsel %vm1398_vm6, %v2985_v12, %v1526_v20  ;;  %v1524_v26 = vmul.f32 0.2, %v887_v17  ;;  %vm1460_vm9 = vcmp.gt.f32.partialorder %v1143_v18, 0.0 }
  0xee   : > { %2292 = vst.msk [vmem:[%s3416_s26] sm:$0xf] %vm2291_vm3, %v2781_v21  ;;  %v2784_v27 = vpack.c.bf16 %v1654_v25, %v1654_v25  ;;  %v1718_v28 = vsel %vm1462_vm7, %v3049_v13, %v1590_v23  ;;  %v1588_v29 = vmul.f32 0.2, %v1143_v18  ;;  %v2988_v30 = vpop.f32.mrb[4].mxu0 }
  0xef   : > { %v3052_v31 = vpop.f32.mrb[4].mxu1  ;;  %2356 = vst.msk [vmem:[%s3416_s26 + $0x100] sm:$0xf] %vm2291_vm3, %v2845_v24  ;;  %v2848_v32 = vpack.c.bf16 %v1718_v28, %v1718_v28  ;;  %v1652_v33 = vsel %vm1396_vm8, %v887_v17, %v1524_v26  ;;  %vm1401_vm10 = vcmp.gt.f32.partialorder %v2988_v30, 0.0  ;;  %v1529_v34 = vmul.f32 0.2, %v2988_v30 }
  0xf0   : > { %v900_v35 = vpop.f32.mrb[5].mxu0  ;;  %v1156_v36 = vpop.f32.mrb[5].mxu1  ;;  %2295 = vst.msk [vmem:[%s3416_s26 + $0xc] sm:$0xf] %vm2291_vm3, %v2784_v27  ;;  %v2782_v37 = vpack.c.bf16 %v1652_v33, %v1652_v33  ;;  %v1716_v38 = vsel %vm1460_vm9, %v1143_v18, %v1588_v29  ;;  %vm1465_vm11 = vcmp.gt.f32.partialorder %v3052_v31, 0.0 }
  0xf1   : > { %v1593_v39 = vmul.f32 0.2, %v3052_v31  ;;  %v2989_v40 = vpop.f32.mrb[6].mxu0  ;;  %v3053_v41 = vpop.f32.mrb[6].mxu1  ;;  %2359 = vst.msk [vmem:[%s3416_s26 + $0x10c] sm:$0xf] %vm2291_vm3, %v2848_v32  ;;  %v2846_v42 = vpack.c.bf16 %v1716_v38, %v1716_v38  ;;  %v1657_v43 = vsel %vm1401_vm10, %v2988_v30, %v1529_v34 }
  0xf2   : > { %vm1399_vm12 = vcmp.gt.f32.partialorder %v900_v35, 0.0  ;;  %v1527_v44 = vmul.f32 0.2, %v900_v35  ;;  %v903_v45 = vpop.f32.mrb[7].mxu0  ;;  %v1159_v46 = vpop.f32.mrb[7].mxu1  ;;  %v2787_v47 = vpack.c.bf16 %v1657_v43, %v1657_v43  ;;  %vm1463_vm13 = vcmp.gt.f32.partialorder %v1156_v36, 0.0 }
  0xf3   : > { %2293 = vst.msk [vmem:[%s3416_s26 + $0x4] sm:$0xf] %vm2291_vm3, %v2782_v37  ;;  %v1721_v48 = vsel %vm1465_vm11, %v3052_v31, %v1593_v39  ;;  %v1591_v49 = vmul.f32 0.2, %v1156_v36  ;;  %2357 = vst.msk [vmem:[%s3416_s26 + $0x104] sm:$0xf] %vm2291_vm3, %v2846_v42 }
  0xf4   : > { %v2851_v50 = vpack.c.bf16 %v1721_v48, %v1721_v48  ;;  %v1655_v51 = vsel %vm1399_vm12, %v900_v35, %v1527_v44  ;;  %vm1402_vm14 = vcmp.gt.f32.partialorder %v2989_v40, 0.0  ;;  %v1530_v52 = vmul.f32 0.2, %v2989_v40  ;;  %2298 = vst.msk [vmem:[%s3416_s26 + $0x18] sm:$0xf] %vm2291_vm3, %v2787_v47 }
  0xf5   : > { %v2785_v53 = vpack.c.bf16 %v1655_v51, %v1655_v51  ;;  %v1719_v54 = vsel %vm1463_vm13, %v1156_v36, %v1591_v49  ;;  %vm1466_vm15 = vcmp.gt.f32.partialorder %v3053_v41, 0.0  ;;  %v1594_v55 = vmul.f32 0.2, %v3053_v41 }
  0xf6   : > { %2362 = vst.msk [vmem:[%s3416_s26 + $0x118] sm:$0xf] %vm2291_vm3, %v2851_v50  ;;  %v2849_v56 = vpack.c.bf16 %v1719_v54, %v1719_v54  ;;  %v1658_v57 = vsel %vm1402_vm14, %v2989_v40, %v1530_v52  ;;  %vm1400_vm0 = vcmp.gt.f32.partialorder %v903_v45, 0.0  ;;  %v1528_v58 = vmul.f32 0.2, %v903_v45  ;;  %v2992_v62 = vpop.f32.mrb[8].mxu0 }
  0xf7   : > { %2296 = vst.msk [vmem:[%s3416_s26 + $0x10] sm:$0xf] %vm2291_vm3, %v2785_v53  ;;  %v2788_v59 = vpack.c.bf16 %v1658_v57, %v1658_v57  ;;  %v1722_v60 = vsel %vm1466_vm15, %v3053_v41, %v1594_v55  ;;  %vm1464_vm1 = vcmp.gt.f32.partialorder %v1159_v46, 0.0  ;;  %v1592_v61 = vmul.f32 0.2, %v1159_v46  ;;  %v3056_v63 = vpop.f32.mrb[8].mxu1 }
  0xf8   : > { %2360 = vst.msk [vmem:[%s3416_s26 + $0x110] sm:$0xf] %vm2291_vm3, %v2849_v56  ;;  %v2852_v0 = vpack.c.bf16 %v1722_v60, %v1722_v60  ;;  %v1656_v1 = vsel %vm1400_vm0, %v903_v45, %v1528_v58  ;;  %vm1405_vm2 = vcmp.gt.f32.partialorder %v2992_v62, 0.0  ;;  %v1533_v2 = vmul.f32 0.2, %v2992_v62  ;;  %v916_v3 = vpop.f32.mrb[9].mxu0 }
  0xf9   : > { %v1172_v4 = vpop.f32.mrb[9].mxu1  ;;  %2299 = vst.msk [vmem:[%s3416_s26 + $0x1c] sm:$0xf] %vm2291_vm3, %v2788_v59  ;;  %v2786_v5 = vpack.c.bf16 %v1656_v1, %v1656_v1  ;;  %v1720_v6 = vsel %vm1464_vm1, %v1159_v46, %v1592_v61  ;;  %vm1469_vm4 = vcmp.gt.f32.partialorder %v3056_v63, 0.0  ;;  %v1597_v7 = vmul.f32 0.2, %v3056_v63 }
  0xfa   : > { %v2993_v8 = vpop.f32.mrb[10].mxu0  ;;  %v3057_v9 = vpop.f32.mrb[10].mxu1  ;;  %2363 = vst.msk [vmem:[%s3416_s26 + $0x11c] sm:$0xf] %vm2291_vm3, %v2852_v0  ;;  %v2850_v10 = vpack.c.bf16 %v1720_v6, %v1720_v6  ;;  %v1661_v11 = vsel %vm1405_vm2, %v2992_v62, %v1533_v2  ;;  %vm1403_vm5 = vcmp.gt.f32.partialorder %v916_v3, 0.0  ;;  %vm1467_vm6 = vcmp.gt.f32.partialorder %v1172_v4, 0.0 }
  0xfb   : > { %v1531_v12 = vmul.f32 0.2, %v916_v3  ;;  %v919_v13 = vpop.f32.mrb[11].mxu0  ;;  %v1175_v14 = vpop.f32.mrb[11].mxu1  ;;  %2297 = vst.msk [vmem:[%s3416_s26 + $0x14] sm:$0xf] %vm2291_vm3, %v2786_v5  ;;  %v2791_v15 = vpack.c.bf16 %v1661_v11, %v1661_v11  ;;  %v1725_v16 = vsel %vm1469_vm4, %v3056_v63, %v1597_v7 }
  0xfc   : > { %v1595_v17 = vmul.f32 0.2, %v1172_v4  ;;  %2361 = vst.msk [vmem:[%s3416_s26 + $0x114] sm:$0xf] %vm2291_vm3, %v2850_v10  ;;  %v2855_v18 = vpack.c.bf16 %v1725_v16, %v1725_v16  ;;  %vm1406_vm7 = vcmp.gt.f32.partialorder %v2993_v8, 0.0  ;;  %vm1470_vm8 = vcmp.gt.f32.partialorder %v3057_v9, 0.0 }
  0xfd   : > { %v1659_v19 = vsel %vm1403_vm5, %v916_v3, %v1531_v12  ;;  %v1534_v20 = vmul.f32 0.2, %v2993_v8  ;;  %2302 = vst.msk [vmem:[%s3416_s26 + $0x28] sm:$0xf] %vm2291_vm3, %v2791_v15  ;;  %v1598_v23 = vmul.f32 0.2, %v3057_v9 }
  0xfe   : > { %v2789_v21 = vpack.c.bf16 %v1659_v19, %v1659_v19  ;;  %v1723_v22 = vsel %vm1467_vm6, %v1172_v4, %v1595_v17  ;;  %2366 = vst.msk [vmem:[%s3416_s26 + $0x128] sm:$0xf] %vm2291_vm3, %v2855_v18  ;;  %vm1404_vm9 = vcmp.gt.f32.partialorder %v919_v13, 0.0  ;;  %v1532_v26 = vmul.f32 0.2, %v919_v13  ;;  %v2996_v30 = vpop.f32.mrb[12].mxu0 }
  0xff   : > { %v2853_v24 = vpack.c.bf16 %v1723_v22, %v1723_v22  ;;  %v1662_v25 = vsel %vm1406_vm7, %v2993_v8, %v1534_v20  ;;  %v1726_v28 = vsel %vm1470_vm8, %v3057_v9, %v1598_v23  ;;  %vm1468_vm10 = vcmp.gt.f32.partialorder %v1175_v14, 0.0  ;;  %v3060_v31 = vpop.f32.mrb[12].mxu1  ;;  %v932_v35 = vpop.f32.mrb[13].mxu0 }
 0x100   : > { %2300 = vst.msk [vmem:[%s3416_s26 + $0x20] sm:$0xf] %vm2291_vm3, %v2789_v21  ;;  %v2792_v27 = vpack.c.bf16 %v1662_v25, %v1662_v25  ;;  %v1596_v29 = vmul.f32 0.2, %v1175_v14  ;;  %v2856_v32 = vpack.c.bf16 %v1726_v28, %v1726_v28  ;;  %v1660_v33 = vsel %vm1404_vm9, %v919_v13, %v1532_v26  ;;  %v1188_v36 = vpop.f32.mrb[13].mxu1  ;;  %v2997_v40 = vpop.f32.mrb[14].mxu0 }
 0x101   : > { %2364 = vst.msk [vmem:[%s3416_s26 + $0x120] sm:$0xf] %vm2291_vm3, %v2853_v24  ;;  %vm1409_vm11 = vcmp.gt.f32.partialorder %v2996_v30, 0.0  ;;  %v1537_v34 = vmul.f32 0.2, %v2996_v30  ;;  %v2790_v37 = vpack.c.bf16 %v1660_v33, %v1660_v33  ;;  %vm1473_vm12 = vcmp.gt.f32.partialorder %v3060_v31, 0.0 }
 0x102   : > { %2303 = vst.msk [vmem:[%s3416_s26 + $0x2c] sm:$0xf] %vm2291_vm3, %v2792_v27  ;;  %v1724_v38 = vsel %vm1468_vm10, %v1175_v14, %v1596_v29  ;;  %v1601_v39 = vmul.f32 0.2, %v3060_v31  ;;  %v3061_v41 = vpop.f32.mrb[14].mxu1  ;;  %vm1407_vm13 = vcmp.gt.f32.partialorder %v932_v35, 0.0 }
 0x103   : > { %2367 = vst.msk [vmem:[%s3416_s26 + $0x12c] sm:$0xf] %vm2291_vm3, %v2856_v32  ;;  %v2854_v42 = vpack.c.bf16 %v1724_v38, %v1724_v38  ;;  %v1665_v43 = vsel %vm1409_vm11, %v2996_v30, %v1537_v34  ;;  %v1535_v44 = vmul.f32 0.2, %v932_v35  ;;  %v935_v45 = vpop.f32.mrb[15].mxu0  ;;  %v1191_v46 = vpop.f32.mrb[15].mxu1 }
 0x104   : > { %2301 = vst.msk [vmem:[%s3416_s26 + $0x24] sm:$0xf] %vm2291_vm3, %v2790_v37  ;;  %v2795_v47 = vpack.c.bf16 %v1665_v43, %v1665_v43  ;;  %v1729_v48 = vsel %vm1473_vm12, %v3060_v31, %v1601_v39  ;;  %vm1471_vm14 = vcmp.gt.f32.partialorder %v1188_v36, 0.0  ;;  %v1599_v49 = vmul.f32 0.2, %v1188_v36 }
 0x105   : > { %2365 = vst.msk [vmem:[%s3416_s26 + $0x124] sm:$0xf] %vm2291_vm3, %v2854_v42  ;;  %v2859_v50 = vpack.c.bf16 %v1729_v48, %v1729_v48  ;;  %v1663_v51 = vsel %vm1407_vm13, %v932_v35, %v1535_v44  ;;  %vm1410_vm15 = vcmp.gt.f32.partialorder %v2997_v40, 0.0  ;;  %v1538_v52 = vmul.f32 0.2, %v2997_v40 }
 0x106   : > { %2306 = vst.msk [vmem:[%s3416_s26 + $0x38] sm:$0xf] %vm2291_vm3, %v2795_v47  ;;  %v2793_v53 = vpack.c.bf16 %v1663_v51, %v1663_v51  ;;  %v1727_v54 = vsel %vm1471_vm14, %v1188_v36, %v1599_v49  ;;  %vm1474_vm0 = vcmp.gt.f32.partialorder %v3061_v41, 0.0  ;;  %v1602_v55 = vmul.f32 0.2, %v3061_v41  ;;  %v3000_v62 = vpop.f32.mrb[16].mxu0 }
 0x107   : > { %2370 = vst.msk [vmem:[%s3416_s26 + $0x138] sm:$0xf] %vm2291_vm3, %v2859_v50  ;;  %v2857_v56 = vpack.c.bf16 %v1727_v54, %v1727_v54  ;;  %v1666_v57 = vsel %vm1410_vm15, %v2997_v40, %v1538_v52  ;;  %vm1408_vm1 = vcmp.gt.f32.partialorder %v935_v45, 0.0  ;;  %v1536_v58 = vmul.f32 0.2, %v935_v45  ;;  %v3064_v63 = vpop.f32.mrb[16].mxu1 }
 0x108   : > { %2304 = vst.msk [vmem:[%s3416_s26 + $0x30] sm:$0xf] %vm2291_vm3, %v2793_v53  ;;  %v2796_v59 = vpack.c.bf16 %v1666_v57, %v1666_v57  ;;  %v1730_v60 = vsel %vm1474_vm0, %v3061_v41, %v1602_v55  ;;  %vm1472_vm2 = vcmp.gt.f32.partialorder %v1191_v46, 0.0  ;;  %v1600_v61 = vmul.f32 0.2, %v1191_v46  ;;  %v948_v3 = vpop.f32.mrb[17].mxu0 }
 0x109   : > { %2368 = vst.msk [vmem:[%s3416_s26 + $0x130] sm:$0xf] %vm2291_vm3, %v2857_v56  ;;  %v2860_v0 = vpack.c.bf16 %v1730_v60, %v1730_v60  ;;  %v1664_v1 = vsel %vm1408_vm1, %v935_v45, %v1536_v58  ;;  %vm1413_vm4 = vcmp.gt.f32.partialorder %v3000_v62, 0.0  ;;  %v1541_v2 = vmul.f32 0.2, %v3000_v62  ;;  %v1204_v4 = vpop.f32.mrb[17].mxu1 }
 0x10a   : > { %2307 = vst.msk [vmem:[%s3416_s26 + $0x3c] sm:$0xf] %vm2291_vm3, %v2796_v59  ;;  %v2794_v5 = vpack.c.bf16 %v1664_v1, %v1664_v1  ;;  %v1728_v6 = vsel %vm1472_vm2, %v1191_v46, %v1600_v61  ;;  %vm1477_vm5 = vcmp.gt.f32.partialorder %v3064_v63, 0.0  ;;  %v1605_v7 = vmul.f32 0.2, %v3064_v63  ;;  %v3001_v8 = vpop.f32.mrb[18].mxu0 }
 0x10b   : > { %v3065_v9 = vpop.f32.mrb[18].mxu1  ;;  %2371 = vst.msk [vmem:[%s3416_s26 + $0x13c] sm:$0xf] %vm2291_vm3, %v2860_v0  ;;  %v2858_v10 = vpack.c.bf16 %v1728_v6, %v1728_v6  ;;  %v1669_v11 = vsel %vm1413_vm4, %v3000_v62, %v1541_v2  ;;  %vm1411_vm6 = vcmp.gt.f32.partialorder %v948_v3, 0.0  ;;  %v1539_v12 = vmul.f32 0.2, %v948_v3 }
 0x10c   : > { %v951_v13 = vpop.f32.mrb[19].mxu0  ;;  %v1207_v14 = vpop.f32.mrb[19].mxu1  ;;  %2305 = vst.msk [vmem:[%s3416_s26 + $0x34] sm:$0xf] %vm2291_vm3, %v2794_v5  ;;  %v2799_v15 = vpack.c.bf16 %v1669_v11, %v1669_v11  ;;  %v1733_v16 = vsel %vm1477_vm5, %v3064_v63, %v1605_v7  ;;  %vm1475_vm7 = vcmp.gt.f32.partialorder %v1204_v4, 0.0  ;;  %vm1414_vm8 = vcmp.gt.f32.partialorder %v3001_v8, 0.0 }
 0x10d   : > { %v1603_v17 = vmul.f32 0.2, %v1204_v4  ;;  %2369 = vst.msk [vmem:[%s3416_s26 + $0x134] sm:$0xf] %vm2291_vm3, %v2858_v10  ;;  %v2863_v18 = vpack.c.bf16 %v1733_v16, %v1733_v16  ;;  %v1667_v19 = vsel %vm1411_vm6, %v948_v3, %v1539_v12  ;;  %v1542_v20 = vmul.f32 0.2, %v3001_v8 }
 0x10e   : > { %2310 = vst.msk [vmem:[%s3416_s26 + $0x48] sm:$0xf] %vm2291_vm3, %v2799_v15  ;;  %v2797_v21 = vpack.c.bf16 %v1667_v19, %v1667_v19  ;;  %vm1478_vm9 = vcmp.gt.f32.partialorder %v3065_v9, 0.0  ;;  %v1606_v23 = vmul.f32 0.2, %v3065_v9  ;;  %vm1412_vm10 = vcmp.gt.f32.partialorder %v951_v13, 0.0 }
 0x10f   : > { %v1731_v22 = vsel %vm1475_vm7, %v1204_v4, %v1603_v17  ;;  %2374 = vst.msk [vmem:[%s3416_s26 + $0x148] sm:$0xf] %vm2291_vm3, %v2863_v18  ;;  %v1670_v25 = vsel %vm1414_vm8, %v3001_v8, %v1542_v20  ;;  %v1540_v26 = vmul.f32 0.2, %v951_v13  ;;  %vm1476_vm11 = vcmp.gt.f32.partialorder %v1207_v14, 0.0  ;;  %v3004_v30 = vpop.f32.mrb[20].mxu0 }
 0x110   : > { %v2861_v24 = vpack.c.bf16 %v1731_v22, %v1731_v22  ;;  %2308 = vst.msk [vmem:[%s3416_s26 + $0x40] sm:$0xf] %vm2291_vm3, %v2797_v21  ;;  %v2800_v27 = vpack.c.bf16 %v1670_v25, %v1670_v25  ;;  %v1734_v28 = vsel %vm1478_vm9, %v3065_v9, %v1606_v23  ;;  %v1604_v29 = vmul.f32 0.2, %v1207_v14  ;;  %v3068_v31 = vpop.f32.mrb[20].mxu1  ;;  %v964_v35 = vpop.f32.mrb[21].mxu0 }
 0x111   : > { %v2864_v32 = vpack.c.bf16 %v1734_v28, %v1734_v28  ;;  %v1668_v33 = vsel %vm1412_vm10, %v951_v13, %v1540_v26  ;;  %vm1417_vm12 = vcmp.gt.f32.partialorder %v3004_v30, 0.0  ;;  %v1545_v34 = vmul.f32 0.2, %v3004_v30  ;;  %v1220_v36 = vpop.f32.mrb[21].mxu1  ;;  %v3005_v40 = vpop.f32.mrb[22].mxu0 }
 0x112   : > { %2372 = vst.msk [vmem:[%s3416_s26 + $0x140] sm:$0xf] %vm2291_vm3, %v2861_v24  ;;  %2311 = vst.msk [vmem:[%s3416_s26 + $0x4c] sm:$0xf] %vm2291_vm3, %v2800_v27  ;;  %v2798_v37 = vpack.c.bf16 %v1668_v33, %v1668_v33  ;;  %v1732_v38 = vsel %vm1476_vm11, %v1207_v14, %v1604_v29  ;;  %vm1481_vm13 = vcmp.gt.f32.partialorder %v3068_v31, 0.0  ;;  %v3069_v41 = vpop.f32.mrb[22].mxu1 }
 0x113   : > { %v1609_v39 = vmul.f32 0.2, %v3068_v31  ;;  %2375 = vst.msk [vmem:[%s3416_s26 + $0x14c] sm:$0xf] %vm2291_vm3, %v2864_v32  ;;  %v2862_v42 = vpack.c.bf16 %v1732_v38, %v1732_v38  ;;  %v1673_v43 = vsel %vm1417_vm12, %v3004_v30, %v1545_v34  ;;  %vm1415_vm14 = vcmp.gt.f32.partialorder %v964_v35, 0.0  ;;  %v967_v45 = vpop.f32.mrb[23].mxu0 }
 0x114   : > { %v1543_v44 = vmul.f32 0.2, %v964_v35  ;;  %v1223_v46 = vpop.f32.mrb[23].mxu1  ;;  %2309 = vst.msk [vmem:[%s3416_s26 + $0x44] sm:$0xf] %vm2291_vm3, %v2798_v37  ;;  %v2803_v47 = vpack.c.bf16 %v1673_v43, %v1673_v43  ;;  %vm1479_vm15 = vcmp.gt.f32.partialorder %v1220_v36, 0.0 }
 0x115   : > { %v1737_v48 = vsel %vm1481_vm13, %v3068_v31, %v1609_v39  ;;  %v1607_v49 = vmul.f32 0.2, %v1220_v36  ;;  %2373 = vst.msk [vmem:[%s3416_s26 + $0x144] sm:$0xf] %vm2291_vm3, %v2862_v42  ;;  %vm1418_vm0 = vcmp.gt.f32.partialorder %v3005_v40, 0.0  ;;  %vm1482_vm1 = vcmp.gt.f32.partialorder %v3069_v41, 0.0 }
 0x116   : > { %v2867_v50 = vpack.c.bf16 %v1737_v48, %v1737_v48  ;;  %v1671_v51 = vsel %vm1415_vm14, %v964_v35, %v1543_v44  ;;  %v1546_v52 = vmul.f32 0.2, %v3005_v40  ;;  %2314 = vst.msk [vmem:[%s3416_s26 + $0x58] sm:$0xf] %vm2291_vm3, %v2803_v47  ;;  %v1610_v55 = vmul.f32 0.2, %v3069_v41 }
 0x117   : > { %v2801_v53 = vpack.c.bf16 %v1671_v51, %v1671_v51  ;;  %v1735_v54 = vsel %vm1479_vm15, %v1220_v36, %v1607_v49  ;;  %vm1416_vm2 = vcmp.gt.f32.partialorder %v967_v45, 0.0  ;;  %v1544_v58 = vmul.f32 0.2, %v967_v45  ;;  %v3008_v62 = vpop.f32.mrb[24].mxu0  ;;  %v3072_v63 = vpop.f32.mrb[24].mxu1 }
 0x118   : > { %2378 = vst.msk [vmem:[%s3416_s26 + $0x158] sm:$0xf] %vm2291_vm3, %v2867_v50  ;;  %v2865_v56 = vpack.c.bf16 %v1735_v54, %v1735_v54  ;;  %v1674_v57 = vsel %vm1418_vm0, %v3005_v40, %v1546_v52  ;;  %v1738_v60 = vsel %vm1482_vm1, %v3069_v41, %v1610_v55  ;;  %vm1480_vm4 = vcmp.gt.f32.partialorder %v1223_v46, 0.0  ;;  %v980_v3 = vpop.f32.mrb[25].mxu0  ;;  %v1236_v4 = vpop.f32.mrb[25].mxu1 }
 0x119   : > { %2312 = vst.msk [vmem:[%s3416_s26 + $0x50] sm:$0xf] %vm2291_vm3, %v2801_v53  ;;  %v2804_v59 = vpack.c.bf16 %v1674_v57, %v1674_v57  ;;  %v1608_v61 = vmul.f32 0.2, %v1223_v46  ;;  %v2868_v0 = vpack.c.bf16 %v1738_v60, %v1738_v60  ;;  %v1672_v1 = vsel %vm1416_vm2, %v967_v45, %v1544_v58  ;;  %v3009_v8 = vpop.f32.mrb[26].mxu0  ;;  %v3073_v9 = vpop.f32.mrb[26].mxu1 }
 0x11a   : > { %2376 = vst.msk [vmem:[%s3416_s26 + $0x150] sm:$0xf] %vm2291_vm3, %v2865_v56  ;;  %vm1421_vm5 = vcmp.gt.f32.partialorder %v3008_v62, 0.0  ;;  %v1549_v2 = vmul.f32 0.2, %v3008_v62  ;;  %v2802_v5 = vpack.c.bf16 %v1672_v1, %v1672_v1  ;;  %vm1485_vm6 = vcmp.gt.f32.partialorder %v3072_v63, 0.0 }
 0x11b   : > { %2315 = vst.msk [vmem:[%s3416_s26 + $0x5c] sm:$0xf] %vm2291_vm3, %v2804_v59  ;;  %v1736_v6 = vsel %vm1480_vm4, %v1223_v46, %v1608_v61  ;;  %v1613_v7 = vmul.f32 0.2, %v3072_v63  ;;  %2379 = vst.msk [vmem:[%s3416_s26 + $0x15c] sm:$0xf] %vm2291_vm3, %v2868_v0 }
 0x11c   : > { %v2866_v10 = vpack.c.bf16 %v1736_v6, %v1736_v6  ;;  %v1677_v11 = vsel %vm1421_vm5, %v3008_v62, %v1549_v2  ;;  %vm1419_vm7 = vcmp.gt.f32.partialorder %v980_v3, 0.0  ;;  %v1547_v12 = vmul.f32 0.2, %v980_v3  ;;  %v983_v13 = vpop.f32.mrb[27].mxu0  ;;  %v1239_v14 = vpop.f32.mrb[27].mxu1 }
 0x11d   : > { %2313 = vst.msk [vmem:[%s3416_s26 + $0x54] sm:$0xf] %vm2291_vm3, %v2802_v5  ;;  %v2807_v15 = vpack.c.bf16 %v1677_v11, %v1677_v11  ;;  %v1741_v16 = vsel %vm1485_vm6, %v3072_v63, %v1613_v7  ;;  %vm1483_vm8 = vcmp.gt.f32.partialorder %v1236_v4, 0.0  ;;  %v1611_v17 = vmul.f32 0.2, %v1236_v4 }
 0x11e   : > { %2377 = vst.msk [vmem:[%s3416_s26 + $0x154] sm:$0xf] %vm2291_vm3, %v2866_v10  ;;  %v2871_v18 = vpack.c.bf16 %v1741_v16, %v1741_v16  ;;  %v1675_v19 = vsel %vm1419_vm7, %v980_v3, %v1547_v12  ;;  %vm1422_vm9 = vcmp.gt.f32.partialorder %v3009_v8, 0.0  ;;  %v1550_v20 = vmul.f32 0.2, %v3009_v8  ;;  %v3012_v30 = vpop.f32.mrb[28].mxu0 }
 0x11f   : > { %2318 = vst.msk [vmem:[%s3416_s26 + $0x68] sm:$0xf] %vm2291_vm3, %v2807_v15  ;;  %v2805_v21 = vpack.c.bf16 %v1675_v19, %v1675_v19  ;;  %v1739_v22 = vsel %vm1483_vm8, %v1236_v4, %v1611_v17  ;;  %vm1486_vm10 = vcmp.gt.f32.partialorder %v3073_v9, 0.0  ;;  %v1614_v23 = vmul.f32 0.2, %v3073_v9  ;;  %v3076_v31 = vpop.f32.mrb[28].mxu1 }
 0x120   : > { %2382 = vst.msk [vmem:[%s3416_s26 + $0x168] sm:$0xf] %vm2291_vm3, %v2871_v18  ;;  %v2869_v24 = vpack.c.bf16 %v1739_v22, %v1739_v22  ;;  %v1678_v25 = vsel %vm1422_vm9, %v3009_v8, %v1550_v20  ;;  %vm1420_vm11 = vcmp.gt.f32.partialorder %v983_v13, 0.0  ;;  %v1548_v26 = vmul.f32 0.2, %v983_v13  ;;  %v996_v35 = vpop.f32.mrb[29].mxu0 }
 0x121   : > { %2316 = vst.msk [vmem:[%s3416_s26 + $0x60] sm:$0xf] %vm2291_vm3, %v2805_v21  ;;  %v2808_v27 = vpack.c.bf16 %v1678_v25, %v1678_v25  ;;  %v1742_v28 = vsel %vm1486_vm10, %v3073_v9, %v1614_v23  ;;  %vm1484_vm12 = vcmp.gt.f32.partialorder %v1239_v14, 0.0  ;;  %v1612_v29 = vmul.f32 0.2, %v1239_v14  ;;  %v1252_v36 = vpop.f32.mrb[29].mxu1 }
 0x122   : > { %2380 = vst.msk [vmem:[%s3416_s26 + $0x160] sm:$0xf] %vm2291_vm3, %v2869_v24  ;;  %v2872_v32 = vpack.c.bf16 %v1742_v28, %v1742_v28  ;;  %v1676_v33 = vsel %vm1420_vm11, %v983_v13, %v1548_v26  ;;  %vm1425_vm13 = vcmp.gt.f32.partialorder %v3012_v30, 0.0  ;;  %v1553_v34 = vmul.f32 0.2, %v3012_v30  ;;  %v3013_v40 = vpop.f32.mrb[30].mxu0 }
 0x123   : > { %2319 = vst.msk [vmem:[%s3416_s26 + $0x6c] sm:$0xf] %vm2291_vm3, %v2808_v27  ;;  %v2806_v37 = vpack.c.bf16 %v1676_v33, %v1676_v33  ;;  %v1740_v38 = vsel %vm1484_vm12, %v1239_v14, %v1612_v29  ;;  %vm1489_vm14 = vcmp.gt.f32.partialorder %v3076_v31, 0.0  ;;  %v1617_v39 = vmul.f32 0.2, %v3076_v31  ;;  %v3077_v41 = vpop.f32.mrb[30].mxu1 }
 0x124   : > { %2383 = vst.msk [vmem:[%s3416_s26 + $0x16c] sm:$0xf] %vm2291_vm3, %v2872_v32  ;;  %v2870_v42 = vpack.c.bf16 %v1740_v38, %v1740_v38  ;;  %v1681_v43 = vsel %vm1425_vm13, %v3012_v30, %v1553_v34  ;;  %vm1423_vm15 = vcmp.gt.f32.partialorder %v996_v35, 0.0  ;;  %v1551_v44 = vmul.f32 0.2, %v996_v35  ;;  %v999_v45 = vpop.f32.mrb[31].mxu0 }
 0x125   : > { %v1255_v46 = vpop.f32.mrb[31].mxu1  ;;  %2317 = vst.msk [vmem:[%s3416_s26 + $0x64] sm:$0xf] %vm2291_vm3, %v2806_v37  ;;  %v2811_v47 = vpack.c.bf16 %v1681_v43, %v1681_v43  ;;  %v1745_v48 = vsel %vm1489_vm14, %v3076_v31, %v1617_v39  ;;  %vm1487_vm0 = vcmp.gt.f32.partialorder %v1252_v36, 0.0  ;;  %v1615_v49 = vmul.f32 0.2, %v1252_v36 }
 0x126   : > { %2381 = vst.msk [vmem:[%s3416_s26 + $0x164] sm:$0xf] %vm2291_vm3, %v2870_v42  ;;  %v2875_v50 = vpack.c.bf16 %v1745_v48, %v1745_v48  ;;  %v1679_v51 = vsel %vm1423_vm15, %v996_v35, %v1551_v44  ;;  %vm1426_vm1 = vcmp.gt.f32.partialorder %v3013_v40, 0.0  ;;  %v1554_v52 = vmul.f32 0.2, %v3013_v40  ;;  %v3016_v62 = vpop.f32.mrb[32].mxu0 }
 0x127   : > { %2322 = vst.msk [vmem:[%s3416_s26 + $0x78] sm:$0xf] %vm2291_vm3, %v2811_v47  ;;  %v2809_v53 = vpack.c.bf16 %v1679_v51, %v1679_v51  ;;  %v1743_v54 = vsel %vm1487_vm0, %v1252_v36, %v1615_v49  ;;  %vm1490_vm2 = vcmp.gt.f32.partialorder %v3077_v41, 0.0  ;;  %v1618_v55 = vmul.f32 0.2, %v3077_v41  ;;  %v3080_v63 = vpop.f32.mrb[32].mxu1 }
 0x128   : > { %2386 = vst.msk [vmem:[%s3416_s26 + $0x178] sm:$0xf] %vm2291_vm3, %v2875_v50  ;;  %v2873_v56 = vpack.c.bf16 %v1743_v54, %v1743_v54  ;;  %v1682_v57 = vsel %vm1426_vm1, %v3013_v40, %v1554_v52  ;;  %vm1424_vm4 = vcmp.gt.f32.partialorder %v999_v45, 0.0  ;;  %v1552_v58 = vmul.f32 0.2, %v999_v45  ;;  %v1012_v3 = vpop.f32.mrb[33].mxu0 }
 0x129   : > { %2320 = vst.msk [vmem:[%s3416_s26 + $0x70] sm:$0xf] %vm2291_vm3, %v2809_v53  ;;  %v2812_v59 = vpack.c.bf16 %v1682_v57, %v1682_v57  ;;  %v1746_v60 = vsel %vm1490_vm2, %v3077_v41, %v1618_v55  ;;  %vm1488_vm5 = vcmp.gt.f32.partialorder %v1255_v46, 0.0  ;;  %v1616_v61 = vmul.f32 0.2, %v1255_v46  ;;  %v1268_v4 = vpop.f32.mrb[33].mxu1 }
 0x12a   : > { %2384 = vst.msk [vmem:[%s3416_s26 + $0x170] sm:$0xf] %vm2291_vm3, %v2873_v56  ;;  %v2876_v0 = vpack.c.bf16 %v1746_v60, %v1746_v60  ;;  %v1680_v1 = vsel %vm1424_vm4, %v999_v45, %v1552_v58  ;;  %vm1429_vm6 = vcmp.gt.f32.partialorder %v3016_v62, 0.0  ;;  %v1557_v2 = vmul.f32 0.2, %v3016_v62  ;;  %v3017_v8 = vpop.f32.mrb[34].mxu0 }
 0x12b   : > { %2323 = vst.msk [vmem:[%s3416_s26 + $0x7c] sm:$0xf] %vm2291_vm3, %v2812_v59  ;;  %v2810_v5 = vpack.c.bf16 %v1680_v1, %v1680_v1  ;;  %v1744_v6 = vsel %vm1488_vm5, %v1255_v46, %v1616_v61  ;;  %vm1493_vm7 = vcmp.gt.f32.partialorder %v3080_v63, 0.0  ;;  %v1621_v7 = vmul.f32 0.2, %v3080_v63  ;;  %v3081_v9 = vpop.f32.mrb[34].mxu1 }
 0x12c   : > { %2387 = vst.msk [vmem:[%s3416_s26 + $0x17c] sm:$0xf] %vm2291_vm3, %v2876_v0  ;;  %v2874_v10 = vpack.c.bf16 %v1744_v6, %v1744_v6  ;;  %v1685_v11 = vsel %vm1429_vm6, %v3016_v62, %v1557_v2  ;;  %vm1427_vm8 = vcmp.gt.f32.partialorder %v1012_v3, 0.0  ;;  %v1555_v12 = vmul.f32 0.2, %v1012_v3  ;;  %v1015_v13 = vpop.f32.mrb[35].mxu0 }
 0x12d   : > { %v1271_v14 = vpop.f32.mrb[35].mxu1  ;;  %2321 = vst.msk [vmem:[%s3416_s26 + $0x74] sm:$0xf] %vm2291_vm3, %v2810_v5  ;;  %v2815_v15 = vpack.c.bf16 %v1685_v11, %v1685_v11  ;;  %v1749_v16 = vsel %vm1493_vm7, %v3080_v63, %v1621_v7  ;;  %vm1491_vm9 = vcmp.gt.f32.partialorder %v1268_v4, 0.0  ;;  %v1619_v17 = vmul.f32 0.2, %v1268_v4 }
 0x12e   : > { %2385 = vst.msk [vmem:[%s3416_s26 + $0x174] sm:$0xf] %vm2291_vm3, %v2874_v10  ;;  %v2879_v18 = vpack.c.bf16 %v1749_v16, %v1749_v16  ;;  %v1683_v19 = vsel %vm1427_vm8, %v1012_v3, %v1555_v12  ;;  %vm1430_vm10 = vcmp.gt.f32.partialorder %v3017_v8, 0.0  ;;  %v1558_v20 = vmul.f32 0.2, %v3017_v8  ;;  %v3020_v30 = vpop.f32.mrb[36].mxu0 }
 0x12f   : > { %2326 = vst.msk [vmem:[%s3416_s26 + $0x88] sm:$0xf] %vm2291_vm3, %v2815_v15  ;;  %v2813_v21 = vpack.c.bf16 %v1683_v19, %v1683_v19  ;;  %v1747_v22 = vsel %vm1491_vm9, %v1268_v4, %v1619_v17  ;;  %vm1494_vm11 = vcmp.gt.f32.partialorder %v3081_v9, 0.0  ;;  %v1622_v23 = vmul.f32 0.2, %v3081_v9  ;;  %v3084_v31 = vpop.f32.mrb[36].mxu1 }
 0x130   : > { %2390 = vst.msk [vmem:[%s3416_s26 + $0x188] sm:$0xf] %vm2291_vm3, %v2879_v18  ;;  %v2877_v24 = vpack.c.bf16 %v1747_v22, %v1747_v22  ;;  %v1686_v25 = vsel %vm1430_vm10, %v3017_v8, %v1558_v20  ;;  %vm1428_vm12 = vcmp.gt.f32.partialorder %v1015_v13, 0.0  ;;  %v1556_v26 = vmul.f32 0.2, %v1015_v13  ;;  %v1028_v35 = vpop.f32.mrb[37].mxu0 }
 0x131   : > { %2324 = vst.msk [vmem:[%s3416_s26 + $0x80] sm:$0xf] %vm2291_vm3, %v2813_v21  ;;  %v2816_v27 = vpack.c.bf16 %v1686_v25, %v1686_v25  ;;  %v1750_v28 = vsel %vm1494_vm11, %v3081_v9, %v1622_v23  ;;  %vm1492_vm13 = vcmp.gt.f32.partialorder %v1271_v14, 0.0  ;;  %v1620_v29 = vmul.f32 0.2, %v1271_v14  ;;  %v1284_v36 = vpop.f32.mrb[37].mxu1 }
 0x132   : > { %2388 = vst.msk [vmem:[%s3416_s26 + $0x180] sm:$0xf] %vm2291_vm3, %v2877_v24  ;;  %v2880_v32 = vpack.c.bf16 %v1750_v28, %v1750_v28  ;;  %v1684_v33 = vsel %vm1428_vm12, %v1015_v13, %v1556_v26  ;;  %vm1433_vm14 = vcmp.gt.f32.partialorder %v3020_v30, 0.0  ;;  %v1561_v34 = vmul.f32 0.2, %v3020_v30  ;;  %v3021_v40 = vpop.f32.mrb[38].mxu0 }
 0x133   : > { %2327 = vst.msk [vmem:[%s3416_s26 + $0x8c] sm:$0xf] %vm2291_vm3, %v2816_v27  ;;  %v2814_v37 = vpack.c.bf16 %v1684_v33, %v1684_v33  ;;  %v1748_v38 = vsel %vm1492_vm13, %v1271_v14, %v1620_v29  ;;  %vm1497_vm15 = vcmp.gt.f32.partialorder %v3084_v31, 0.0  ;;  %v1625_v39 = vmul.f32 0.2, %v3084_v31  ;;  %v3085_v41 = vpop.f32.mrb[38].mxu1 }
 0x134   : > { %2391 = vst.msk [vmem:[%s3416_s26 + $0x18c] sm:$0xf] %vm2291_vm3, %v2880_v32  ;;  %v2878_v42 = vpack.c.bf16 %v1748_v38, %v1748_v38  ;;  %v1689_v43 = vsel %vm1433_vm14, %v3020_v30, %v1561_v34  ;;  %vm1431_vm0 = vcmp.gt.f32.partialorder %v1028_v35, 0.0  ;;  %v1559_v44 = vmul.f32 0.2, %v1028_v35  ;;  %v1031_v45 = vpop.f32.mrb[39].mxu0 }
 0x135   : > { %v1287_v46 = vpop.f32.mrb[39].mxu1  ;;  %2325 = vst.msk [vmem:[%s3416_s26 + $0x84] sm:$0xf] %vm2291_vm3, %v2814_v37  ;;  %v2819_v47 = vpack.c.bf16 %v1689_v43, %v1689_v43  ;;  %v1753_v48 = vsel %vm1497_vm15, %v3084_v31, %v1625_v39  ;;  %vm1495_vm1 = vcmp.gt.f32.partialorder %v1284_v36, 0.0  ;;  %v1623_v49 = vmul.f32 0.2, %v1284_v36 }
 0x136   : > { %2389 = vst.msk [vmem:[%s3416_s26 + $0x184] sm:$0xf] %vm2291_vm3, %v2878_v42  ;;  %v2883_v50 = vpack.c.bf16 %v1753_v48, %v1753_v48  ;;  %v1687_v51 = vsel %vm1431_vm0, %v1028_v35, %v1559_v44  ;;  %vm1434_vm2 = vcmp.gt.f32.partialorder %v3021_v40, 0.0  ;;  %v1562_v52 = vmul.f32 0.2, %v3021_v40  ;;  %v3024_v62 = vpop.f32.mrb[40].mxu0 }
 0x137   : > { %2330 = vst.msk [vmem:[%s3416_s26 + $0x98] sm:$0xf] %vm2291_vm3, %v2819_v47  ;;  %v2817_v53 = vpack.c.bf16 %v1687_v51, %v1687_v51  ;;  %v1751_v54 = vsel %vm1495_vm1, %v1284_v36, %v1623_v49  ;;  %vm1498_vm4 = vcmp.gt.f32.partialorder %v3085_v41, 0.0  ;;  %v1626_v55 = vmul.f32 0.2, %v3085_v41  ;;  %v3088_v63 = vpop.f32.mrb[40].mxu1 }
 0x138   : > { %2394 = vst.msk [vmem:[%s3416_s26 + $0x198] sm:$0xf] %vm2291_vm3, %v2883_v50  ;;  %v2881_v56 = vpack.c.bf16 %v1751_v54, %v1751_v54  ;;  %v1690_v57 = vsel %vm1434_vm2, %v3021_v40, %v1562_v52  ;;  %vm1432_vm5 = vcmp.gt.f32.partialorder %v1031_v45, 0.0  ;;  %v1560_v58 = vmul.f32 0.2, %v1031_v45  ;;  %v1044_v3 = vpop.f32.mrb[41].mxu0 }
 0x139   : > { %2328 = vst.msk [vmem:[%s3416_s26 + $0x90] sm:$0xf] %vm2291_vm3, %v2817_v53  ;;  %v2820_v59 = vpack.c.bf16 %v1690_v57, %v1690_v57  ;;  %v1754_v60 = vsel %vm1498_vm4, %v3085_v41, %v1626_v55  ;;  %vm1496_vm6 = vcmp.gt.f32.partialorder %v1287_v46, 0.0  ;;  %v1624_v61 = vmul.f32 0.2, %v1287_v46  ;;  %v1300_v4 = vpop.f32.mrb[41].mxu1 }
 0x13a   : > { %2392 = vst.msk [vmem:[%s3416_s26 + $0x190] sm:$0xf] %vm2291_vm3, %v2881_v56  ;;  %v2884_v0 = vpack.c.bf16 %v1754_v60, %v1754_v60  ;;  %v1688_v1 = vsel %vm1432_vm5, %v1031_v45, %v1560_v58  ;;  %vm1437_vm7 = vcmp.gt.f32.partialorder %v3024_v62, 0.0  ;;  %v1565_v2 = vmul.f32 0.2, %v3024_v62  ;;  %v3025_v8 = vpop.f32.mrb[42].mxu0 }
 0x13b   : > { %2331 = vst.msk [vmem:[%s3416_s26 + $0x9c] sm:$0xf] %vm2291_vm3, %v2820_v59  ;;  %v2818_v5 = vpack.c.bf16 %v1688_v1, %v1688_v1  ;;  %v1752_v6 = vsel %vm1496_vm6, %v1287_v46, %v1624_v61  ;;  %vm1501_vm8 = vcmp.gt.f32.partialorder %v3088_v63, 0.0  ;;  %v1629_v7 = vmul.f32 0.2, %v3088_v63  ;;  %v3089_v9 = vpop.f32.mrb[42].mxu1 }
 0x13c   : > { %2395 = vst.msk [vmem:[%s3416_s26 + $0x19c] sm:$0xf] %vm2291_vm3, %v2884_v0  ;;  %v2882_v10 = vpack.c.bf16 %v1752_v6, %v1752_v6  ;;  %v1693_v11 = vsel %vm1437_vm7, %v3024_v62, %v1565_v2  ;;  %vm1435_vm9 = vcmp.gt.f32.partialorder %v1044_v3, 0.0  ;;  %v1563_v12 = vmul.f32 0.2, %v1044_v3  ;;  %v1047_v13 = vpop.f32.mrb[43].mxu0 }
 0x13d   : > { %v1303_v14 = vpop.f32.mrb[43].mxu1  ;;  %2329 = vst.msk [vmem:[%s3416_s26 + $0x94] sm:$0xf] %vm2291_vm3, %v2818_v5  ;;  %v2823_v15 = vpack.c.bf16 %v1693_v11, %v1693_v11  ;;  %v1757_v16 = vsel %vm1501_vm8, %v3088_v63, %v1629_v7  ;;  %vm1499_vm10 = vcmp.gt.f32.partialorder %v1300_v4, 0.0  ;;  %v1627_v17 = vmul.f32 0.2, %v1300_v4 }
 0x13e   : > { %2393 = vst.msk [vmem:[%s3416_s26 + $0x194] sm:$0xf] %vm2291_vm3, %v2882_v10  ;;  %v2887_v18 = vpack.c.bf16 %v1757_v16, %v1757_v16  ;;  %v1691_v19 = vsel %vm1435_vm9, %v1044_v3, %v1563_v12  ;;  %vm1438_vm11 = vcmp.gt.f32.partialorder %v3025_v8, 0.0  ;;  %v1566_v20 = vmul.f32 0.2, %v3025_v8  ;;  %v3028_v30 = vpop.f32.mrb[44].mxu0 }
 0x13f   : > { %2334 = vst.msk [vmem:[%s3416_s26 + $0xa8] sm:$0xf] %vm2291_vm3, %v2823_v15  ;;  %v2821_v21 = vpack.c.bf16 %v1691_v19, %v1691_v19  ;;  %v1755_v22 = vsel %vm1499_vm10, %v1300_v4, %v1627_v17  ;;  %vm1502_vm12 = vcmp.gt.f32.partialorder %v3089_v9, 0.0  ;;  %v1630_v23 = vmul.f32 0.2, %v3089_v9  ;;  %v3092_v31 = vpop.f32.mrb[44].mxu1 }
 0x140   : > { %2398 = vst.msk [vmem:[%s3416_s26 + $0x1a8] sm:$0xf] %vm2291_vm3, %v2887_v18  ;;  %v2885_v24 = vpack.c.bf16 %v1755_v22, %v1755_v22  ;;  %v1694_v25 = vsel %vm1438_vm11, %v3025_v8, %v1566_v20  ;;  %vm1436_vm13 = vcmp.gt.f32.partialorder %v1047_v13, 0.0  ;;  %v1564_v26 = vmul.f32 0.2, %v1047_v13  ;;  %v1060_v35 = vpop.f32.mrb[45].mxu0 }
 0x141   : > { %2332 = vst.msk [vmem:[%s3416_s26 + $0xa0] sm:$0xf] %vm2291_vm3, %v2821_v21  ;;  %v2824_v27 = vpack.c.bf16 %v1694_v25, %v1694_v25  ;;  %v1758_v28 = vsel %vm1502_vm12, %v3089_v9, %v1630_v23  ;;  %vm1500_vm14 = vcmp.gt.f32.partialorder %v1303_v14, 0.0  ;;  %v1628_v29 = vmul.f32 0.2, %v1303_v14  ;;  %v1316_v36 = vpop.f32.mrb[45].mxu1 }
 0x142   : > { %2396 = vst.msk [vmem:[%s3416_s26 + $0x1a0] sm:$0xf] %vm2291_vm3, %v2885_v24  ;;  %v2888_v32 = vpack.c.bf16 %v1758_v28, %v1758_v28  ;;  %v1692_v33 = vsel %vm1436_vm13, %v1047_v13, %v1564_v26  ;;  %vm1441_vm15 = vcmp.gt.f32.partialorder %v3028_v30, 0.0  ;;  %v1569_v34 = vmul.f32 0.2, %v3028_v30  ;;  %v3029_v40 = vpop.f32.mrb[46].mxu0 }
 0x143   : > { %2335 = vst.msk [vmem:[%s3416_s26 + $0xac] sm:$0xf] %vm2291_vm3, %v2824_v27  ;;  %v2822_v37 = vpack.c.bf16 %v1692_v33, %v1692_v33  ;;  %v1756_v38 = vsel %vm1500_vm14, %v1303_v14, %v1628_v29  ;;  %vm1505_vm0 = vcmp.gt.f32.partialorder %v3092_v31, 0.0  ;;  %v1633_v39 = vmul.f32 0.2, %v3092_v31  ;;  %v3093_v41 = vpop.f32.mrb[46].mxu1 }
 0x144   : > { %2399 = vst.msk [vmem:[%s3416_s26 + $0x1ac] sm:$0xf] %vm2291_vm3, %v2888_v32  ;;  %v2886_v42 = vpack.c.bf16 %v1756_v38, %v1756_v38  ;;  %v1697_v43 = vsel %vm1441_vm15, %v3028_v30, %v1569_v34  ;;  %vm1439_vm1 = vcmp.gt.f32.partialorder %v1060_v35, 0.0  ;;  %v1567_v44 = vmul.f32 0.2, %v1060_v35  ;;  %v1063_v45 = vpop.f32.mrb[47].mxu0 }
 0x145   : > { %v1319_v46 = vpop.f32.mrb[47].mxu1  ;;  %2333 = vst.msk [vmem:[%s3416_s26 + $0xa4] sm:$0xf] %vm2291_vm3, %v2822_v37  ;;  %v2827_v47 = vpack.c.bf16 %v1697_v43, %v1697_v43  ;;  %v1761_v48 = vsel %vm1505_vm0, %v3092_v31, %v1633_v39  ;;  %vm1503_vm2 = vcmp.gt.f32.partialorder %v1316_v36, 0.0  ;;  %v1631_v49 = vmul.f32 0.2, %v1316_v36 }
 0x146   : > { %2397 = vst.msk [vmem:[%s3416_s26 + $0x1a4] sm:$0xf] %vm2291_vm3, %v2886_v42  ;;  %v2891_v50 = vpack.c.bf16 %v1761_v48, %v1761_v48  ;;  %v1695_v51 = vsel %vm1439_vm1, %v1060_v35, %v1567_v44  ;;  %vm1442_vm4 = vcmp.gt.f32.partialorder %v3029_v40, 0.0  ;;  %v1570_v52 = vmul.f32 0.2, %v3029_v40  ;;  %v3032_v62 = vpop.f32.mrb[48].mxu0 }
 0x147   : > { %2338 = vst.msk [vmem:[%s3416_s26 + $0xb8] sm:$0xf] %vm2291_vm3, %v2827_v47  ;;  %v2825_v53 = vpack.c.bf16 %v1695_v51, %v1695_v51  ;;  %v1759_v54 = vsel %vm1503_vm2, %v1316_v36, %v1631_v49  ;;  %vm1506_vm5 = vcmp.gt.f32.partialorder %v3093_v41, 0.0  ;;  %v1634_v55 = vmul.f32 0.2, %v3093_v41  ;;  %v3096_v63 = vpop.f32.mrb[48].mxu1 }
 0x148   : > { %2402 = vst.msk [vmem:[%s3416_s26 + $0x1b8] sm:$0xf] %vm2291_vm3, %v2891_v50  ;;  %v2889_v56 = vpack.c.bf16 %v1759_v54, %v1759_v54  ;;  %v1698_v57 = vsel %vm1442_vm4, %v3029_v40, %v1570_v52  ;;  %vm1440_vm6 = vcmp.gt.f32.partialorder %v1063_v45, 0.0  ;;  %v1568_v58 = vmul.f32 0.2, %v1063_v45  ;;  %v1076_v3 = vpop.f32.mrb[49].mxu0 }
 0x149   : > { %2336 = vst.msk [vmem:[%s3416_s26 + $0xb0] sm:$0xf] %vm2291_vm3, %v2825_v53  ;;  %v2828_v59 = vpack.c.bf16 %v1698_v57, %v1698_v57  ;;  %v1762_v60 = vsel %vm1506_vm5, %v3093_v41, %v1634_v55  ;;  %vm1504_vm7 = vcmp.gt.f32.partialorder %v1319_v46, 0.0  ;;  %v1632_v61 = vmul.f32 0.2, %v1319_v46  ;;  %v1332_v4 = vpop.f32.mrb[49].mxu1 }
 0x14a   : > { %2400 = vst.msk [vmem:[%s3416_s26 + $0x1b0] sm:$0xf] %vm2291_vm3, %v2889_v56  ;;  %v2892_v0 = vpack.c.bf16 %v1762_v60, %v1762_v60  ;;  %v1696_v1 = vsel %vm1440_vm6, %v1063_v45, %v1568_v58  ;;  %vm1445_vm8 = vcmp.gt.f32.partialorder %v3032_v62, 0.0  ;;  %v1573_v2 = vmul.f32 0.2, %v3032_v62  ;;  %v3033_v8 = vpop.f32.mrb[50].mxu0 }
 0x14b   : > { %2339 = vst.msk [vmem:[%s3416_s26 + $0xbc] sm:$0xf] %vm2291_vm3, %v2828_v59  ;;  %v2826_v5 = vpack.c.bf16 %v1696_v1, %v1696_v1  ;;  %v1760_v6 = vsel %vm1504_vm7, %v1319_v46, %v1632_v61  ;;  %vm1509_vm9 = vcmp.gt.f32.partialorder %v3096_v63, 0.0  ;;  %v1637_v7 = vmul.f32 0.2, %v3096_v63  ;;  %v3097_v9 = vpop.f32.mrb[50].mxu1 }
 0x14c   : > { %2403 = vst.msk [vmem:[%s3416_s26 + $0x1bc] sm:$0xf] %vm2291_vm3, %v2892_v0  ;;  %v2890_v10 = vpack.c.bf16 %v1760_v6, %v1760_v6  ;;  %v1701_v11 = vsel %vm1445_vm8, %v3032_v62, %v1573_v2  ;;  %vm1443_vm10 = vcmp.gt.f32.partialorder %v1076_v3, 0.0  ;;  %v1571_v12 = vmul.f32 0.2, %v1076_v3  ;;  %v1079_v13 = vpop.f32.mrb[51].mxu0 }
 0x14d   : > { %v1335_v14 = vpop.f32.mrb[51].mxu1  ;;  %2337 = vst.msk [vmem:[%s3416_s26 + $0xb4] sm:$0xf] %vm2291_vm3, %v2826_v5  ;;  %v2831_v15 = vpack.c.bf16 %v1701_v11, %v1701_v11  ;;  %v1765_v16 = vsel %vm1509_vm9, %v3096_v63, %v1637_v7  ;;  %vm1507_vm11 = vcmp.gt.f32.partialorder %v1332_v4, 0.0  ;;  %v1635_v17 = vmul.f32 0.2, %v1332_v4 }
 0x14e   : > { %2401 = vst.msk [vmem:[%s3416_s26 + $0x1b4] sm:$0xf] %vm2291_vm3, %v2890_v10  ;;  %v2895_v18 = vpack.c.bf16 %v1765_v16, %v1765_v16  ;;  %v1699_v19 = vsel %vm1443_vm10, %v1076_v3, %v1571_v12  ;;  %vm1446_vm12 = vcmp.gt.f32.partialorder %v3033_v8, 0.0  ;;  %v1574_v20 = vmul.f32 0.2, %v3033_v8  ;;  %v3036_v30 = vpop.f32.mrb[52].mxu0 }
 0x14f   : > { %2342 = vst.msk [vmem:[%s3416_s26 + $0xc8] sm:$0xf] %vm2291_vm3, %v2831_v15  ;;  %v2829_v21 = vpack.c.bf16 %v1699_v19, %v1699_v19  ;;  %v1763_v22 = vsel %vm1507_vm11, %v1332_v4, %v1635_v17  ;;  %vm1510_vm13 = vcmp.gt.f32.partialorder %v3097_v9, 0.0  ;;  %v1638_v23 = vmul.f32 0.2, %v3097_v9  ;;  %v3100_v31 = vpop.f32.mrb[52].mxu1 }
 0x150   : > { %2406 = vst.msk [vmem:[%s3416_s26 + $0x1c8] sm:$0xf] %vm2291_vm3, %v2895_v18  ;;  %v2893_v24 = vpack.c.bf16 %v1763_v22, %v1763_v22  ;;  %v1702_v25 = vsel %vm1446_vm12, %v3033_v8, %v1574_v20  ;;  %vm1444_vm14 = vcmp.gt.f32.partialorder %v1079_v13, 0.0  ;;  %v1572_v26 = vmul.f32 0.2, %v1079_v13  ;;  %v1092_v35 = vpop.f32.mrb[53].mxu0 }
 0x151   : > { %2340 = vst.msk [vmem:[%s3416_s26 + $0xc0] sm:$0xf] %vm2291_vm3, %v2829_v21  ;;  %v2832_v27 = vpack.c.bf16 %v1702_v25, %v1702_v25  ;;  %v1766_v28 = vsel %vm1510_vm13, %v3097_v9, %v1638_v23  ;;  %vm1508_vm15 = vcmp.gt.f32.partialorder %v1335_v14, 0.0  ;;  %v1636_v29 = vmul.f32 0.2, %v1335_v14  ;;  %v1348_v36 = vpop.f32.mrb[53].mxu1 }
 0x152   : > { %2404 = vst.msk [vmem:[%s3416_s26 + $0x1c0] sm:$0xf] %vm2291_vm3, %v2893_v24  ;;  %v2896_v32 = vpack.c.bf16 %v1766_v28, %v1766_v28  ;;  %v1700_v33 = vsel %vm1444_vm14, %v1079_v13, %v1572_v26  ;;  %vm1449_vm0 = vcmp.gt.f32.partialorder %v3036_v30, 0.0  ;;  %v1577_v34 = vmul.f32 0.2, %v3036_v30  ;;  %v3037_v40 = vpop.f32.mrb[54].mxu0 }
 0x153   : > { %2343 = vst.msk [vmem:[%s3416_s26 + $0xcc] sm:$0xf] %vm2291_vm3, %v2832_v27  ;;  %v2830_v37 = vpack.c.bf16 %v1700_v33, %v1700_v33  ;;  %v1764_v38 = vsel %vm1508_vm15, %v1335_v14, %v1636_v29  ;;  %vm1513_vm1 = vcmp.gt.f32.partialorder %v3100_v31, 0.0  ;;  %v1641_v39 = vmul.f32 0.2, %v3100_v31  ;;  %v3101_v41 = vpop.f32.mrb[54].mxu1 }
 0x154   : > { %2407 = vst.msk [vmem:[%s3416_s26 + $0x1cc] sm:$0xf] %vm2291_vm3, %v2896_v32  ;;  %v2894_v42 = vpack.c.bf16 %v1764_v38, %v1764_v38  ;;  %v1705_v43 = vsel %vm1449_vm0, %v3036_v30, %v1577_v34  ;;  %vm1447_vm2 = vcmp.gt.f32.partialorder %v1092_v35, 0.0  ;;  %v1575_v44 = vmul.f32 0.2, %v1092_v35  ;;  %v1095_v45 = vpop.f32.mrb[55].mxu0 }
 0x155   : > { %v1351_v46 = vpop.f32.mrb[55].mxu1  ;;  %2341 = vst.msk [vmem:[%s3416_s26 + $0xc4] sm:$0xf] %vm2291_vm3, %v2830_v37  ;;  %v2835_v47 = vpack.c.bf16 %v1705_v43, %v1705_v43  ;;  %v1769_v48 = vsel %vm1513_vm1, %v3100_v31, %v1641_v39  ;;  %vm1511_vm4 = vcmp.gt.f32.partialorder %v1348_v36, 0.0  ;;  %v1639_v49 = vmul.f32 0.2, %v1348_v36 }
 0x156   : > { %2405 = vst.msk [vmem:[%s3416_s26 + $0x1c4] sm:$0xf] %vm2291_vm3, %v2894_v42  ;;  %v2899_v50 = vpack.c.bf16 %v1769_v48, %v1769_v48  ;;  %v1703_v51 = vsel %vm1447_vm2, %v1092_v35, %v1575_v44  ;;  %vm1450_vm5 = vcmp.gt.f32.partialorder %v3037_v40, 0.0  ;;  %v1578_v52 = vmul.f32 0.2, %v3037_v40  ;;  %v3040_v62 = vpop.f32.mrb[56].mxu0 }
 0x157   : > { %2346 = vst.msk [vmem:[%s3416_s26 + $0xd8] sm:$0xf] %vm2291_vm3, %v2835_v47  ;;  %v2833_v53 = vpack.c.bf16 %v1703_v51, %v1703_v51  ;;  %v1767_v54 = vsel %vm1511_vm4, %v1348_v36, %v1639_v49  ;;  %vm1514_vm6 = vcmp.gt.f32.partialorder %v3101_v41, 0.0  ;;  %v1642_v55 = vmul.f32 0.2, %v3101_v41  ;;  %v3104_v63 = vpop.f32.mrb[56].mxu1 }
 0x158   : > { %2410 = vst.msk [vmem:[%s3416_s26 + $0x1d8] sm:$0xf] %vm2291_vm3, %v2899_v50  ;;  %v2897_v56 = vpack.c.bf16 %v1767_v54, %v1767_v54  ;;  %v1706_v57 = vsel %vm1450_vm5, %v3037_v40, %v1578_v52  ;;  %vm1448_vm7 = vcmp.gt.f32.partialorder %v1095_v45, 0.0  ;;  %v1576_v58 = vmul.f32 0.2, %v1095_v45  ;;  %v1108_v3 = vpop.f32.mrb[57].mxu0 }
 0x159   : > { %2344 = vst.msk [vmem:[%s3416_s26 + $0xd0] sm:$0xf] %vm2291_vm3, %v2833_v53  ;;  %v2836_v59 = vpack.c.bf16 %v1706_v57, %v1706_v57  ;;  %v1770_v60 = vsel %vm1514_vm6, %v3101_v41, %v1642_v55  ;;  %vm1512_vm8 = vcmp.gt.f32.partialorder %v1351_v46, 0.0  ;;  %v1640_v61 = vmul.f32 0.2, %v1351_v46  ;;  %v1364_v4 = vpop.f32.mrb[57].mxu1 }
 0x15a   : > { %2408 = vst.msk [vmem:[%s3416_s26 + $0x1d0] sm:$0xf] %vm2291_vm3, %v2897_v56  ;;  %v2900_v0 = vpack.c.bf16 %v1770_v60, %v1770_v60  ;;  %v1704_v1 = vsel %vm1448_vm7, %v1095_v45, %v1576_v58  ;;  %vm1453_vm9 = vcmp.gt.f32.partialorder %v3040_v62, 0.0  ;;  %v1581_v2 = vmul.f32 0.2, %v3040_v62  ;;  %v3041_v8 = vpop.f32.mrb[58].mxu0 }
 0x15b   : > { %2347 = vst.msk [vmem:[%s3416_s26 + $0xdc] sm:$0xf] %vm2291_vm3, %v2836_v59  ;;  %v2834_v5 = vpack.c.bf16 %v1704_v1, %v1704_v1  ;;  %v1768_v6 = vsel %vm1512_vm8, %v1351_v46, %v1640_v61  ;;  %vm1517_vm10 = vcmp.gt.f32.partialorder %v3104_v63, 0.0  ;;  %v1645_v7 = vmul.f32 0.2, %v3104_v63  ;;  %v3105_v9 = vpop.f32.mrb[58].mxu1 }
 0x15c   : > { %2411 = vst.msk [vmem:[%s3416_s26 + $0x1dc] sm:$0xf] %vm2291_vm3, %v2900_v0  ;;  %v2898_v10 = vpack.c.bf16 %v1768_v6, %v1768_v6  ;;  %v1709_v11 = vsel %vm1453_vm9, %v3040_v62, %v1581_v2  ;;  %vm1451_vm11 = vcmp.gt.f32.partialorder %v1108_v3, 0.0  ;;  %v1579_v12 = vmul.f32 0.2, %v1108_v3  ;;  %v1111_v13 = vpop.f32.mrb[59].mxu0 }
 0x15d   : > { %v1367_v14 = vpop.f32.mrb[59].mxu1  ;;  %2345 = vst.msk [vmem:[%s3416_s26 + $0xd4] sm:$0xf] %vm2291_vm3, %v2834_v5  ;;  %v2839_v15 = vpack.c.bf16 %v1709_v11, %v1709_v11  ;;  %v1773_v16 = vsel %vm1517_vm10, %v3104_v63, %v1645_v7  ;;  %vm1515_vm12 = vcmp.gt.f32.partialorder %v1364_v4, 0.0  ;;  %v1643_v17 = vmul.f32 0.2, %v1364_v4 }
 0x15e   : > { %2409 = vst.msk [vmem:[%s3416_s26 + $0x1d4] sm:$0xf] %vm2291_vm3, %v2898_v10  ;;  %v2903_v18 = vpack.c.bf16 %v1773_v16, %v1773_v16  ;;  %v1707_v19 = vsel %vm1451_vm11, %v1108_v3, %v1579_v12  ;;  %vm1454_vm13 = vcmp.gt.f32.partialorder %v3041_v8, 0.0  ;;  %v1582_v20 = vmul.f32 0.2, %v3041_v8  ;;  %v3044_v30 = vpop.f32.mrb[60].mxu0 }
 0x15f   : > { %2350 = vst.msk [vmem:[%s3416_s26 + $0xe8] sm:$0xf] %vm2291_vm3, %v2839_v15  ;;  %v2837_v21 = vpack.c.bf16 %v1707_v19, %v1707_v19  ;;  %v1771_v22 = vsel %vm1515_vm12, %v1364_v4, %v1643_v17  ;;  %vm1518_vm14 = vcmp.gt.f32.partialorder %v3105_v9, 0.0  ;;  %v1646_v23 = vmul.f32 0.2, %v3105_v9  ;;  %v3108_v31 = vpop.f32.mrb[60].mxu1 }
 0x160   : > { %2414 = vst.msk [vmem:[%s3416_s26 + $0x1e8] sm:$0xf] %vm2291_vm3, %v2903_v18  ;;  %v2901_v24 = vpack.c.bf16 %v1771_v22, %v1771_v22  ;;  %v1710_v25 = vsel %vm1454_vm13, %v3041_v8, %v1582_v20  ;;  %vm1452_vm15 = vcmp.gt.f32.partialorder %v1111_v13, 0.0  ;;  %v1580_v26 = vmul.f32 0.2, %v1111_v13  ;;  %v1124_v35 = vpop.f32.mrb[61].mxu0 }
 0x161   : > { %2348 = vst.msk [vmem:[%s3416_s26 + $0xe0] sm:$0xf] %vm2291_vm3, %v2837_v21  ;;  %v2840_v27 = vpack.c.bf16 %v1710_v25, %v1710_v25  ;;  %v1774_v28 = vsel %vm1518_vm14, %v3105_v9, %v1646_v23  ;;  %vm1516_vm0 = vcmp.gt.f32.partialorder %v1367_v14, 0.0  ;;  %v1644_v29 = vmul.f32 0.2, %v1367_v14  ;;  %v1380_v36 = vpop.f32.mrb[61].mxu1 }
 0x162   : > { %2412 = vst.msk [vmem:[%s3416_s26 + $0x1e0] sm:$0xf] %vm2291_vm3, %v2901_v24  ;;  %v2904_v32 = vpack.c.bf16 %v1774_v28, %v1774_v28  ;;  %v1708_v33 = vsel %vm1452_vm15, %v1111_v13, %v1580_v26  ;;  %vm1457_vm1 = vcmp.gt.f32.partialorder %v3044_v30, 0.0  ;;  %v1585_v34 = vmul.f32 0.2, %v3044_v30  ;;  %v3045_v40 = vpop.f32.mrb[62].mxu0 }
 0x163   : > { %2351 = vst.msk [vmem:[%s3416_s26 + $0xec] sm:$0xf] %vm2291_vm3, %v2840_v27  ;;  %v2838_v37 = vpack.c.bf16 %v1708_v33, %v1708_v33  ;;  %v1772_v38 = vsel %vm1516_vm0, %v1367_v14, %v1644_v29  ;;  %vm1521_vm2 = vcmp.gt.f32.partialorder %v3108_v31, 0.0  ;;  %v1649_v39 = vmul.f32 0.2, %v3108_v31  ;;  %v3109_v41 = vpop.f32.mrb[62].mxu1 }
 0x164   : > { %2415 = vst.msk [vmem:[%s3416_s26 + $0x1ec] sm:$0xf] %vm2291_vm3, %v2904_v32  ;;  %v2902_v42 = vpack.c.bf16 %v1772_v38, %v1772_v38  ;;  %v1713_v43 = vsel %vm1457_vm1, %v3044_v30, %v1585_v34  ;;  %vm1455_vm4 = vcmp.gt.f32.partialorder %v1124_v35, 0.0  ;;  %v1583_v44 = vmul.f32 0.2, %v1124_v35  ;;  %v1127_v45 = vpop.f32.mrb[63].mxu0 }
 0x165   : > { %v1383_v46 = vpop.f32.mrb[63].mxu1  ;;  %2349 = vst.msk [vmem:[%s3416_s26 + $0xe4] sm:$0xf] %vm2291_vm3, %v2838_v37  ;;  %v2843_v47 = vpack.c.bf16 %v1713_v43, %v1713_v43  ;;  %v1777_v48 = vsel %vm1521_vm2, %v3108_v31, %v1649_v39  ;;  %vm1519_vm5 = vcmp.gt.f32.partialorder %v1380_v36, 0.0  ;;  %v1647_v49 = vmul.f32 0.2, %v1380_v36 }
 0x166   : > { %2413 = vst.msk [vmem:[%s3416_s26 + $0x1e4] sm:$0xf] %vm2291_vm3, %v2902_v42  ;;  %v2907_v50 = vpack.c.bf16 %v1777_v48, %v1777_v48  ;;  %v1711_v51 = vsel %vm1455_vm4, %v1124_v35, %v1583_v44  ;;  %vm1458_vm6 = vcmp.gt.f32.partialorder %v3045_v40, 0.0  ;;  %v1586_v52 = vmul.f32 0.2, %v3045_v40 }
 0x167   : > { %2354 = vst.msk [vmem:[%s3416_s26 + $0xf8] sm:$0xf] %vm2291_vm3, %v2843_v47  ;;  %v2841_v53 = vpack.c.bf16 %v1711_v51, %v1711_v51  ;;  %v1775_v54 = vsel %vm1519_vm5, %v1380_v36, %v1647_v49  ;;  %vm1522_vm7 = vcmp.gt.f32.partialorder %v3109_v41, 0.0  ;;  %v1650_v55 = vmul.f32 0.2, %v3109_v41 }
 0x168   : > { %2418 = vst.msk [vmem:[%s3416_s26 + $0x1f8] sm:$0xf] %vm2291_vm3, %v2907_v50  ;;  %v2905_v56 = vpack.c.bf16 %v1775_v54, %v1775_v54  ;;  %v1714_v57 = vsel %vm1458_vm6, %v3045_v40, %v1586_v52  ;;  %vm1456_vm8 = vcmp.gt.f32.partialorder %v1127_v45, 0.0  ;;  %v1584_v58 = vmul.f32 0.2, %v1127_v45 }
 0x169   : > { %2352 = vst.msk [vmem:[%s3416_s26 + $0xf0] sm:$0xf] %vm2291_vm3, %v2841_v53  ;;  %v2844_v59 = vpack.c.bf16 %v1714_v57, %v1714_v57  ;;  %v1778_v60 = vsel %vm1522_vm7, %v3109_v41, %v1650_v55  ;;  %vm1520_vm9 = vcmp.gt.f32.partialorder %v1383_v46, 0.0  ;;  %v1648_v61 = vmul.f32 0.2, %v1383_v46 }
 0x16a   : > { %2416 = vst.msk [vmem:[%s3416_s26 + $0x1f0] sm:$0xf] %vm2291_vm3, %v2905_v56  ;;  %v2908_v62 = vpack.c.bf16 %v1778_v60, %v1778_v60  ;;  %v1712_v63 = vsel %vm1456_vm8, %v1127_v45, %v1584_v58 }
 0x16b   : > { %2355 = vst.msk [vmem:[%s3416_s26 + $0xfc] sm:$0xf] %vm2291_vm3, %v2844_v59  ;;  %v2842_v0 = vpack.c.bf16 %v1712_v63, %v1712_v63  ;;  %v1776_v1 = vsel %vm1520_vm9, %v1383_v46, %v1648_v61 }
 0x16c   : > { %2419 = vst.msk [vmem:[%s3416_s26 + $0x1fc] sm:$0xf] %vm2291_vm3, %v2908_v62  ;;  %v2906_v2 = vpack.c.bf16 %v1776_v1, %v1776_v1 }
 0x16d   : > { %2353 = vst.msk [vmem:[%s3416_s26 + $0xf4] sm:$0xf] %vm2291_vm3, %v2842_v0 }
 0x16e   : > { %2417 = vst.msk [vmem:[%s3416_s26 + $0x1f4] sm:$0xf] %vm2291_vm3, %v2906_v2 }
 0x16f PF: > { %s12_s11 = sadd.s32 1, %s3229_s11   ;;  %s3687_s9 = smov %s3225_s10 }
 0x170   : > { %p9_p5 = scmp.ge.s32.totalorder %s12_s11, 4   ;;  %s3688_s10 = smov %s3690_s12 }
 0x172   :  { %11 = sbr.rel (!%p9_p5) target bundleno = 2 (0x2), region = 61 }

// kernel: discriminator_forward.5
= control target key start
LH: loop header
LB: loop body
LE: loop exit
PB: predicated region body
PF: predicated region fallthrough
CT: control target
= control target key end

     0   :  { %s3398_s9 = smov 0   ;;  %s3400_s10 = smov 0   ;;  %s3874_s0 = inlined_call_operand.vmem [shape: bf16[512,1024], index: 0, kind: input, shape index: {}]   ;;  %s3875_s1 = inlined_call_operand.vmem [shape: bf16[1024,128], index: 1, kind: input, shape index: {}]   ;;  %s3876_s2 = inlined_call_operand.vmem [shape: bf16[512,128], index: 2, kind: output, shape index: {}]  }
   0x1   :  { %s3402_s11 = smov 0  }
   0x2 LB: > { %s24_s12 = sadd.s32 1, %s3377_s10  ;;  %p2463_p0 = scmp.ge.s32.totalorder %s3381_s11, 1  ;;  %s3381_s11 = sphi %s3402_s11, %s12_s11   ;;  %s3377_s10 = sphi %s3400_s10, %s3878_s10   ;;  %s3373_s9 = sphi %s3398_s9, %s3877_s9  }
   0x3   : > { %p26_p1 = scmp.ge.s32.totalorder %s24_s12, 2  ;;  %p137_p2 = scmp.lt.s32.totalorder %s3381_s11, 3 }
   0x5   : > { %s3880_s12 = smov (%p26_p1, %s24_s12), 0  ;;  %p138_p3 = pnand %p2463_p0, %p137_p2 }
   0x6   : > { %v3295_v0 = vld [vmem:[%s3875_s1 + $0x40] sm:$0xff] (!%p138_p3)   ;;  %v3299_v4 = vld [vmem:[%s3875_s1 + $0x48] sm:$0xff] (!%p138_p3)   ;;  %v3303_v8 = vld [vmem:[%s3875_s1 + $0x50] sm:$0xff] (!%p138_p3)   ;;  %s2464_s21 = sshll.u32 (!%p138_p3), %s3373_s9, 5 }
   0x7   : > { %141 = sbr.rel (%p138_p3) target bundleno = 515 (0x203), region = 28  ;;  %v3296_v1 = vld [vmem:[%s3875_s1 + $0xc0] sm:$0xff] (!%p138_p3)   ;;  %2823 = vmatprep.subr.bf16.mxu0 (!%p138_p3), %v3295_v0  ;;  %v3300_v5 = vld [vmem:[%s3875_s1 + $0xc8] sm:$0xff] (!%p138_p3)   ;;  %v3304_v9 = vld [vmem:[%s3875_s1 + $0xd0] sm:$0xff] (!%p138_p3)   ;;  %p168_p4 = scmp.lt.s32.totalorder (!%p138_p3), %s2464_s21, 63 }
   0x8   : > { %v3297_v2 = vld [vmem:[%s3875_s1] sm:$0xff] (!%p138_p3)   ;;  %2935 = vmatprep.subr.bf16.mxu1 (!%p138_p3), %v3296_v1  ;;  %v3301_v6 = vld [vmem:[%s3875_s1 + $0x8] sm:$0xff] (!%p138_p3)   ;;  %v3305_v10 = vld [vmem:[%s3875_s1 + $0x10] sm:$0xff] (!%p138_p3)  }
   0x9   : > { %v3298_v3 = vld [vmem:[%s3875_s1 + $0x80] sm:$0xff] (!%p138_p3)   ;;  %2824 = vmatpush3.bf16.msra.mxu0 (!%p138_p3), %v3297_v2  ;;  %v3302_v7 = vld [vmem:[%s3875_s1 + $0x88] sm:$0xff] (!%p138_p3)   ;;  %v3306_v11 = vld [vmem:[%s3875_s1 + $0x90] sm:$0xff] (!%p138_p3)  }
   0xa   : > { %2936 = vmatpush3.bf16.msra.mxu1 (!%p138_p3), %v3298_v3  ;;  %2825 = vmatprep.subr.bf16.mxu0 (!%p138_p3), %v3299_v4  ;;  %v3307_v12 = vld [vmem:[%s3875_s1 + $0x58] sm:$0xff] (!%p138_p3)   ;;  %v3311_v16 = vld [vmem:[%s3875_s1 + $0x60] sm:$0xff] (!%p138_p3)   ;;  %v3315_v20 = vld [vmem:[%s3875_s1 + $0x68] sm:$0xff] (!%p138_p3)  }
   0xb   : > { %2937 = vmatprep.subr.bf16.mxu1 (!%p138_p3), %v3300_v5  ;;  %v3308_v13 = vld [vmem:[%s3875_s1 + $0xd8] sm:$0xff] (!%p138_p3)   ;;  %v3312_v17 = vld [vmem:[%s3875_s1 + $0xe0] sm:$0xff] (!%p138_p3)   ;;  %v3316_v21 = vld [vmem:[%s3875_s1 + $0xe8] sm:$0xff] (!%p138_p3)  }
   0xc   : > { %v3309_v14 = vld [vmem:[%s3875_s1 + $0x18] sm:$0xff] (!%p138_p3)   ;;  %v3313_v18 = vld [vmem:[%s3875_s1 + $0x20] sm:$0xff] (!%p138_p3)   ;;  %v3317_v22 = vld [vmem:[%s3875_s1 + $0x28] sm:$0xff] (!%p138_p3)  }
   0xd   : > { %2826 = vmatpush3.bf16.msra.mxu0 (!%p138_p3), %v3301_v6  ;;  %v3310_v15 = vld [vmem:[%s3875_s1 + $0x98] sm:$0xff] (!%p138_p3)   ;;  %v3314_v19 = vld [vmem:[%s3875_s1 + $0xa0] sm:$0xff] (!%p138_p3)   ;;  %v3318_v23 = vld [vmem:[%s3875_s1 + $0xa8] sm:$0xff] (!%p138_p3)  }
   0xe   : > { %2938 = vmatpush3.bf16.msra.mxu1 %v3302_v7  ;;  %2827 = vmatprep.subr.bf16.mxu0 %v3303_v8  ;;  %s3882_s21 = smov (!%p168_p4, %s2464_s21), 63  ;;  %v3319_v24 = vld [vmem:[%s3875_s1 + $0x70] sm:$0xff]   ;;  %v3323_v28 = vld [vmem:[%s3875_s1 + $0x78] sm:$0xff]   ;;  %v3327_v40 = vld [vmem:[%s3875_s1 + $0x140] sm:$0xff]  }
   0xf   : > { %2939 = vmatprep.subr.bf16.mxu1 %v3304_v9  ;;  %v3320_v25 = vld [vmem:[%s3875_s1 + $0xf0] sm:$0xff]   ;;  %s2695_s19 = sshll.u32 %s3882_s21, 5  ;;  %v3324_v29 = vld [vmem:[%s3875_s1 + $0xf8] sm:$0xff]   ;;  %v3328_v41 = vld [vmem:[%s3875_s1 + $0x100] sm:$0xff]  }
  0x10   : > { %v3321_v26 = vld [vmem:[%s3875_s1 + $0x30] sm:$0xff]   ;;  %s3515_s29 = scalar_lea.vmem %s3874_s0, %s2695_s19  ;;  %v3325_v30 = vld [vmem:[%s3875_s1 + $0x38] sm:$0xff]   ;;  %v3329_v42 = vld [vmem:[%s3875_s1 + $0x1c0] sm:$0xff]  }
  0x11   : > { %2828 = vmatpush3.bf16.msra.mxu0 %v3305_v10  ;;  %v3322_v27 = vld [vmem:[%s3875_s1 + $0xb0] sm:$0xff]   ;;  %v3326_v31 = vld [vmem:[%s3875_s1 + $0xb8] sm:$0xff]   ;;  %v188_v32 = vld [vmem:[%s3515_s29] sm:$0xff] }
  0x12   : > { %2940 = vmatpush3.bf16.msra.mxu1 %v3306_v11  ;;  %2829 = vmatprep.subr.bf16.mxu0 %v3307_v12  ;;  %v192_v33 = vld [vmem:[%s3515_s29 + $0x20] sm:$0xff]  ;;  %v189_v34 = vld [vmem:[%s3515_s29 + $0x8] sm:$0xff]  ;;  %v3335_v2 = vld [vmem:[%s3875_s1 + $0x150] sm:$0xff]  }
  0x13   : > { %2941 = vmatprep.subr.bf16.mxu1 %v3308_v13  ;;  %v2469_v35 = vcombine.low %v188_v32, %v192_v33  ;;  %v2470_v36 = vcombine.high %v188_v32, %v192_v33  ;;  %v193_v37 = vld [vmem:[%s3515_s29 + $0x28] sm:$0xff]  ;;  %v3330_v43 = vld [vmem:[%s3875_s1 + $0x180] sm:$0xff]   ;;  %v3336_v4 = vld [vmem:[%s3875_s1 + $0x110] sm:$0xff]  }
  0x14   : > { %v2471_v38 = vcombine.low %v189_v34, %v193_v37  ;;  %v2472_v39 = vcombine.high %v189_v34, %v193_v37  ;;  %v196_v44 = vld [vmem:[%s3515_s29 + $0x40] sm:$0xff]  ;;  %v197_v47 = vld [vmem:[%s3515_s29 + $0x48] sm:$0xff]  ;;  %v3337_v7 = vld [vmem:[%s3875_s1 + $0x1d0] sm:$0xff]  }
  0x15   : > { %2830 = vmatpush3.bf16.msra.mxu0 %v3309_v14  ;;  %1500 = vmatprep.mubr.bf16.mxu0 %v2470_v36  ;;  %v200_v45 = vld [vmem:[%s3515_s29 + $0x60] sm:$0xff]  ;;  %v201_v48 = vld [vmem:[%s3515_s29 + $0x68] sm:$0xff]  ;;  %v3338_v9 = vld [vmem:[%s3875_s1 + $0x190] sm:$0xff]  }
  0x16   : > { %2942 = vmatpush3.bf16.msra.mxu1 %v3310_v15  ;;  %2831 = vmatprep.subr.bf16.mxu0 %v3311_v16  ;;  %v2478_v46 = vcombine.high %v196_v44, %v200_v45  ;;  %v204_v49 = vld [vmem:[%s3515_s29 + $0x80] sm:$0xff]  ;;  %v2480_v50 = vcombine.high %v197_v47, %v201_v48  ;;  %v205_v52 = vld [vmem:[%s3515_s29 + $0x88] sm:$0xff]  ;;  %v2477_v54 = vcombine.low %v196_v44, %v200_v45  ;;  %v3339_v14 = vld [vmem:[%s3875_s1 + $0x158] sm:$0xff]  }
  0x17   : > { %2943 = vmatprep.subr.bf16.mxu1 %v3312_v17  ;;  %1661 = vmatprep.mubr.bf16.mxu1 %v2472_v39  ;;  %v208_v51 = vld [vmem:[%s3515_s29 + $0xa0] sm:$0xff]  ;;  %v209_v53 = vld [vmem:[%s3515_s29 + $0xa8] sm:$0xff]  ;;  %v2479_v56 = vcombine.low %v197_v47, %v201_v48  ;;  %v3340_v15 = vld [vmem:[%s3875_s1 + $0x118] sm:$0xff]  }
  0x18   : > { %v3331_v55 = vld [vmem:[%s3875_s1 + $0x148] sm:$0xff]   ;;  %v2486_v57 = vcombine.high %v204_v49, %v208_v51  ;;  %v2488_v59 = vcombine.high %v205_v52, %v209_v53  ;;  %v212_v62 = vld [vmem:[%s3515_s29 + $0xc0] sm:$0xff]  ;;  %v2485_v3 = vcombine.low %v204_v49, %v208_v51  ;;  %v2487_v5 = vcombine.low %v205_v52, %v209_v53  ;;  %v3341_v17 = vld [vmem:[%s3875_s1 + $0x1d8] sm:$0xff]  }
  0x19   : > { %2832 = vmatpush3.bf16.msra.mxu0 %v3313_v18  ;;  %v3332_v58 = vld [vmem:[%s3875_s1 + $0x108] sm:$0xff]   ;;  %v216_v63 = vld [vmem:[%s3515_s29 + $0xe0] sm:$0xff]  ;;  %v3352_v47 = vld [vmem:[%s3875_s1 + $0x130] sm:$0xff]  }
  0x1a   : > { %2944 = vmatpush3.bf16.msra.mxu1 %v3314_v19  ;;  %2833 = vmatprep.subr.bf16.mxu0 %v3315_v20  ;;  %v3333_v60 = vld [vmem:[%s3875_s1 + $0x1c8] sm:$0xff]   ;;  %v2494_v6 = vcombine.high %v212_v62, %v216_v63  ;;  %v220_v10 = vld [vmem:[%s3515_s29 + $0x100] sm:$0xff]  ;;  %v2493_v16 = vcombine.low %v212_v62, %v216_v63  ;;  %v3342_v20 = vld [vmem:[%s3875_s1 + $0x198] sm:$0xff]  }
  0x1b   : > { %2945 = vmatprep.subr.bf16.mxu1 %v3316_v21  ;;  %v3334_v61 = vld [vmem:[%s3875_s1 + $0x188] sm:$0xff]   ;;  %v224_v11 = vld [vmem:[%s3515_s29 + $0x120] sm:$0xff]  ;;  %v3353_v48 = vld [vmem:[%s3875_s1 + $0x1f0] sm:$0xff]  }
  0x1c   : > { %v213_v0 = vld [vmem:[%s3515_s29 + $0xc8] sm:$0xff]  ;;  %v2502_v19 = vcombine.high %v220_v10, %v224_v11  ;;  %v3354_v49 = vld [vmem:[%s3875_s1 + $0x1b0] sm:$0xff]   ;;  %v248_v51 = vld [vmem:[%s3515_s29 + $0x1e0] sm:$0xff] }
  0x1d   : > { %2834 = vmatpush3.bf16.msra.mxu0 %v3317_v22  ;;  %v217_v1 = vld [vmem:[%s3515_s29 + $0xe8] sm:$0xff]  ;;  %v228_v22 = vld [vmem:[%s3515_s29 + $0x140] sm:$0xff] }
  0x1e   : > { %2946 = vmatpush3.bf16.msra.mxu1 %v3318_v23  ;;  %2835 = vmatprep.subr.bf16.mxu0 %v3319_v24  ;;  %v2496_v8 = vcombine.high %v213_v0, %v217_v1  ;;  %v221_v12 = vld [vmem:[%s3515_s29 + $0x108] sm:$0xff]  ;;  %v2495_v18 = vcombine.low %v213_v0, %v217_v1  ;;  %v232_v23 = vld [vmem:[%s3515_s29 + $0x160] sm:$0xff] }
  0x1f   : > { %2947 = vmatprep.subr.bf16.mxu1 %v3320_v25  ;;  %v225_v13 = vld [vmem:[%s3515_s29 + $0x128] sm:$0xff]  ;;  %v3343_v24 = vld [vmem:[%s3875_s1 + $0x160] sm:$0xff]   ;;  %v2510_v32 = vcombine.high %v228_v22, %v232_v23 }
  0x20   : > { %v2504_v21 = vcombine.high %v221_v12, %v225_v13  ;;  %v229_v25 = vld [vmem:[%s3515_s29 + $0x148] sm:$0xff]  ;;  %v252_v62 = vld [vmem:[%s3515_s29 + $0x200] sm:$0xff] }
  0x21   : > { %2836 = vmatpush3.bf16.msra.mxu0 %v3321_v26  ;;  %v233_v26 = vld [vmem:[%s3515_s29 + $0x168] sm:$0xff]  ;;  %v256_v63 = vld [vmem:[%s3515_s29 + $0x220] sm:$0xff] }
  0x22   : > { %2948 = vmatpush3.bf16.msra.mxu1 %v3322_v27  ;;  %2837 = vmatprep.subr.bf16.mxu0 %v3323_v28  ;;  %v3344_v27 = vld [vmem:[%s3875_s1 + $0x120] sm:$0xff]   ;;  %v2512_v33 = vcombine.high %v229_v25, %v233_v26  ;;  %v3347_v34 = vld [vmem:[%s3875_s1 + $0x168] sm:$0xff]  }
  0x23   : > { %2949 = vmatprep.subr.bf16.mxu1 %v3324_v29  ;;  %v3345_v28 = vld [vmem:[%s3875_s1 + $0x1e0] sm:$0xff]   ;;  %v3348_v36 = vld [vmem:[%s3875_s1 + $0x128] sm:$0xff]  }
  0x24   : > { %v3346_v29 = vld [vmem:[%s3875_s1 + $0x1a0] sm:$0xff]   ;;  %v3349_v37 = vld [vmem:[%s3875_s1 + $0x1e8] sm:$0xff]  }
  0x25   : > { %2838 = vmatpush3.bf16.msra.mxu0 %v3325_v30  ;;  %v2501_v30 = vcombine.low %v220_v10, %v224_v11  ;;  %v3350_v39 = vld [vmem:[%s3875_s1 + $0x1a8] sm:$0xff]   ;;  %v2533_v10 = vcombine.low %v252_v62, %v256_v63 }
  0x26   : > { %2950 = vmatpush3.bf16.msra.mxu1 %v3326_v31  ;;  %3047 = vmatprep.subr.bf16.mxu0 %v3327_v40  ;;  %v2503_v31 = vcombine.low %v221_v12, %v225_v13  ;;  %v237_v40 = vld [vmem:[%s3515_s29 + $0x188] sm:$0xff] }
  0x27   : > { %3159 = vmatprep.subr.bf16.mxu1 %v3329_v42  ;;  %v2509_v42 = vcombine.low %v228_v22, %v232_v23  ;;  %v245_v52 = vld [vmem:[%s3515_s29 + $0x1c8] sm:$0xff]  ;;  %v276_v22 = vld [vmem:[%s3515_s29 + $0x2c0] sm:$0xff] }
  0x28   : > { %1501 = vmatmul.mubr.bf16.vlgmr.msra.gmra.mrb[0].mxu0 %v2469_v35  ;;  %v236_v35 = vld [vmem:[%s3515_s29 + $0x180] sm:$0xff]  ;;  %v249_v53 = vld [vmem:[%s3515_s29 + $0x1e8] sm:$0xff] }
  0x29   : > { %1662 = vmatmul.mubr.bf16.vlgmr.msra.gmra.mrb[0].mxu1 %v2471_v38  ;;  %3048 = vmatpush3.bf16.msra.mxu0 %v3328_v41  ;;  %v240_v38 = vld [vmem:[%s3515_s29 + $0x1a0] sm:$0xff]  ;;  %v241_v41 = vld [vmem:[%s3515_s29 + $0x1a8] sm:$0xff] }
  0x2a   : > { %3160 = vmatpush3.bf16.msra.mxu1 %v3330_v43  ;;  %1508 = vmatprep.mubr.bf16.mxu0 %v2478_v46  ;;  %v2511_v43 = vcombine.low %v229_v25, %v233_v26  ;;  %v2518_v44 = vcombine.high %v236_v35, %v240_v38  ;;  %v2520_v45 = vcombine.high %v237_v40, %v241_v41  ;;  %v3351_v46 = vld [vmem:[%s3875_s1 + $0x170] sm:$0xff]   ;;  %v253_v0 = vld [vmem:[%s3515_s29 + $0x208] sm:$0xff]  ;;  %v280_v23 = vld [vmem:[%s3515_s29 + $0x2e0] sm:$0xff] }
  0x2b   : > { %1669 = vmatprep.mubr.bf16.mxu1 %v2480_v50  ;;  %3049 = vmatprep.subr.bf16.mxu0 %v3331_v55  ;;  %v244_v50 = vld [vmem:[%s3515_s29 + $0x1c0] sm:$0xff]  ;;  %v3355_v55 = vld [vmem:[%s3875_s1 + $0x178] sm:$0xff]   ;;  %v257_v1 = vld [vmem:[%s3515_s29 + $0x228] sm:$0xff] }
  0x2c   : > { %3161 = vmatprep.subr.bf16.mxu1 %v3333_v60  ;;  %v3357_v60 = vld [vmem:[%s3875_s1 + $0x1f8] sm:$0xff]   ;;  %v2535_v11 = vcombine.low %v253_v0, %v257_v1  ;;  %v281_v25 = vld [vmem:[%s3515_s29 + $0x2e8] sm:$0xff] }
  0x2d   : > { %3050 = vmatpush3.bf16.msra.mxu0 %v3332_v58  ;;  %v3356_v58 = vld [vmem:[%s3875_s1 + $0x138] sm:$0xff]  }
  0x2e   : > { %3162 = vmatpush3.bf16.msra.mxu1 %v3334_v61  ;;  %3051 = vmatprep.subr.bf16.mxu0 %v3335_v2  ;;  %v3358_v61 = vld [vmem:[%s3875_s1 + $0x1b8] sm:$0xff]   ;;  %v2525_v2 = vcombine.low %v244_v50, %v248_v51 }
  0x2f   : > { %3163 = vmatprep.subr.bf16.mxu1 %v3337_v7  ;;  %v264_v7 = vld [vmem:[%s3515_s29 + $0x260] sm:$0xff] }
  0x30   : > { %1509 = vmatmul.mubr.bf16.gmra.mrb[4].mxu0 %v2477_v54  ;;  %v2517_v54 = vcombine.low %v236_v35, %v240_v38  ;;  %v292_v38 = vld [vmem:[%s3515_s29 + $0x340] sm:$0xff] }
  0x31   : > { %1670 = vmatmul.mubr.bf16.gmra.mrb[4].mxu1 %v2479_v56  ;;  %1516 = vmatprep.mubr.bf16.mxu0 %v2486_v57  ;;  %v2519_v56 = vcombine.low %v237_v40, %v241_v41  ;;  %v2526_v57 = vcombine.high %v244_v50, %v248_v51  ;;  %v293_v40 = vld [vmem:[%s3515_s29 + $0x348] sm:$0xff] }
  0x32   : > { %1677 = vmatprep.mubr.bf16.mxu1 %v2488_v59  ;;  %3052 = vmatpush3.bf16.msra.mxu0 %v3336_v4  ;;  %v2528_v59 = vcombine.high %v245_v52, %v249_v53  ;;  %v2534_v4 = vcombine.high %v252_v62, %v256_v63  ;;  %v297_v41 = vld [vmem:[%s3515_s29 + $0x368] sm:$0xff]  ;;  %v190_v62 = vld [vmem:[%s3515_s29 + $0x10] sm:$0xff] }
  0x33   : > { %3164 = vmatpush3.bf16.msra.mxu1 %v3338_v9  ;;  %3053 = vmatprep.subr.bf16.mxu0 %v3339_v14  ;;  %v265_v9 = vld [vmem:[%s3515_s29 + $0x268] sm:$0xff]  ;;  %v268_v14 = vld [vmem:[%s3515_s29 + $0x280] sm:$0xff]  ;;  %v2575_v51 = vcombine.low %v293_v40, %v297_v41  ;;  %v194_v63 = vld [vmem:[%s3515_s29 + $0x30] sm:$0xff] }
  0x34   : > { %3165 = vmatprep.subr.bf16.mxu1 %v3341_v17  ;;  %v273_v17 = vld [vmem:[%s3515_s29 + $0x2a8] sm:$0xff] }
  0x36   : > { %3054 = vmatpush3.bf16.msra.mxu0 %v3340_v15  ;;  %v272_v15 = vld [vmem:[%s3515_s29 + $0x2a0] sm:$0xff] }
  0x37   : > { %3166 = vmatpush3.bf16.msra.mxu1 %v3342_v20  ;;  %3055 = vmatprep.subr.bf16.mxu0 %v3343_v24  ;;  %v2550_v20 = vcombine.high %v268_v14, %v272_v15  ;;  %v277_v24 = vld [vmem:[%s3515_s29 + $0x2c8] sm:$0xff]  ;;  %v2549_v26 = vcombine.low %v268_v14, %v272_v15  ;;  %v206_v14 = vld [vmem:[%s3515_s29 + $0x90] sm:$0xff] }
  0x38   : > { %1517 = vmatmul.mubr.bf16.gmra.mrb[8].mxu0 %v2485_v3  ;;  %3167 = vmatprep.subr.bf16.mxu1 %v3345_v28  ;;  %v2527_v3 = vcombine.low %v245_v52, %v249_v53  ;;  %v2558_v28 = vcombine.high %v276_v22, %v280_v23  ;;  %v2559_v35 = vcombine.low %v277_v24, %v281_v25  ;;  %v210_v15 = vld [vmem:[%s3515_s29 + $0xb0] sm:$0xff] }
  0x39   : > { %1678 = vmatmul.mubr.bf16.gmra.mrb[8].mxu1 %v2487_v5  ;;  %1524 = vmatprep.mubr.bf16.mxu0 %v2494_v6  ;;  %v2536_v5 = vcombine.high %v253_v0, %v257_v1  ;;  %v260_v6 = vld [vmem:[%s3515_s29 + $0x240] sm:$0xff]  ;;  %v191_v0 = vld [vmem:[%s3515_s29 + $0x18] sm:$0xff] }
  0x3a   : > { %1685 = vmatprep.mubr.bf16.mxu1 %v2496_v8  ;;  %3056 = vmatpush3.bf16.msra.mxu0 %v3344_v27  ;;  %v261_v8 = vld [vmem:[%s3515_s29 + $0x248] sm:$0xff]  ;;  %v2542_v12 = vcombine.high %v260_v6, %v264_v7  ;;  %v195_v1 = vld [vmem:[%s3515_s29 + $0x38] sm:$0xff] }
  0x3b   : > { %3168 = vmatpush3.bf16.msra.mxu1 %v3346_v29  ;;  %3057 = vmatprep.subr.bf16.mxu0 %v3347_v34  ;;  %v2544_v13 = vcombine.high %v261_v8, %v265_v9  ;;  %v2560_v29 = vcombine.high %v277_v24, %v281_v25  ;;  %v2557_v34 = vcombine.low %v276_v22, %v280_v23  ;;  %v214_v22 = vld [vmem:[%s3515_s29 + $0xd0] sm:$0xff]  ;;  %v215_v24 = vld [vmem:[%s3515_s29 + $0xd8] sm:$0xff] }
  0x3c   : > { %3169 = vmatprep.subr.bf16.mxu1 %v3349_v37  ;;  %v218_v23 = vld [vmem:[%s3515_s29 + $0xf0] sm:$0xff]  ;;  %v219_v25 = vld [vmem:[%s3515_s29 + $0xf8] sm:$0xff] }
  0x3e   : > { %3058 = vmatpush3.bf16.msra.mxu0 %v3348_v36 }
  0x3f   : > { %3170 = vmatpush3.bf16.msra.mxu1 %v3350_v39  ;;  %3059 = vmatprep.subr.bf16.mxu0 %v3351_v46  ;;  %v296_v39 = vld [vmem:[%s3515_s29 + $0x360] sm:$0xff] }
  0x40   : > { %1525 = vmatmul.mubr.bf16.gmra.mrb[12].mxu0 %v2493_v16  ;;  %3171 = vmatprep.subr.bf16.mxu1 %v3353_v48  ;;  %v269_v16 = vld [vmem:[%s3515_s29 + $0x288] sm:$0xff]  ;;  %v300_v46 = vld [vmem:[%s3515_s29 + $0x380] sm:$0xff]  ;;  %v2573_v50 = vcombine.low %v292_v38, %v296_v39 }
  0x41   : > { %1686 = vmatmul.mubr.bf16.gmra.mrb[12].mxu1 %v2495_v18  ;;  %1532 = vmatprep.mubr.bf16.mxu0 %v2502_v19  ;;  %v2541_v18 = vcombine.low %v260_v6, %v264_v7  ;;  %v2543_v19 = vcombine.low %v261_v8, %v265_v9  ;;  %v2551_v27 = vcombine.low %v269_v16, %v273_v17  ;;  %v301_v48 = vld [vmem:[%s3515_s29 + $0x388] sm:$0xff]  ;;  %v198_v6 = vld [vmem:[%s3515_s29 + $0x50] sm:$0xff]  ;;  %v199_v8 = vld [vmem:[%s3515_s29 + $0x58] sm:$0xff] }
  0x42   : > { %1693 = vmatprep.mubr.bf16.mxu1 %v2504_v21  ;;  %3060 = vmatpush3.bf16.msra.mxu0 %v3352_v47  ;;  %v2552_v21 = vcombine.high %v269_v16, %v273_v17  ;;  %v304_v47 = vld [vmem:[%s3515_s29 + $0x3a0] sm:$0xff]  ;;  %v202_v7 = vld [vmem:[%s3515_s29 + $0x70] sm:$0xff]  ;;  %v203_v9 = vld [vmem:[%s3515_s29 + $0x78] sm:$0xff] }
  0x43   : > { %3172 = vmatpush3.bf16.msra.mxu1 %v3354_v49  ;;  %3061 = vmatprep.subr.bf16.mxu0 %v3355_v55  ;;  %v305_v49 = vld [vmem:[%s3515_s29 + $0x3a8] sm:$0xff]  ;;  %v2582_v52 = vcombine.high %v300_v46, %v304_v47  ;;  %v312_v55 = vld [vmem:[%s3515_s29 + $0x3e0] sm:$0xff]  ;;  %v207_v16 = vld [vmem:[%s3515_s29 + $0x98] sm:$0xff] }
  0x44   : > { %3173 = vmatprep.subr.bf16.mxu1 %v3357_v60  ;;  %v2584_v53 = vcombine.high %v301_v48, %v305_v49  ;;  %v211_v17 = vld [vmem:[%s3515_s29 + $0xb8] sm:$0xff] }
  0x46   : > { %3062 = vmatpush3.bf16.msra.mxu0 %v3356_v58  ;;  %v2581_v58 = vcombine.low %v300_v46, %v304_v47  ;;  %v238_v46 = vld [vmem:[%s3515_s29 + $0x190] sm:$0xff] }
  0x47   : > { %3174 = vmatpush3.bf16.msra.mxu1 %v3358_v61  ;;  %v242_v47 = vld [vmem:[%s3515_s29 + $0x1b0] sm:$0xff] }
  0x48   : > { %1533 = vmatmul.mubr.bf16.gmra.mrb[16].mxu0 %v2501_v30  ;;  %v284_v30 = vld [vmem:[%s3515_s29 + $0x300] sm:$0xff] }
  0x49   : > { %1694 = vmatmul.mubr.bf16.gmra.mrb[16].mxu1 %v2503_v31  ;;  %1540 = vmatprep.mubr.bf16.mxu0 %v2510_v32  ;;  %v288_v31 = vld [vmem:[%s3515_s29 + $0x320] sm:$0xff]  ;;  %v285_v32 = vld [vmem:[%s3515_s29 + $0x308] sm:$0xff] }
  0x4a   : > { %1701 = vmatprep.mubr.bf16.mxu1 %v2512_v33  ;;  %v289_v33 = vld [vmem:[%s3515_s29 + $0x328] sm:$0xff]  ;;  %v2566_v36 = vcombine.high %v284_v30, %v288_v31 }
  0x4b   : > { %v2568_v37 = vcombine.high %v285_v32, %v289_v33 }
  0x50   : > { %1541 = vmatmul.mubr.bf16.gmra.mrb[20].mxu0 %v2509_v42  ;;  %v2565_v42 = vcombine.low %v284_v30, %v288_v31  ;;  %v222_v30 = vld [vmem:[%s3515_s29 + $0x110] sm:$0xff] }
  0x51   : > { %1702 = vmatmul.mubr.bf16.gmra.mrb[20].mxu1 %v2511_v43  ;;  %1548 = vmatprep.mubr.bf16.mxu0 %v2518_v44  ;;  %v2567_v43 = vcombine.low %v285_v32, %v289_v33  ;;  %v2574_v44 = vcombine.high %v292_v38, %v296_v39  ;;  %v226_v31 = vld [vmem:[%s3515_s29 + $0x130] sm:$0xff]  ;;  %v223_v32 = vld [vmem:[%s3515_s29 + $0x118] sm:$0xff] }
  0x52   : > { %1709 = vmatprep.mubr.bf16.mxu1 %v2520_v45  ;;  %v2576_v45 = vcombine.high %v293_v40, %v297_v41  ;;  %v227_v33 = vld [vmem:[%s3515_s29 + $0x138] sm:$0xff]  ;;  %v230_v38 = vld [vmem:[%s3515_s29 + $0x150] sm:$0xff] }
  0x53   : > { %v234_v39 = vld [vmem:[%s3515_s29 + $0x170] sm:$0xff]  ;;  %v231_v40 = vld [vmem:[%s3515_s29 + $0x158] sm:$0xff] }
  0x54   : > { %v235_v41 = vld [vmem:[%s3515_s29 + $0x178] sm:$0xff] }
  0x58   : > { %1549 = vmatmul.mubr.bf16.gmra.mrb[24].mxu0 %v2517_v54  ;;  %v308_v54 = vld [vmem:[%s3515_s29 + $0x3c0] sm:$0xff] }
  0x59   : > { %1710 = vmatmul.mubr.bf16.gmra.mrb[24].mxu1 %v2519_v56  ;;  %1556 = vmatprep.mubr.bf16.mxu0 %v2526_v57  ;;  %v309_v56 = vld [vmem:[%s3515_s29 + $0x3c8] sm:$0xff]  ;;  %v2590_v60 = vcombine.high %v308_v54, %v312_v55 }
  0x5a   : > { %1717 = vmatprep.mubr.bf16.mxu1 %v2528_v59  ;;  %v313_v57 = vld [vmem:[%s3515_s29 + $0x3e8] sm:$0xff]  ;;  %v2583_v59 = vcombine.low %v301_v48, %v305_v49  ;;  %v239_v48 = vld [vmem:[%s3515_s29 + $0x198] sm:$0xff] }
  0x5b   : > { %v2592_v61 = vcombine.high %v309_v56, %v313_v57  ;;  %v243_v49 = vld [vmem:[%s3515_s29 + $0x1b8] sm:$0xff] }
  0x60   : > { %1557 = vmatmul.mubr.bf16.gmra.mrb[28].mxu0 %v2525_v2  ;;  %v2589_v2 = vcombine.low %v308_v54, %v312_v55  ;;  %v246_v54 = vld [vmem:[%s3515_s29 + $0x1d0] sm:$0xff] }
  0x61   : > { %1718 = vmatmul.mubr.bf16.gmra.mrb[28].mxu1 %v2527_v3  ;;  %1564 = vmatprep.mubr.bf16.mxu0 %v2534_v4  ;;  %v2591_v3 = vcombine.low %v309_v56, %v313_v57  ;;  %v2474_v4 = vcombine.high %v190_v62, %v194_v63  ;;  %v250_v55 = vld [vmem:[%s3515_s29 + $0x1f0] sm:$0xff]  ;;  %v247_v56 = vld [vmem:[%s3515_s29 + $0x1d8] sm:$0xff] }
  0x62   : > { %1725 = vmatprep.mubr.bf16.mxu1 %v2536_v5  ;;  %v2476_v5 = vcombine.high %v191_v0, %v195_v1  ;;  %v251_v57 = vld [vmem:[%s3515_s29 + $0x1f8] sm:$0xff] }
  0x68   : > { %1565 = vmatmul.mubr.bf16.gmra.mrb[32].mxu0 %v2533_v10  ;;  %v2473_v10 = vcombine.low %v190_v62, %v194_v63  ;;  %v254_v62 = vld [vmem:[%s3515_s29 + $0x210] sm:$0xff] }
  0x69   : > { %1726 = vmatmul.mubr.bf16.gmra.mrb[32].mxu1 %v2535_v11  ;;  %1572 = vmatprep.mubr.bf16.mxu0 %v2542_v12  ;;  %v2475_v11 = vcombine.low %v191_v0, %v195_v1  ;;  %v2482_v12 = vcombine.high %v198_v6, %v202_v7  ;;  %v258_v63 = vld [vmem:[%s3515_s29 + $0x230] sm:$0xff]  ;;  %v255_v0 = vld [vmem:[%s3515_s29 + $0x218] sm:$0xff] }
  0x6a   : > { %1733 = vmatprep.mubr.bf16.mxu1 %v2544_v13  ;;  %v2484_v13 = vcombine.high %v199_v8, %v203_v9  ;;  %v259_v1 = vld [vmem:[%s3515_s29 + $0x238] sm:$0xff] }
  0x70   : > { %1573 = vmatmul.mubr.bf16.gmra.mrb[36].mxu0 %v2541_v18  ;;  %v2481_v18 = vcombine.low %v198_v6, %v202_v7  ;;  %v262_v6 = vld [vmem:[%s3515_s29 + $0x250] sm:$0xff] }
  0x71   : > { %1734 = vmatmul.mubr.bf16.gmra.mrb[36].mxu1 %v2543_v19  ;;  %1580 = vmatprep.mubr.bf16.mxu0 %v2550_v20  ;;  %v2483_v19 = vcombine.low %v199_v8, %v203_v9  ;;  %v2490_v20 = vcombine.high %v206_v14, %v210_v15  ;;  %v266_v7 = vld [vmem:[%s3515_s29 + $0x270] sm:$0xff]  ;;  %v263_v8 = vld [vmem:[%s3515_s29 + $0x258] sm:$0xff] }
  0x72   : > { %1741 = vmatprep.mubr.bf16.mxu1 %v2552_v21  ;;  %v2492_v21 = vcombine.high %v207_v16, %v211_v17  ;;  %v267_v9 = vld [vmem:[%s3515_s29 + $0x278] sm:$0xff] }
  0x78   : > { %1581 = vmatmul.mubr.bf16.gmra.mrb[40].mxu0 %v2549_v26  ;;  %v2489_v26 = vcombine.low %v206_v14, %v210_v15  ;;  %v270_v14 = vld [vmem:[%s3515_s29 + $0x290] sm:$0xff] }
  0x79   : > { %1742 = vmatmul.mubr.bf16.gmra.mrb[40].mxu1 %v2551_v27  ;;  %1588 = vmatprep.mubr.bf16.mxu0 %v2558_v28  ;;  %v2491_v27 = vcombine.low %v207_v16, %v211_v17  ;;  %v2498_v28 = vcombine.high %v214_v22, %v218_v23  ;;  %v274_v15 = vld [vmem:[%s3515_s29 + $0x2b0] sm:$0xff]  ;;  %v271_v16 = vld [vmem:[%s3515_s29 + $0x298] sm:$0xff] }
  0x7a   : > { %1749 = vmatprep.mubr.bf16.mxu1 %v2560_v29  ;;  %v2500_v29 = vcombine.high %v215_v24, %v219_v25  ;;  %v275_v17 = vld [vmem:[%s3515_s29 + $0x2b8] sm:$0xff] }
  0x80   : > { %1589 = vmatmul.mubr.bf16.gmra.mrb[44].mxu0 %v2557_v34  ;;  %v2497_v34 = vcombine.low %v214_v22, %v218_v23  ;;  %v278_v22 = vld [vmem:[%s3515_s29 + $0x2d0] sm:$0xff] }
  0x81   : > { %1750 = vmatmul.mubr.bf16.gmra.mrb[44].mxu1 %v2559_v35  ;;  %1596 = vmatprep.mubr.bf16.mxu0 %v2566_v36  ;;  %v2499_v35 = vcombine.low %v215_v24, %v219_v25  ;;  %v2506_v36 = vcombine.high %v222_v30, %v226_v31  ;;  %v282_v23 = vld [vmem:[%s3515_s29 + $0x2f0] sm:$0xff]  ;;  %v279_v24 = vld [vmem:[%s3515_s29 + $0x2d8] sm:$0xff] }
  0x82   : > { %1757 = vmatprep.mubr.bf16.mxu1 %v2568_v37  ;;  %v2508_v37 = vcombine.high %v223_v32, %v227_v33  ;;  %v283_v25 = vld [vmem:[%s3515_s29 + $0x2f8] sm:$0xff] }
  0x88   : > { %1597 = vmatmul.mubr.bf16.gmra.mrb[48].mxu0 %v2565_v42  ;;  %v2505_v42 = vcombine.low %v222_v30, %v226_v31  ;;  %v286_v30 = vld [vmem:[%s3515_s29 + $0x310] sm:$0xff] }
  0x89   : > { %1758 = vmatmul.mubr.bf16.gmra.mrb[48].mxu1 %v2567_v43  ;;  %1604 = vmatprep.mubr.bf16.mxu0 %v2574_v44  ;;  %v2507_v43 = vcombine.low %v223_v32, %v227_v33  ;;  %v2514_v44 = vcombine.high %v230_v38, %v234_v39  ;;  %v290_v31 = vld [vmem:[%s3515_s29 + $0x330] sm:$0xff]  ;;  %v287_v33 = vld [vmem:[%s3515_s29 + $0x318] sm:$0xff] }
  0x8a   : > { %1765 = vmatprep.mubr.bf16.mxu1 %v2576_v45  ;;  %v2516_v45 = vcombine.high %v231_v40, %v235_v41 }
  0x90   : > { %1605 = vmatmul.mubr.bf16.gmra.mrb[52].mxu0 %v2573_v50  ;;  %v2513_v50 = vcombine.low %v230_v38, %v234_v39 }
  0x91   : > { %1766 = vmatmul.mubr.bf16.gmra.mrb[52].mxu1 %v2575_v51  ;;  %1612 = vmatprep.mubr.bf16.mxu0 %v2582_v52  ;;  %v2515_v51 = vcombine.low %v231_v40, %v235_v41  ;;  %v2522_v52 = vcombine.high %v238_v46, %v242_v47  ;;  %v2563_v41 = vcombine.low %v279_v24, %v283_v25 }
  0x92   : > { %1773 = vmatprep.mubr.bf16.mxu1 %v2584_v53  ;;  %v2524_v53 = vcombine.high %v239_v48, %v243_v49 }
  0x98   : > { %1613 = vmatmul.mubr.bf16.gmra.mrb[56].mxu0 %v2581_v58  ;;  %v2521_v58 = vcombine.low %v238_v46, %v242_v47 }
  0x99   : > { %1774 = vmatmul.mubr.bf16.gmra.mrb[56].mxu1 %v2583_v59  ;;  %1620 = vmatprep.mubr.bf16.mxu0 %v2590_v60  ;;  %v2523_v59 = vcombine.low %v239_v48, %v243_v49  ;;  %v2530_v60 = vcombine.high %v246_v54, %v250_v55 }
  0x9a   : > { %1781 = vmatprep.mubr.bf16.mxu1 %v2592_v61  ;;  %v2532_v61 = vcombine.high %v247_v56, %v251_v57 }
  0xa0   : > { %1621 = vmatmul.mubr.bf16.gmra.mrb[60].mxu0 %v2589_v2  ;;  %v2529_v2 = vcombine.low %v246_v54, %v250_v55  ;;  %v295_v55 = vld [vmem:[%s3515_s29 + $0x358] sm:$0xff] }
  0xa1   : > { %1782 = vmatmul.mubr.bf16.gmra.mrb[60].mxu1 %v2591_v3  ;;  %1822 = vmatprep.mubr.bf16.mxu0 %v2474_v4  ;;  %v2531_v3 = vcombine.low %v247_v56, %v251_v57  ;;  %v2538_v4 = vcombine.high %v254_v62, %v258_v63  ;;  %v299_v56 = vld [vmem:[%s3515_s29 + $0x378] sm:$0xff] }
  0xa2   : > { %1983 = vmatprep.mubr.bf16.mxu1 %v2476_v5  ;;  %v2540_v5 = vcombine.high %v255_v0, %v259_v1 }
  0xa8   : > { %1823 = vmatmul.mubr.bf16.vlgmr.msra.gmra.mrb[64].mxu0 %v2473_v10  ;;  %v2537_v10 = vcombine.low %v254_v62, %v258_v63 }
  0xa9   : > { %1984 = vmatmul.mubr.bf16.vlgmr.msra.gmra.mrb[64].mxu1 %v2475_v11  ;;  %1830 = vmatprep.mubr.bf16.mxu0 %v2482_v12  ;;  %v2539_v11 = vcombine.low %v255_v0, %v259_v1  ;;  %v2546_v12 = vcombine.high %v262_v6, %v266_v7 }
  0xaa   : > { %1991 = vmatprep.mubr.bf16.mxu1 %v2484_v13  ;;  %v2548_v13 = vcombine.high %v263_v8, %v267_v9 }
  0xb0   : > { %1831 = vmatmul.mubr.bf16.gmra.mrb[68].mxu0 %v2481_v18  ;;  %v2545_v18 = vcombine.low %v262_v6, %v266_v7 }
  0xb1   : > { %1992 = vmatmul.mubr.bf16.gmra.mrb[68].mxu1 %v2483_v19  ;;  %1838 = vmatprep.mubr.bf16.mxu0 %v2490_v20  ;;  %v2547_v19 = vcombine.low %v263_v8, %v267_v9  ;;  %v2554_v20 = vcombine.high %v270_v14, %v274_v15 }
  0xb2   : > { %1999 = vmatprep.mubr.bf16.mxu1 %v2492_v21  ;;  %v2556_v21 = vcombine.high %v271_v16, %v275_v17 }
  0xb8   : > { %1839 = vmatmul.mubr.bf16.gmra.mrb[72].mxu0 %v2489_v26  ;;  %v2553_v26 = vcombine.low %v270_v14, %v274_v15  ;;  %v307_v14 = vld [vmem:[%s3515_s29 + $0x3b8] sm:$0xff] }
  0xb9   : > { %2000 = vmatmul.mubr.bf16.gmra.mrb[72].mxu1 %v2491_v27  ;;  %1846 = vmatprep.mubr.bf16.mxu0 %v2498_v28  ;;  %v2555_v27 = vcombine.low %v271_v16, %v275_v17  ;;  %v2562_v28 = vcombine.high %v278_v22, %v282_v23 }
  0xba   : > { %2007 = vmatprep.mubr.bf16.mxu1 %v2500_v29  ;;  %v2564_v29 = vcombine.high %v279_v24, %v283_v25 }
  0xc0   : > { %1847 = vmatmul.mubr.bf16.gmra.mrb[76].mxu0 %v2497_v34  ;;  %v291_v34 = vld [vmem:[%s3515_s29 + $0x338] sm:$0xff] }
  0xc1   : > { %2008 = vmatmul.mubr.bf16.gmra.mrb[76].mxu1 %v2499_v35  ;;  %1854 = vmatprep.mubr.bf16.mxu0 %v2506_v36  ;;  %v2572_v46 = vcombine.high %v287_v33, %v291_v34  ;;  %v2571_v63 = vcombine.low %v287_v33, %v291_v34  ;;  %v314_v33 = vld [vmem:[%s3515_s29 + $0x3f0] sm:$0xff] }
  0xc2   : > { %2015 = vmatprep.mubr.bf16.mxu1 %v2508_v37  ;;  %v2561_v37 = vcombine.low %v278_v22, %v282_v23 }
  0xc8   : > { %1855 = vmatmul.mubr.bf16.gmra.mrb[80].mxu0 %v2505_v42  ;;  %v2570_v42 = vcombine.high %v286_v30, %v290_v31 }
  0xc9   : > { %2016 = vmatmul.mubr.bf16.gmra.mrb[80].mxu1 %v2507_v43  ;;  %1862 = vmatprep.mubr.bf16.mxu0 %v2514_v44 }
  0xca   : > { %2023 = vmatprep.mubr.bf16.mxu1 %v2516_v45 }
  0xd0   : > { %1863 = vmatmul.mubr.bf16.gmra.mrb[84].mxu0 %v2513_v50 }
  0xd1   : > { %2024 = vmatmul.mubr.bf16.gmra.mrb[84].mxu1 %v2515_v51  ;;  %1870 = vmatprep.mubr.bf16.mxu0 %v2522_v52  ;;  %v294_v52 = vld [vmem:[%s3515_s29 + $0x350] sm:$0xff] }
  0xd2   : > { %2031 = vmatprep.mubr.bf16.mxu1 %v2524_v53  ;;  %v298_v53 = vld [vmem:[%s3515_s29 + $0x370] sm:$0xff] }
  0xd3   : > { %v2578_v0 = vcombine.high %v294_v52, %v298_v53  ;;  %v2577_v17 = vcombine.low %v294_v52, %v298_v53 }
  0xd8   : > { %1871 = vmatmul.mubr.bf16.gmra.mrb[88].mxu0 %v2521_v58 }
  0xd9   : > { %2032 = vmatmul.mubr.bf16.gmra.mrb[88].mxu1 %v2523_v59  ;;  %1878 = vmatprep.mubr.bf16.mxu0 %v2530_v60  ;;  %v2569_v59 = vcombine.low %v286_v30, %v290_v31 }
  0xda   : > { %2039 = vmatprep.mubr.bf16.mxu1 %v2532_v61 }
  0xe0   : > { %1879 = vmatmul.mubr.bf16.gmra.mrb[92].mxu0 %v2529_v2 }
  0xe1   : > { %2040 = vmatmul.mubr.bf16.gmra.mrb[92].mxu1 %v2531_v3  ;;  %1886 = vmatprep.mubr.bf16.mxu0 %v2538_v4  ;;  %v2580_v4 = vcombine.high %v295_v55, %v299_v56 }
  0xe2   : > { %2047 = vmatprep.mubr.bf16.mxu1 %v2540_v5 }
  0xe8   : > { %1887 = vmatmul.mubr.bf16.gmra.mrb[96].mxu0 %v2537_v10  ;;  %v302_v10 = vld [vmem:[%s3515_s29 + $0x390] sm:$0xff] }
  0xe9   : > { %2048 = vmatmul.mubr.bf16.gmra.mrb[96].mxu1 %v2539_v11  ;;  %1894 = vmatprep.mubr.bf16.mxu0 %v2546_v12  ;;  %v306_v11 = vld [vmem:[%s3515_s29 + $0x3b0] sm:$0xff] }
  0xea   : > { %2055 = vmatprep.mubr.bf16.mxu1 %v2548_v13  ;;  %v303_v13 = vld [vmem:[%s3515_s29 + $0x398] sm:$0xff]  ;;  %v2586_v22 = vcombine.high %v302_v10, %v306_v11 }
  0xf0   : > { %1895 = vmatmul.mubr.bf16.gmra.mrb[100].mxu0 %v2545_v18 }
  0xf1   : > { %2056 = vmatmul.mubr.bf16.gmra.mrb[100].mxu1 %v2547_v19  ;;  %1902 = vmatprep.mubr.bf16.mxu0 %v2554_v20 }
  0xf2   : > { %2063 = vmatprep.mubr.bf16.mxu1 %v2556_v21  ;;  %v2579_v21 = vcombine.low %v295_v55, %v299_v56 }
  0xf8   : > { %1903 = vmatmul.mubr.bf16.gmra.mrb[104].mxu0 %v2553_v26  ;;  %v2588_v26 = vcombine.high %v303_v13, %v307_v14 }
  0xf9   : > { %2064 = vmatmul.mubr.bf16.gmra.mrb[104].mxu1 %v2555_v27  ;;  %1910 = vmatprep.mubr.bf16.mxu0 %v2562_v28 }
  0xfa   : > { %2071 = vmatprep.mubr.bf16.mxu1 %v2564_v29 }
  0xfb   : > { %v2839_v32 = vpop.f32.mrb[0].mxu0 }
  0xfc   : > { %v2951_v35 = vpop.f32.mrb[0].mxu1  ;;  %v2840_v36 = vpop.f32.mrb[1].mxu0 }
  0xfd   : > { %v2841_v38 = vadd.f32 %v2840_v36, %v2839_v32  ;;  %v2952_v39 = vpop.f32.mrb[1].mxu1  ;;  %v2842_v40 = vpop.f32.mrb[2].mxu0  ;;  %v310_v32 = vld [vmem:[%s3515_s29 + $0x3d0] sm:$0xff]  ;;  %v315_v36 = vld [vmem:[%s3515_s29 + $0x3f8] sm:$0xff] }
  0xfe   : > { %v2953_v43 = vadd.f32 %v2952_v39, %v2951_v35  ;;  %v2954_v44 = vpop.f32.mrb[2].mxu1  ;;  %v2843_v45 = vpop.f32.mrb[3].mxu0  ;;  %v311_v35 = vld [vmem:[%s3515_s29 + $0x3d8] sm:$0xff]  ;;  %v2585_v39 = vcombine.low %v302_v10, %v306_v11  ;;  %s2468_s29 = sshll.u32 %s3882_s21, 2 }
  0xff   : > { %v2844_v47 = vadd.f32 %v2843_v45, %v2842_v40  ;;  %v2955_v48 = vpop.f32.mrb[3].mxu1  ;;  %s3817_s30 = scalar_lea.vmem %s3876_s2, %s2468_s29 }
 0x100   : > { %v3735_v49 = vadd.f32 %v2953_v43, %v2841_v38  ;;  %v2956_v50 = vadd.f32 %v2955_v48, %v2954_v44  ;;  %1911 = vmatmul.mubr.bf16.gmra.mrb[108].mxu0 %v2561_v37  ;;  %v2587_v43 = vcombine.low %v303_v13, %v307_v14  ;;  %v2594_v44 = vcombine.high %v310_v32, %v314_v33 }
 0x101   : > { %2072 = vmatmul.mubr.bf16.gmra.mrb[108].mxu1 %v2563_v41  ;;  %1918 = vmatprep.mubr.bf16.mxu0 %v2570_v42  ;;  %v2596_v48 = vcombine.high %v311_v35, %v315_v36 }
 0x102   : > { %v3737_v51 = vadd.f32 %v2956_v50, %v2844_v47  ;;  %2079 = vmatprep.mubr.bf16.mxu1 %v2572_v46 }
 0x103   : > { %v2845_v54 = vpop.f32.mrb[4].mxu0 }
 0x104   : > { %v2957_v57 = vpop.f32.mrb[4].mxu1  ;;  %v2846_v58 = vpop.f32.mrb[5].mxu0 }
 0x105   : > { %v2847_v60 = vadd.f32 %v2846_v58, %v2845_v54  ;;  %v2958_v61 = vpop.f32.mrb[5].mxu1  ;;  %v2848_v62 = vpop.f32.mrb[6].mxu0 }
 0x106   : > { %v2959_v1 = vadd.f32 %v2958_v61, %v2957_v57  ;;  %v2960_v2 = vpop.f32.mrb[6].mxu1  ;;  %v2849_v3 = vpop.f32.mrb[7].mxu0 }
 0x107   : > { %v2850_v5 = vadd.f32 %v2849_v3, %v2848_v62  ;;  %v2961_v6 = vpop.f32.mrb[7].mxu1 }
 0x108   : > { %v3743_v7 = vadd.f32 %v2959_v1, %v2847_v60  ;;  %v2962_v8 = vadd.f32 %v2961_v6, %v2960_v2  ;;  %1919 = vmatmul.mubr.bf16.gmra.mrb[112].mxu0 %v2569_v59  ;;  %v2593_v59 = vcombine.low %v310_v32, %v314_v33 }
 0x109   : > { %2080 = vmatmul.mubr.bf16.gmra.mrb[112].mxu1 %v2571_v63  ;;  %1926 = vmatprep.mubr.bf16.mxu0 %v2578_v0  ;;  %v2595_v63 = vcombine.low %v311_v35, %v315_v36 }
 0x10a   : > { %v3745_v9 = vadd.f32 %v2962_v8, %v2850_v5  ;;  %2087 = vmatprep.mubr.bf16.mxu1 %v2580_v4 }
 0x10b   : > { %v2851_v12 = vpop.f32.mrb[8].mxu0 }
 0x10c   : > { %v2963_v15 = vpop.f32.mrb[8].mxu1  ;;  %v2852_v16 = vpop.f32.mrb[9].mxu0 }
 0x10d   : > { %v2853_v18 = vadd.f32 %v2852_v16, %v2851_v12  ;;  %v2964_v19 = vpop.f32.mrb[9].mxu1  ;;  %v2854_v20 = vpop.f32.mrb[10].mxu0 }
 0x10e   : > { %v2965_v23 = vadd.f32 %v2964_v19, %v2963_v15  ;;  %v2966_v24 = vpop.f32.mrb[10].mxu1  ;;  %v2855_v25 = vpop.f32.mrb[11].mxu0 }
 0x10f   : > { %v2856_v27 = vadd.f32 %v2855_v25, %v2854_v20  ;;  %v2967_v28 = vpop.f32.mrb[11].mxu1 }
 0x110   : > { %v3751_v29 = vadd.f32 %v2965_v23, %v2853_v18  ;;  %v2968_v30 = vadd.f32 %v2967_v28, %v2966_v24  ;;  %1927 = vmatmul.mubr.bf16.gmra.mrb[116].mxu0 %v2577_v17 }
 0x111   : > { %2088 = vmatmul.mubr.bf16.gmra.mrb[116].mxu1 %v2579_v21  ;;  %1934 = vmatprep.mubr.bf16.mxu0 %v2586_v22 }
 0x112   : > { %v3753_v31 = vadd.f32 %v2968_v30, %v2856_v27  ;;  %2095 = vmatprep.mubr.bf16.mxu1 %v2588_v26 }
 0x113   : > { %v2857_v34 = vpop.f32.mrb[12].mxu0 }
 0x114   : > { %v2969_v37 = vpop.f32.mrb[12].mxu1  ;;  %v2858_v38 = vpop.f32.mrb[13].mxu0 }
 0x115   : > { %v2859_v40 = vadd.f32 %v2858_v38, %v2857_v34  ;;  %v2970_v41 = vpop.f32.mrb[13].mxu1  ;;  %v2860_v42 = vpop.f32.mrb[14].mxu0 }
 0x116   : > { %v2971_v45 = vadd.f32 %v2970_v41, %v2969_v37  ;;  %v2972_v46 = vpop.f32.mrb[14].mxu1  ;;  %v2861_v47 = vpop.f32.mrb[15].mxu0 }
 0x117   : > { %v2862_v50 = vadd.f32 %v2861_v47, %v2860_v42  ;;  %v2973_v52 = vpop.f32.mrb[15].mxu1 }
 0x118   : > { %v3759_v53 = vadd.f32 %v2971_v45, %v2859_v40  ;;  %v2974_v54 = vadd.f32 %v2973_v52, %v2972_v46  ;;  %1935 = vmatmul.mubr.bf16.gmra.mrb[120].mxu0 %v2585_v39 }
 0x119   : > { %2096 = vmatmul.mubr.bf16.gmra.mrb[120].mxu1 %v2587_v43  ;;  %1942 = vmatprep.mubr.bf16.mxu0 %v2594_v44 }
 0x11a   : > { %v3761_v55 = vadd.f32 %v2974_v54, %v2862_v50  ;;  %2103 = vmatprep.mubr.bf16.mxu1 %v2596_v48 }
 0x11b   : > { %v2863_v56 = vpop.f32.mrb[16].mxu0 }
 0x11c   : > { %v2975_v57 = vpop.f32.mrb[16].mxu1  ;;  %v2864_v58 = vpop.f32.mrb[17].mxu0 }
 0x11d   : > { %v2865_v60 = vadd.f32 %v2864_v58, %v2863_v56  ;;  %v2976_v61 = vpop.f32.mrb[17].mxu1  ;;  %v2866_v62 = vpop.f32.mrb[18].mxu0 }
 0x11e   : > { %v2977_v0 = vadd.f32 %v2976_v61, %v2975_v57  ;;  %v2978_v1 = vpop.f32.mrb[18].mxu1  ;;  %v2867_v2 = vpop.f32.mrb[19].mxu0 }
 0x11f   : > { %v2868_v3 = vadd.f32 %v2867_v2, %v2866_v62  ;;  %v2979_v4 = vpop.f32.mrb[19].mxu1 }
 0x120   : > { %v3763_v5 = vadd.f32 %v2977_v0, %v2865_v60  ;;  %v2980_v6 = vadd.f32 %v2979_v4, %v2978_v1  ;;  %1943 = vmatmul.mubr.bf16.gmra.mrb[124].mxu0 %v2593_v59 }
 0x121   : > { %2104 = vmatmul.mubr.bf16.gmra.mrb[124].mxu1 %v2595_v63 }
 0x122   : > { %v3765_v8 = vadd.f32 %v2980_v6, %v2868_v3 }
 0x123   : > { %v2869_v10 = vpop.f32.mrb[20].mxu0 }
 0x124   : > { %v2981_v11 = vpop.f32.mrb[20].mxu1  ;;  %v2870_v12 = vpop.f32.mrb[21].mxu0 }
 0x125   : > { %v2871_v13 = vadd.f32 %v2870_v12, %v2869_v10  ;;  %v2982_v14 = vpop.f32.mrb[21].mxu1  ;;  %v2872_v15 = vpop.f32.mrb[22].mxu0 }
 0x126   : > { %v2983_v16 = vadd.f32 %v2982_v14, %v2981_v11  ;;  %v2984_v17 = vpop.f32.mrb[22].mxu1  ;;  %v2873_v18 = vpop.f32.mrb[23].mxu0 }
 0x127   : > { %v2874_v19 = vadd.f32 %v2873_v18, %v2872_v15  ;;  %v2985_v20 = vpop.f32.mrb[23].mxu1 }
 0x128   : > { %v3767_v21 = vadd.f32 %v2983_v16, %v2871_v13  ;;  %v2986_v22 = vadd.f32 %v2985_v20, %v2984_v17 }
 0x12a   : > { %v3769_v23 = vadd.f32 %v2986_v22, %v2874_v19 }
 0x12b   : > { %v2875_v24 = vpop.f32.mrb[24].mxu0 }
 0x12c   : > { %v2987_v25 = vpop.f32.mrb[24].mxu1  ;;  %v2876_v26 = vpop.f32.mrb[25].mxu0 }
 0x12d   : > { %v2877_v27 = vadd.f32 %v2876_v26, %v2875_v24  ;;  %v2988_v28 = vpop.f32.mrb[25].mxu1  ;;  %v2878_v30 = vpop.f32.mrb[26].mxu0 }
 0x12e   : > { %v2989_v32 = vadd.f32 %v2988_v28, %v2987_v25  ;;  %v2990_v33 = vpop.f32.mrb[26].mxu1  ;;  %v2879_v34 = vpop.f32.mrb[27].mxu0 }
 0x12f   : > { %v2880_v35 = vadd.f32 %v2879_v34, %v2878_v30  ;;  %v2991_v36 = vpop.f32.mrb[27].mxu1 }
 0x130   : > { %v3771_v37 = vadd.f32 %v2989_v32, %v2877_v27  ;;  %v2992_v38 = vadd.f32 %v2991_v36, %v2990_v33 }
 0x132   : > { %v3773_v39 = vadd.f32 %v2992_v38, %v2880_v35 }
 0x133   : > { %v2881_v40 = vpop.f32.mrb[28].mxu0 }
 0x134   : > { %v2993_v41 = vpop.f32.mrb[28].mxu1  ;;  %v2882_v42 = vpop.f32.mrb[29].mxu0 }
 0x135   : > { %v2883_v43 = vadd.f32 %v2882_v42, %v2881_v40  ;;  %v2994_v44 = vpop.f32.mrb[29].mxu1  ;;  %v2884_v45 = vpop.f32.mrb[30].mxu0 }
 0x136   : > { %v2995_v46 = vadd.f32 %v2994_v44, %v2993_v41  ;;  %v2996_v47 = vpop.f32.mrb[30].mxu1  ;;  %v2885_v48 = vpop.f32.mrb[31].mxu0 }
 0x137   : > { %v2886_v50 = vadd.f32 %v2885_v48, %v2884_v45  ;;  %v2997_v52 = vpop.f32.mrb[31].mxu1 }
 0x138   : > { %v3775_v54 = vadd.f32 %v2995_v46, %v2883_v43  ;;  %v2998_v56 = vadd.f32 %v2997_v52, %v2996_v47 }
 0x13a   : > { %v3777_v57 = vadd.f32 %v2998_v56, %v2886_v50 }
 0x13b   : > { %v2887_v58 = vpop.f32.mrb[32].mxu0 }
 0x13c   : > { %v2999_v59 = vpop.f32.mrb[32].mxu1  ;;  %v2888_v60 = vpop.f32.mrb[33].mxu0 }
 0x13d   : > { %v2889_v61 = vadd.f32 %v2888_v60, %v2887_v58  ;;  %v3000_v62 = vpop.f32.mrb[33].mxu1  ;;  %v2890_v63 = vpop.f32.mrb[34].mxu0 }
 0x13e   : > { %v3001_v0 = vadd.f32 %v3000_v62, %v2999_v59  ;;  %v3002_v1 = vpop.f32.mrb[34].mxu1  ;;  %v2891_v2 = vpop.f32.mrb[35].mxu0 }
 0x13f   : > { %v2892_v3 = vadd.f32 %v2891_v2, %v2890_v63  ;;  %v3003_v4 = vpop.f32.mrb[35].mxu1 }
 0x140   : > { %v3779_v6 = vadd.f32 %v3001_v0, %v2889_v61  ;;  %v3004_v10 = vadd.f32 %v3003_v4, %v3002_v1 }
 0x142   : > { %v3781_v11 = vadd.f32 %v3004_v10, %v2892_v3 }
 0x143   : > { %v2893_v12 = vpop.f32.mrb[36].mxu0 }
 0x144   : > { %v3005_v13 = vpop.f32.mrb[36].mxu1  ;;  %v2894_v14 = vpop.f32.mrb[37].mxu0 }
 0x145   : > { %v2895_v15 = vadd.f32 %v2894_v14, %v2893_v12  ;;  %v3006_v16 = vpop.f32.mrb[37].mxu1  ;;  %v2896_v17 = vpop.f32.mrb[38].mxu0 }
 0x146   : > { %v3007_v18 = vadd.f32 %v3006_v16, %v3005_v13  ;;  %v3008_v19 = vpop.f32.mrb[38].mxu1  ;;  %v2897_v20 = vpop.f32.mrb[39].mxu0 }
 0x147   : > { %v2898_v22 = vadd.f32 %v2897_v20, %v2896_v17  ;;  %v3009_v24 = vpop.f32.mrb[39].mxu1 }
 0x148   : > { %v3783_v25 = vadd.f32 %v3007_v18, %v2895_v15  ;;  %v3010_v26 = vadd.f32 %v3009_v24, %v3008_v19 }
 0x14a   : > { %v3785_v27 = vadd.f32 %v3010_v26, %v2898_v22 }
 0x14b   : > { %v2899_v28 = vpop.f32.mrb[40].mxu0 }
 0x14c   : > { %v3011_v30 = vpop.f32.mrb[40].mxu1  ;;  %v2900_v32 = vpop.f32.mrb[41].mxu0 }
 0x14d   : > { %v2901_v33 = vadd.f32 %v2900_v32, %v2899_v28  ;;  %v3012_v34 = vpop.f32.mrb[41].mxu1  ;;  %v2902_v35 = vpop.f32.mrb[42].mxu0 }
 0x14e   : > { %v3013_v36 = vadd.f32 %v3012_v34, %v3011_v30  ;;  %v3014_v38 = vpop.f32.mrb[42].mxu1  ;;  %v2903_v40 = vpop.f32.mrb[43].mxu0 }
 0x14f   : > { %v2904_v41 = vadd.f32 %v2903_v40, %v2902_v35  ;;  %v3015_v42 = vpop.f32.mrb[43].mxu1 }
 0x150   : > { %v3787_v43 = vadd.f32 %v3013_v36, %v2901_v33  ;;  %v3016_v44 = vadd.f32 %v3015_v42, %v3014_v38 }
 0x152   : > { %v3789_v45 = vadd.f32 %v3016_v44, %v2904_v41 }
 0x153   : > { %v2905_v46 = vpop.f32.mrb[44].mxu0 }
 0x154   : > { %v3017_v47 = vpop.f32.mrb[44].mxu1  ;;  %v2906_v48 = vpop.f32.mrb[45].mxu0 }
 0x155   : > { %v2907_v50 = vadd.f32 %v2906_v48, %v2905_v46  ;;  %v3018_v52 = vpop.f32.mrb[45].mxu1  ;;  %v2908_v56 = vpop.f32.mrb[46].mxu0 }
 0x156   : > { %v3019_v58 = vadd.f32 %v3018_v52, %v3017_v47  ;;  %v3020_v59 = vpop.f32.mrb[46].mxu1  ;;  %v2909_v60 = vpop.f32.mrb[47].mxu0 }
 0x157   : > { %v2910_v61 = vadd.f32 %v2909_v60, %v2908_v56  ;;  %v3021_v62 = vpop.f32.mrb[47].mxu1 }
 0x158   : > { %v3791_v63 = vadd.f32 %v3019_v58, %v2907_v50  ;;  %v3022_v0 = vadd.f32 %v3021_v62, %v3020_v59 }
 0x15a   : > { %v3793_v1 = vadd.f32 %v3022_v0, %v2910_v61 }
 0x15b   : > { %v2911_v2 = vpop.f32.mrb[48].mxu0 }
 0x15c   : > { %v3023_v3 = vpop.f32.mrb[48].mxu1  ;;  %v2912_v4 = vpop.f32.mrb[49].mxu0 }
 0x15d   : > { %v2913_v10 = vadd.f32 %v2912_v4, %v2911_v2  ;;  %v3024_v12 = vpop.f32.mrb[49].mxu1  ;;  %v2914_v13 = vpop.f32.mrb[50].mxu0 }
 0x15e   : > { %v3025_v14 = vadd.f32 %v3024_v12, %v3023_v3  ;;  %v3026_v15 = vpop.f32.mrb[50].mxu1  ;;  %v2915_v16 = vpop.f32.mrb[51].mxu0 }
 0x15f   : > { %v2916_v17 = vadd.f32 %v2915_v16, %v2914_v13  ;;  %v3027_v18 = vpop.f32.mrb[51].mxu1 }
 0x160   : > { %v3795_v19 = vadd.f32 %v3025_v14, %v2913_v10  ;;  %v3028_v20 = vadd.f32 %v3027_v18, %v3026_v15 }
 0x162   : > { %v3797_v22 = vadd.f32 %v3028_v20, %v2916_v17 }
 0x163   : > { %v2917_v24 = vpop.f32.mrb[52].mxu0 }
 0x164   : > { %v3029_v26 = vpop.f32.mrb[52].mxu1  ;;  %v2918_v28 = vpop.f32.mrb[53].mxu0 }
 0x165   : > { %v2919_v30 = vadd.f32 %v2918_v28, %v2917_v24  ;;  %v3030_v32 = vpop.f32.mrb[53].mxu1  ;;  %v2920_v33 = vpop.f32.mrb[54].mxu0 }
 0x166   : > { %v3031_v34 = vadd.f32 %v3030_v32, %v3029_v26  ;;  %v3032_v35 = vpop.f32.mrb[54].mxu1  ;;  %v2921_v36 = vpop.f32.mrb[55].mxu0 }
 0x167   : > { %v2922_v38 = vadd.f32 %v2921_v36, %v2920_v33  ;;  %v3033_v40 = vpop.f32.mrb[55].mxu1 }
 0x168   : > { %v3799_v41 = vadd.f32 %v3031_v34, %v2919_v30  ;;  %v3034_v42 = vadd.f32 %v3033_v40, %v3032_v35 }
 0x16a   : > { %v3801_v44 = vadd.f32 %v3034_v42, %v2922_v38 }
 0x16b   : > { %v2923_v46 = vpop.f32.mrb[56].mxu0 }
 0x16c   : > { %v3035_v47 = vpop.f32.mrb[56].mxu1  ;;  %v2924_v48 = vpop.f32.mrb[57].mxu0 }
 0x16d   : > { %v2925_v50 = vadd.f32 %v2924_v48, %v2923_v46  ;;  %v3036_v52 = vpop.f32.mrb[57].mxu1  ;;  %v2926_v56 = vpop.f32.mrb[58].mxu0 }
 0x16e   : > { %v3037_v58 = vadd.f32 %v3036_v52, %v3035_v47  ;;  %v3038_v59 = vpop.f32.mrb[58].mxu1  ;;  %v2927_v60 = vpop.f32.mrb[59].mxu0 }
 0x16f   : > { %v2928_v61 = vadd.f32 %v2927_v60, %v2926_v56  ;;  %v3039_v62 = vpop.f32.mrb[59].mxu1 }
 0x170   : > { %v3803_v0 = vadd.f32 %v3037_v58, %v2925_v50  ;;  %v3040_v2 = vadd.f32 %v3039_v62, %v3038_v59 }
 0x172   : > { %v3805_v3 = vadd.f32 %v3040_v2, %v2928_v61 }
 0x173   : > { %v2929_v4 = vpop.f32.mrb[60].mxu0 }
 0x174   : > { %v3041_v10 = vpop.f32.mrb[60].mxu1  ;;  %v2930_v12 = vpop.f32.mrb[61].mxu0 }
 0x175   : > { %v2931_v13 = vadd.f32 %v2930_v12, %v2929_v4  ;;  %v3042_v14 = vpop.f32.mrb[61].mxu1  ;;  %v2932_v15 = vpop.f32.mrb[62].mxu0 }
 0x176   : > { %v3043_v16 = vadd.f32 %v3042_v14, %v3041_v10  ;;  %v3044_v17 = vpop.f32.mrb[62].mxu1  ;;  %v2933_v18 = vpop.f32.mrb[63].mxu0 }
 0x177   : > { %v2934_v20 = vadd.f32 %v2933_v18, %v2932_v15  ;;  %v3045_v24 = vpop.f32.mrb[63].mxu1 }
 0x178   : > { %v3807_v26 = vadd.f32 %v3043_v16, %v2931_v13  ;;  %v3046_v28 = vadd.f32 %v3045_v24, %v3044_v17 }
 0x17a   : > { %v3809_v30 = vadd.f32 %v3046_v28, %v2934_v20 }
 0x17b   : > { %v3063_v32 = vpop.f32.mrb[64].mxu0 }
 0x17c   : > { %v3175_v33 = vpop.f32.mrb[64].mxu1  ;;  %v3064_v34 = vpop.f32.mrb[65].mxu0 }
 0x17d   : > { %v3065_v35 = vadd.f32 %v3064_v34, %v3063_v32  ;;  %v3176_v36 = vpop.f32.mrb[65].mxu1  ;;  %v3066_v38 = vpop.f32.mrb[66].mxu0 }
 0x17e   : > { %v3177_v40 = vadd.f32 %v3176_v36, %v3175_v33  ;;  %v3178_v42 = vpop.f32.mrb[66].mxu1  ;;  %v3067_v46 = vpop.f32.mrb[67].mxu0 }
 0x17f   : > { %v1825_v47 = vadd.f32 %v3065_v35, %v3735_v49  ;;  %v3068_v48 = vadd.f32 %v3067_v46, %v3066_v38  ;;  %v3179_v50 = vpop.f32.mrb[67].mxu1 }
 0x180   : > { %v3180_v52 = vadd.f32 %v3179_v50, %v3178_v42 }
 0x181   : > { %v1986_v56 = vadd.f32 %v3177_v40, %v1825_v47  ;;  %v1828_v58 = vadd.f32 %v3068_v48, %v3737_v51 }
 0x183   : > { %v2144_v59 = vmul.f32 0.2, %v1986_v56  ;;  %v1989_v60 = vadd.f32 %v3180_v52, %v1828_v58  ;;  %v3069_v61 = vpop.f32.mrb[68].mxu0  ;;  %vm2112_vm0 = vcmp.gt.f32.partialorder %v1986_v56, 0.0 }
 0x184   : > { %v3181_v62 = vpop.f32.mrb[68].mxu1  ;;  %v3070_v2 = vpop.f32.mrb[69].mxu0 }
 0x185   : > { %vm2113_vm1 = vcmp.gt.f32.partialorder %v1989_v60, 0.0  ;;  %v2145_v4 = vmul.f32 0.2, %v1989_v60  ;;  %v3071_v10 = vadd.f32 %v3070_v2, %v3069_v61  ;;  %v3182_v12 = vpop.f32.mrb[69].mxu1  ;;  %v3072_v13 = vpop.f32.mrb[70].mxu0  ;;  %v2176_v16 = vsel %vm2112_vm0, %v1986_v56, %v2144_v59 }
 0x186   : > { %v3183_v14 = vadd.f32 %v3182_v12, %v3181_v62  ;;  %v3184_v49 = vpop.f32.mrb[70].mxu1  ;;  %v3073_v15 = vpop.f32.mrb[71].mxu0 }
 0x187   : > { %v2177_v51 = vsel %vm2113_vm1, %v1989_v60, %v2145_v4  ;;  %v1833_v17 = vadd.f32 %v3071_v10, %v3743_v7  ;;  %v3074_v18 = vadd.f32 %v3073_v15, %v3072_v13  ;;  %v3185_v20 = vpop.f32.mrb[71].mxu1 }
 0x188   : > { %v2731_v24 = vpack.c.bf16 %v2177_v51, %v2176_v16  ;;  %v3186_v28 = vadd.f32 %v3185_v20, %v3184_v49 }
 0x189   : > { %v1994_v32 = vadd.f32 %v3183_v14, %v1833_v17  ;;  %v1836_v33 = vadd.f32 %v3074_v18, %v3745_v9 }
 0x18a   : > { %2732 = vst [vmem:[%s3817_s30] sm:$0xff] %v2731_v24  }
 0x18b   : > { %v2146_v34 = vmul.f32 0.2, %v1994_v32  ;;  %v1997_v35 = vadd.f32 %v3186_v28, %v1836_v33  ;;  %v3075_v36 = vpop.f32.mrb[72].mxu0  ;;  %vm2114_vm2 = vcmp.gt.f32.partialorder %v1994_v32, 0.0 }
 0x18c   : > { %v3187_v38 = vpop.f32.mrb[72].mxu1  ;;  %v3076_v40 = vpop.f32.mrb[73].mxu0 }
 0x18d   : > { %vm2115_vm3 = vcmp.gt.f32.partialorder %v1997_v35, 0.0  ;;  %v2147_v42 = vmul.f32 0.2, %v1997_v35  ;;  %v3077_v46 = vadd.f32 %v3076_v40, %v3075_v36  ;;  %v3188_v47 = vpop.f32.mrb[73].mxu1  ;;  %v3078_v7 = vpop.f32.mrb[74].mxu0  ;;  %v2178_v56 = vsel %vm2114_vm2, %v1994_v32, %v2146_v34 }
 0x18e   : > { %v3189_v48 = vadd.f32 %v3188_v47, %v3187_v38  ;;  %v3190_v50 = vpop.f32.mrb[74].mxu1  ;;  %v3079_v52 = vpop.f32.mrb[75].mxu0 }
 0x18f   : > { %v2179_v58 = vsel %vm2115_vm3, %v1997_v35, %v2147_v42  ;;  %v1841_v9 = vadd.f32 %v3077_v46, %v3751_v29  ;;  %v3080_v59 = vadd.f32 %v3079_v52, %v3078_v7  ;;  %v3191_v60 = vpop.f32.mrb[75].mxu1 }
 0x190   : > { %v2736_v61 = vpack.c.bf16 %v2179_v58, %v2178_v56  ;;  %v3192_v62 = vadd.f32 %v3191_v60, %v3190_v50 }
 0x191   : > { %v2002_v2 = vadd.f32 %v3189_v48, %v1841_v9  ;;  %v1844_v4 = vadd.f32 %v3080_v59, %v3753_v31 }
 0x192   : > { %2808 = vst [vmem:[%s3817_s30 + $0x8] sm:$0xff] %v2736_v61  }
 0x193   : > { %v2148_v10 = vmul.f32 0.2, %v2002_v2  ;;  %v2005_v12 = vadd.f32 %v3192_v62, %v1844_v4  ;;  %v3081_v13 = vpop.f32.mrb[76].mxu0  ;;  %vm2116_vm4 = vcmp.gt.f32.partialorder %v2002_v2, 0.0 }
 0x194   : > { %v3193_v14 = vpop.f32.mrb[76].mxu1  ;;  %v3082_v49 = vpop.f32.mrb[77].mxu0 }
 0x195   : > { %vm2117_vm5 = vcmp.gt.f32.partialorder %v2005_v12, 0.0  ;;  %v2149_v15 = vmul.f32 0.2, %v2005_v12  ;;  %v3083_v16 = vadd.f32 %v3082_v49, %v3081_v13  ;;  %v3194_v51 = vpop.f32.mrb[77].mxu1  ;;  %v3084_v29 = vpop.f32.mrb[78].mxu0  ;;  %v2180_v24 = vsel %vm2116_vm4, %v2002_v2, %v2148_v10 }
 0x196   : > { %v3195_v17 = vadd.f32 %v3194_v51, %v3193_v14  ;;  %v3196_v18 = vpop.f32.mrb[78].mxu1  ;;  %v3085_v20 = vpop.f32.mrb[79].mxu0 }
 0x197   : > { %v2181_v28 = vsel %vm2117_vm5, %v2005_v12, %v2149_v15  ;;  %v1849_v31 = vadd.f32 %v3083_v16, %v3759_v53  ;;  %v3086_v32 = vadd.f32 %v3085_v20, %v3084_v29  ;;  %v3197_v33 = vpop.f32.mrb[79].mxu1 }
 0x198   : > { %v2741_v34 = vpack.c.bf16 %v2181_v28, %v2180_v24  ;;  %v3198_v35 = vadd.f32 %v3197_v33, %v3196_v18 }
 0x199   : > { %v2010_v36 = vadd.f32 %v3195_v17, %v1849_v31  ;;  %v1852_v38 = vadd.f32 %v3086_v32, %v3761_v55 }
 0x19a   : > { %2809 = vst [vmem:[%s3817_s30 + $0x10] sm:$0xff] %v2741_v34  }
 0x19b   : > { %v2150_v40 = vmul.f32 0.2, %v2010_v36  ;;  %v2013_v42 = vadd.f32 %v3198_v35, %v1852_v38  ;;  %v3087_v46 = vpop.f32.mrb[80].mxu0  ;;  %vm2118_vm6 = vcmp.gt.f32.partialorder %v2010_v36, 0.0 }
 0x19c   : > { %v3199_v47 = vpop.f32.mrb[80].mxu1  ;;  %v3088_v7 = vpop.f32.mrb[81].mxu0 }
 0x19d   : > { %vm2119_vm7 = vcmp.gt.f32.partialorder %v2013_v42, 0.0  ;;  %v2151_v48 = vmul.f32 0.2, %v2013_v42  ;;  %v3089_v50 = vadd.f32 %v3088_v7, %v3087_v46  ;;  %v3200_v52 = vpop.f32.mrb[81].mxu1  ;;  %v3090_v53 = vpop.f32.mrb[82].mxu0  ;;  %v2182_v59 = vsel %vm2118_vm6, %v2010_v36, %v2150_v40 }
 0x19e   : > { %v3201_v56 = vadd.f32 %v3200_v52, %v3199_v47  ;;  %v3202_v58 = vpop.f32.mrb[82].mxu1  ;;  %v3091_v9 = vpop.f32.mrb[83].mxu0 }
 0x19f   : > { %v2183_v60 = vsel %vm2119_vm7, %v2013_v42, %v2151_v48  ;;  %v1857_v55 = vadd.f32 %v3089_v50, %v3763_v5  ;;  %v3092_v61 = vadd.f32 %v3091_v9, %v3090_v53  ;;  %v3203_v62 = vpop.f32.mrb[83].mxu1 }
 0x1a0   : > { %v2746_v2 = vpack.c.bf16 %v2183_v60, %v2182_v59  ;;  %v3204_v4 = vadd.f32 %v3203_v62, %v3202_v58 }
 0x1a1   : > { %v2018_v10 = vadd.f32 %v3201_v56, %v1857_v55  ;;  %v1860_v12 = vadd.f32 %v3092_v61, %v3765_v8 }
 0x1a2   : > { %2810 = vst [vmem:[%s3817_s30 + $0x18] sm:$0xff] %v2746_v2  }
 0x1a3   : > { %v2152_v13 = vmul.f32 0.2, %v2018_v10  ;;  %v2021_v14 = vadd.f32 %v3204_v4, %v1860_v12  ;;  %v3093_v49 = vpop.f32.mrb[84].mxu0  ;;  %vm2120_vm8 = vcmp.gt.f32.partialorder %v2018_v10, 0.0 }
 0x1a4   : > { %v3205_v15 = vpop.f32.mrb[84].mxu1  ;;  %v3094_v16 = vpop.f32.mrb[85].mxu0 }
 0x1a5   : > { %vm2121_vm9 = vcmp.gt.f32.partialorder %v2021_v14, 0.0  ;;  %v2153_v51 = vmul.f32 0.2, %v2021_v14  ;;  %v3095_v29 = vadd.f32 %v3094_v16, %v3093_v49  ;;  %v3206_v17 = vpop.f32.mrb[85].mxu1  ;;  %v3096_v5 = vpop.f32.mrb[86].mxu0  ;;  %v2184_v28 = vsel %vm2120_vm8, %v2018_v10, %v2152_v13 }
 0x1a6   : > { %v3207_v18 = vadd.f32 %v3206_v17, %v3205_v15  ;;  %v3208_v20 = vpop.f32.mrb[86].mxu1  ;;  %v3097_v24 = vpop.f32.mrb[87].mxu0 }
 0x1a7   : > { %v2185_v31 = vsel %vm2121_vm9, %v2021_v14, %v2153_v51  ;;  %v1865_v8 = vadd.f32 %v3095_v29, %v3767_v21  ;;  %v3098_v32 = vadd.f32 %v3097_v24, %v3096_v5  ;;  %v3209_v33 = vpop.f32.mrb[87].mxu1 }
 0x1a8   : > { %v2751_v34 = vpack.c.bf16 %v2185_v31, %v2184_v28  ;;  %v3210_v35 = vadd.f32 %v3209_v33, %v3208_v20 }
 0x1a9   : > { %v2026_v36 = vadd.f32 %v3207_v18, %v1865_v8  ;;  %v1868_v38 = vadd.f32 %v3098_v32, %v3769_v23 }
 0x1aa   : > { %2811 = vst [vmem:[%s3817_s30 + $0x20] sm:$0xff] %v2751_v34  }
 0x1ab   : > { %v2154_v40 = vmul.f32 0.2, %v2026_v36  ;;  %v2029_v42 = vadd.f32 %v3210_v35, %v1868_v38  ;;  %v3099_v46 = vpop.f32.mrb[88].mxu0  ;;  %vm2122_vm10 = vcmp.gt.f32.partialorder %v2026_v36, 0.0 }
 0x1ac   : > { %v3211_v47 = vpop.f32.mrb[88].mxu1  ;;  %v3100_v7 = vpop.f32.mrb[89].mxu0 }
 0x1ad   : > { %vm2123_vm11 = vcmp.gt.f32.partialorder %v2029_v42, 0.0  ;;  %v2155_v48 = vmul.f32 0.2, %v2029_v42  ;;  %v3101_v50 = vadd.f32 %v3100_v7, %v3099_v46  ;;  %v3212_v52 = vpop.f32.mrb[89].mxu1  ;;  %v3102_v21 = vpop.f32.mrb[90].mxu0  ;;  %v2186_v9 = vsel %vm2122_vm10, %v2026_v36, %v2154_v40 }
 0x1ae   : > { %v3213_v53 = vadd.f32 %v3212_v52, %v3211_v47  ;;  %v3214_v56 = vpop.f32.mrb[90].mxu1  ;;  %v3103_v58 = vpop.f32.mrb[91].mxu0 }
 0x1af   : > { %v2187_v59 = vsel %vm2123_vm11, %v2029_v42, %v2155_v48  ;;  %v1873_v23 = vadd.f32 %v3101_v50, %v3771_v37  ;;  %v3104_v60 = vadd.f32 %v3103_v58, %v3102_v21  ;;  %v3215_v55 = vpop.f32.mrb[91].mxu1 }
 0x1b0   : > { %v2756_v61 = vpack.c.bf16 %v2187_v59, %v2186_v9  ;;  %v3216_v62 = vadd.f32 %v3215_v55, %v3214_v56 }
 0x1b1   : > { %v2034_v2 = vadd.f32 %v3213_v53, %v1873_v23  ;;  %v1876_v4 = vadd.f32 %v3104_v60, %v3773_v39 }
 0x1b2   : > { %2812 = vst [vmem:[%s3817_s30 + $0x28] sm:$0xff] %v2756_v61  }
 0x1b3   : > { %v2156_v10 = vmul.f32 0.2, %v2034_v2  ;;  %v2037_v12 = vadd.f32 %v3216_v62, %v1876_v4  ;;  %v3105_v13 = vpop.f32.mrb[92].mxu0  ;;  %vm2124_vm12 = vcmp.gt.f32.partialorder %v2034_v2, 0.0 }
 0x1b4   : > { %v3217_v14 = vpop.f32.mrb[92].mxu1  ;;  %v3106_v49 = vpop.f32.mrb[93].mxu0 }
 0x1b5   : > { %vm2125_vm13 = vcmp.gt.f32.partialorder %v2037_v12, 0.0  ;;  %v2157_v15 = vmul.f32 0.2, %v2037_v12  ;;  %v3107_v16 = vadd.f32 %v3106_v49, %v3105_v13  ;;  %v3218_v51 = vpop.f32.mrb[93].mxu1  ;;  %v3108_v37 = vpop.f32.mrb[94].mxu0  ;;  %v2188_v18 = vsel %vm2124_vm12, %v2034_v2, %v2156_v10 }
 0x1b6   : > { %v3219_v29 = vadd.f32 %v3218_v51, %v3217_v14  ;;  %v3220_v17 = vpop.f32.mrb[94].mxu1  ;;  %v3109_v5 = vpop.f32.mrb[95].mxu0 }
 0x1b7   : > { %v2189_v20 = vsel %vm2125_vm13, %v2037_v12, %v2157_v15  ;;  %v1881_v39 = vadd.f32 %v3107_v16, %v3775_v54  ;;  %v3110_v24 = vadd.f32 %v3109_v5, %v3108_v37  ;;  %v3221_v28 = vpop.f32.mrb[95].mxu1 }
 0x1b8   : > { %v2761_v31 = vpack.c.bf16 %v2189_v20, %v2188_v18  ;;  %v3222_v8 = vadd.f32 %v3221_v28, %v3220_v17 }
 0x1b9   : > { %v2042_v32 = vadd.f32 %v3219_v29, %v1881_v39  ;;  %v1884_v33 = vadd.f32 %v3110_v24, %v3777_v57 }
 0x1ba   : > { %2813 = vst [vmem:[%s3817_s30 + $0x30] sm:$0xff] %v2761_v31  }
 0x1bb   : > { %v2158_v34 = vmul.f32 0.2, %v2042_v32  ;;  %v2045_v35 = vadd.f32 %v3222_v8, %v1884_v33  ;;  %v3111_v36 = vpop.f32.mrb[96].mxu0  ;;  %vm2126_vm14 = vcmp.gt.f32.partialorder %v2042_v32, 0.0 }
 0x1bc   : > { %v3223_v38 = vpop.f32.mrb[96].mxu1  ;;  %v3112_v40 = vpop.f32.mrb[97].mxu0 }
 0x1bd   : > { %vm2127_vm15 = vcmp.gt.f32.partialorder %v2045_v35, 0.0  ;;  %v2159_v42 = vmul.f32 0.2, %v2045_v35  ;;  %v3113_v46 = vadd.f32 %v3112_v40, %v3111_v36  ;;  %v3224_v47 = vpop.f32.mrb[97].mxu1  ;;  %v3114_v54 = vpop.f32.mrb[98].mxu0  ;;  %v2190_v52 = vsel %vm2126_vm14, %v2042_v32, %v2158_v34 }
 0x1be   : > { %v3225_v7 = vadd.f32 %v3224_v47, %v3223_v38  ;;  %v3226_v48 = vpop.f32.mrb[98].mxu1  ;;  %v3115_v50 = vpop.f32.mrb[99].mxu0 }
 0x1bf   : > { %v2191_v21 = vsel %vm2127_vm15, %v2045_v35, %v2159_v42  ;;  %v1889_v57 = vadd.f32 %v3113_v46, %v3779_v6  ;;  %v3116_v53 = vadd.f32 %v3115_v50, %v3114_v54  ;;  %v3227_v56 = vpop.f32.mrb[99].mxu1 }
 0x1c0   : > { %v2766_v58 = vpack.c.bf16 %v2191_v21, %v2190_v52  ;;  %v3228_v9 = vadd.f32 %v3227_v56, %v3226_v48 }
 0x1c1   : > { %v2050_v59 = vadd.f32 %v3225_v7, %v1889_v57  ;;  %v1892_v23 = vadd.f32 %v3116_v53, %v3781_v11 }
 0x1c2   : > { %2814 = vst [vmem:[%s3817_s30 + $0x38] sm:$0xff] %v2766_v58  }
 0x1c3   : > { %v2160_v60 = vmul.f32 0.2, %v2050_v59  ;;  %v2053_v55 = vadd.f32 %v3228_v9, %v1892_v23  ;;  %v3117_v61 = vpop.f32.mrb[100].mxu0  ;;  %vm2128_vm0 = vcmp.gt.f32.partialorder %v2050_v59, 0.0 }
 0x1c4   : > { %v3229_v62 = vpop.f32.mrb[100].mxu1  ;;  %v3118_v2 = vpop.f32.mrb[101].mxu0 }
 0x1c5   : > { %vm2129_vm1 = vcmp.gt.f32.partialorder %v2053_v55, 0.0  ;;  %v2161_v4 = vmul.f32 0.2, %v2053_v55  ;;  %v3119_v10 = vadd.f32 %v3118_v2, %v3117_v61  ;;  %v3230_v12 = vpop.f32.mrb[101].mxu1  ;;  %v3120_v6 = vpop.f32.mrb[102].mxu0  ;;  %v2192_v15 = vsel %vm2128_vm0, %v2050_v59, %v2160_v60 }
 0x1c6   : > { %v3231_v13 = vadd.f32 %v3230_v12, %v3229_v62  ;;  %v3232_v14 = vpop.f32.mrb[102].mxu1  ;;  %v3121_v49 = vpop.f32.mrb[103].mxu0 }
 0x1c7   : > { %v2193_v16 = vsel %vm2129_vm1, %v2053_v55, %v2161_v4  ;;  %v1897_v11 = vadd.f32 %v3119_v10, %v3783_v25  ;;  %v3122_v51 = vadd.f32 %v3121_v49, %v3120_v6  ;;  %v3233_v37 = vpop.f32.mrb[103].mxu1 }
 0x1c8   : > { %v2771_v29 = vpack.c.bf16 %v2193_v16, %v2192_v15  ;;  %v3234_v17 = vadd.f32 %v3233_v37, %v3232_v14 }
 0x1c9   : > { %v2058_v5 = vadd.f32 %v3231_v13, %v1897_v11  ;;  %v1900_v18 = vadd.f32 %v3122_v51, %v3785_v27 }
 0x1ca   : > { %2815 = vst [vmem:[%s3817_s30 + $0x40] sm:$0xff] %v2771_v29  }
 0x1cb   : > { %v2162_v20 = vmul.f32 0.2, %v2058_v5  ;;  %v2061_v39 = vadd.f32 %v3234_v17, %v1900_v18  ;;  %v3123_v24 = vpop.f32.mrb[104].mxu0  ;;  %vm2130_vm2 = vcmp.gt.f32.partialorder %v2058_v5, 0.0 }
 0x1cc   : > { %v3235_v28 = vpop.f32.mrb[104].mxu1  ;;  %v3124_v31 = vpop.f32.mrb[105].mxu0 }
 0x1cd   : > { %vm2131_vm3 = vcmp.gt.f32.partialorder %v2061_v39, 0.0  ;;  %v2163_v8 = vmul.f32 0.2, %v2061_v39  ;;  %v3125_v32 = vadd.f32 %v3124_v31, %v3123_v24  ;;  %v3236_v33 = vpop.f32.mrb[105].mxu1  ;;  %v3126_v25 = vpop.f32.mrb[106].mxu0  ;;  %v2194_v38 = vsel %vm2130_vm2, %v2058_v5, %v2162_v20 }
 0x1ce   : > { %v3237_v34 = vadd.f32 %v3236_v33, %v3235_v28  ;;  %v3238_v35 = vpop.f32.mrb[106].mxu1  ;;  %v3127_v36 = vpop.f32.mrb[107].mxu0 }
 0x1cf   : > { %v2195_v40 = vsel %vm2131_vm3, %v2061_v39, %v2163_v8  ;;  %v1905_v27 = vadd.f32 %v3125_v32, %v3787_v43  ;;  %v3128_v42 = vadd.f32 %v3127_v36, %v3126_v25  ;;  %v3239_v46 = vpop.f32.mrb[107].mxu1 }
 0x1d0   : > { %v2776_v47 = vpack.c.bf16 %v2195_v40, %v2194_v38  ;;  %v3240_v54 = vadd.f32 %v3239_v46, %v3238_v35 }
 0x1d1   : > { %v2066_v7 = vadd.f32 %v3237_v34, %v1905_v27  ;;  %v1908_v48 = vadd.f32 %v3128_v42, %v3789_v45 }
 0x1d2   : > { %2816 = vst [vmem:[%s3817_s30 + $0x48] sm:$0xff] %v2776_v47  }
 0x1d3   : > { %v2164_v50 = vmul.f32 0.2, %v2066_v7  ;;  %v2069_v52 = vadd.f32 %v3240_v54, %v1908_v48  ;;  %v3129_v21 = vpop.f32.mrb[108].mxu0  ;;  %vm2132_vm4 = vcmp.gt.f32.partialorder %v2066_v7, 0.0 }
 0x1d4   : > { %v3241_v57 = vpop.f32.mrb[108].mxu1  ;;  %v3130_v53 = vpop.f32.mrb[109].mxu0 }
 0x1d5   : > { %vm2133_vm5 = vcmp.gt.f32.partialorder %v2069_v52, 0.0  ;;  %v2165_v56 = vmul.f32 0.2, %v2069_v52  ;;  %v3131_v58 = vadd.f32 %v3130_v53, %v3129_v21  ;;  %v3242_v9 = vpop.f32.mrb[109].mxu1  ;;  %v3132_v43 = vpop.f32.mrb[110].mxu0  ;;  %v2196_v55 = vsel %vm2132_vm4, %v2066_v7, %v2164_v50 }
 0x1d6   : > { %v3243_v59 = vadd.f32 %v3242_v9, %v3241_v57  ;;  %v3244_v23 = vpop.f32.mrb[110].mxu1  ;;  %v3133_v60 = vpop.f32.mrb[111].mxu0 }
 0x1d7   : > { %v2197_v61 = vsel %vm2133_vm5, %v2069_v52, %v2165_v56  ;;  %v1913_v45 = vadd.f32 %v3131_v58, %v3791_v63  ;;  %v3134_v62 = vadd.f32 %v3133_v60, %v3132_v43  ;;  %v3245_v2 = vpop.f32.mrb[111].mxu1 }
 0x1d8   : > { %v2781_v4 = vpack.c.bf16 %v2197_v61, %v2196_v55  ;;  %v3246_v10 = vadd.f32 %v3245_v2, %v3244_v23 }
 0x1d9   : > { %v2074_v12 = vadd.f32 %v3243_v59, %v1913_v45  ;;  %v1916_v6 = vadd.f32 %v3134_v62, %v3793_v1 }
 0x1da   : > { %2817 = vst [vmem:[%s3817_s30 + $0x50] sm:$0xff] %v2781_v4  }
 0x1db   : > { %v2166_v13 = vmul.f32 0.2, %v2074_v12  ;;  %v2077_v14 = vadd.f32 %v3246_v10, %v1916_v6  ;;  %v3135_v49 = vpop.f32.mrb[112].mxu0  ;;  %vm2134_vm6 = vcmp.gt.f32.partialorder %v2074_v12, 0.0 }
 0x1dc   : > { %v3247_v15 = vpop.f32.mrb[112].mxu1  ;;  %v3136_v16 = vpop.f32.mrb[113].mxu0 }
 0x1dd   : > { %vm2135_vm7 = vcmp.gt.f32.partialorder %v2077_v14, 0.0  ;;  %v2167_v11 = vmul.f32 0.2, %v2077_v14  ;;  %v3137_v51 = vadd.f32 %v3136_v16, %v3135_v49  ;;  %v3248_v37 = vpop.f32.mrb[113].mxu1  ;;  %v3138_v63 = vpop.f32.mrb[114].mxu0  ;;  %v2198_v18 = vsel %vm2134_vm6, %v2074_v12, %v2166_v13 }
 0x1de   : > { %v3249_v29 = vadd.f32 %v3248_v37, %v3247_v15  ;;  %v3250_v17 = vpop.f32.mrb[114].mxu1  ;;  %v3139_v5 = vpop.f32.mrb[115].mxu0 }
 0x1df   : > { %v2199_v20 = vsel %vm2135_vm7, %v2077_v14, %v2167_v11  ;;  %v1921_v1 = vadd.f32 %v3137_v51, %v3795_v19  ;;  %v3140_v39 = vadd.f32 %v3139_v5, %v3138_v63  ;;  %v3251_v24 = vpop.f32.mrb[115].mxu1 }
 0x1e0   : > { %v2786_v28 = vpack.c.bf16 %v2199_v20, %v2198_v18  ;;  %v3252_v31 = vadd.f32 %v3251_v24, %v3250_v17 }
 0x1e1   : > { %v2082_v8 = vadd.f32 %v3249_v29, %v1921_v1  ;;  %v1924_v32 = vadd.f32 %v3140_v39, %v3797_v22 }
 0x1e2   : > { %2818 = vst [vmem:[%s3817_s30 + $0x58] sm:$0xff] %v2786_v28  }
 0x1e3   : > { %v2168_v33 = vmul.f32 0.2, %v2082_v8  ;;  %v2085_v25 = vadd.f32 %v3252_v31, %v1924_v32  ;;  %v3141_v34 = vpop.f32.mrb[116].mxu0  ;;  %vm2136_vm8 = vcmp.gt.f32.partialorder %v2082_v8, 0.0 }
 0x1e4   : > { %v3253_v35 = vpop.f32.mrb[116].mxu1  ;;  %v3142_v36 = vpop.f32.mrb[117].mxu0 }
 0x1e5   : > { %vm2137_vm9 = vcmp.gt.f32.partialorder %v2085_v25, 0.0  ;;  %v2169_v38 = vmul.f32 0.2, %v2085_v25  ;;  %v3143_v40 = vadd.f32 %v3142_v36, %v3141_v34  ;;  %v3254_v27 = vpop.f32.mrb[117].mxu1  ;;  %v3144_v19 = vpop.f32.mrb[118].mxu0  ;;  %v2200_v54 = vsel %vm2136_vm8, %v2082_v8, %v2168_v33 }
 0x1e6   : > { %v3255_v42 = vadd.f32 %v3254_v27, %v3253_v35  ;;  %v3256_v46 = vpop.f32.mrb[118].mxu1  ;;  %v3145_v47 = vpop.f32.mrb[119].mxu0 }
 0x1e7   : > { %v2201_v7 = vsel %vm2137_vm9, %v2085_v25, %v2169_v38  ;;  %v1929_v22 = vadd.f32 %v3143_v40, %v3799_v41  ;;  %v3146_v48 = vadd.f32 %v3145_v47, %v3144_v19  ;;  %v3257_v50 = vpop.f32.mrb[119].mxu1 }
 0x1e8   : > { %v2791_v52 = vpack.c.bf16 %v2201_v7, %v2200_v54  ;;  %v3258_v21 = vadd.f32 %v3257_v50, %v3256_v46 }
 0x1e9   : > { %v2090_v57 = vadd.f32 %v3255_v42, %v1929_v22  ;;  %v1932_v53 = vadd.f32 %v3146_v48, %v3801_v44 }
 0x1ea   : > { %2819 = vst [vmem:[%s3817_s30 + $0x60] sm:$0xff] %v2791_v52  }
 0x1eb   : > { %v2170_v56 = vmul.f32 0.2, %v2090_v57  ;;  %v2093_v58 = vadd.f32 %v3258_v21, %v1932_v53  ;;  %v3147_v9 = vpop.f32.mrb[120].mxu0  ;;  %vm2138_vm10 = vcmp.gt.f32.partialorder %v2090_v57, 0.0 }
 0x1ec   : > { %v3259_v43 = vpop.f32.mrb[120].mxu1  ;;  %v3148_v59 = vpop.f32.mrb[121].mxu0 }
 0x1ed   : > { %vm2139_vm11 = vcmp.gt.f32.partialorder %v2093_v58, 0.0  ;;  %v2171_v23 = vmul.f32 0.2, %v2093_v58  ;;  %v3149_v60 = vadd.f32 %v3148_v59, %v3147_v9  ;;  %v3260_v55 = vpop.f32.mrb[121].mxu1  ;;  %v3150_v41 = vpop.f32.mrb[122].mxu0  ;;  %v2202_v2 = vsel %vm2138_vm10, %v2090_v57, %v2170_v56 }
 0x1ee   : > { %v3261_v61 = vadd.f32 %v3260_v55, %v3259_v43  ;;  %v3262_v45 = vpop.f32.mrb[122].mxu1  ;;  %v3151_v62 = vpop.f32.mrb[123].mxu0 }
 0x1ef   : > { %v2203_v4 = vsel %vm2139_vm11, %v2093_v58, %v2171_v23  ;;  %v1937_v44 = vadd.f32 %v3149_v60, %v3803_v0  ;;  %v3152_v10 = vadd.f32 %v3151_v62, %v3150_v41  ;;  %v3263_v12 = vpop.f32.mrb[123].mxu1 }
 0x1f0   : > { %v2796_v6 = vpack.c.bf16 %v2203_v4, %v2202_v2  ;;  %v3264_v13 = vadd.f32 %v3263_v12, %v3262_v45 }
 0x1f1   : > { %v2098_v14 = vadd.f32 %v3261_v61, %v1937_v44  ;;  %v1940_v49 = vadd.f32 %v3152_v10, %v3805_v3 }
 0x1f2   : > { %2820 = vst [vmem:[%s3817_s30 + $0x68] sm:$0xff] %v2796_v6  }
 0x1f3   : > { %v2172_v15 = vmul.f32 0.2, %v2098_v14  ;;  %v2101_v16 = vadd.f32 %v3264_v13, %v1940_v49  ;;  %v3153_v11 = vpop.f32.mrb[124].mxu0  ;;  %vm2140_vm12 = vcmp.gt.f32.partialorder %v2098_v14, 0.0 }
 0x1f4   : > { %v3265_v51 = vpop.f32.mrb[124].mxu1  ;;  %v3154_v37 = vpop.f32.mrb[125].mxu0 }
 0x1f5   : > { %vm2141_vm13 = vcmp.gt.f32.partialorder %v2101_v16, 0.0  ;;  %v2173_v63 = vmul.f32 0.2, %v2101_v16  ;;  %v3155_v29 = vadd.f32 %v3154_v37, %v3153_v11  ;;  %v3266_v17 = vpop.f32.mrb[125].mxu1  ;;  %v3156_v0 = vpop.f32.mrb[126].mxu0  ;;  %v2204_v1 = vsel %vm2140_vm12, %v2098_v14, %v2172_v15 }
 0x1f6   : > { %v3267_v5 = vadd.f32 %v3266_v17, %v3265_v51  ;;  %v3268_v18 = vpop.f32.mrb[126].mxu1  ;;  %v3157_v20 = vpop.f32.mrb[127].mxu0 }
 0x1f7   : > { %v2205_v39 = vsel %vm2141_vm13, %v2101_v16, %v2173_v63  ;;  %v1945_v3 = vadd.f32 %v3155_v29, %v3807_v26  ;;  %v3158_v24 = vadd.f32 %v3157_v20, %v3156_v0  ;;  %v3269_v28 = vpop.f32.mrb[127].mxu1 }
 0x1f8   : > { %v2801_v31 = vpack.c.bf16 %v2205_v39, %v2204_v1  ;;  %v3270_v8 = vadd.f32 %v3269_v28, %v3268_v18 }
 0x1f9   : > { %v2106_v32 = vadd.f32 %v3267_v5, %v1945_v3  ;;  %v1948_v33 = vadd.f32 %v3158_v24, %v3809_v30 }
 0x1fa   : > { %2821 = vst [vmem:[%s3817_s30 + $0x70] sm:$0xff] %v2801_v31  }
 0x1fb   : > { %v2174_v25 = vmul.f32 0.2, %v2106_v32  ;;  %v2109_v34 = vadd.f32 %v3270_v8, %v1948_v33  ;;  %vm2142_vm14 = vcmp.gt.f32.partialorder %v2106_v32, 0.0 }
 0x1fd   : > { %vm2143_vm15 = vcmp.gt.f32.partialorder %v2109_v34, 0.0  ;;  %v2175_v35 = vmul.f32 0.2, %v2109_v34  ;;  %v2206_v36 = vsel %vm2142_vm14, %v2106_v32, %v2174_v25 }
 0x1ff   : > { %v2207_v38 = vsel %vm2143_vm15, %v2109_v34, %v2175_v35 }
 0x200   : > { %v2806_v40 = vpack.c.bf16 %v2207_v38, %v2206_v36 }
 0x202   : > { %2822 = vst [vmem:[%s3817_s30 + $0x78] sm:$0xff] %v2806_v40  }
 0x203 PF: > { %s12_s11 = sadd.s32 1, %s3381_s11   ;;  %s3877_s9 = smov %s3377_s10 }
 0x204   : > { %p9_p5 = scmp.ge.s32.totalorder %s12_s11, 4   ;;  %s3878_s10 = smov %s3880_s12 }
 0x206   :  { %11 = sbr.rel (!%p9_p5) target bundleno = 2 (0x2), region = 61 }

// kernel: discriminator_forward.6
= control target key start
LH: loop header
LB: loop body
LE: loop exit
PB: predicated region body
PF: predicated region fallthrough
CT: control target
= control target key end

     0   :  { %s5213_s9 = smov 0   ;;  %s5215_s10 = smov 0   ;;  %s6505_s0 = inlined_call_operand.vmem [shape: bf16[128,2048], index: 0, kind: input, shape index: {}]   ;;  %s6506_s1 = inlined_call_operand.vmem [shape: bf16[2048,256], index: 1, kind: input, shape index: {}]   ;;  %s6507_s2 = inlined_call_operand.vmem [shape: bf16[128,256], index: 2, kind: output, shape index: {}]  }
   0x1   :  { %s5217_s11 = smov 0   ;;  %s5219_s12 = smov 0  }
   0x2   :  { %s5221_s13 = smov 0  }
   0x3 LB: > { %s21_s14 = sadd.s32 1, %s5192_s12  ;;  %s4129_s15 = sadd.s32 4294967295, %s5196_s13   ;;  %s5196_s13 = sphi %s5221_s13, %s12_s13   ;;  %s5192_s12 = sphi %s5219_s12, %s6512_s12   ;;  %s5188_s11 = sphi %s5217_s11, %s6511_s11   ;;  %s5184_s10 = sphi %s5215_s10, %s6510_s10   ;;  %s5180_s9 = sphi %s5213_s9, %s6509_s9  }
   0x4   : > { %p22_p0 = scmp.ge.s32.totalorder %s21_s14, 2  ;;  %p64_p1 = scmp.ne.s32.totalorder %s5184_s10, %s5180_s9 }
   0x5   : > { %p65_p2 = scmp.eq.s32.totalorder %s5196_s13, 0  ;;  %p96_p4 = scmp.eq.s32.totalorder %s4129_s15, 1 }
   0x6   : > { %s6514_s14 = smov (%p22_p0, %s21_s14), 0  ;;  %s57_s17 = sadd.s32 1, %s5184_s10 }
   0x7   : > { %p66_p3 = por %p65_p2, %p64_p1  ;;  %s54_s16 = ssub.s32 %s5192_s12, %s6514_s14 }
   0x8   : > { %p55_p5 = scmp.eq.s32.totalorder %s54_s16, 0  ;;  %p5248_p6 = por %p96_p4, %p64_p1 }
   0x9   : > { %p4133_p7 = scmp.ge.s32.totalorder %s5196_s13, 2 }
   0xa   : > { %s5253_s19 = scalar_select %p55_p5, %s5184_s10, %s57_s17  }
   0xb   : > { %128 = sbr.rel (%p4133_p7) target bundleno = 192 (0xc0), region = 20 }
  0x12   : > { %131 = sbr.rel (!%p66_p3) target bundleno = 192 (0xc0), region = 24  ;;  %s133_s20 = sand.u32 (%p66_p3), 1, %s5184_s10  }
  0x13   : > { %s4135_s21 = sshll.u32 (%p66_p3), %s5192_s12, 2  ;;  %s4134_s22 = sshll.u32 (%p66_p3), %s133_s20, 10 }
  0x14   : > { %s5261_s25 = scalar_lea.vmem (%p66_p3), %s6506_s1, %s4135_s21  ;;  %s5265_s26 = scalar_lea.vmem (%p66_p3), [#allocation2], %s4134_s22 }
  0x15   : > { %v153_v0 = vld [vmem:[%s5261_s25] sm:$0xf] (%p66_p3)  ;;  %v155_v1 = vld [vmem:[%s5261_s25 + $0x8] sm:$0xf] (%p66_p3)  ;;  %v157_v2 = vld [vmem:[%s5261_s25 + $0x10] sm:$0xf] (%p66_p3) }
  0x16   : > { %154 = vst [vmem:[%s5265_s26] sm:$0xf] (%p66_p3), %v153_v0  ;;  %156 = vst [vmem:[%s5265_s26 + $0x4] sm:$0xf] (%p66_p3), %v155_v1  ;;  %v159_v3 = vld [vmem:[%s5261_s25 + $0x18] sm:$0xf] (%p66_p3) }
  0x17   : > { %v161_v4 = vld [vmem:[%s5261_s25 + $0x20] sm:$0xf] (%p66_p3)  ;;  %158 = vst [vmem:[%s5265_s26 + $0x8] sm:$0xf] (%p66_p3), %v157_v2  ;;  %160 = vst [vmem:[%s5265_s26 + $0xc] sm:$0xf] (%p66_p3), %v159_v3 }
  0x18   : > { %162 = vst [vmem:[%s5265_s26 + $0x10] sm:$0xf] (%p66_p3), %v161_v4  ;;  %v163_v5 = vld [vmem:[%s5261_s25 + $0x28] sm:$0xf] (%p66_p3)  ;;  %v165_v6 = vld [vmem:[%s5261_s25 + $0x30] sm:$0xf] (%p66_p3) }
  0x19   : > { %v167_v7 = vld [vmem:[%s5261_s25 + $0x38] sm:$0xf]  ;;  %164 = vst [vmem:[%s5265_s26 + $0x14] sm:$0xf] %v163_v5  ;;  %166 = vst [vmem:[%s5265_s26 + $0x18] sm:$0xf] %v165_v6 }
  0x1a   : > { %168 = vst [vmem:[%s5265_s26 + $0x1c] sm:$0xf] %v167_v7  ;;  %v169_v8 = vld [vmem:[%s5261_s25 + $0x40] sm:$0xf]  ;;  %v171_v9 = vld [vmem:[%s5261_s25 + $0x48] sm:$0xf] }
  0x1b   : > { %v173_v10 = vld [vmem:[%s5261_s25 + $0x50] sm:$0xf]  ;;  %170 = vst [vmem:[%s5265_s26 + $0x20] sm:$0xf] %v169_v8  ;;  %172 = vst [vmem:[%s5265_s26 + $0x24] sm:$0xf] %v171_v9 }
  0x1c   : > { %174 = vst [vmem:[%s5265_s26 + $0x28] sm:$0xf] %v173_v10  ;;  %v175_v11 = vld [vmem:[%s5261_s25 + $0x58] sm:$0xf]  ;;  %v177_v12 = vld [vmem:[%s5261_s25 + $0x60] sm:$0xf] }
  0x1d   : > { %v179_v13 = vld [vmem:[%s5261_s25 + $0x68] sm:$0xf]  ;;  %176 = vst [vmem:[%s5265_s26 + $0x2c] sm:$0xf] %v175_v11  ;;  %178 = vst [vmem:[%s5265_s26 + $0x30] sm:$0xf] %v177_v12 }
  0x1e   : > { %180 = vst [vmem:[%s5265_s26 + $0x34] sm:$0xf] %v179_v13  ;;  %v181_v14 = vld [vmem:[%s5261_s25 + $0x70] sm:$0xf]  ;;  %v183_v15 = vld [vmem:[%s5261_s25 + $0x78] sm:$0xf] }
  0x1f   : > { %v185_v16 = vld [vmem:[%s5261_s25 + $0x80] sm:$0xf]  ;;  %182 = vst [vmem:[%s5265_s26 + $0x38] sm:$0xf] %v181_v14  ;;  %184 = vst [vmem:[%s5265_s26 + $0x3c] sm:$0xf] %v183_v15 }
  0x20   : > { %186 = vst [vmem:[%s5265_s26 + $0x40] sm:$0xf] %v185_v16  ;;  %v187_v17 = vld [vmem:[%s5261_s25 + $0x88] sm:$0xf]  ;;  %v189_v18 = vld [vmem:[%s5261_s25 + $0x90] sm:$0xf] }
  0x21   : > { %v191_v19 = vld [vmem:[%s5261_s25 + $0x98] sm:$0xf]  ;;  %188 = vst [vmem:[%s5265_s26 + $0x44] sm:$0xf] %v187_v17  ;;  %190 = vst [vmem:[%s5265_s26 + $0x48] sm:$0xf] %v189_v18 }
  0x22   : > { %192 = vst [vmem:[%s5265_s26 + $0x4c] sm:$0xf] %v191_v19  ;;  %v193_v20 = vld [vmem:[%s5261_s25 + $0xa0] sm:$0xf]  ;;  %v195_v21 = vld [vmem:[%s5261_s25 + $0xa8] sm:$0xf] }
  0x23   : > { %v197_v22 = vld [vmem:[%s5261_s25 + $0xb0] sm:$0xf]  ;;  %194 = vst [vmem:[%s5265_s26 + $0x50] sm:$0xf] %v193_v20  ;;  %196 = vst [vmem:[%s5265_s26 + $0x54] sm:$0xf] %v195_v21 }
  0x24   : > { %198 = vst [vmem:[%s5265_s26 + $0x58] sm:$0xf] %v197_v22  ;;  %v199_v23 = vld [vmem:[%s5261_s25 + $0xb8] sm:$0xf]  ;;  %v201_v24 = vld [vmem:[%s5261_s25 + $0xc0] sm:$0xf] }
  0x25   : > { %v203_v25 = vld [vmem:[%s5261_s25 + $0xc8] sm:$0xf]  ;;  %200 = vst [vmem:[%s5265_s26 + $0x5c] sm:$0xf] %v199_v23  ;;  %202 = vst [vmem:[%s5265_s26 + $0x60] sm:$0xf] %v201_v24 }
  0x26   : > { %204 = vst [vmem:[%s5265_s26 + $0x64] sm:$0xf] %v203_v25  ;;  %v205_v26 = vld [vmem:[%s5261_s25 + $0xd0] sm:$0xf]  ;;  %v207_v27 = vld [vmem:[%s5261_s25 + $0xd8] sm:$0xf] }
  0x27   : > { %v209_v28 = vld [vmem:[%s5261_s25 + $0xe0] sm:$0xf]  ;;  %206 = vst [vmem:[%s5265_s26 + $0x68] sm:$0xf] %v205_v26  ;;  %208 = vst [vmem:[%s5265_s26 + $0x6c] sm:$0xf] %v207_v27 }
  0x28   : > { %210 = vst [vmem:[%s5265_s26 + $0x70] sm:$0xf] %v209_v28  ;;  %v211_v29 = vld [vmem:[%s5261_s25 + $0xe8] sm:$0xf]  ;;  %v213_v30 = vld [vmem:[%s5261_s25 + $0xf0] sm:$0xf] }
  0x29   : > { %v215_v31 = vld [vmem:[%s5261_s25 + $0xf8] sm:$0xf]  ;;  %212 = vst [vmem:[%s5265_s26 + $0x74] sm:$0xf] %v211_v29  ;;  %214 = vst [vmem:[%s5265_s26 + $0x78] sm:$0xf] %v213_v30 }
  0x2a   : > { %216 = vst [vmem:[%s5265_s26 + $0x7c] sm:$0xf] %v215_v31  ;;  %v217_v32 = vld [vmem:[%s5261_s25 + $0x100] sm:$0xf]  ;;  %v219_v33 = vld [vmem:[%s5261_s25 + $0x108] sm:$0xf] }
  0x2b   : > { %v221_v34 = vld [vmem:[%s5261_s25 + $0x110] sm:$0xf]  ;;  %218 = vst [vmem:[%s5265_s26 + $0x80] sm:$0xf] %v217_v32  ;;  %220 = vst [vmem:[%s5265_s26 + $0x84] sm:$0xf] %v219_v33 }
  0x2c   : > { %222 = vst [vmem:[%s5265_s26 + $0x88] sm:$0xf] %v221_v34  ;;  %v223_v35 = vld [vmem:[%s5261_s25 + $0x118] sm:$0xf]  ;;  %v225_v36 = vld [vmem:[%s5261_s25 + $0x120] sm:$0xf] }
  0x2d   : > { %v227_v37 = vld [vmem:[%s5261_s25 + $0x128] sm:$0xf]  ;;  %224 = vst [vmem:[%s5265_s26 + $0x8c] sm:$0xf] %v223_v35  ;;  %226 = vst [vmem:[%s5265_s26 + $0x90] sm:$0xf] %v225_v36 }
  0x2e   : > { %228 = vst [vmem:[%s5265_s26 + $0x94] sm:$0xf] %v227_v37  ;;  %v229_v38 = vld [vmem:[%s5261_s25 + $0x130] sm:$0xf]  ;;  %v231_v39 = vld [vmem:[%s5261_s25 + $0x138] sm:$0xf] }
  0x2f   : > { %v233_v40 = vld [vmem:[%s5261_s25 + $0x140] sm:$0xf]  ;;  %230 = vst [vmem:[%s5265_s26 + $0x98] sm:$0xf] %v229_v38  ;;  %232 = vst [vmem:[%s5265_s26 + $0x9c] sm:$0xf] %v231_v39 }
  0x30   : > { %234 = vst [vmem:[%s5265_s26 + $0xa0] sm:$0xf] %v233_v40  ;;  %v235_v41 = vld [vmem:[%s5261_s25 + $0x148] sm:$0xf]  ;;  %v237_v42 = vld [vmem:[%s5261_s25 + $0x150] sm:$0xf] }
  0x31   : > { %v239_v43 = vld [vmem:[%s5261_s25 + $0x158] sm:$0xf]  ;;  %236 = vst [vmem:[%s5265_s26 + $0xa4] sm:$0xf] %v235_v41  ;;  %238 = vst [vmem:[%s5265_s26 + $0xa8] sm:$0xf] %v237_v42 }
  0x32   : > { %240 = vst [vmem:[%s5265_s26 + $0xac] sm:$0xf] %v239_v43  ;;  %v241_v44 = vld [vmem:[%s5261_s25 + $0x160] sm:$0xf]  ;;  %v243_v45 = vld [vmem:[%s5261_s25 + $0x168] sm:$0xf] }
  0x33   : > { %v245_v46 = vld [vmem:[%s5261_s25 + $0x170] sm:$0xf]  ;;  %242 = vst [vmem:[%s5265_s26 + $0xb0] sm:$0xf] %v241_v44  ;;  %244 = vst [vmem:[%s5265_s26 + $0xb4] sm:$0xf] %v243_v45 }
  0x34   : > { %246 = vst [vmem:[%s5265_s26 + $0xb8] sm:$0xf] %v245_v46  ;;  %v247_v47 = vld [vmem:[%s5261_s25 + $0x178] sm:$0xf]  ;;  %v249_v48 = vld [vmem:[%s5261_s25 + $0x180] sm:$0xf] }
  0x35   : > { %v251_v49 = vld [vmem:[%s5261_s25 + $0x188] sm:$0xf]  ;;  %248 = vst [vmem:[%s5265_s26 + $0xbc] sm:$0xf] %v247_v47  ;;  %250 = vst [vmem:[%s5265_s26 + $0xc0] sm:$0xf] %v249_v48 }
  0x36   : > { %252 = vst [vmem:[%s5265_s26 + $0xc4] sm:$0xf] %v251_v49  ;;  %v253_v50 = vld [vmem:[%s5261_s25 + $0x190] sm:$0xf]  ;;  %v255_v51 = vld [vmem:[%s5261_s25 + $0x198] sm:$0xf] }
  0x37   : > { %v257_v52 = vld [vmem:[%s5261_s25 + $0x1a0] sm:$0xf]  ;;  %254 = vst [vmem:[%s5265_s26 + $0xc8] sm:$0xf] %v253_v50  ;;  %256 = vst [vmem:[%s5265_s26 + $0xcc] sm:$0xf] %v255_v51 }
  0x38   : > { %258 = vst [vmem:[%s5265_s26 + $0xd0] sm:$0xf] %v257_v52  ;;  %v259_v53 = vld [vmem:[%s5261_s25 + $0x1a8] sm:$0xf]  ;;  %v261_v54 = vld [vmem:[%s5261_s25 + $0x1b0] sm:$0xf] }
  0x39   : > { %v263_v55 = vld [vmem:[%s5261_s25 + $0x1b8] sm:$0xf]  ;;  %260 = vst [vmem:[%s5265_s26 + $0xd4] sm:$0xf] %v259_v53  ;;  %262 = vst [vmem:[%s5265_s26 + $0xd8] sm:$0xf] %v261_v54 }
  0x3a   : > { %264 = vst [vmem:[%s5265_s26 + $0xdc] sm:$0xf] %v263_v55  ;;  %v265_v56 = vld [vmem:[%s5261_s25 + $0x1c0] sm:$0xf]  ;;  %v267_v57 = vld [vmem:[%s5261_s25 + $0x1c8] sm:$0xf] }
  0x3b   : > { %v269_v58 = vld [vmem:[%s5261_s25 + $0x1d0] sm:$0xf]  ;;  %266 = vst [vmem:[%s5265_s26 + $0xe0] sm:$0xf] %v265_v56  ;;  %268 = vst [vmem:[%s5265_s26 + $0xe4] sm:$0xf] %v267_v57 }
  0x3c   : > { %270 = vst [vmem:[%s5265_s26 + $0xe8] sm:$0xf] %v269_v58  ;;  %v271_v59 = vld [vmem:[%s5261_s25 + $0x1d8] sm:$0xf]  ;;  %v273_v60 = vld [vmem:[%s5261_s25 + $0x1e0] sm:$0xf] }
  0x3d   : > { %v275_v61 = vld [vmem:[%s5261_s25 + $0x1e8] sm:$0xf]  ;;  %272 = vst [vmem:[%s5265_s26 + $0xec] sm:$0xf] %v271_v59  ;;  %274 = vst [vmem:[%s5265_s26 + $0xf0] sm:$0xf] %v273_v60 }
  0x3e   : > { %276 = vst [vmem:[%s5265_s26 + $0xf4] sm:$0xf] %v275_v61  ;;  %v277_v62 = vld [vmem:[%s5261_s25 + $0x1f0] sm:$0xf]  ;;  %v279_v63 = vld [vmem:[%s5261_s25 + $0x1f8] sm:$0xf] }
  0x3f   : > { %v281_v0 = vld [vmem:[%s5261_s25 + $0x200] sm:$0xf]  ;;  %278 = vst [vmem:[%s5265_s26 + $0xf8] sm:$0xf] %v277_v62  ;;  %280 = vst [vmem:[%s5265_s26 + $0xfc] sm:$0xf] %v279_v63 }
  0x40   : > { %282 = vst [vmem:[%s5265_s26 + $0x100] sm:$0xf] %v281_v0  ;;  %v283_v1 = vld [vmem:[%s5261_s25 + $0x208] sm:$0xf]  ;;  %v285_v2 = vld [vmem:[%s5261_s25 + $0x210] sm:$0xf] }
  0x41   : > { %v287_v3 = vld [vmem:[%s5261_s25 + $0x218] sm:$0xf]  ;;  %284 = vst [vmem:[%s5265_s26 + $0x104] sm:$0xf] %v283_v1  ;;  %286 = vst [vmem:[%s5265_s26 + $0x108] sm:$0xf] %v285_v2 }
  0x42   : > { %288 = vst [vmem:[%s5265_s26 + $0x10c] sm:$0xf] %v287_v3  ;;  %v289_v4 = vld [vmem:[%s5261_s25 + $0x220] sm:$0xf]  ;;  %v291_v5 = vld [vmem:[%s5261_s25 + $0x228] sm:$0xf] }
  0x43   : > { %v293_v6 = vld [vmem:[%s5261_s25 + $0x230] sm:$0xf]  ;;  %290 = vst [vmem:[%s5265_s26 + $0x110] sm:$0xf] %v289_v4  ;;  %292 = vst [vmem:[%s5265_s26 + $0x114] sm:$0xf] %v291_v5 }
  0x44   : > { %294 = vst [vmem:[%s5265_s26 + $0x118] sm:$0xf] %v293_v6  ;;  %v295_v7 = vld [vmem:[%s5261_s25 + $0x238] sm:$0xf]  ;;  %v297_v8 = vld [vmem:[%s5261_s25 + $0x240] sm:$0xf] }
  0x45   : > { %v299_v9 = vld [vmem:[%s5261_s25 + $0x248] sm:$0xf]  ;;  %296 = vst [vmem:[%s5265_s26 + $0x11c] sm:$0xf] %v295_v7  ;;  %298 = vst [vmem:[%s5265_s26 + $0x120] sm:$0xf] %v297_v8 }
  0x46   : > { %300 = vst [vmem:[%s5265_s26 + $0x124] sm:$0xf] %v299_v9  ;;  %v301_v10 = vld [vmem:[%s5261_s25 + $0x250] sm:$0xf]  ;;  %v303_v11 = vld [vmem:[%s5261_s25 + $0x258] sm:$0xf] }
  0x47   : > { %v305_v12 = vld [vmem:[%s5261_s25 + $0x260] sm:$0xf]  ;;  %302 = vst [vmem:[%s5265_s26 + $0x128] sm:$0xf] %v301_v10  ;;  %304 = vst [vmem:[%s5265_s26 + $0x12c] sm:$0xf] %v303_v11 }
  0x48   : > { %306 = vst [vmem:[%s5265_s26 + $0x130] sm:$0xf] %v305_v12  ;;  %v307_v13 = vld [vmem:[%s5261_s25 + $0x268] sm:$0xf]  ;;  %v309_v14 = vld [vmem:[%s5261_s25 + $0x270] sm:$0xf] }
  0x49   : > { %v311_v15 = vld [vmem:[%s5261_s25 + $0x278] sm:$0xf]  ;;  %308 = vst [vmem:[%s5265_s26 + $0x134] sm:$0xf] %v307_v13  ;;  %310 = vst [vmem:[%s5265_s26 + $0x138] sm:$0xf] %v309_v14 }
  0x4a   : > { %312 = vst [vmem:[%s5265_s26 + $0x13c] sm:$0xf] %v311_v15  ;;  %v313_v16 = vld [vmem:[%s5261_s25 + $0x280] sm:$0xf]  ;;  %v315_v17 = vld [vmem:[%s5261_s25 + $0x288] sm:$0xf] }
  0x4b   : > { %v317_v18 = vld [vmem:[%s5261_s25 + $0x290] sm:$0xf]  ;;  %314 = vst [vmem:[%s5265_s26 + $0x140] sm:$0xf] %v313_v16  ;;  %316 = vst [vmem:[%s5265_s26 + $0x144] sm:$0xf] %v315_v17 }
  0x4c   : > { %318 = vst [vmem:[%s5265_s26 + $0x148] sm:$0xf] %v317_v18  ;;  %v319_v19 = vld [vmem:[%s5261_s25 + $0x298] sm:$0xf]  ;;  %v321_v20 = vld [vmem:[%s5261_s25 + $0x2a0] sm:$0xf] }
  0x4d   : > { %v323_v21 = vld [vmem:[%s5261_s25 + $0x2a8] sm:$0xf]  ;;  %320 = vst [vmem:[%s5265_s26 + $0x14c] sm:$0xf] %v319_v19  ;;  %322 = vst [vmem:[%s5265_s26 + $0x150] sm:$0xf] %v321_v20 }
  0x4e   : > { %324 = vst [vmem:[%s5265_s26 + $0x154] sm:$0xf] %v323_v21  ;;  %v325_v22 = vld [vmem:[%s5261_s25 + $0x2b0] sm:$0xf]  ;;  %v327_v23 = vld [vmem:[%s5261_s25 + $0x2b8] sm:$0xf] }
  0x4f   : > { %v329_v24 = vld [vmem:[%s5261_s25 + $0x2c0] sm:$0xf]  ;;  %326 = vst [vmem:[%s5265_s26 + $0x158] sm:$0xf] %v325_v22  ;;  %328 = vst [vmem:[%s5265_s26 + $0x15c] sm:$0xf] %v327_v23 }
  0x50   : > { %330 = vst [vmem:[%s5265_s26 + $0x160] sm:$0xf] %v329_v24  ;;  %v331_v25 = vld [vmem:[%s5261_s25 + $0x2c8] sm:$0xf]  ;;  %v333_v26 = vld [vmem:[%s5261_s25 + $0x2d0] sm:$0xf] }
  0x51   : > { %v335_v27 = vld [vmem:[%s5261_s25 + $0x2d8] sm:$0xf]  ;;  %332 = vst [vmem:[%s5265_s26 + $0x164] sm:$0xf] %v331_v25  ;;  %334 = vst [vmem:[%s5265_s26 + $0x168] sm:$0xf] %v333_v26 }
  0x52   : > { %336 = vst [vmem:[%s5265_s26 + $0x16c] sm:$0xf] %v335_v27  ;;  %v337_v28 = vld [vmem:[%s5261_s25 + $0x2e0] sm:$0xf]  ;;  %v339_v29 = vld [vmem:[%s5261_s25 + $0x2e8] sm:$0xf] }
  0x53   : > { %v341_v30 = vld [vmem:[%s5261_s25 + $0x2f0] sm:$0xf]  ;;  %338 = vst [vmem:[%s5265_s26 + $0x170] sm:$0xf] %v337_v28  ;;  %340 = vst [vmem:[%s5265_s26 + $0x174] sm:$0xf] %v339_v29 }
  0x54   : > { %342 = vst [vmem:[%s5265_s26 + $0x178] sm:$0xf] %v341_v30  ;;  %v343_v31 = vld [vmem:[%s5261_s25 + $0x2f8] sm:$0xf]  ;;  %v345_v32 = vld [vmem:[%s5261_s25 + $0x300] sm:$0xf] }
  0x55   : > { %v347_v33 = vld [vmem:[%s5261_s25 + $0x308] sm:$0xf]  ;;  %344 = vst [vmem:[%s5265_s26 + $0x17c] sm:$0xf] %v343_v31  ;;  %346 = vst [vmem:[%s5265_s26 + $0x180] sm:$0xf] %v345_v32 }
  0x56   : > { %348 = vst [vmem:[%s5265_s26 + $0x184] sm:$0xf] %v347_v33  ;;  %v349_v34 = vld [vmem:[%s5261_s25 + $0x310] sm:$0xf]  ;;  %v351_v35 = vld [vmem:[%s5261_s25 + $0x318] sm:$0xf] }
  0x57   : > { %v353_v36 = vld [vmem:[%s5261_s25 + $0x320] sm:$0xf]  ;;  %350 = vst [vmem:[%s5265_s26 + $0x188] sm:$0xf] %v349_v34  ;;  %352 = vst [vmem:[%s5265_s26 + $0x18c] sm:$0xf] %v351_v35 }
  0x58   : > { %354 = vst [vmem:[%s5265_s26 + $0x190] sm:$0xf] %v353_v36  ;;  %v355_v37 = vld [vmem:[%s5261_s25 + $0x328] sm:$0xf]  ;;  %v357_v38 = vld [vmem:[%s5261_s25 + $0x330] sm:$0xf] }
  0x59   : > { %v359_v39 = vld [vmem:[%s5261_s25 + $0x338] sm:$0xf]  ;;  %356 = vst [vmem:[%s5265_s26 + $0x194] sm:$0xf] %v355_v37  ;;  %358 = vst [vmem:[%s5265_s26 + $0x198] sm:$0xf] %v357_v38 }
  0x5a   : > { %360 = vst [vmem:[%s5265_s26 + $0x19c] sm:$0xf] %v359_v39  ;;  %v361_v40 = vld [vmem:[%s5261_s25 + $0x340] sm:$0xf]  ;;  %v363_v41 = vld [vmem:[%s5261_s25 + $0x348] sm:$0xf] }
  0x5b   : > { %v365_v42 = vld [vmem:[%s5261_s25 + $0x350] sm:$0xf]  ;;  %362 = vst [vmem:[%s5265_s26 + $0x1a0] sm:$0xf] %v361_v40  ;;  %364 = vst [vmem:[%s5265_s26 + $0x1a4] sm:$0xf] %v363_v41 }
  0x5c   : > { %366 = vst [vmem:[%s5265_s26 + $0x1a8] sm:$0xf] %v365_v42  ;;  %v367_v43 = vld [vmem:[%s5261_s25 + $0x358] sm:$0xf]  ;;  %v369_v44 = vld [vmem:[%s5261_s25 + $0x360] sm:$0xf] }
  0x5d   : > { %v371_v45 = vld [vmem:[%s5261_s25 + $0x368] sm:$0xf]  ;;  %368 = vst [vmem:[%s5265_s26 + $0x1ac] sm:$0xf] %v367_v43  ;;  %370 = vst [vmem:[%s5265_s26 + $0x1b0] sm:$0xf] %v369_v44 }
  0x5e   : > { %372 = vst [vmem:[%s5265_s26 + $0x1b4] sm:$0xf] %v371_v45  ;;  %v373_v46 = vld [vmem:[%s5261_s25 + $0x370] sm:$0xf]  ;;  %v375_v47 = vld [vmem:[%s5261_s25 + $0x378] sm:$0xf] }
  0x5f   : > { %v377_v48 = vld [vmem:[%s5261_s25 + $0x380] sm:$0xf]  ;;  %374 = vst [vmem:[%s5265_s26 + $0x1b8] sm:$0xf] %v373_v46  ;;  %376 = vst [vmem:[%s5265_s26 + $0x1bc] sm:$0xf] %v375_v47 }
  0x60   : > { %378 = vst [vmem:[%s5265_s26 + $0x1c0] sm:$0xf] %v377_v48  ;;  %v379_v49 = vld [vmem:[%s5261_s25 + $0x388] sm:$0xf]  ;;  %v381_v50 = vld [vmem:[%s5261_s25 + $0x390] sm:$0xf] }
  0x61   : > { %v383_v51 = vld [vmem:[%s5261_s25 + $0x398] sm:$0xf]  ;;  %380 = vst [vmem:[%s5265_s26 + $0x1c4] sm:$0xf] %v379_v49  ;;  %382 = vst [vmem:[%s5265_s26 + $0x1c8] sm:$0xf] %v381_v50 }
  0x62   : > { %384 = vst [vmem:[%s5265_s26 + $0x1cc] sm:$0xf] %v383_v51  ;;  %v385_v52 = vld [vmem:[%s5261_s25 + $0x3a0] sm:$0xf]  ;;  %v387_v53 = vld [vmem:[%s5261_s25 + $0x3a8] sm:$0xf] }
  0x63   : > { %v389_v54 = vld [vmem:[%s5261_s25 + $0x3b0] sm:$0xf]  ;;  %386 = vst [vmem:[%s5265_s26 + $0x1d0] sm:$0xf] %v385_v52  ;;  %388 = vst [vmem:[%s5265_s26 + $0x1d4] sm:$0xf] %v387_v53 }
  0x64   : > { %390 = vst [vmem:[%s5265_s26 + $0x1d8] sm:$0xf] %v389_v54  ;;  %v391_v55 = vld [vmem:[%s5261_s25 + $0x3b8] sm:$0xf]  ;;  %v393_v56 = vld [vmem:[%s5261_s25 + $0x3c0] sm:$0xf] }
  0x65   : > { %v395_v57 = vld [vmem:[%s5261_s25 + $0x3c8] sm:$0xf]  ;;  %392 = vst [vmem:[%s5265_s26 + $0x1dc] sm:$0xf] %v391_v55  ;;  %394 = vst [vmem:[%s5265_s26 + $0x1e0] sm:$0xf] %v393_v56 }
  0x66   : > { %396 = vst [vmem:[%s5265_s26 + $0x1e4] sm:$0xf] %v395_v57  ;;  %v397_v58 = vld [vmem:[%s5261_s25 + $0x3d0] sm:$0xf]  ;;  %v399_v59 = vld [vmem:[%s5261_s25 + $0x3d8] sm:$0xf] }
  0x67   : > { %v401_v60 = vld [vmem:[%s5261_s25 + $0x3e0] sm:$0xf]  ;;  %398 = vst [vmem:[%s5265_s26 + $0x1e8] sm:$0xf] %v397_v58  ;;  %400 = vst [vmem:[%s5265_s26 + $0x1ec] sm:$0xf] %v399_v59 }
  0x68   : > { %402 = vst [vmem:[%s5265_s26 + $0x1f0] sm:$0xf] %v401_v60  ;;  %v403_v61 = vld [vmem:[%s5261_s25 + $0x3e8] sm:$0xf]  ;;  %v405_v62 = vld [vmem:[%s5261_s25 + $0x3f0] sm:$0xf] }
  0x69   : > { %v407_v63 = vld [vmem:[%s5261_s25 + $0x3f8] sm:$0xf]  ;;  %404 = vst [vmem:[%s5265_s26 + $0x1f4] sm:$0xf] %v403_v61  ;;  %406 = vst [vmem:[%s5265_s26 + $0x1f8] sm:$0xf] %v405_v62 }
  0x6a   : > { %408 = vst [vmem:[%s5265_s26 + $0x1fc] sm:$0xf] %v407_v63  ;;  %v409_v0 = vld [vmem:[%s5261_s25 + $0x400] sm:$0xf]  ;;  %v411_v1 = vld [vmem:[%s5261_s25 + $0x408] sm:$0xf] }
  0x6b   : > { %v413_v2 = vld [vmem:[%s5261_s25 + $0x410] sm:$0xf]  ;;  %410 = vst [vmem:[%s5265_s26 + $0x200] sm:$0xf] %v409_v0  ;;  %412 = vst [vmem:[%s5265_s26 + $0x204] sm:$0xf] %v411_v1 }
  0x6c   : > { %414 = vst [vmem:[%s5265_s26 + $0x208] sm:$0xf] %v413_v2  ;;  %v415_v3 = vld [vmem:[%s5261_s25 + $0x418] sm:$0xf]  ;;  %v417_v4 = vld [vmem:[%s5261_s25 + $0x420] sm:$0xf] }
  0x6d   : > { %v419_v5 = vld [vmem:[%s5261_s25 + $0x428] sm:$0xf]  ;;  %416 = vst [vmem:[%s5265_s26 + $0x20c] sm:$0xf] %v415_v3  ;;  %418 = vst [vmem:[%s5265_s26 + $0x210] sm:$0xf] %v417_v4 }
  0x6e   : > { %420 = vst [vmem:[%s5265_s26 + $0x214] sm:$0xf] %v419_v5  ;;  %v421_v6 = vld [vmem:[%s5261_s25 + $0x430] sm:$0xf]  ;;  %v423_v7 = vld [vmem:[%s5261_s25 + $0x438] sm:$0xf] }
  0x6f   : > { %v425_v8 = vld [vmem:[%s5261_s25 + $0x440] sm:$0xf]  ;;  %422 = vst [vmem:[%s5265_s26 + $0x218] sm:$0xf] %v421_v6  ;;  %424 = vst [vmem:[%s5265_s26 + $0x21c] sm:$0xf] %v423_v7 }
  0x70   : > { %426 = vst [vmem:[%s5265_s26 + $0x220] sm:$0xf] %v425_v8  ;;  %v427_v9 = vld [vmem:[%s5261_s25 + $0x448] sm:$0xf]  ;;  %v429_v10 = vld [vmem:[%s5261_s25 + $0x450] sm:$0xf] }
  0x71   : > { %v431_v11 = vld [vmem:[%s5261_s25 + $0x458] sm:$0xf]  ;;  %428 = vst [vmem:[%s5265_s26 + $0x224] sm:$0xf] %v427_v9  ;;  %430 = vst [vmem:[%s5265_s26 + $0x228] sm:$0xf] %v429_v10 }
  0x72   : > { %432 = vst [vmem:[%s5265_s26 + $0x22c] sm:$0xf] %v431_v11  ;;  %v433_v12 = vld [vmem:[%s5261_s25 + $0x460] sm:$0xf]  ;;  %v435_v13 = vld [vmem:[%s5261_s25 + $0x468] sm:$0xf] }
  0x73   : > { %v437_v14 = vld [vmem:[%s5261_s25 + $0x470] sm:$0xf]  ;;  %434 = vst [vmem:[%s5265_s26 + $0x230] sm:$0xf] %v433_v12  ;;  %436 = vst [vmem:[%s5265_s26 + $0x234] sm:$0xf] %v435_v13 }
  0x74   : > { %438 = vst [vmem:[%s5265_s26 + $0x238] sm:$0xf] %v437_v14  ;;  %v439_v15 = vld [vmem:[%s5261_s25 + $0x478] sm:$0xf]  ;;  %v441_v16 = vld [vmem:[%s5261_s25 + $0x480] sm:$0xf] }
  0x75   : > { %v443_v17 = vld [vmem:[%s5261_s25 + $0x488] sm:$0xf]  ;;  %440 = vst [vmem:[%s5265_s26 + $0x23c] sm:$0xf] %v439_v15  ;;  %442 = vst [vmem:[%s5265_s26 + $0x240] sm:$0xf] %v441_v16 }
  0x76   : > { %444 = vst [vmem:[%s5265_s26 + $0x244] sm:$0xf] %v443_v17  ;;  %v445_v18 = vld [vmem:[%s5261_s25 + $0x490] sm:$0xf]  ;;  %v447_v19 = vld [vmem:[%s5261_s25 + $0x498] sm:$0xf] }
  0x77   : > { %v449_v20 = vld [vmem:[%s5261_s25 + $0x4a0] sm:$0xf]  ;;  %446 = vst [vmem:[%s5265_s26 + $0x248] sm:$0xf] %v445_v18  ;;  %448 = vst [vmem:[%s5265_s26 + $0x24c] sm:$0xf] %v447_v19 }
  0x78   : > { %450 = vst [vmem:[%s5265_s26 + $0x250] sm:$0xf] %v449_v20  ;;  %v451_v21 = vld [vmem:[%s5261_s25 + $0x4a8] sm:$0xf]  ;;  %v453_v22 = vld [vmem:[%s5261_s25 + $0x4b0] sm:$0xf] }
  0x79   : > { %v455_v23 = vld [vmem:[%s5261_s25 + $0x4b8] sm:$0xf]  ;;  %452 = vst [vmem:[%s5265_s26 + $0x254] sm:$0xf] %v451_v21  ;;  %454 = vst [vmem:[%s5265_s26 + $0x258] sm:$0xf] %v453_v22 }
  0x7a   : > { %456 = vst [vmem:[%s5265_s26 + $0x25c] sm:$0xf] %v455_v23  ;;  %v457_v24 = vld [vmem:[%s5261_s25 + $0x4c0] sm:$0xf]  ;;  %v459_v25 = vld [vmem:[%s5261_s25 + $0x4c8] sm:$0xf] }
  0x7b   : > { %v461_v26 = vld [vmem:[%s5261_s25 + $0x4d0] sm:$0xf]  ;;  %458 = vst [vmem:[%s5265_s26 + $0x260] sm:$0xf] %v457_v24  ;;  %460 = vst [vmem:[%s5265_s26 + $0x264] sm:$0xf] %v459_v25 }
  0x7c   : > { %462 = vst [vmem:[%s5265_s26 + $0x268] sm:$0xf] %v461_v26  ;;  %v463_v27 = vld [vmem:[%s5261_s25 + $0x4d8] sm:$0xf]  ;;  %v465_v28 = vld [vmem:[%s5261_s25 + $0x4e0] sm:$0xf] }
  0x7d   : > { %v467_v29 = vld [vmem:[%s5261_s25 + $0x4e8] sm:$0xf]  ;;  %464 = vst [vmem:[%s5265_s26 + $0x26c] sm:$0xf] %v463_v27  ;;  %466 = vst [vmem:[%s5265_s26 + $0x270] sm:$0xf] %v465_v28 }
  0x7e   : > { %468 = vst [vmem:[%s5265_s26 + $0x274] sm:$0xf] %v467_v29  ;;  %v469_v30 = vld [vmem:[%s5261_s25 + $0x4f0] sm:$0xf]  ;;  %v471_v31 = vld [vmem:[%s5261_s25 + $0x4f8] sm:$0xf] }
  0x7f   : > { %v473_v32 = vld [vmem:[%s5261_s25 + $0x500] sm:$0xf]  ;;  %470 = vst [vmem:[%s5265_s26 + $0x278] sm:$0xf] %v469_v30  ;;  %472 = vst [vmem:[%s5265_s26 + $0x27c] sm:$0xf] %v471_v31 }
  0x80   : > { %474 = vst [vmem:[%s5265_s26 + $0x280] sm:$0xf] %v473_v32  ;;  %v475_v33 = vld [vmem:[%s5261_s25 + $0x508] sm:$0xf]  ;;  %v477_v34 = vld [vmem:[%s5261_s25 + $0x510] sm:$0xf] }
  0x81   : > { %v479_v35 = vld [vmem:[%s5261_s25 + $0x518] sm:$0xf]  ;;  %476 = vst [vmem:[%s5265_s26 + $0x284] sm:$0xf] %v475_v33  ;;  %478 = vst [vmem:[%s5265_s26 + $0x288] sm:$0xf] %v477_v34 }
  0x82   : > { %480 = vst [vmem:[%s5265_s26 + $0x28c] sm:$0xf] %v479_v35  ;;  %v481_v36 = vld [vmem:[%s5261_s25 + $0x520] sm:$0xf]  ;;  %v483_v37 = vld [vmem:[%s5261_s25 + $0x528] sm:$0xf] }
  0x83   : > { %v485_v38 = vld [vmem:[%s5261_s25 + $0x530] sm:$0xf]  ;;  %482 = vst [vmem:[%s5265_s26 + $0x290] sm:$0xf] %v481_v36  ;;  %484 = vst [vmem:[%s5265_s26 + $0x294] sm:$0xf] %v483_v37 }
  0x84   : > { %486 = vst [vmem:[%s5265_s26 + $0x298] sm:$0xf] %v485_v38  ;;  %v487_v39 = vld [vmem:[%s5261_s25 + $0x538] sm:$0xf]  ;;  %v489_v40 = vld [vmem:[%s5261_s25 + $0x540] sm:$0xf] }
  0x85   : > { %v491_v41 = vld [vmem:[%s5261_s25 + $0x548] sm:$0xf]  ;;  %488 = vst [vmem:[%s5265_s26 + $0x29c] sm:$0xf] %v487_v39  ;;  %490 = vst [vmem:[%s5265_s26 + $0x2a0] sm:$0xf] %v489_v40 }
  0x86   : > { %492 = vst [vmem:[%s5265_s26 + $0x2a4] sm:$0xf] %v491_v41  ;;  %v493_v42 = vld [vmem:[%s5261_s25 + $0x550] sm:$0xf]  ;;  %v495_v43 = vld [vmem:[%s5261_s25 + $0x558] sm:$0xf] }
  0x87   : > { %v497_v44 = vld [vmem:[%s5261_s25 + $0x560] sm:$0xf]  ;;  %494 = vst [vmem:[%s5265_s26 + $0x2a8] sm:$0xf] %v493_v42  ;;  %496 = vst [vmem:[%s5265_s26 + $0x2ac] sm:$0xf] %v495_v43 }
  0x88   : > { %498 = vst [vmem:[%s5265_s26 + $0x2b0] sm:$0xf] %v497_v44  ;;  %v499_v45 = vld [vmem:[%s5261_s25 + $0x568] sm:$0xf]  ;;  %v501_v46 = vld [vmem:[%s5261_s25 + $0x570] sm:$0xf] }
  0x89   : > { %v503_v47 = vld [vmem:[%s5261_s25 + $0x578] sm:$0xf]  ;;  %500 = vst [vmem:[%s5265_s26 + $0x2b4] sm:$0xf] %v499_v45  ;;  %502 = vst [vmem:[%s5265_s26 + $0x2b8] sm:$0xf] %v501_v46 }
  0x8a   : > { %504 = vst [vmem:[%s5265_s26 + $0x2bc] sm:$0xf] %v503_v47  ;;  %v505_v48 = vld [vmem:[%s5261_s25 + $0x580] sm:$0xf]  ;;  %v507_v49 = vld [vmem:[%s5261_s25 + $0x588] sm:$0xf] }
  0x8b   : > { %v509_v50 = vld [vmem:[%s5261_s25 + $0x590] sm:$0xf]  ;;  %506 = vst [vmem:[%s5265_s26 + $0x2c0] sm:$0xf] %v505_v48  ;;  %508 = vst [vmem:[%s5265_s26 + $0x2c4] sm:$0xf] %v507_v49 }
  0x8c   : > { %510 = vst [vmem:[%s5265_s26 + $0x2c8] sm:$0xf] %v509_v50  ;;  %v511_v51 = vld [vmem:[%s5261_s25 + $0x598] sm:$0xf]  ;;  %v513_v52 = vld [vmem:[%s5261_s25 + $0x5a0] sm:$0xf] }
  0x8d   : > { %v515_v53 = vld [vmem:[%s5261_s25 + $0x5a8] sm:$0xf]  ;;  %512 = vst [vmem:[%s5265_s26 + $0x2cc] sm:$0xf] %v511_v51  ;;  %514 = vst [vmem:[%s5265_s26 + $0x2d0] sm:$0xf] %v513_v52 }
  0x8e   : > { %516 = vst [vmem:[%s5265_s26 + $0x2d4] sm:$0xf] %v515_v53  ;;  %v517_v54 = vld [vmem:[%s5261_s25 + $0x5b0] sm:$0xf]  ;;  %v519_v55 = vld [vmem:[%s5261_s25 + $0x5b8] sm:$0xf] }
  0x8f   : > { %v521_v56 = vld [vmem:[%s5261_s25 + $0x5c0] sm:$0xf]  ;;  %518 = vst [vmem:[%s5265_s26 + $0x2d8] sm:$0xf] %v517_v54  ;;  %520 = vst [vmem:[%s5265_s26 + $0x2dc] sm:$0xf] %v519_v55 }
  0x90   : > { %522 = vst [vmem:[%s5265_s26 + $0x2e0] sm:$0xf] %v521_v56  ;;  %v523_v57 = vld [vmem:[%s5261_s25 + $0x5c8] sm:$0xf]  ;;  %v525_v58 = vld [vmem:[%s5261_s25 + $0x5d0] sm:$0xf] }
  0x91   : > { %v527_v59 = vld [vmem:[%s5261_s25 + $0x5d8] sm:$0xf]  ;;  %524 = vst [vmem:[%s5265_s26 + $0x2e4] sm:$0xf] %v523_v57  ;;  %526 = vst [vmem:[%s5265_s26 + $0x2e8] sm:$0xf] %v525_v58 }
  0x92   : > { %528 = vst [vmem:[%s5265_s26 + $0x2ec] sm:$0xf] %v527_v59  ;;  %v529_v60 = vld [vmem:[%s5261_s25 + $0x5e0] sm:$0xf]  ;;  %v531_v61 = vld [vmem:[%s5261_s25 + $0x5e8] sm:$0xf] }
  0x93   : > { %v533_v62 = vld [vmem:[%s5261_s25 + $0x5f0] sm:$0xf]  ;;  %530 = vst [vmem:[%s5265_s26 + $0x2f0] sm:$0xf] %v529_v60  ;;  %532 = vst [vmem:[%s5265_s26 + $0x2f4] sm:$0xf] %v531_v61 }
  0x94   : > { %534 = vst [vmem:[%s5265_s26 + $0x2f8] sm:$0xf] %v533_v62  ;;  %v535_v63 = vld [vmem:[%s5261_s25 + $0x5f8] sm:$0xf]  ;;  %v537_v0 = vld [vmem:[%s5261_s25 + $0x600] sm:$0xf] }
  0x95   : > { %v539_v1 = vld [vmem:[%s5261_s25 + $0x608] sm:$0xf]  ;;  %536 = vst [vmem:[%s5265_s26 + $0x2fc] sm:$0xf] %v535_v63  ;;  %538 = vst [vmem:[%s5265_s26 + $0x300] sm:$0xf] %v537_v0 }
  0x96   : > { %540 = vst [vmem:[%s5265_s26 + $0x304] sm:$0xf] %v539_v1  ;;  %v541_v2 = vld [vmem:[%s5261_s25 + $0x610] sm:$0xf]  ;;  %v543_v3 = vld [vmem:[%s5261_s25 + $0x618] sm:$0xf] }
  0x97   : > { %v545_v4 = vld [vmem:[%s5261_s25 + $0x620] sm:$0xf]  ;;  %542 = vst [vmem:[%s5265_s26 + $0x308] sm:$0xf] %v541_v2  ;;  %544 = vst [vmem:[%s5265_s26 + $0x30c] sm:$0xf] %v543_v3 }
  0x98   : > { %546 = vst [vmem:[%s5265_s26 + $0x310] sm:$0xf] %v545_v4  ;;  %v547_v5 = vld [vmem:[%s5261_s25 + $0x628] sm:$0xf]  ;;  %v549_v6 = vld [vmem:[%s5261_s25 + $0x630] sm:$0xf] }
  0x99   : > { %v551_v7 = vld [vmem:[%s5261_s25 + $0x638] sm:$0xf]  ;;  %548 = vst [vmem:[%s5265_s26 + $0x314] sm:$0xf] %v547_v5  ;;  %550 = vst [vmem:[%s5265_s26 + $0x318] sm:$0xf] %v549_v6 }
  0x9a   : > { %552 = vst [vmem:[%s5265_s26 + $0x31c] sm:$0xf] %v551_v7  ;;  %v553_v8 = vld [vmem:[%s5261_s25 + $0x640] sm:$0xf]  ;;  %v555_v9 = vld [vmem:[%s5261_s25 + $0x648] sm:$0xf] }
  0x9b   : > { %v557_v10 = vld [vmem:[%s5261_s25 + $0x650] sm:$0xf]  ;;  %554 = vst [vmem:[%s5265_s26 + $0x320] sm:$0xf] %v553_v8  ;;  %556 = vst [vmem:[%s5265_s26 + $0x324] sm:$0xf] %v555_v9 }
  0x9c   : > { %558 = vst [vmem:[%s5265_s26 + $0x328] sm:$0xf] %v557_v10  ;;  %v559_v11 = vld [vmem:[%s5261_s25 + $0x658] sm:$0xf]  ;;  %v561_v12 = vld [vmem:[%s5261_s25 + $0x660] sm:$0xf] }
  0x9d   : > { %v563_v13 = vld [vmem:[%s5261_s25 + $0x668] sm:$0xf]  ;;  %560 = vst [vmem:[%s5265_s26 + $0x32c] sm:$0xf] %v559_v11  ;;  %562 = vst [vmem:[%s5265_s26 + $0x330] sm:$0xf] %v561_v12 }
  0x9e   : > { %564 = vst [vmem:[%s5265_s26 + $0x334] sm:$0xf] %v563_v13  ;;  %v565_v14 = vld [vmem:[%s5261_s25 + $0x670] sm:$0xf]  ;;  %v567_v15 = vld [vmem:[%s5261_s25 + $0x678] sm:$0xf] }
  0x9f   : > { %v569_v16 = vld [vmem:[%s5261_s25 + $0x680] sm:$0xf]  ;;  %566 = vst [vmem:[%s5265_s26 + $0x338] sm:$0xf] %v565_v14  ;;  %568 = vst [vmem:[%s5265_s26 + $0x33c] sm:$0xf] %v567_v15 }
  0xa0   : > { %570 = vst [vmem:[%s5265_s26 + $0x340] sm:$0xf] %v569_v16  ;;  %v571_v17 = vld [vmem:[%s5261_s25 + $0x688] sm:$0xf]  ;;  %v573_v18 = vld [vmem:[%s5261_s25 + $0x690] sm:$0xf] }
  0xa1   : > { %v575_v19 = vld [vmem:[%s5261_s25 + $0x698] sm:$0xf]  ;;  %572 = vst [vmem:[%s5265_s26 + $0x344] sm:$0xf] %v571_v17  ;;  %574 = vst [vmem:[%s5265_s26 + $0x348] sm:$0xf] %v573_v18 }
  0xa2   : > { %576 = vst [vmem:[%s5265_s26 + $0x34c] sm:$0xf] %v575_v19  ;;  %v577_v20 = vld [vmem:[%s5261_s25 + $0x6a0] sm:$0xf]  ;;  %v579_v21 = vld [vmem:[%s5261_s25 + $0x6a8] sm:$0xf] }
  0xa3   : > { %v581_v22 = vld [vmem:[%s5261_s25 + $0x6b0] sm:$0xf]  ;;  %578 = vst [vmem:[%s5265_s26 + $0x350] sm:$0xf] %v577_v20  ;;  %580 = vst [vmem:[%s5265_s26 + $0x354] sm:$0xf] %v579_v21 }
  0xa4   : > { %582 = vst [vmem:[%s5265_s26 + $0x358] sm:$0xf] %v581_v22  ;;  %v583_v23 = vld [vmem:[%s5261_s25 + $0x6b8] sm:$0xf]  ;;  %v585_v24 = vld [vmem:[%s5261_s25 + $0x6c0] sm:$0xf] }
  0xa5   : > { %v587_v25 = vld [vmem:[%s5261_s25 + $0x6c8] sm:$0xf]  ;;  %584 = vst [vmem:[%s5265_s26 + $0x35c] sm:$0xf] %v583_v23  ;;  %586 = vst [vmem:[%s5265_s26 + $0x360] sm:$0xf] %v585_v24 }
  0xa6   : > { %588 = vst [vmem:[%s5265_s26 + $0x364] sm:$0xf] %v587_v25  ;;  %v589_v26 = vld [vmem:[%s5261_s25 + $0x6d0] sm:$0xf]  ;;  %v591_v27 = vld [vmem:[%s5261_s25 + $0x6d8] sm:$0xf] }
  0xa7   : > { %v593_v28 = vld [vmem:[%s5261_s25 + $0x6e0] sm:$0xf]  ;;  %590 = vst [vmem:[%s5265_s26 + $0x368] sm:$0xf] %v589_v26  ;;  %592 = vst [vmem:[%s5265_s26 + $0x36c] sm:$0xf] %v591_v27 }
  0xa8   : > { %594 = vst [vmem:[%s5265_s26 + $0x370] sm:$0xf] %v593_v28  ;;  %v595_v29 = vld [vmem:[%s5261_s25 + $0x6e8] sm:$0xf]  ;;  %v597_v30 = vld [vmem:[%s5261_s25 + $0x6f0] sm:$0xf] }
  0xa9   : > { %v599_v31 = vld [vmem:[%s5261_s25 + $0x6f8] sm:$0xf]  ;;  %596 = vst [vmem:[%s5265_s26 + $0x374] sm:$0xf] %v595_v29  ;;  %598 = vst [vmem:[%s5265_s26 + $0x378] sm:$0xf] %v597_v30 }
  0xaa   : > { %600 = vst [vmem:[%s5265_s26 + $0x37c] sm:$0xf] %v599_v31  ;;  %v601_v32 = vld [vmem:[%s5261_s25 + $0x700] sm:$0xf]  ;;  %v603_v33 = vld [vmem:[%s5261_s25 + $0x708] sm:$0xf] }
  0xab   : > { %v605_v34 = vld [vmem:[%s5261_s25 + $0x710] sm:$0xf]  ;;  %602 = vst [vmem:[%s5265_s26 + $0x380] sm:$0xf] %v601_v32  ;;  %604 = vst [vmem:[%s5265_s26 + $0x384] sm:$0xf] %v603_v33 }
  0xac   : > { %606 = vst [vmem:[%s5265_s26 + $0x388] sm:$0xf] %v605_v34  ;;  %v607_v35 = vld [vmem:[%s5261_s25 + $0x718] sm:$0xf]  ;;  %v609_v36 = vld [vmem:[%s5261_s25 + $0x720] sm:$0xf] }
  0xad   : > { %v611_v37 = vld [vmem:[%s5261_s25 + $0x728] sm:$0xf]  ;;  %608 = vst [vmem:[%s5265_s26 + $0x38c] sm:$0xf] %v607_v35  ;;  %610 = vst [vmem:[%s5265_s26 + $0x390] sm:$0xf] %v609_v36 }
  0xae   : > { %612 = vst [vmem:[%s5265_s26 + $0x394] sm:$0xf] %v611_v37  ;;  %v613_v38 = vld [vmem:[%s5261_s25 + $0x730] sm:$0xf]  ;;  %v615_v39 = vld [vmem:[%s5261_s25 + $0x738] sm:$0xf] }
  0xaf   : > { %v617_v40 = vld [vmem:[%s5261_s25 + $0x740] sm:$0xf]  ;;  %614 = vst [vmem:[%s5265_s26 + $0x398] sm:$0xf] %v613_v38  ;;  %616 = vst [vmem:[%s5265_s26 + $0x39c] sm:$0xf] %v615_v39 }
  0xb0   : > { %618 = vst [vmem:[%s5265_s26 + $0x3a0] sm:$0xf] %v617_v40  ;;  %v619_v41 = vld [vmem:[%s5261_s25 + $0x748] sm:$0xf]  ;;  %v621_v42 = vld [vmem:[%s5261_s25 + $0x750] sm:$0xf] }
  0xb1   : > { %v623_v43 = vld [vmem:[%s5261_s25 + $0x758] sm:$0xf]  ;;  %620 = vst [vmem:[%s5265_s26 + $0x3a4] sm:$0xf] %v619_v41  ;;  %622 = vst [vmem:[%s5265_s26 + $0x3a8] sm:$0xf] %v621_v42 }
  0xb2   : > { %624 = vst [vmem:[%s5265_s26 + $0x3ac] sm:$0xf] %v623_v43  ;;  %v625_v44 = vld [vmem:[%s5261_s25 + $0x760] sm:$0xf]  ;;  %v627_v45 = vld [vmem:[%s5261_s25 + $0x768] sm:$0xf] }
  0xb3   : > { %v629_v46 = vld [vmem:[%s5261_s25 + $0x770] sm:$0xf]  ;;  %626 = vst [vmem:[%s5265_s26 + $0x3b0] sm:$0xf] %v625_v44  ;;  %628 = vst [vmem:[%s5265_s26 + $0x3b4] sm:$0xf] %v627_v45 }
  0xb4   : > { %630 = vst [vmem:[%s5265_s26 + $0x3b8] sm:$0xf] %v629_v46  ;;  %v631_v47 = vld [vmem:[%s5261_s25 + $0x778] sm:$0xf]  ;;  %v633_v48 = vld [vmem:[%s5261_s25 + $0x780] sm:$0xf] }
  0xb5   : > { %v635_v49 = vld [vmem:[%s5261_s25 + $0x788] sm:$0xf]  ;;  %632 = vst [vmem:[%s5265_s26 + $0x3bc] sm:$0xf] %v631_v47  ;;  %634 = vst [vmem:[%s5265_s26 + $0x3c0] sm:$0xf] %v633_v48 }
  0xb6   : > { %636 = vst [vmem:[%s5265_s26 + $0x3c4] sm:$0xf] %v635_v49  ;;  %v637_v50 = vld [vmem:[%s5261_s25 + $0x790] sm:$0xf]  ;;  %v639_v51 = vld [vmem:[%s5261_s25 + $0x798] sm:$0xf] }
  0xb7   : > { %v641_v52 = vld [vmem:[%s5261_s25 + $0x7a0] sm:$0xf]  ;;  %638 = vst [vmem:[%s5265_s26 + $0x3c8] sm:$0xf] %v637_v50  ;;  %640 = vst [vmem:[%s5265_s26 + $0x3cc] sm:$0xf] %v639_v51 }
  0xb8   : > { %642 = vst [vmem:[%s5265_s26 + $0x3d0] sm:$0xf] %v641_v52  ;;  %v643_v53 = vld [vmem:[%s5261_s25 + $0x7a8] sm:$0xf]  ;;  %v645_v54 = vld [vmem:[%s5261_s25 + $0x7b0] sm:$0xf] }
  0xb9   : > { %v647_v55 = vld [vmem:[%s5261_s25 + $0x7b8] sm:$0xf]  ;;  %644 = vst [vmem:[%s5265_s26 + $0x3d4] sm:$0xf] %v643_v53  ;;  %646 = vst [vmem:[%s5265_s26 + $0x3d8] sm:$0xf] %v645_v54 }
  0xba   : > { %648 = vst [vmem:[%s5265_s26 + $0x3dc] sm:$0xf] %v647_v55  ;;  %v649_v56 = vld [vmem:[%s5261_s25 + $0x7c0] sm:$0xf]  ;;  %v651_v57 = vld [vmem:[%s5261_s25 + $0x7c8] sm:$0xf] }
  0xbb   : > { %v653_v58 = vld [vmem:[%s5261_s25 + $0x7d0] sm:$0xf]  ;;  %650 = vst [vmem:[%s5265_s26 + $0x3e0] sm:$0xf] %v649_v56  ;;  %652 = vst [vmem:[%s5265_s26 + $0x3e4] sm:$0xf] %v651_v57 }
  0xbc   : > { %654 = vst [vmem:[%s5265_s26 + $0x3e8] sm:$0xf] %v653_v58  ;;  %v655_v59 = vld [vmem:[%s5261_s25 + $0x7d8] sm:$0xf]  ;;  %v657_v60 = vld [vmem:[%s5261_s25 + $0x7e0] sm:$0xf] }
  0xbd   : > { %v659_v61 = vld [vmem:[%s5261_s25 + $0x7e8] sm:$0xf]  ;;  %656 = vst [vmem:[%s5265_s26 + $0x3ec] sm:$0xf] %v655_v59  ;;  %658 = vst [vmem:[%s5265_s26 + $0x3f0] sm:$0xf] %v657_v60 }
  0xbe   : > { %660 = vst [vmem:[%s5265_s26 + $0x3f4] sm:$0xf] %v659_v61  ;;  %v661_v62 = vld [vmem:[%s5261_s25 + $0x7f0] sm:$0xf]  ;;  %v663_v63 = vld [vmem:[%s5261_s25 + $0x7f8] sm:$0xf] }
  0xbf   : > { %662 = vst [vmem:[%s5265_s26 + $0x3f8] sm:$0xf] %v661_v62  ;;  %664 = vst [vmem:[%s5265_s26 + $0x3fc] sm:$0xf] %v663_v63 }
  0xc0 PF: > { %p4136_p8 = scmp.ge.s32.totalorder %s5196_s13, 1  ;;  %p1198_p9 = scmp.lt.s32.totalorder %s5196_s13, 3 }
  0xc2   : > { %p1199_p10 = pnand %p4136_p8, %p1198_p9 }
  0xc3   : > { %s1205_s27 = sand.u32 (!%p1199_p10), 1, %s5180_s9   ;;  %v5783_v0 = vld [vmem:[%s6505_s0] sm:$0xff] (!%p1199_p10)  ;;  %v5793_v2 = vld [vmem:[%s6505_s0 + $0x8] sm:$0xff] (!%p1199_p10) }
  0xc4   : > { %1202 = sbr.rel (%p1199_p10) target bundleno = 715 (0x2cb), region = 65  ;;  %v5788_v1 = vld [vmem:[%s6505_s0 + $0x40] sm:$0xff] (!%p1199_p10)  ;;  %s4137_s6 = sshll.u32 (!%p1199_p10), %s1205_s27, 10  ;;  %v5802_v4 = vld [vmem:[%s6505_s0 + $0x48] sm:$0xff] (!%p1199_p10) }
  0xc5   : > { %v4140_v3 = vcombine.high (!%p1199_p10), %v5783_v0, %v5788_v1  ;;  %v4142_v5 = vcombine.high (!%p1199_p10), %v5793_v2, %v5802_v4  ;;  %s5806_s15 = scalar_lea.vmem (!%p1199_p10), [#allocation2], %s4137_s6  ;;  %v1256_v35 = vld [vmem:[%s6505_s0 + $0x80] sm:$0xff] (!%p1199_p10)  ;;  %v1257_v38 = vld [vmem:[%s6505_s0 + $0x88] sm:$0xff] (!%p1199_p10)  ;;  %v4139_v42 = vcombine.low (!%p1199_p10), %v5783_v0, %v5788_v1  ;;  %v4141_v43 = vcombine.low (!%p1199_p10), %v5793_v2, %v5802_v4 }
  0xc6   : > { %v5030_v6 = vld [vmem:[%s5806_s15 + $0x40] sm:$0xff] (!%p1199_p10)   ;;  %v5034_v10 = vld [vmem:[%s5806_s15 + $0x48] sm:$0xff] (!%p1199_p10)   ;;  %v5038_v14 = vld [vmem:[%s5806_s15 + $0x50] sm:$0xff] (!%p1199_p10)  }
  0xc7   : > { %3064 = vmatprep.mubr.bf16.mxu0 (!%p1199_p10), %v4140_v3  ;;  %v5031_v7 = vld [vmem:[%s5806_s15 + $0xc0] sm:$0xff] (!%p1199_p10)   ;;  %3161 = vmatprep.mubr.bf16.mxu1 (!%p1199_p10), %v4142_v5  ;;  %v5035_v11 = vld [vmem:[%s5806_s15 + $0xc8] sm:$0xff] (!%p1199_p10)   ;;  %v5039_v15 = vld [vmem:[%s5806_s15 + $0xd0] sm:$0xff] (!%p1199_p10)  }
  0xc8   : > { %4478 = vmatprep.subr.bf16.mxu0 (!%p1199_p10), %v5030_v6  ;;  %v5032_v8 = vld [vmem:[%s5806_s15] sm:$0xff] (!%p1199_p10)   ;;  %4542 = vmatprep.subr.bf16.mxu1 (!%p1199_p10), %v5031_v7  ;;  %v5036_v12 = vld [vmem:[%s5806_s15 + $0x8] sm:$0xff] (!%p1199_p10)   ;;  %v5040_v16 = vld [vmem:[%s5806_s15 + $0x10] sm:$0xff] (!%p1199_p10)  }
  0xc9   : > { %v5033_v9 = vld [vmem:[%s5806_s15 + $0x80] sm:$0xff] (!%p1199_p10)   ;;  %4479 = vmatpush3.bf16.msra.mxu0 (!%p1199_p10), %v5032_v8  ;;  %v5037_v13 = vld [vmem:[%s5806_s15 + $0x88] sm:$0xff] (!%p1199_p10)   ;;  %v5041_v17 = vld [vmem:[%s5806_s15 + $0x90] sm:$0xff] (!%p1199_p10)  }
  0xca   : > { %4543 = vmatpush3.bf16.msra.mxu1 (!%p1199_p10), %v5033_v9  ;;  %4480 = vmatprep.subr.bf16.mxu0 (!%p1199_p10), %v5034_v10  ;;  %v5042_v18 = vld [vmem:[%s5806_s15 + $0x58] sm:$0xff] (!%p1199_p10)   ;;  %v5046_v22 = vld [vmem:[%s5806_s15 + $0x60] sm:$0xff] (!%p1199_p10)   ;;  %v5050_v26 = vld [vmem:[%s5806_s15 + $0x68] sm:$0xff] (!%p1199_p10)  }
  0xcb   : > { %4544 = vmatprep.subr.bf16.mxu1 %v5035_v11  ;;  %v5043_v19 = vld [vmem:[%s5806_s15 + $0xd8] sm:$0xff]   ;;  %v5047_v23 = vld [vmem:[%s5806_s15 + $0xe0] sm:$0xff]   ;;  %v5051_v27 = vld [vmem:[%s5806_s15 + $0xe8] sm:$0xff]  }
  0xcc   : > { %v5044_v20 = vld [vmem:[%s5806_s15 + $0x18] sm:$0xff]   ;;  %v5048_v24 = vld [vmem:[%s5806_s15 + $0x20] sm:$0xff]   ;;  %v5052_v28 = vld [vmem:[%s5806_s15 + $0x28] sm:$0xff]  }
  0xcd   : > { %4481 = vmatpush3.bf16.msra.mxu0 %v5036_v12  ;;  %v5045_v21 = vld [vmem:[%s5806_s15 + $0x98] sm:$0xff]   ;;  %v5049_v25 = vld [vmem:[%s5806_s15 + $0xa0] sm:$0xff]   ;;  %v5053_v29 = vld [vmem:[%s5806_s15 + $0xa8] sm:$0xff]  }
  0xce   : > { %4545 = vmatpush3.bf16.msra.mxu1 %v5037_v13  ;;  %4482 = vmatprep.subr.bf16.mxu0 %v5038_v14  ;;  %v5054_v30 = vld [vmem:[%s5806_s15 + $0x70] sm:$0xff]   ;;  %v5058_v34 = vld [vmem:[%s5806_s15 + $0x78] sm:$0xff]   ;;  %v1264_v36 = vld [vmem:[%s6505_s0 + $0xc0] sm:$0xff] }
  0xcf   : > { %4546 = vmatprep.subr.bf16.mxu1 %v5039_v15  ;;  %v5055_v31 = vld [vmem:[%s5806_s15 + $0xf0] sm:$0xff]   ;;  %v5059_v37 = vld [vmem:[%s5806_s15 + $0xf8] sm:$0xff]   ;;  %v1265_v39 = vld [vmem:[%s6505_s0 + $0xc8] sm:$0xff]  ;;  %v4156_v46 = vcombine.high %v1256_v35, %v1264_v36  ;;  %v4155_v54 = vcombine.low %v1256_v35, %v1264_v36 }
  0xd0   : > { %v5056_v32 = vld [vmem:[%s5806_s15 + $0x30] sm:$0xff]   ;;  %v5060_v40 = vld [vmem:[%s5806_s15 + $0x38] sm:$0xff]   ;;  %v5062_v44 = vld [vmem:[%s5806_s15 + $0x140] sm:$0xff]   ;;  %v4158_v48 = vcombine.high %v1257_v38, %v1265_v39  ;;  %v4157_v56 = vcombine.low %v1257_v38, %v1265_v39 }
  0xd1   : > { %4483 = vmatpush3.bf16.msra.mxu0 %v5040_v16  ;;  %v5057_v33 = vld [vmem:[%s5806_s15 + $0xb0] sm:$0xff]   ;;  %v5061_v41 = vld [vmem:[%s5806_s15 + $0xb8] sm:$0xff]   ;;  %v5063_v45 = vld [vmem:[%s5806_s15 + $0x100] sm:$0xff]  }
  0xd2   : > { %4547 = vmatpush3.bf16.msra.mxu1 %v5041_v17  ;;  %4484 = vmatprep.subr.bf16.mxu0 %v5042_v18  ;;  %v5064_v47 = vld [vmem:[%s5806_s15 + $0x1c0] sm:$0xff]   ;;  %v5066_v50 = vld [vmem:[%s5806_s15 + $0x148] sm:$0xff]   ;;  %v5070_v62 = vld [vmem:[%s5806_s15 + $0x150] sm:$0xff]  }
  0xd3   : > { %4548 = vmatprep.subr.bf16.mxu1 %v5043_v19  ;;  %v5065_v49 = vld [vmem:[%s5806_s15 + $0x180] sm:$0xff]   ;;  %v5067_v52 = vld [vmem:[%s5806_s15 + $0x108] sm:$0xff]   ;;  %v5071_v63 = vld [vmem:[%s5806_s15 + $0x110] sm:$0xff]  }
  0xd4   : > { %v1272_v51 = vld [vmem:[%s6505_s0 + $0x100] sm:$0xff]  ;;  %v5068_v53 = vld [vmem:[%s5806_s15 + $0x1c8] sm:$0xff]   ;;  %v5072_v0 = vld [vmem:[%s5806_s15 + $0x1d0] sm:$0xff]  }
  0xd5   : > { %4485 = vmatpush3.bf16.msra.mxu0 %v5044_v20  ;;  %v5069_v55 = vld [vmem:[%s5806_s15 + $0x188] sm:$0xff]   ;;  %v1280_v57 = vld [vmem:[%s6505_s0 + $0x140] sm:$0xff]  ;;  %v5073_v1 = vld [vmem:[%s5806_s15 + $0x190] sm:$0xff]  }
  0xd6   : > { %4549 = vmatpush3.bf16.msra.mxu1 %v5045_v21  ;;  %4486 = vmatprep.subr.bf16.mxu0 %v5046_v22  ;;  %v1273_v58 = vld [vmem:[%s6505_s0 + $0x108] sm:$0xff]  ;;  %v4172_v60 = vcombine.high %v1272_v51, %v1280_v57  ;;  %v1288_v2 = vld [vmem:[%s6505_s0 + $0x180] sm:$0xff]  ;;  %v4171_v6 = vcombine.low %v1272_v51, %v1280_v57  ;;  %v5074_v7 = vld [vmem:[%s5806_s15 + $0x158] sm:$0xff]  }
  0xd7   : > { %4550 = vmatprep.subr.bf16.mxu1 %v5047_v23  ;;  %v1281_v59 = vld [vmem:[%s6505_s0 + $0x148] sm:$0xff]  ;;  %v1296_v3 = vld [vmem:[%s6505_s0 + $0x1c0] sm:$0xff]  ;;  %v5075_v10 = vld [vmem:[%s5806_s15 + $0x118] sm:$0xff]  }
  0xd8   : > { %v4174_v61 = vcombine.high %v1273_v58, %v1281_v59  ;;  %v1289_v4 = vld [vmem:[%s6505_s0 + $0x188] sm:$0xff]  ;;  %v4173_v8 = vcombine.low %v1273_v58, %v1281_v59  ;;  %v4188_v9 = vcombine.high %v1288_v2, %v1296_v3  ;;  %v5076_v12 = vld [vmem:[%s5806_s15 + $0x1d8] sm:$0xff]   ;;  %v1304_v14 = vld [vmem:[%s6505_s0 + $0x200] sm:$0xff]  ;;  %v4187_v21 = vcombine.low %v1288_v2, %v1296_v3 }
  0xd9   : > { %4487 = vmatpush3.bf16.msra.mxu0 %v5048_v24  ;;  %v1297_v5 = vld [vmem:[%s6505_s0 + $0x1c8] sm:$0xff]  ;;  %v5077_v13 = vld [vmem:[%s5806_s15 + $0x198] sm:$0xff]   ;;  %v1312_v15 = vld [vmem:[%s6505_s0 + $0x240] sm:$0xff] }
  0xda   : > { %4551 = vmatpush3.bf16.msra.mxu1 %v5049_v25  ;;  %4488 = vmatprep.subr.bf16.mxu0 %v5050_v26  ;;  %v4190_v11 = vcombine.high %v1289_v4, %v1297_v5  ;;  %v1305_v16 = vld [vmem:[%s6505_s0 + $0x208] sm:$0xff]  ;;  %v5078_v18 = vld [vmem:[%s5806_s15 + $0x160] sm:$0xff]   ;;  %v4189_v23 = vcombine.low %v1289_v4, %v1297_v5  ;;  %v4204_v24 = vcombine.high %v1304_v14, %v1312_v15  ;;  %v5086_v35 = vld [vmem:[%s5806_s15 + $0x170] sm:$0xff]  }
  0xdb   : > { %4552 = vmatprep.subr.bf16.mxu1 %v5051_v27  ;;  %v1313_v17 = vld [vmem:[%s6505_s0 + $0x248] sm:$0xff]  ;;  %v5079_v19 = vld [vmem:[%s5806_s15 + $0x120] sm:$0xff]   ;;  %v5087_v38 = vld [vmem:[%s5806_s15 + $0x130] sm:$0xff]  }
  0xdc   : > { %v5080_v20 = vld [vmem:[%s5806_s15 + $0x1e0] sm:$0xff]   ;;  %v4206_v25 = vcombine.high %v1305_v16, %v1313_v17  ;;  %v5082_v26 = vld [vmem:[%s5806_s15 + $0x168] sm:$0xff]   ;;  %v4205_v36 = vcombine.low %v1305_v16, %v1313_v17  ;;  %v1243_v2 = vld [vmem:[%s6505_s0 + $0x18] sm:$0xff] }
  0xdd   : > { %4489 = vmatpush3.bf16.msra.mxu0 %v5052_v28  ;;  %v5081_v22 = vld [vmem:[%s5806_s15 + $0x1a0] sm:$0xff]   ;;  %v5083_v27 = vld [vmem:[%s5806_s15 + $0x128] sm:$0xff]   ;;  %v1251_v3 = vld [vmem:[%s6505_s0 + $0x58] sm:$0xff] }
  0xde   : > { %4553 = vmatpush3.bf16.msra.mxu1 %v5053_v29  ;;  %4490 = vmatprep.subr.bf16.mxu0 %v5054_v30  ;;  %v5084_v28 = vld [vmem:[%s5806_s15 + $0x1e8] sm:$0xff]   ;;  %v1320_v30 = vld [vmem:[%s6505_s0 + $0x280] sm:$0xff] }
  0xdf   : > { %4554 = vmatprep.subr.bf16.mxu1 %v5055_v31  ;;  %v5085_v29 = vld [vmem:[%s5806_s15 + $0x1a8] sm:$0xff]   ;;  %v1328_v31 = vld [vmem:[%s6505_s0 + $0x2c0] sm:$0xff] }
  0xe0   : > { %v1360_v57 = vld [vmem:[%s6505_s0 + $0x3c0] sm:$0xff]  ;;  %v1353_v58 = vld [vmem:[%s6505_s0 + $0x388] sm:$0xff] }
  0xe1   : > { %4491 = vmatpush3.bf16.msra.mxu0 %v5056_v32  ;;  %v1321_v32 = vld [vmem:[%s6505_s0 + $0x288] sm:$0xff] }
  0xe2   : > { %4555 = vmatpush3.bf16.msra.mxu1 %v5057_v33  ;;  %4492 = vmatprep.subr.bf16.mxu0 %v5058_v34  ;;  %v1329_v33 = vld [vmem:[%s6505_s0 + $0x2c8] sm:$0xff]  ;;  %v4203_v34 = vcombine.low %v1304_v14, %v1312_v15  ;;  %v5095_v14 = vld [vmem:[%s5806_s15 + $0x200] sm:$0xff]  }
  0xe3   : > { %4556 = vmatprep.subr.bf16.mxu1 %v5059_v37  ;;  %v4220_v37 = vcombine.high %v1320_v30, %v1328_v31  ;;  %v4222_v39 = vcombine.high %v1321_v32, %v1329_v33  ;;  %v4221_v51 = vcombine.low %v1321_v32, %v1329_v33  ;;  %v1361_v59 = vld [vmem:[%s6505_s0 + $0x3c8] sm:$0xff]  ;;  %v5097_v15 = vld [vmem:[%s5806_s15 + $0x280] sm:$0xff]   ;;  %v5105_v33 = vld [vmem:[%s5806_s15 + $0x290] sm:$0xff]  }
  0xe4   : > { %v4253_v5 = vcombine.low %v1353_v58, %v1361_v59 }
  0xe5   : > { %4493 = vmatpush3.bf16.msra.mxu0 %v5060_v40  ;;  %v5088_v40 = vld [vmem:[%s5806_s15 + $0x1f0] sm:$0xff]  }
  0xe6   : > { %4557 = vmatpush3.bf16.msra.mxu1 %v5061_v41  ;;  %4606 = vmatprep.subr.bf16.mxu0 %v5062_v44  ;;  %v5089_v41 = vld [vmem:[%s5806_s15 + $0x1b0] sm:$0xff]   ;;  %v1337_v44 = vld [vmem:[%s6505_s0 + $0x308] sm:$0xff] }
  0xe7   : > { %4670 = vmatprep.subr.bf16.mxu1 %v5064_v47  ;;  %v5091_v47 = vld [vmem:[%s5806_s15 + $0x138] sm:$0xff]  }
  0xe8   : > { %3065 = vmatmul.mubr.bf16.vlgmr.msra.gmra.mrb[0].mxu0 %v4139_v42  ;;  %v1336_v42 = vld [vmem:[%s6505_s0 + $0x300] sm:$0xff] }
  0xe9   : > { %3162 = vmatmul.mubr.bf16.vlgmr.msra.gmra.mrb[0].mxu1 %v4141_v43  ;;  %4607 = vmatpush3.bf16.msra.mxu0 %v5063_v45  ;;  %v1344_v43 = vld [vmem:[%s6505_s0 + $0x340] sm:$0xff]  ;;  %v1345_v45 = vld [vmem:[%s6505_s0 + $0x348] sm:$0xff] }
  0xea   : > { %3072 = vmatprep.mubr.bf16.mxu0 %v4156_v46  ;;  %4671 = vmatpush3.bf16.msra.mxu1 %v5065_v49  ;;  %v5090_v46 = vld [vmem:[%s5806_s15 + $0x178] sm:$0xff]   ;;  %v4219_v49 = vcombine.low %v1320_v30, %v1328_v31  ;;  %v5103_v31 = vld [vmem:[%s5806_s15 + $0x210] sm:$0xff]  }
  0xeb   : > { %3169 = vmatprep.mubr.bf16.mxu1 %v4158_v48  ;;  %4608 = vmatprep.subr.bf16.mxu0 %v5066_v50  ;;  %v5092_v48 = vld [vmem:[%s5806_s15 + $0x1f8] sm:$0xff]  }
  0xec   : > { %4672 = vmatprep.subr.bf16.mxu1 %v5068_v53  ;;  %v5093_v50 = vld [vmem:[%s5806_s15 + $0x1b8] sm:$0xff]   ;;  %v4238_v53 = vcombine.high %v1337_v44, %v1345_v45 }
  0xed   : > { %4609 = vmatpush3.bf16.msra.mxu0 %v5067_v52  ;;  %v4236_v52 = vcombine.high %v1336_v42, %v1344_v43 }
  0xee   : > { %4673 = vmatpush3.bf16.msra.mxu1 %v5069_v55  ;;  %4610 = vmatprep.subr.bf16.mxu0 %v5070_v62  ;;  %v5096_v55 = vld [vmem:[%s5806_s15 + $0x2c0] sm:$0xff]  }
  0xef   : > { %4674 = vmatprep.subr.bf16.mxu1 %v5072_v0  ;;  %v1242_v0 = vld [vmem:[%s6505_s0 + $0x10] sm:$0xff] }
  0xf0   : > { %3073 = vmatmul.mubr.bf16.gmra.mrb[4].mxu0 %v4155_v54  ;;  %v5094_v54 = vld [vmem:[%s5806_s15 + $0x240] sm:$0xff]  }
  0xf1   : > { %3170 = vmatmul.mubr.bf16.gmra.mrb[4].mxu1 %v4157_v56  ;;  %3080 = vmatprep.mubr.bf16.mxu0 %v4172_v60  ;;  %v1352_v56 = vld [vmem:[%s6505_s0 + $0x380] sm:$0xff]  ;;  %v4235_v60 = vcombine.low %v1336_v42, %v1344_v43 }
  0xf2   : > { %3177 = vmatprep.mubr.bf16.mxu1 %v4174_v61  ;;  %4611 = vmatpush3.bf16.msra.mxu0 %v5071_v63  ;;  %v4237_v61 = vcombine.low %v1337_v44, %v1345_v45  ;;  %v4252_v62 = vcombine.high %v1352_v56, %v1360_v57  ;;  %v4254_v63 = vcombine.high %v1353_v58, %v1361_v59  ;;  %v5110_v42 = vld [vmem:[%s5806_s15 + $0x260] sm:$0xff]   ;;  %v5118_v58 = vld [vmem:[%s5806_s15 + $0x270] sm:$0xff]  }
  0xf3   : > { %4675 = vmatpush3.bf16.msra.mxu1 %v5073_v1  ;;  %4612 = vmatprep.subr.bf16.mxu0 %v5074_v7  ;;  %v1250_v1 = vld [vmem:[%s6505_s0 + $0x50] sm:$0xff]  ;;  %v4251_v4 = vcombine.low %v1352_v56, %v1360_v57  ;;  %v4146_v7 = vcombine.high %v1243_v2, %v1251_v3  ;;  %v5112_v44 = vld [vmem:[%s5806_s15 + $0x2e0] sm:$0xff]   ;;  %v5115_v56 = vld [vmem:[%s5806_s15 + $0x228] sm:$0xff]  }
  0xf4   : > { %4676 = vmatprep.subr.bf16.mxu1 %v5076_v12  ;;  %v1267_v12 = vld [vmem:[%s6505_s0 + $0xd8] sm:$0xff]  ;;  %v5117_v57 = vld [vmem:[%s5806_s15 + $0x2a8] sm:$0xff]  }
  0xf6   : > { %4613 = vmatpush3.bf16.msra.mxu0 %v5075_v10  ;;  %v1259_v10 = vld [vmem:[%s6505_s0 + $0x98] sm:$0xff] }
  0xf7   : > { %4677 = vmatpush3.bf16.msra.mxu1 %v5077_v13  ;;  %4614 = vmatprep.subr.bf16.mxu0 %v5078_v18  ;;  %v4145_v13 = vcombine.low %v1243_v2, %v1251_v3  ;;  %v4162_v17 = vcombine.high %v1259_v10, %v1267_v12  ;;  %v5098_v18 = vld [vmem:[%s5806_s15 + $0x248] sm:$0xff]   ;;  %v5122_v2 = vld [vmem:[%s5806_s15 + $0x278] sm:$0xff]   ;;  %v1322_v3 = vld [vmem:[%s6505_s0 + $0x290] sm:$0xff] }
  0xf8   : > { %3081 = vmatmul.mubr.bf16.gmra.mrb[8].mxu0 %v4171_v6  ;;  %4678 = vmatprep.subr.bf16.mxu1 %v5080_v20  ;;  %v4144_v6 = vcombine.high %v1242_v0, %v1250_v1  ;;  %v5100_v20 = vld [vmem:[%s5806_s15 + $0x2c8] sm:$0xff]  }
  0xf9   : > { %3178 = vmatmul.mubr.bf16.gmra.mrb[8].mxu1 %v4173_v8  ;;  %3088 = vmatprep.mubr.bf16.mxu0 %v4188_v9  ;;  %v1258_v8 = vld [vmem:[%s6505_s0 + $0x90] sm:$0xff] }
  0xfa   : > { %3185 = vmatprep.mubr.bf16.mxu1 %v4190_v11  ;;  %4615 = vmatpush3.bf16.msra.mxu0 %v5079_v19  ;;  %v1266_v9 = vld [vmem:[%s6505_s0 + $0xd0] sm:$0xff]  ;;  %v4143_v11 = vcombine.low %v1242_v0, %v1250_v1  ;;  %v5099_v19 = vld [vmem:[%s5806_s15 + $0x208] sm:$0xff]  }
  0xfb   : > { %4679 = vmatpush3.bf16.msra.mxu1 %v5081_v22  ;;  %4616 = vmatprep.subr.bf16.mxu0 %v5082_v26  ;;  %v4160_v16 = vcombine.high %v1258_v8, %v1266_v9  ;;  %v1274_v22 = vld [vmem:[%s6505_s0 + $0x110] sm:$0xff] }
  0xfc   : > { %4680 = vmatprep.subr.bf16.mxu1 %v5084_v28  ;;  %v5102_v26 = vld [vmem:[%s5806_s15 + $0x250] sm:$0xff]   ;;  %v4159_v28 = vcombine.low %v1258_v8, %v1266_v9  ;;  %v5123_v8 = vld [vmem:[%s5806_s15 + $0x238] sm:$0xff]  }
  0xfd   : > { %v5121_v1 = vld [vmem:[%s5806_s15 + $0x2b0] sm:$0xff]   ;;  %v5125_v9 = vld [vmem:[%s5806_s15 + $0x2b8] sm:$0xff]  }
  0xfe   : > { %4617 = vmatpush3.bf16.msra.mxu0 %v5083_v27  ;;  %v5104_v27 = vld [vmem:[%s5806_s15 + $0x2d0] sm:$0xff]  }
  0xff   : > { %4681 = vmatpush3.bf16.msra.mxu1 %v5085_v29  ;;  %4618 = vmatprep.subr.bf16.mxu0 %v5086_v35  ;;  %v4161_v29 = vcombine.low %v1259_v10, %v1267_v12  ;;  %v1290_v35 = vld [vmem:[%s6505_s0 + $0x190] sm:$0xff]  ;;  %v5126_v10 = vld [vmem:[%s5806_s15 + $0x340] sm:$0xff]  }
 0x100   : > { %3089 = vmatmul.mubr.bf16.gmra.mrb[12].mxu0 %v4187_v21  ;;  %4682 = vmatprep.subr.bf16.mxu1 %v5088_v40  ;;  %v5101_v21 = vld [vmem:[%s5806_s15 + $0x288] sm:$0xff]   ;;  %v5107_v40 = vld [vmem:[%s5806_s15 + $0x218] sm:$0xff]   ;;  %v5128_v12 = vld [vmem:[%s5806_s15 + $0x3c0] sm:$0xff]  }
 0x101   : > { %3186 = vmatmul.mubr.bf16.gmra.mrb[12].mxu1 %v4189_v23  ;;  %3096 = vmatprep.mubr.bf16.mxu0 %v4204_v24  ;;  %v1282_v23 = vld [vmem:[%s6505_s0 + $0x150] sm:$0xff]  ;;  %v1275_v24 = vld [vmem:[%s6505_s0 + $0x118] sm:$0xff] }
 0x102   : > { %3193 = vmatprep.mubr.bf16.mxu1 %v4206_v25  ;;  %4619 = vmatpush3.bf16.msra.mxu0 %v5087_v38  ;;  %v1283_v25 = vld [vmem:[%s6505_s0 + $0x158] sm:$0xff]  ;;  %v4176_v30 = vcombine.high %v1274_v22, %v1282_v23  ;;  %v4175_v43 = vcombine.low %v1274_v22, %v1282_v23 }
 0x103   : > { %4683 = vmatpush3.bf16.msra.mxu1 %v5089_v41  ;;  %4620 = vmatprep.subr.bf16.mxu0 %v5090_v46  ;;  %v4178_v32 = vcombine.high %v1275_v24, %v1283_v25  ;;  %v1291_v38 = vld [vmem:[%s6505_s0 + $0x198] sm:$0xff]  ;;  %v4177_v45 = vcombine.low %v1275_v24, %v1283_v25  ;;  %v1354_v24 = vld [vmem:[%s6505_s0 + $0x390] sm:$0xff] }
 0x104   : > { %4684 = vmatprep.subr.bf16.mxu1 %v5092_v48  ;;  %v5109_v41 = vld [vmem:[%s5806_s15 + $0x298] sm:$0xff]   ;;  %v5111_v48 = vld [vmem:[%s5806_s15 + $0x220] sm:$0xff]   ;;  %v1362_v25 = vld [vmem:[%s6505_s0 + $0x3d0] sm:$0xff] }
 0x106   : > { %4621 = vmatpush3.bf16.msra.mxu0 %v5091_v47 }
 0x107   : > { %4685 = vmatpush3.bf16.msra.mxu1 %v5093_v50  ;;  %4734 = vmatprep.subr.bf16.mxu0 %v5094_v54  ;;  %v5114_v50 = vld [vmem:[%s5806_s15 + $0x268] sm:$0xff]   ;;  %v1307_v54 = vld [vmem:[%s6505_s0 + $0x218] sm:$0xff] }
 0x108   : > { %3097 = vmatmul.mubr.bf16.gmra.mrb[16].mxu0 %v4203_v34  ;;  %4798 = vmatprep.subr.bf16.mxu1 %v5096_v55  ;;  %v5106_v34 = vld [vmem:[%s5806_s15 + $0x258] sm:$0xff]  }
 0x109   : > { %3194 = vmatmul.mubr.bf16.gmra.mrb[16].mxu1 %v4205_v36  ;;  %3104 = vmatprep.mubr.bf16.mxu0 %v4220_v37  ;;  %v1298_v36 = vld [vmem:[%s6505_s0 + $0x1d0] sm:$0xff]  ;;  %v5108_v37 = vld [vmem:[%s5806_s15 + $0x2d8] sm:$0xff]  }
 0x10a   : > { %3201 = vmatprep.mubr.bf16.mxu1 %v4222_v39  ;;  %v1299_v39 = vld [vmem:[%s6505_s0 + $0x1d8] sm:$0xff]  ;;  %v4192_v46 = vcombine.high %v1290_v35, %v1298_v36  ;;  %v4191_v59 = vcombine.low %v1290_v35, %v1298_v36  ;;  %v1253_v35 = vld [vmem:[%s6505_s0 + $0x68] sm:$0xff]  ;;  %v4255_v36 = vcombine.low %v1354_v24, %v1362_v25 }
 0x10b   : > { %v4194_v47 = vcombine.high %v1291_v38, %v1299_v39  ;;  %v1315_v55 = vld [vmem:[%s6505_s0 + $0x258] sm:$0xff] }
 0x10c   : > { %v4210_v0 = vcombine.high %v1307_v54, %v1315_v55 }
 0x110   : > { %3105 = vmatmul.mubr.bf16.gmra.mrb[20].mxu0 %v4219_v49  ;;  %v5113_v49 = vld [vmem:[%s5806_s15 + $0x2a0] sm:$0xff]  }
 0x111   : > { %3202 = vmatmul.mubr.bf16.gmra.mrb[20].mxu1 %v4221_v51  ;;  %3112 = vmatprep.mubr.bf16.mxu0 %v4236_v52  ;;  %v1306_v51 = vld [vmem:[%s6505_s0 + $0x210] sm:$0xff] }
 0x112   : > { %3209 = vmatprep.mubr.bf16.mxu1 %v4238_v53  ;;  %v1314_v52 = vld [vmem:[%s6505_s0 + $0x250] sm:$0xff]  ;;  %v5116_v53 = vld [vmem:[%s5806_s15 + $0x2e8] sm:$0xff]  }
 0x118   : > { %3113 = vmatmul.mubr.bf16.gmra.mrb[24].mxu0 %v4235_v60  ;;  %v5120_v60 = vld [vmem:[%s5806_s15 + $0x2f0] sm:$0xff]  }
 0x119   : > { %3210 = vmatmul.mubr.bf16.gmra.mrb[24].mxu1 %v4237_v61  ;;  %3120 = vmatprep.mubr.bf16.mxu0 %v4252_v62  ;;  %v4193_v61 = vcombine.low %v1291_v38, %v1299_v39  ;;  %v4208_v62 = vcombine.high %v1306_v51, %v1314_v52 }
 0x11a   : > { %3217 = vmatprep.mubr.bf16.mxu1 %v4254_v63  ;;  %v5119_v63 = vld [vmem:[%s5806_s15 + $0x230] sm:$0xff]  }
 0x120   : > { %3121 = vmatmul.mubr.bf16.gmra.mrb[28].mxu0 %v4251_v4  ;;  %v1330_v4 = vld [vmem:[%s6505_s0 + $0x2d0] sm:$0xff] }
 0x121   : > { %3218 = vmatmul.mubr.bf16.gmra.mrb[28].mxu1 %v4253_v5  ;;  %3258 = vmatprep.mubr.bf16.mxu0 %v4144_v6  ;;  %v5124_v5 = vld [vmem:[%s5806_s15 + $0x2f8] sm:$0xff]  }
 0x122   : > { %3355 = vmatprep.mubr.bf16.mxu1 %v4146_v7  ;;  %v1323_v6 = vld [vmem:[%s6505_s0 + $0x298] sm:$0xff] }
 0x123   : > { %v1331_v7 = vld [vmem:[%s6505_s0 + $0x2d8] sm:$0xff] }
 0x128   : > { %3259 = vmatmul.mubr.bf16.vlgmr.msra.gmra.mrb[32].mxu0 %v4143_v11  ;;  %v4207_v11 = vcombine.low %v1306_v51, %v1314_v52  ;;  %v5132_v51 = vld [vmem:[%s5806_s15 + $0x3c8] sm:$0xff]  }
 0x129   : > { %3356 = vmatmul.mubr.bf16.vlgmr.msra.gmra.mrb[32].mxu1 %v4145_v13  ;;  %4735 = vmatpush3.bf16.msra.mxu0 %v5095_v14  ;;  %v4209_v13 = vcombine.low %v1307_v54, %v1315_v55  ;;  %v4224_v14 = vcombine.high %v1322_v3, %v1330_v4  ;;  %v5131_v52 = vld [vmem:[%s5806_s15 + $0x308] sm:$0xff]   ;;  %v1276_v54 = vld [vmem:[%s6505_s0 + $0x120] sm:$0xff] }
 0x12a   : > { %4799 = vmatpush3.bf16.msra.mxu1 %v5097_v15  ;;  %3266 = vmatprep.mubr.bf16.mxu0 %v4160_v16  ;;  %v4226_v15 = vcombine.high %v1323_v6, %v1331_v7  ;;  %v1338_v16 = vld [vmem:[%s6505_s0 + $0x310] sm:$0xff]  ;;  %v1284_v55 = vld [vmem:[%s6505_s0 + $0x160] sm:$0xff] }
 0x12b   : > { %3363 = vmatprep.mubr.bf16.mxu1 %v4162_v17  ;;  %4736 = vmatprep.subr.bf16.mxu0 %v5098_v18  ;;  %v1346_v17 = vld [vmem:[%s6505_s0 + $0x350] sm:$0xff]  ;;  %v1339_v18 = vld [vmem:[%s6505_s0 + $0x318] sm:$0xff] }
 0x12c   : > { %4800 = vmatprep.subr.bf16.mxu1 %v5100_v20  ;;  %v4223_v20 = vcombine.low %v1322_v3, %v1330_v4  ;;  %v4240_v22 = vcombine.high %v1338_v16, %v1346_v17  ;;  %v5140_v3 = vld [vmem:[%s5806_s15 + $0x3d8] sm:$0xff]   ;;  %v1292_v4 = vld [vmem:[%s6505_s0 + $0x1a0] sm:$0xff] }
 0x12d   : > { %4737 = vmatpush3.bf16.msra.mxu0 %v5099_v19  ;;  %v1347_v19 = vld [vmem:[%s6505_s0 + $0x358] sm:$0xff] }
 0x12e   : > { %4801 = vmatpush3.bf16.msra.mxu1 %v5101_v21  ;;  %4738 = vmatprep.subr.bf16.mxu0 %v5102_v26  ;;  %v4225_v21 = vcombine.low %v1323_v6, %v1331_v7  ;;  %v4242_v23 = vcombine.high %v1339_v18, %v1347_v19  ;;  %v1355_v26 = vld [vmem:[%s6505_s0 + $0x398] sm:$0xff]  ;;  %v1293_v6 = vld [vmem:[%s6505_s0 + $0x1a8] sm:$0xff] }
 0x12f   : > { %4802 = vmatprep.subr.bf16.mxu1 %v5104_v27  ;;  %v1363_v27 = vld [vmem:[%s6505_s0 + $0x3d8] sm:$0xff] }
 0x130   : > { %3267 = vmatmul.mubr.bf16.gmra.mrb[36].mxu0 %v4159_v28  ;;  %v4239_v28 = vcombine.low %v1338_v16, %v1346_v17  ;;  %v5139_v7 = vld [vmem:[%s5806_s15 + $0x318] sm:$0xff]   ;;  %v5143_v16 = vld [vmem:[%s5806_s15 + $0x320] sm:$0xff]  }
 0x131   : > { %3364 = vmatmul.mubr.bf16.gmra.mrb[36].mxu1 %v4161_v29  ;;  %3274 = vmatprep.mubr.bf16.mxu0 %v4176_v30  ;;  %v4241_v29 = vcombine.low %v1339_v18, %v1347_v19  ;;  %v4256_v30 = vcombine.high %v1354_v24, %v1362_v25  ;;  %v5145_v17 = vld [vmem:[%s5806_s15 + $0x3a0] sm:$0xff]   ;;  %v5146_v18 = vld [vmem:[%s5806_s15 + $0x368] sm:$0xff]  }
 0x132   : > { %3371 = vmatprep.mubr.bf16.mxu1 %v4178_v32  ;;  %4739 = vmatpush3.bf16.msra.mxu0 %v5103_v31  ;;  %v4258_v31 = vcombine.high %v1355_v26, %v1363_v27  ;;  %v1244_v32 = vld [vmem:[%s6505_s0 + $0x20] sm:$0xff]  ;;  %v5148_v19 = vld [vmem:[%s5806_s15 + $0x3e8] sm:$0xff]  }
 0x133   : > { %4803 = vmatpush3.bf16.msra.mxu1 %v5105_v33  ;;  %4740 = vmatprep.subr.bf16.mxu0 %v5106_v34  ;;  %v1252_v33 = vld [vmem:[%s6505_s0 + $0x60] sm:$0xff]  ;;  %v1245_v34 = vld [vmem:[%s6505_s0 + $0x28] sm:$0xff] }
 0x134   : > { %4804 = vmatprep.subr.bf16.mxu1 %v5108_v37  ;;  %v4257_v37 = vcombine.low %v1355_v26, %v1363_v27  ;;  %v4148_v38 = vcombine.high %v1244_v32, %v1252_v33  ;;  %v4150_v39 = vcombine.high %v1245_v34, %v1253_v35  ;;  %v1317_v24 = vld [vmem:[%s6505_s0 + $0x268] sm:$0xff]  ;;  %v5150_v26 = vld [vmem:[%s5806_s15 + $0x370] sm:$0xff]  }
 0x135   : > { %v5149_v25 = vld [vmem:[%s5806_s15 + $0x3a8] sm:$0xff]  }
 0x136   : > { %4741 = vmatpush3.bf16.msra.mxu0 %v5107_v40  ;;  %v1260_v40 = vld [vmem:[%s6505_s0 + $0xa0] sm:$0xff] }
 0x137   : > { %4805 = vmatpush3.bf16.msra.mxu1 %v5109_v41  ;;  %4742 = vmatprep.subr.bf16.mxu0 %v5110_v42  ;;  %v1268_v41 = vld [vmem:[%s6505_s0 + $0xe0] sm:$0xff]  ;;  %v4147_v42 = vcombine.low %v1244_v32, %v1252_v33  ;;  %v5151_v32 = vld [vmem:[%s5806_s15 + $0x330] sm:$0xff]  }
 0x138   : > { %3275 = vmatmul.mubr.bf16.gmra.mrb[40].mxu0 %v4175_v43  ;;  %4806 = vmatprep.subr.bf16.mxu1 %v5112_v44  ;;  %v1261_v43 = vld [vmem:[%s6505_s0 + $0xa8] sm:$0xff]  ;;  %v5153_v33 = vld [vmem:[%s5806_s15 + $0x3b0] sm:$0xff]  }
 0x139   : > { %3372 = vmatmul.mubr.bf16.gmra.mrb[40].mxu1 %v4177_v45  ;;  %3282 = vmatprep.mubr.bf16.mxu0 %v4192_v46  ;;  %v1269_v44 = vld [vmem:[%s6505_s0 + $0xe8] sm:$0xff]  ;;  %v4149_v45 = vcombine.low %v1245_v34, %v1253_v35  ;;  %v5127_v46 = vld [vmem:[%s5806_s15 + $0x300] sm:$0xff]   ;;  %v5154_v34 = vld [vmem:[%s5806_s15 + $0x378] sm:$0xff]  }
 0x13a   : > { %3379 = vmatprep.mubr.bf16.mxu1 %v4194_v47  ;;  %4743 = vmatpush3.bf16.msra.mxu0 %v5111_v48  ;;  %v5129_v47 = vld [vmem:[%s5806_s15 + $0x380] sm:$0xff]   ;;  %v4164_v48 = vcombine.high %v1260_v40, %v1268_v41  ;;  %v5156_v35 = vld [vmem:[%s5806_s15 + $0x3f8] sm:$0xff]  }
 0x13b   : > { %4807 = vmatpush3.bf16.msra.mxu1 %v5113_v49  ;;  %4744 = vmatprep.subr.bf16.mxu0 %v5114_v50  ;;  %v4166_v49 = vcombine.high %v1261_v43, %v1269_v44  ;;  %v5130_v50 = vld [vmem:[%s5806_s15 + $0x348] sm:$0xff]  }
 0x13c   : > { %4808 = vmatprep.subr.bf16.mxu1 %v5116_v53  ;;  %v5133_v53 = vld [vmem:[%s5806_s15 + $0x388] sm:$0xff]  }
 0x13e   : > { %4745 = vmatpush3.bf16.msra.mxu0 %v5115_v56  ;;  %v5134_v56 = vld [vmem:[%s5806_s15 + $0x350] sm:$0xff]  }
 0x13f   : > { %4809 = vmatpush3.bf16.msra.mxu1 %v5117_v57  ;;  %4746 = vmatprep.subr.bf16.mxu0 %v5118_v58  ;;  %v1277_v57 = vld [vmem:[%s6505_s0 + $0x128] sm:$0xff] }
 0x140   : > { %3283 = vmatmul.mubr.bf16.gmra.mrb[44].mxu0 %v4191_v59  ;;  %4810 = vmatprep.subr.bf16.mxu1 %v5120_v60  ;;  %v1285_v58 = vld [vmem:[%s6505_s0 + $0x168] sm:$0xff]  ;;  %v5136_v59 = vld [vmem:[%s5806_s15 + $0x3d0] sm:$0xff]   ;;  %v4163_v60 = vcombine.low %v1260_v40, %v1268_v41  ;;  %v5157_v41 = vld [vmem:[%s5806_s15 + $0x3b8] sm:$0xff]  }
 0x141   : > { %3380 = vmatmul.mubr.bf16.gmra.mrb[44].mxu1 %v4193_v61  ;;  %3290 = vmatprep.mubr.bf16.mxu0 %v4208_v62  ;;  %v4165_v61 = vcombine.low %v1261_v43, %v1269_v44  ;;  %v4180_v62 = vcombine.high %v1276_v54, %v1284_v55  ;;  %v1333_v40 = vld [vmem:[%s6505_s0 + $0x2e8] sm:$0xff] }
 0x142   : > { %3387 = vmatprep.mubr.bf16.mxu1 %v4210_v0  ;;  %4747 = vmatpush3.bf16.msra.mxu0 %v5119_v63  ;;  %v4182_v63 = vcombine.high %v1277_v57, %v1285_v58  ;;  %v5135_v0 = vld [vmem:[%s5806_s15 + $0x310] sm:$0xff]  }
 0x143   : > { %4811 = vmatpush3.bf16.msra.mxu1 %v5121_v1  ;;  %4748 = vmatprep.subr.bf16.mxu0 %v5122_v2  ;;  %v5137_v1 = vld [vmem:[%s5806_s15 + $0x390] sm:$0xff]   ;;  %v5138_v2 = vld [vmem:[%s5806_s15 + $0x358] sm:$0xff]  }
 0x144   : > { %4812 = vmatprep.subr.bf16.mxu1 %v5124_v5  ;;  %v1300_v5 = vld [vmem:[%s6505_s0 + $0x1e0] sm:$0xff] }
 0x145   : > { %v4195_v27 = vcombine.low %v1292_v4, %v1300_v5 }
 0x146   : > { %4749 = vmatpush3.bf16.msra.mxu0 %v5123_v8  ;;  %v1301_v8 = vld [vmem:[%s6505_s0 + $0x1e8] sm:$0xff] }
 0x147   : > { %4813 = vmatpush3.bf16.msra.mxu1 %v5125_v9  ;;  %4862 = vmatprep.subr.bf16.mxu0 %v5126_v10  ;;  %v5141_v9 = vld [vmem:[%s5806_s15 + $0x398] sm:$0xff]   ;;  %v5142_v10 = vld [vmem:[%s5806_s15 + $0x360] sm:$0xff]  }
 0x148   : > { %3291 = vmatmul.mubr.bf16.gmra.mrb[48].mxu0 %v4207_v11  ;;  %4926 = vmatprep.subr.bf16.mxu1 %v5128_v12  ;;  %v4179_v11 = vcombine.low %v1276_v54, %v1284_v55  ;;  %v5144_v12 = vld [vmem:[%s5806_s15 + $0x3e0] sm:$0xff]  }
 0x149   : > { %3388 = vmatmul.mubr.bf16.gmra.mrb[48].mxu1 %v4209_v13  ;;  %3298 = vmatprep.mubr.bf16.mxu0 %v4224_v14  ;;  %v4181_v13 = vcombine.low %v1277_v57, %v1285_v58  ;;  %v4196_v14 = vcombine.high %v1292_v4, %v1300_v5  ;;  %v1356_v54 = vld [vmem:[%s6505_s0 + $0x3a0] sm:$0xff]  ;;  %v1365_v57 = vld [vmem:[%s6505_s0 + $0x3e8] sm:$0xff] }
 0x14a   : > { %3395 = vmatprep.mubr.bf16.mxu1 %v4226_v15  ;;  %v4198_v15 = vcombine.high %v1293_v6, %v1301_v8  ;;  %v1364_v55 = vld [vmem:[%s6505_s0 + $0x3e0] sm:$0xff] }
 0x150   : > { %3299 = vmatmul.mubr.bf16.gmra.mrb[52].mxu0 %v4223_v20  ;;  %v1308_v20 = vld [vmem:[%s6505_s0 + $0x220] sm:$0xff] }
 0x151   : > { %3396 = vmatmul.mubr.bf16.gmra.mrb[52].mxu1 %v4225_v21  ;;  %3306 = vmatprep.mubr.bf16.mxu0 %v4240_v22  ;;  %v1316_v21 = vld [vmem:[%s6505_s0 + $0x260] sm:$0xff]  ;;  %v1309_v22 = vld [vmem:[%s6505_s0 + $0x228] sm:$0xff] }
 0x152   : > { %3403 = vmatprep.mubr.bf16.mxu1 %v4242_v23  ;;  %v5147_v23 = vld [vmem:[%s5806_s15 + $0x328] sm:$0xff]   ;;  %v4213_v43 = vcombine.low %v1309_v22, %v1317_v24 }
 0x158   : > { %3307 = vmatmul.mubr.bf16.gmra.mrb[56].mxu0 %v4239_v28  ;;  %v5152_v28 = vld [vmem:[%s5806_s15 + $0x3f0] sm:$0xff]  }
 0x159   : > { %3404 = vmatmul.mubr.bf16.gmra.mrb[56].mxu1 %v4241_v29  ;;  %3314 = vmatprep.mubr.bf16.mxu0 %v4256_v30  ;;  %v4197_v29 = vcombine.low %v1293_v6, %v1301_v8  ;;  %v4212_v30 = vcombine.high %v1308_v20, %v1316_v21  ;;  %v1262_v6 = vld [vmem:[%s6505_s0 + $0xb0] sm:$0xff]  ;;  %v1263_v8 = vld [vmem:[%s6505_s0 + $0xb8] sm:$0xff] }
 0x15a   : > { %3411 = vmatprep.mubr.bf16.mxu1 %v4258_v31  ;;  %v4214_v31 = vcombine.high %v1309_v22, %v1317_v24  ;;  %v1294_v22 = vld [vmem:[%s6505_s0 + $0x1b0] sm:$0xff]  ;;  %v1295_v24 = vld [vmem:[%s6505_s0 + $0x1b8] sm:$0xff] }
 0x160   : > { %3315 = vmatmul.mubr.bf16.gmra.mrb[60].mxu0 %v4255_v36  ;;  %v1324_v36 = vld [vmem:[%s6505_s0 + $0x2a0] sm:$0xff] }
 0x161   : > { %3412 = vmatmul.mubr.bf16.gmra.mrb[60].mxu1 %v4257_v37  ;;  %3452 = vmatprep.mubr.bf16.mxu0 %v4148_v38  ;;  %v1332_v37 = vld [vmem:[%s6505_s0 + $0x2e0] sm:$0xff]  ;;  %v5155_v38 = vld [vmem:[%s5806_s15 + $0x338] sm:$0xff]   ;;  %s4138_s15 = sshll.u32 %s1205_s27, 6  ;;  %s4412_s27 = sshll.u32 (%p5248_p6), %s5188_s11, 2 }
 0x162   : > { %3549 = vmatprep.mubr.bf16.mxu1 %v4150_v39  ;;  %v1325_v39 = vld [vmem:[%s6505_s0 + $0x2a8] sm:$0xff]  ;;  %v4228_v44 = vcombine.high %v1324_v36, %v1332_v37  ;;  %s6446_s9 = scalar_lea.vmem [#allocation3], %s4138_s15  ;;  %s3947_s3 = scalar_lea.vmem (%p5248_p6), %s6507_s2, %s4412_s27 }
 0x168   : > { %3453 = vmatmul.mubr.bf16.vlgmr.msra.gmra.mrb[64].mxu0 %v4147_v42  ;;  %v4211_v42 = vcombine.low %v1308_v20, %v1316_v21 }
 0x169   : > { %3550 = vmatmul.mubr.bf16.vlgmr.msra.gmra.mrb[64].mxu1 %v4149_v45  ;;  %4863 = vmatpush3.bf16.msra.mxu0 %v5127_v46  ;;  %v4230_v45 = vcombine.high %v1325_v39, %v1333_v40  ;;  %v1340_v46 = vld [vmem:[%s6505_s0 + $0x320] sm:$0xff] }
 0x16a   : > { %4927 = vmatpush3.bf16.msra.mxu1 %v5129_v47  ;;  %3460 = vmatprep.mubr.bf16.mxu0 %v4164_v48  ;;  %v1348_v47 = vld [vmem:[%s6505_s0 + $0x360] sm:$0xff]  ;;  %v1341_v48 = vld [vmem:[%s6505_s0 + $0x328] sm:$0xff] }
 0x16b   : > { %3557 = vmatprep.mubr.bf16.mxu1 %v4166_v49  ;;  %4864 = vmatprep.subr.bf16.mxu0 %v5130_v50  ;;  %v1349_v49 = vld [vmem:[%s6505_s0 + $0x368] sm:$0xff]  ;;  %v4227_v50 = vcombine.low %v1324_v36, %v1332_v37  ;;  %v4243_v58 = vcombine.low %v1340_v46, %v1348_v47 }
 0x16c   : > { %4928 = vmatprep.subr.bf16.mxu1 %v5132_v51  ;;  %v4229_v51 = vcombine.low %v1325_v39, %v1333_v40 }
 0x16d   : > { %4865 = vmatpush3.bf16.msra.mxu0 %v5131_v52  ;;  %v4244_v52 = vcombine.high %v1340_v46, %v1348_v47 }
 0x16e   : > { %4929 = vmatpush3.bf16.msra.mxu1 %v5133_v53  ;;  %4866 = vmatprep.subr.bf16.mxu0 %v5134_v56  ;;  %v4246_v53 = vcombine.high %v1341_v48, %v1349_v49  ;;  %v1357_v56 = vld [vmem:[%s6505_s0 + $0x3a8] sm:$0xff] }
 0x16f   : > { %4930 = vmatprep.subr.bf16.mxu1 %v5136_v59  ;;  %v4245_v59 = vcombine.low %v1341_v48, %v1349_v49 }
 0x170   : > { %3461 = vmatmul.mubr.bf16.gmra.mrb[68].mxu0 %v4163_v60  ;;  %v4260_v60 = vcombine.high %v1356_v54, %v1364_v55 }
 0x171   : > { %3558 = vmatmul.mubr.bf16.gmra.mrb[68].mxu1 %v4165_v61  ;;  %3468 = vmatprep.mubr.bf16.mxu0 %v4180_v62  ;;  %v4262_v61 = vcombine.high %v1357_v56, %v1365_v57  ;;  %v1246_v62 = vld [vmem:[%s6505_s0 + $0x30] sm:$0xff] }
 0x172   : > { %3565 = vmatprep.mubr.bf16.mxu1 %v4182_v63  ;;  %4867 = vmatpush3.bf16.msra.mxu0 %v5135_v0  ;;  %v1254_v63 = vld [vmem:[%s6505_s0 + $0x70] sm:$0xff]  ;;  %v1247_v0 = vld [vmem:[%s6505_s0 + $0x38] sm:$0xff] }
 0x173   : > { %4931 = vmatpush3.bf16.msra.mxu1 %v5137_v1  ;;  %4868 = vmatprep.subr.bf16.mxu0 %v5138_v2  ;;  %v1255_v1 = vld [vmem:[%s6505_s0 + $0x78] sm:$0xff]  ;;  %v4259_v2 = vcombine.low %v1356_v54, %v1364_v55  ;;  %v4152_v4 = vcombine.high %v1246_v62, %v1254_v63 }
 0x174   : > { %4932 = vmatprep.subr.bf16.mxu1 %v5140_v3  ;;  %v4261_v3 = vcombine.low %v1357_v56, %v1365_v57  ;;  %v4154_v5 = vcombine.high %v1247_v0, %v1255_v1  ;;  %v1327_v55 = vld [vmem:[%s6505_s0 + $0x2b8] sm:$0xff] }
 0x175   : > { %v1335_v56 = vld [vmem:[%s6505_s0 + $0x2f8] sm:$0xff] }
 0x176   : > { %4869 = vmatpush3.bf16.msra.mxu0 %v5139_v7  ;;  %v1270_v7 = vld [vmem:[%s6505_s0 + $0xf0] sm:$0xff] }
 0x177   : > { %4933 = vmatpush3.bf16.msra.mxu1 %v5141_v9  ;;  %4870 = vmatprep.subr.bf16.mxu0 %v5142_v10  ;;  %v1271_v9 = vld [vmem:[%s6505_s0 + $0xf8] sm:$0xff]  ;;  %v4151_v10 = vcombine.low %v1246_v62, %v1254_v63 }
 0x178   : > { %3469 = vmatmul.mubr.bf16.gmra.mrb[72].mxu0 %v4179_v11  ;;  %4934 = vmatprep.subr.bf16.mxu1 %v5144_v12  ;;  %v4153_v11 = vcombine.low %v1247_v0, %v1255_v1  ;;  %v4168_v12 = vcombine.high %v1262_v6, %v1270_v7 }
 0x179   : > { %3566 = vmatmul.mubr.bf16.gmra.mrb[72].mxu1 %v4181_v13  ;;  %3476 = vmatprep.mubr.bf16.mxu0 %v4196_v14  ;;  %v4170_v13 = vcombine.high %v1263_v8, %v1271_v9  ;;  %v1278_v14 = vld [vmem:[%s6505_s0 + $0x130] sm:$0xff] }
 0x17a   : > { %3573 = vmatprep.mubr.bf16.mxu1 %v4198_v15  ;;  %4871 = vmatpush3.bf16.msra.mxu0 %v5143_v16  ;;  %v1286_v15 = vld [vmem:[%s6505_s0 + $0x170] sm:$0xff]  ;;  %v1279_v16 = vld [vmem:[%s6505_s0 + $0x138] sm:$0xff] }
 0x17b   : > { %4935 = vmatpush3.bf16.msra.mxu1 %v5145_v17  ;;  %4872 = vmatprep.subr.bf16.mxu0 %v5146_v18  ;;  %v1287_v17 = vld [vmem:[%s6505_s0 + $0x178] sm:$0xff]  ;;  %v4167_v18 = vcombine.low %v1262_v6, %v1270_v7  ;;  %v4184_v20 = vcombine.high %v1278_v14, %v1286_v15 }
 0x17c   : > { %4936 = vmatprep.subr.bf16.mxu1 %v5148_v19  ;;  %v4169_v19 = vcombine.low %v1263_v8, %v1271_v9  ;;  %v4186_v21 = vcombine.high %v1279_v16, %v1287_v17 }
 0x17e   : > { %4873 = vmatpush3.bf16.msra.mxu0 %v5147_v23  ;;  %v1302_v23 = vld [vmem:[%s6505_s0 + $0x1f0] sm:$0xff] }
 0x17f   : > { %4937 = vmatpush3.bf16.msra.mxu1 %v5149_v25  ;;  %4874 = vmatprep.subr.bf16.mxu0 %v5150_v26  ;;  %v1303_v25 = vld [vmem:[%s6505_s0 + $0x1f8] sm:$0xff]  ;;  %v4183_v26 = vcombine.low %v1278_v14, %v1286_v15  ;;  %v4199_v37 = vcombine.low %v1294_v22, %v1302_v23 }
 0x180   : > { %3477 = vmatmul.mubr.bf16.gmra.mrb[76].mxu0 %v4195_v27  ;;  %4938 = vmatprep.subr.bf16.mxu1 %v5152_v28  ;;  %v4185_v27 = vcombine.low %v1279_v16, %v1287_v17  ;;  %v4200_v28 = vcombine.high %v1294_v22, %v1302_v23  ;;  %v1351_v14 = vld [vmem:[%s6505_s0 + $0x378] sm:$0xff] }
 0x181   : > { %3574 = vmatmul.mubr.bf16.gmra.mrb[76].mxu1 %v4197_v29  ;;  %3484 = vmatprep.mubr.bf16.mxu0 %v4212_v30  ;;  %v4202_v29 = vcombine.high %v1295_v24, %v1303_v25  ;;  %v1310_v30 = vld [vmem:[%s6505_s0 + $0x230] sm:$0xff] }
 0x182   : > { %3581 = vmatprep.mubr.bf16.mxu1 %v4214_v31  ;;  %4875 = vmatpush3.bf16.msra.mxu0 %v5151_v32  ;;  %v1318_v31 = vld [vmem:[%s6505_s0 + $0x270] sm:$0xff] }
 0x183   : > { %4939 = vmatpush3.bf16.msra.mxu1 %v5153_v33  ;;  %4876 = vmatprep.subr.bf16.mxu0 %v5154_v34  ;;  %v1311_v33 = vld [vmem:[%s6505_s0 + $0x238] sm:$0xff] }
 0x184   : > { %4940 = vmatprep.subr.bf16.mxu1 %v5156_v35  ;;  %v1319_v34 = vld [vmem:[%s6505_s0 + $0x278] sm:$0xff] }
 0x185   : > { %v4218_v46 = vcombine.high %v1311_v33, %v1319_v34  ;;  %v4217_v63 = vcombine.low %v1311_v33, %v1319_v34  ;;  %v1366_v33 = vld [vmem:[%s6505_s0 + $0x3f0] sm:$0xff] }
 0x186   : > { %4877 = vmatpush3.bf16.msra.mxu0 %v5155_v38 }
 0x187   : > { %4941 = vmatpush3.bf16.msra.mxu1 %v5157_v41  ;;  %v4201_v41 = vcombine.low %v1295_v24, %v1303_v25 }
 0x188   : > { %3485 = vmatmul.mubr.bf16.gmra.mrb[80].mxu0 %v4211_v42  ;;  %v4216_v42 = vcombine.high %v1310_v30, %v1318_v31 }
 0x189   : > { %3582 = vmatmul.mubr.bf16.gmra.mrb[80].mxu1 %v4213_v43  ;;  %3492 = vmatprep.mubr.bf16.mxu0 %v4228_v44 }
 0x18a   : > { %3589 = vmatprep.mubr.bf16.mxu1 %v4230_v45 }
 0x190   : > { %3493 = vmatmul.mubr.bf16.gmra.mrb[84].mxu0 %v4227_v50 }
 0x191   : > { %3590 = vmatmul.mubr.bf16.gmra.mrb[84].mxu1 %v4229_v51  ;;  %3500 = vmatprep.mubr.bf16.mxu0 %v4244_v52  ;;  %v1326_v52 = vld [vmem:[%s6505_s0 + $0x2b0] sm:$0xff] }
 0x192   : > { %3597 = vmatprep.mubr.bf16.mxu1 %v4246_v53  ;;  %v1334_v53 = vld [vmem:[%s6505_s0 + $0x2f0] sm:$0xff] }
 0x193   : > { %v4232_v0 = vcombine.high %v1326_v52, %v1334_v53  ;;  %v4231_v17 = vcombine.low %v1326_v52, %v1334_v53 }
 0x198   : > { %3501 = vmatmul.mubr.bf16.gmra.mrb[88].mxu0 %v4243_v58 }
 0x199   : > { %3598 = vmatmul.mubr.bf16.gmra.mrb[88].mxu1 %v4245_v59  ;;  %3508 = vmatprep.mubr.bf16.mxu0 %v4260_v60  ;;  %v4215_v59 = vcombine.low %v1310_v30, %v1318_v31 }
 0x19a   : > { %3605 = vmatprep.mubr.bf16.mxu1 %v4262_v61 }
 0x1a0   : > { %3509 = vmatmul.mubr.bf16.gmra.mrb[92].mxu0 %v4259_v2 }
 0x1a1   : > { %3606 = vmatmul.mubr.bf16.gmra.mrb[92].mxu1 %v4261_v3  ;;  %3646 = vmatprep.mubr.bf16.mxu0 %v4152_v4  ;;  %v4234_v4 = vcombine.high %v1327_v55, %v1335_v56 }
 0x1a2   : > { %3743 = vmatprep.mubr.bf16.mxu1 %v4154_v5 }
 0x1a8   : > { %3647 = vmatmul.mubr.bf16.vlgmr.msra.gmra.mrb[96].mxu0 %v4151_v10  ;;  %v1342_v10 = vld [vmem:[%s6505_s0 + $0x330] sm:$0xff] }
 0x1a9   : > { %3744 = vmatmul.mubr.bf16.vlgmr.msra.gmra.mrb[96].mxu1 %v4153_v11  ;;  %3654 = vmatprep.mubr.bf16.mxu0 %v4168_v12  ;;  %v1350_v11 = vld [vmem:[%s6505_s0 + $0x370] sm:$0xff] }
 0x1aa   : > { %3751 = vmatprep.mubr.bf16.mxu1 %v4170_v13  ;;  %v1343_v13 = vld [vmem:[%s6505_s0 + $0x338] sm:$0xff]  ;;  %v4248_v22 = vcombine.high %v1342_v10, %v1350_v11 }
 0x1b0   : > { %3655 = vmatmul.mubr.bf16.gmra.mrb[100].mxu0 %v4167_v18 }
 0x1b1   : > { %3752 = vmatmul.mubr.bf16.gmra.mrb[100].mxu1 %v4169_v19  ;;  %3662 = vmatprep.mubr.bf16.mxu0 %v4184_v20 }
 0x1b2   : > { %3759 = vmatprep.mubr.bf16.mxu1 %v4186_v21  ;;  %v4233_v21 = vcombine.low %v1327_v55, %v1335_v56 }
 0x1b8   : > { %3663 = vmatmul.mubr.bf16.gmra.mrb[104].mxu0 %v4183_v26  ;;  %v4250_v26 = vcombine.high %v1343_v13, %v1351_v14 }
 0x1b9   : > { %3760 = vmatmul.mubr.bf16.gmra.mrb[104].mxu1 %v4185_v27  ;;  %3670 = vmatprep.mubr.bf16.mxu0 %v4200_v28 }
 0x1ba   : > { %3767 = vmatprep.mubr.bf16.mxu1 %v4202_v29 }
 0x1bb   : > { %v4494_v32 = vpop.f32.mrb[0].mxu0 }
 0x1bc   : > { %v4558_v35 = vpop.f32.mrb[0].mxu1  ;;  %v4495_v36 = vpop.f32.mrb[1].mxu0 }
 0x1bd   : > { %v4496_v38 = vadd.f32 %v4495_v36, %v4494_v32  ;;  %v4559_v39 = vpop.f32.mrb[1].mxu1  ;;  %v4497_v40 = vpop.f32.mrb[2].mxu0  ;;  %v1358_v32 = vld [vmem:[%s6505_s0 + $0x3b0] sm:$0xff]  ;;  %v1367_v36 = vld [vmem:[%s6505_s0 + $0x3f8] sm:$0xff] }
 0x1be   : > { %v4560_v43 = vadd.f32 %v4559_v39, %v4558_v35  ;;  %v4561_v44 = vpop.f32.mrb[2].mxu1  ;;  %v4498_v45 = vpop.f32.mrb[3].mxu0  ;;  %v1359_v35 = vld [vmem:[%s6505_s0 + $0x3b8] sm:$0xff]  ;;  %v4247_v39 = vcombine.low %v1342_v10, %v1350_v11 }
 0x1bf   : > { %v4499_v47 = vadd.f32 %v4498_v45, %v4497_v40  ;;  %v4562_v48 = vpop.f32.mrb[3].mxu1 }
 0x1c0   : > { %v6276_v49 = vadd.f32 %v4560_v43, %v4496_v38  ;;  %v4563_v50 = vadd.f32 %v4562_v48, %v4561_v44  ;;  %3671 = vmatmul.mubr.bf16.gmra.mrb[108].mxu0 %v4199_v37  ;;  %v4249_v43 = vcombine.low %v1343_v13, %v1351_v14  ;;  %v4264_v44 = vcombine.high %v1358_v32, %v1366_v33 }
 0x1c1   : > { %3768 = vmatmul.mubr.bf16.gmra.mrb[108].mxu1 %v4201_v41  ;;  %3678 = vmatprep.mubr.bf16.mxu0 %v4216_v42  ;;  %v4266_v48 = vcombine.high %v1359_v35, %v1367_v36 }
 0x1c2   : > { %v6278_v51 = vadd.f32 %v4563_v50, %v4499_v47  ;;  %3775 = vmatprep.mubr.bf16.mxu1 %v4218_v46 }
 0x1c3   : > { %v4500_v54 = vpop.f32.mrb[4].mxu0 }
 0x1c4   : > { %v4564_v57 = vpop.f32.mrb[4].mxu1  ;;  %v4501_v58 = vpop.f32.mrb[5].mxu0 }
 0x1c5   : > { %v4502_v60 = vadd.f32 %v4501_v58, %v4500_v54  ;;  %v4565_v61 = vpop.f32.mrb[5].mxu1  ;;  %v4503_v62 = vpop.f32.mrb[6].mxu0 }
 0x1c6   : > { %v4566_v1 = vadd.f32 %v4565_v61, %v4564_v57  ;;  %v4567_v2 = vpop.f32.mrb[6].mxu1  ;;  %v4504_v3 = vpop.f32.mrb[7].mxu0 }
 0x1c7   : > { %v4505_v5 = vadd.f32 %v4504_v3, %v4503_v62  ;;  %v4568_v6 = vpop.f32.mrb[7].mxu1 }
 0x1c8   : > { %v6292_v7 = vadd.f32 %v4566_v1, %v4502_v60  ;;  %v4569_v8 = vadd.f32 %v4568_v6, %v4567_v2  ;;  %3679 = vmatmul.mubr.bf16.gmra.mrb[112].mxu0 %v4215_v59  ;;  %v4263_v59 = vcombine.low %v1358_v32, %v1366_v33 }
 0x1c9   : > { %3776 = vmatmul.mubr.bf16.gmra.mrb[112].mxu1 %v4217_v63  ;;  %3686 = vmatprep.mubr.bf16.mxu0 %v4232_v0  ;;  %v4265_v63 = vcombine.low %v1359_v35, %v1367_v36 }
 0x1ca   : > { %v6294_v9 = vadd.f32 %v4569_v8, %v4505_v5  ;;  %3783 = vmatprep.mubr.bf16.mxu1 %v4234_v4 }
 0x1cb   : > { %v4506_v12 = vpop.f32.mrb[8].mxu0 }
 0x1cc   : > { %v4570_v15 = vpop.f32.mrb[8].mxu1  ;;  %v4507_v16 = vpop.f32.mrb[9].mxu0 }
 0x1cd   : > { %v4508_v18 = vadd.f32 %v4507_v16, %v4506_v12  ;;  %v4571_v19 = vpop.f32.mrb[9].mxu1  ;;  %v4509_v20 = vpop.f32.mrb[10].mxu0 }
 0x1ce   : > { %v4572_v23 = vadd.f32 %v4571_v19, %v4570_v15  ;;  %v4573_v24 = vpop.f32.mrb[10].mxu1  ;;  %v4510_v25 = vpop.f32.mrb[11].mxu0 }
 0x1cf   : > { %v4511_v27 = vadd.f32 %v4510_v25, %v4509_v20  ;;  %v4574_v28 = vpop.f32.mrb[11].mxu1 }
 0x1d0   : > { %v6308_v29 = vadd.f32 %v4572_v23, %v4508_v18  ;;  %v4575_v30 = vadd.f32 %v4574_v28, %v4573_v24  ;;  %3687 = vmatmul.mubr.bf16.gmra.mrb[116].mxu0 %v4231_v17 }
 0x1d1   : > { %3784 = vmatmul.mubr.bf16.gmra.mrb[116].mxu1 %v4233_v21  ;;  %3694 = vmatprep.mubr.bf16.mxu0 %v4248_v22 }
 0x1d2   : > { %v6310_v31 = vadd.f32 %v4575_v30, %v4511_v27  ;;  %3791 = vmatprep.mubr.bf16.mxu1 %v4250_v26 }
 0x1d3   : > { %v4512_v34 = vpop.f32.mrb[12].mxu0 }
 0x1d4   : > { %v4576_v37 = vpop.f32.mrb[12].mxu1  ;;  %v4513_v38 = vpop.f32.mrb[13].mxu0 }
 0x1d5   : > { %v4514_v40 = vadd.f32 %v4513_v38, %v4512_v34  ;;  %v4577_v41 = vpop.f32.mrb[13].mxu1  ;;  %v4515_v42 = vpop.f32.mrb[14].mxu0 }
 0x1d6   : > { %v4578_v45 = vadd.f32 %v4577_v41, %v4576_v37  ;;  %v4579_v46 = vpop.f32.mrb[14].mxu1  ;;  %v4516_v47 = vpop.f32.mrb[15].mxu0 }
 0x1d7   : > { %v4517_v50 = vadd.f32 %v4516_v47, %v4515_v42  ;;  %v4580_v52 = vpop.f32.mrb[15].mxu1 }
 0x1d8   : > { %v6324_v53 = vadd.f32 %v4578_v45, %v4514_v40  ;;  %v4581_v54 = vadd.f32 %v4580_v52, %v4579_v46  ;;  %3695 = vmatmul.mubr.bf16.gmra.mrb[120].mxu0 %v4247_v39 }
 0x1d9   : > { %3792 = vmatmul.mubr.bf16.gmra.mrb[120].mxu1 %v4249_v43  ;;  %3702 = vmatprep.mubr.bf16.mxu0 %v4264_v44 }
 0x1da   : > { %v6326_v55 = vadd.f32 %v4581_v54, %v4517_v50  ;;  %3799 = vmatprep.mubr.bf16.mxu1 %v4266_v48 }
 0x1db   : > { %v4518_v56 = vpop.f32.mrb[16].mxu0 }
 0x1dc   : > { %v4582_v57 = vpop.f32.mrb[16].mxu1  ;;  %v4519_v58 = vpop.f32.mrb[17].mxu0 }
 0x1dd   : > { %v4520_v60 = vadd.f32 %v4519_v58, %v4518_v56  ;;  %v4583_v61 = vpop.f32.mrb[17].mxu1  ;;  %v4521_v62 = vpop.f32.mrb[18].mxu0 }
 0x1de   : > { %v4584_v0 = vadd.f32 %v4583_v61, %v4582_v57  ;;  %v4585_v1 = vpop.f32.mrb[18].mxu1  ;;  %v4522_v2 = vpop.f32.mrb[19].mxu0 }
 0x1df   : > { %v4523_v3 = vadd.f32 %v4522_v2, %v4521_v62  ;;  %v4586_v4 = vpop.f32.mrb[19].mxu1 }
 0x1e0   : > { %v6328_v5 = vadd.f32 %v4584_v0, %v4520_v60  ;;  %v4587_v6 = vadd.f32 %v4586_v4, %v4585_v1  ;;  %3703 = vmatmul.mubr.bf16.gmra.mrb[124].mxu0 %v4263_v59 }
 0x1e1   : > { %3800 = vmatmul.mubr.bf16.gmra.mrb[124].mxu1 %v4265_v63 }
 0x1e2   : > { %v6330_v8 = vadd.f32 %v4587_v6, %v4523_v3 }
 0x1e3   : > { %v4524_v10 = vpop.f32.mrb[20].mxu0 }
 0x1e4   : > { %v4588_v11 = vpop.f32.mrb[20].mxu1  ;;  %v4525_v12 = vpop.f32.mrb[21].mxu0 }
 0x1e5   : > { %v4526_v13 = vadd.f32 %v4525_v12, %v4524_v10  ;;  %v4589_v14 = vpop.f32.mrb[21].mxu1  ;;  %v4527_v15 = vpop.f32.mrb[22].mxu0 }
 0x1e6   : > { %v4590_v16 = vadd.f32 %v4589_v14, %v4588_v11  ;;  %v4591_v17 = vpop.f32.mrb[22].mxu1  ;;  %v4528_v18 = vpop.f32.mrb[23].mxu0 }
 0x1e7   : > { %v4529_v19 = vadd.f32 %v4528_v18, %v4527_v15  ;;  %v4592_v20 = vpop.f32.mrb[23].mxu1 }
 0x1e8   : > { %v6332_v21 = vadd.f32 %v4590_v16, %v4526_v13  ;;  %v4593_v22 = vadd.f32 %v4592_v20, %v4591_v17 }
 0x1ea   : > { %v6334_v23 = vadd.f32 %v4593_v22, %v4529_v19 }
 0x1eb   : > { %v4530_v24 = vpop.f32.mrb[24].mxu0 }
 0x1ec   : > { %v4594_v25 = vpop.f32.mrb[24].mxu1  ;;  %v4531_v26 = vpop.f32.mrb[25].mxu0 }
 0x1ed   : > { %v4532_v27 = vadd.f32 %v4531_v26, %v4530_v24  ;;  %v4595_v28 = vpop.f32.mrb[25].mxu1  ;;  %v4533_v30 = vpop.f32.mrb[26].mxu0 }
 0x1ee   : > { %v4596_v32 = vadd.f32 %v4595_v28, %v4594_v25  ;;  %v4597_v33 = vpop.f32.mrb[26].mxu1  ;;  %v4534_v34 = vpop.f32.mrb[27].mxu0 }
 0x1ef   : > { %v4535_v35 = vadd.f32 %v4534_v34, %v4533_v30  ;;  %v4598_v36 = vpop.f32.mrb[27].mxu1 }
 0x1f0   : > { %v6336_v37 = vadd.f32 %v4596_v32, %v4532_v27  ;;  %v4599_v38 = vadd.f32 %v4598_v36, %v4597_v33 }
 0x1f2   : > { %v6338_v39 = vadd.f32 %v4599_v38, %v4535_v35 }
 0x1f3   : > { %v4536_v40 = vpop.f32.mrb[28].mxu0 }
 0x1f4   : > { %v4600_v41 = vpop.f32.mrb[28].mxu1  ;;  %v4537_v42 = vpop.f32.mrb[29].mxu0 }
 0x1f5   : > { %v4538_v43 = vadd.f32 %v4537_v42, %v4536_v40  ;;  %v4601_v44 = vpop.f32.mrb[29].mxu1  ;;  %v4539_v45 = vpop.f32.mrb[30].mxu0 }
 0x1f6   : > { %v4602_v46 = vadd.f32 %v4601_v44, %v4600_v41  ;;  %v4603_v47 = vpop.f32.mrb[30].mxu1  ;;  %v4540_v48 = vpop.f32.mrb[31].mxu0 }
 0x1f7   : > { %v4541_v50 = vadd.f32 %v4540_v48, %v4539_v45  ;;  %v4604_v52 = vpop.f32.mrb[31].mxu1 }
 0x1f8   : > { %v6340_v54 = vadd.f32 %v4602_v46, %v4538_v43  ;;  %v4605_v56 = vadd.f32 %v4604_v52, %v4603_v47 }
 0x1fa   : > { %v6342_v57 = vadd.f32 %v4605_v56, %v4541_v50 }
 0x1fb   : > { %v4622_v58 = vpop.f32.mrb[32].mxu0 }
 0x1fc   : > { %v4686_v59 = vpop.f32.mrb[32].mxu1  ;;  %v4623_v60 = vpop.f32.mrb[33].mxu0 }
 0x1fd   : > { %v4624_v61 = vadd.f32 %v4623_v60, %v4622_v58  ;;  %v4687_v62 = vpop.f32.mrb[33].mxu1  ;;  %v4625_v63 = vpop.f32.mrb[34].mxu0 }
 0x1fe   : > { %v4688_v0 = vadd.f32 %v4687_v62, %v4686_v59  ;;  %v4689_v1 = vpop.f32.mrb[34].mxu1  ;;  %v4626_v2 = vpop.f32.mrb[35].mxu0 }
 0x1ff   : > { %v3261_v3 = vadd.f32 %v4624_v61, %v6276_v49  ;;  %v4627_v4 = vadd.f32 %v4626_v2, %v4625_v63  ;;  %v4690_v6 = vpop.f32.mrb[35].mxu1 }
 0x200   : > { %v4691_v10 = vadd.f32 %v4690_v6, %v4689_v1 }
 0x201   : > { %v6345_v11 = vadd.f32 %v4688_v0, %v3261_v3  ;;  %v3264_v12 = vadd.f32 %v4627_v4, %v6278_v51 }
 0x203   : > { %v6348_v13 = vadd.f32 %v4691_v10, %v3264_v12  ;;  %v4628_v14 = vpop.f32.mrb[36].mxu0 }
 0x204   : > { %v4692_v15 = vpop.f32.mrb[36].mxu1  ;;  %v4629_v16 = vpop.f32.mrb[37].mxu0 }
 0x205   : > { %v4630_v17 = vadd.f32 %v4629_v16, %v4628_v14  ;;  %v4693_v18 = vpop.f32.mrb[37].mxu1  ;;  %v4631_v19 = vpop.f32.mrb[38].mxu0 }
 0x206   : > { %v4694_v20 = vadd.f32 %v4693_v18, %v4692_v15  ;;  %v4695_v22 = vpop.f32.mrb[38].mxu1  ;;  %v4632_v24 = vpop.f32.mrb[39].mxu0 }
 0x207   : > { %v3269_v49 = vadd.f32 %v4630_v17, %v6292_v7  ;;  %v4633_v25 = vadd.f32 %v4632_v24, %v4631_v19  ;;  %v4696_v26 = vpop.f32.mrb[39].mxu1 }
 0x208   : > { %v4697_v27 = vadd.f32 %v4696_v26, %v4695_v22 }
 0x209   : > { %v6351_v28 = vadd.f32 %v4694_v20, %v3269_v49  ;;  %v3272_v51 = vadd.f32 %v4633_v25, %v6294_v9 }
 0x20b   : > { %v6354_v30 = vadd.f32 %v4697_v27, %v3272_v51  ;;  %v4634_v32 = vpop.f32.mrb[40].mxu0 }
 0x20c   : > { %v4698_v33 = vpop.f32.mrb[40].mxu1  ;;  %v4635_v34 = vpop.f32.mrb[41].mxu0 }
 0x20d   : > { %v4636_v35 = vadd.f32 %v4635_v34, %v4634_v32  ;;  %v4699_v36 = vpop.f32.mrb[41].mxu1  ;;  %v4637_v38 = vpop.f32.mrb[42].mxu0 }
 0x20e   : > { %v4700_v40 = vadd.f32 %v4699_v36, %v4698_v33  ;;  %v4701_v41 = vpop.f32.mrb[42].mxu1  ;;  %v4638_v42 = vpop.f32.mrb[43].mxu0 }
 0x20f   : > { %v3277_v7 = vadd.f32 %v4636_v35, %v6308_v29  ;;  %v4639_v43 = vadd.f32 %v4638_v42, %v4637_v38  ;;  %v4702_v44 = vpop.f32.mrb[43].mxu1 }
 0x210   : > { %v4703_v45 = vadd.f32 %v4702_v44, %v4701_v41 }
 0x211   : > { %v6357_v46 = vadd.f32 %v4700_v40, %v3277_v7  ;;  %v3280_v9 = vadd.f32 %v4639_v43, %v6310_v31 }
 0x213   : > { %v6360_v47 = vadd.f32 %v4703_v45, %v3280_v9  ;;  %v4640_v48 = vpop.f32.mrb[44].mxu0 }
 0x214   : > { %v4704_v50 = vpop.f32.mrb[44].mxu1  ;;  %v4641_v52 = vpop.f32.mrb[45].mxu0 }
 0x215   : > { %v4642_v56 = vadd.f32 %v4641_v52, %v4640_v48  ;;  %v4705_v58 = vpop.f32.mrb[45].mxu1  ;;  %v4643_v59 = vpop.f32.mrb[46].mxu0 }
 0x216   : > { %v4706_v60 = vadd.f32 %v4705_v58, %v4704_v50  ;;  %v4707_v61 = vpop.f32.mrb[46].mxu1  ;;  %v4644_v62 = vpop.f32.mrb[47].mxu0 }
 0x217   : > { %v3285_v29 = vadd.f32 %v4642_v56, %v6324_v53  ;;  %v4645_v63 = vadd.f32 %v4644_v62, %v4643_v59  ;;  %v4708_v0 = vpop.f32.mrb[47].mxu1 }
 0x218   : > { %v4709_v1 = vadd.f32 %v4708_v0, %v4707_v61 }
 0x219   : > { %v6363_v2 = vadd.f32 %v4706_v60, %v3285_v29  ;;  %v3288_v31 = vadd.f32 %v4645_v63, %v6326_v55 }
 0x21b   : > { %v6366_v3 = vadd.f32 %v4709_v1, %v3288_v31  ;;  %v4646_v4 = vpop.f32.mrb[48].mxu0 }
 0x21c   : > { %v4710_v6 = vpop.f32.mrb[48].mxu1  ;;  %v4647_v10 = vpop.f32.mrb[49].mxu0 }
 0x21d   : > { %v4648_v12 = vadd.f32 %v4647_v10, %v4646_v4  ;;  %v4711_v14 = vpop.f32.mrb[49].mxu1  ;;  %v4649_v15 = vpop.f32.mrb[50].mxu0 }
 0x21e   : > { %v4712_v16 = vadd.f32 %v4711_v14, %v4710_v6  ;;  %v4713_v17 = vpop.f32.mrb[50].mxu1  ;;  %v4650_v18 = vpop.f32.mrb[51].mxu0 }
 0x21f   : > { %v3293_v53 = vadd.f32 %v4648_v12, %v6328_v5  ;;  %v4651_v19 = vadd.f32 %v4650_v18, %v4649_v15  ;;  %v4714_v20 = vpop.f32.mrb[51].mxu1 }
 0x220   : > { %v4715_v22 = vadd.f32 %v4714_v20, %v4713_v17 }
 0x221   : > { %v6369_v24 = vadd.f32 %v4712_v16, %v3293_v53  ;;  %v3296_v55 = vadd.f32 %v4651_v19, %v6330_v8 }
 0x223   : > { %v6372_v49 = vadd.f32 %v4715_v22, %v3296_v55  ;;  %v4652_v25 = vpop.f32.mrb[52].mxu0 }
 0x224   : > { %v4716_v26 = vpop.f32.mrb[52].mxu1  ;;  %v4653_v27 = vpop.f32.mrb[53].mxu0 }
 0x225   : > { %v4654_v51 = vadd.f32 %v4653_v27, %v4652_v25  ;;  %v4717_v32 = vpop.f32.mrb[53].mxu1  ;;  %v4655_v33 = vpop.f32.mrb[54].mxu0 }
 0x226   : > { %v4718_v34 = vadd.f32 %v4717_v32, %v4716_v26  ;;  %v4719_v35 = vpop.f32.mrb[54].mxu1  ;;  %v4656_v36 = vpop.f32.mrb[55].mxu0 }
 0x227   : > { %v3301_v5 = vadd.f32 %v4654_v51, %v6332_v21  ;;  %v4657_v38 = vadd.f32 %v4656_v36, %v4655_v33  ;;  %v4720_v40 = vpop.f32.mrb[55].mxu1 }
 0x228   : > { %v4721_v41 = vadd.f32 %v4720_v40, %v4719_v35 }
 0x229   : > { %v6375_v42 = vadd.f32 %v4718_v34, %v3301_v5  ;;  %v3304_v8 = vadd.f32 %v4657_v38, %v6334_v23 }
 0x22b   : > { %v6378_v7 = vadd.f32 %v4721_v41, %v3304_v8  ;;  %v4658_v43 = vpop.f32.mrb[56].mxu0 }
 0x22c   : > { %v4722_v44 = vpop.f32.mrb[56].mxu1  ;;  %v4659_v45 = vpop.f32.mrb[57].mxu0 }
 0x22d   : > { %v4660_v9 = vadd.f32 %v4659_v45, %v4658_v43  ;;  %v4723_v48 = vpop.f32.mrb[57].mxu1  ;;  %v4661_v50 = vpop.f32.mrb[58].mxu0 }
 0x22e   : > { %v4724_v52 = vadd.f32 %v4723_v48, %v4722_v44  ;;  %v4725_v56 = vpop.f32.mrb[58].mxu1  ;;  %v4662_v58 = vpop.f32.mrb[59].mxu0 }
 0x22f   : > { %v3309_v21 = vadd.f32 %v4660_v9, %v6336_v37  ;;  %v4663_v59 = vadd.f32 %v4662_v58, %v4661_v50  ;;  %v4726_v60 = vpop.f32.mrb[59].mxu1 }
 0x230   : > { %v4727_v61 = vadd.f32 %v4726_v60, %v4725_v56 }
 0x231   : > { %v6381_v62 = vadd.f32 %v4724_v52, %v3309_v21  ;;  %v3312_v23 = vadd.f32 %v4663_v59, %v6338_v39 }
 0x233   : > { %v6384_v29 = vadd.f32 %v4727_v61, %v3312_v23  ;;  %v4664_v63 = vpop.f32.mrb[60].mxu0 }
 0x234   : > { %v4728_v0 = vpop.f32.mrb[60].mxu1  ;;  %v4665_v1 = vpop.f32.mrb[61].mxu0 }
 0x235   : > { %v4666_v31 = vadd.f32 %v4665_v1, %v4664_v63  ;;  %v4729_v4 = vpop.f32.mrb[61].mxu1  ;;  %v4667_v6 = vpop.f32.mrb[62].mxu0 }
 0x236   : > { %v4730_v10 = vadd.f32 %v4729_v4, %v4728_v0  ;;  %v4731_v12 = vpop.f32.mrb[62].mxu1  ;;  %v4668_v14 = vpop.f32.mrb[63].mxu0 }
 0x237   : > { %v3317_v37 = vadd.f32 %v4666_v31, %v6340_v54  ;;  %v4669_v15 = vadd.f32 %v4668_v14, %v4667_v6  ;;  %v4732_v16 = vpop.f32.mrb[63].mxu1 }
 0x238   : > { %v4733_v17 = vadd.f32 %v4732_v16, %v4731_v12 }
 0x239   : > { %v6387_v18 = vadd.f32 %v4730_v10, %v3317_v37  ;;  %v3320_v39 = vadd.f32 %v4669_v15, %v6342_v57 }
 0x23b   : > { %v6390_v53 = vadd.f32 %v4733_v17, %v3320_v39  ;;  %v4750_v19 = vpop.f32.mrb[64].mxu0 }
 0x23c   : > { %v4814_v20 = vpop.f32.mrb[64].mxu1  ;;  %v4751_v22 = vpop.f32.mrb[65].mxu0 }
 0x23d   : > { %v4752_v55 = vadd.f32 %v4751_v22, %v4750_v19  ;;  %v4815_v25 = vpop.f32.mrb[65].mxu1  ;;  %v4753_v26 = vpop.f32.mrb[66].mxu0 }
 0x23e   : > { %v4816_v27 = vadd.f32 %v4815_v25, %v4814_v20  ;;  %v4817_v51 = vpop.f32.mrb[66].mxu1  ;;  %v4754_v32 = vpop.f32.mrb[67].mxu0 }
 0x23f   : > { %v3455_v54 = vadd.f32 %v4752_v55, %v6345_v11  ;;  %v4755_v33 = vadd.f32 %v4754_v32, %v4753_v26  ;;  %v4818_v34 = vpop.f32.mrb[67].mxu1 }
 0x240   : > { %v4819_v35 = vadd.f32 %v4818_v34, %v4817_v51 }
 0x241   : > { %v6393_v36 = vadd.f32 %v4816_v27, %v3455_v54  ;;  %v3458_v57 = vadd.f32 %v4755_v33, %v6348_v13 }
 0x243   : > { %v6396_v5 = vadd.f32 %v4819_v35, %v3458_v57  ;;  %v4756_v38 = vpop.f32.mrb[68].mxu0 }
 0x244   : > { %v4820_v40 = vpop.f32.mrb[68].mxu1  ;;  %v4757_v41 = vpop.f32.mrb[69].mxu0 }
 0x245   : > { %v4758_v8 = vadd.f32 %v4757_v41, %v4756_v38  ;;  %v4821_v43 = vpop.f32.mrb[69].mxu1  ;;  %v4759_v44 = vpop.f32.mrb[70].mxu0 }
 0x246   : > { %v4822_v45 = vadd.f32 %v4821_v43, %v4820_v40  ;;  %v4823_v9 = vpop.f32.mrb[70].mxu1  ;;  %v4760_v48 = vpop.f32.mrb[71].mxu0 }
 0x247   : > { %v3463_v11 = vadd.f32 %v4758_v8, %v6351_v28  ;;  %v4761_v50 = vadd.f32 %v4760_v48, %v4759_v44  ;;  %v4824_v52 = vpop.f32.mrb[71].mxu1 }
 0x248   : > { %v4825_v56 = vadd.f32 %v4824_v52, %v4823_v9 }
 0x249   : > { %v6399_v58 = vadd.f32 %v4822_v45, %v3463_v11  ;;  %v3466_v13 = vadd.f32 %v4761_v50, %v6354_v30 }
 0x24b   : > { %v6402_v21 = vadd.f32 %v4825_v56, %v3466_v13  ;;  %v4762_v59 = vpop.f32.mrb[72].mxu0 }
 0x24c   : > { %v4826_v60 = vpop.f32.mrb[72].mxu1  ;;  %v4763_v61 = vpop.f32.mrb[73].mxu0 }
 0x24d   : > { %v4764_v23 = vadd.f32 %v4763_v61, %v4762_v59  ;;  %v4827_v63 = vpop.f32.mrb[73].mxu1  ;;  %v4765_v0 = vpop.f32.mrb[74].mxu0 }
 0x24e   : > { %v4828_v1 = vadd.f32 %v4827_v63, %v4826_v60  ;;  %v4829_v31 = vpop.f32.mrb[74].mxu1  ;;  %v4766_v4 = vpop.f32.mrb[75].mxu0 }
 0x24f   : > { %v3471_v28 = vadd.f32 %v4764_v23, %v6357_v46  ;;  %v4767_v6 = vadd.f32 %v4766_v4, %v4765_v0  ;;  %v4830_v10 = vpop.f32.mrb[75].mxu1 }
 0x250   : > { %v4831_v12 = vadd.f32 %v4830_v10, %v4829_v31 }
 0x251   : > { %v6405_v14 = vadd.f32 %v4828_v1, %v3471_v28  ;;  %v3474_v30 = vadd.f32 %v4767_v6, %v6360_v47 }
 0x253   : > { %v6408_v37 = vadd.f32 %v4831_v12, %v3474_v30  ;;  %v4768_v15 = vpop.f32.mrb[76].mxu0 }
 0x254   : > { %v4832_v16 = vpop.f32.mrb[76].mxu1  ;;  %v4769_v17 = vpop.f32.mrb[77].mxu0 }
 0x255   : > { %v4770_v39 = vadd.f32 %v4769_v17, %v4768_v15  ;;  %v4833_v19 = vpop.f32.mrb[77].mxu1  ;;  %v4771_v20 = vpop.f32.mrb[78].mxu0 }
 0x256   : > { %v4834_v22 = vadd.f32 %v4833_v19, %v4832_v16  ;;  %v4835_v55 = vpop.f32.mrb[78].mxu1  ;;  %v4772_v25 = vpop.f32.mrb[79].mxu0 }
 0x257   : > { %v3479_v46 = vadd.f32 %v4770_v39, %v6363_v2  ;;  %v4773_v26 = vadd.f32 %v4772_v25, %v4771_v20  ;;  %v4836_v27 = vpop.f32.mrb[79].mxu1 }
 0x258   : > { %v4837_v51 = vadd.f32 %v4836_v27, %v4835_v55 }
 0x259   : > { %v6411_v32 = vadd.f32 %v4834_v22, %v3479_v46  ;;  %v3482_v47 = vadd.f32 %v4773_v26, %v6366_v3 }
 0x25b   : > { %v6414_v54 = vadd.f32 %v4837_v51, %v3482_v47  ;;  %v4774_v33 = vpop.f32.mrb[80].mxu0 }
 0x25c   : > { %v4838_v34 = vpop.f32.mrb[80].mxu1  ;;  %v4775_v35 = vpop.f32.mrb[81].mxu0 }
 0x25d   : > { %v4776_v57 = vadd.f32 %v4775_v35, %v4774_v33  ;;  %v4839_v38 = vpop.f32.mrb[81].mxu1  ;;  %v4777_v40 = vpop.f32.mrb[82].mxu0 }
 0x25e   : > { %v4840_v41 = vadd.f32 %v4839_v38, %v4838_v34  ;;  %v4841_v8 = vpop.f32.mrb[82].mxu1  ;;  %v4778_v43 = vpop.f32.mrb[83].mxu0 }
 0x25f   : > { %v3487_v2 = vadd.f32 %v4776_v57, %v6369_v24  ;;  %v4779_v44 = vadd.f32 %v4778_v43, %v4777_v40  ;;  %v4842_v45 = vpop.f32.mrb[83].mxu1 }
 0x260   : > { %v4843_v9 = vadd.f32 %v4842_v45, %v4841_v8 }
 0x261   : > { %v6417_v48 = vadd.f32 %v4840_v41, %v3487_v2  ;;  %v3490_v3 = vadd.f32 %v4779_v44, %v6372_v49 }
 0x263   : > { %v6420_v11 = vadd.f32 %v4843_v9, %v3490_v3  ;;  %v4780_v50 = vpop.f32.mrb[84].mxu0 }
 0x264   : > { %v4844_v52 = vpop.f32.mrb[84].mxu1  ;;  %v4781_v56 = vpop.f32.mrb[85].mxu0 }
 0x265   : > { %v4782_v13 = vadd.f32 %v4781_v56, %v4780_v50  ;;  %v4845_v59 = vpop.f32.mrb[85].mxu1  ;;  %v4783_v60 = vpop.f32.mrb[86].mxu0 }
 0x266   : > { %v4846_v61 = vadd.f32 %v4845_v59, %v4844_v52  ;;  %v4847_v23 = vpop.f32.mrb[86].mxu1  ;;  %v4784_v63 = vpop.f32.mrb[87].mxu0 }
 0x267   : > { %v3495_v24 = vadd.f32 %v4782_v13, %v6375_v42  ;;  %v4785_v0 = vadd.f32 %v4784_v63, %v4783_v60  ;;  %v4848_v1 = vpop.f32.mrb[87].mxu1 }
 0x268   : > { %v4849_v31 = vadd.f32 %v4848_v1, %v4847_v23 }
 0x269   : > { %v6423_v4 = vadd.f32 %v4846_v61, %v3495_v24  ;;  %v3498_v49 = vadd.f32 %v4785_v0, %v6378_v7 }
 0x26b   : > { %v6426_v28 = vadd.f32 %v4849_v31, %v3498_v49  ;;  %v4786_v6 = vpop.f32.mrb[88].mxu0 }
 0x26c   : > { %v4850_v10 = vpop.f32.mrb[88].mxu1  ;;  %v4787_v12 = vpop.f32.mrb[89].mxu0 }
 0x26d   : > { %v4788_v30 = vadd.f32 %v4787_v12, %v4786_v6  ;;  %v4851_v15 = vpop.f32.mrb[89].mxu1  ;;  %v4789_v16 = vpop.f32.mrb[90].mxu0 }
 0x26e   : > { %v4852_v17 = vadd.f32 %v4851_v15, %v4850_v10  ;;  %v4853_v39 = vpop.f32.mrb[90].mxu1  ;;  %v4790_v19 = vpop.f32.mrb[91].mxu0 }
 0x26f   : > { %v3503_v42 = vadd.f32 %v4788_v30, %v6381_v62  ;;  %v4791_v20 = vadd.f32 %v4790_v19, %v4789_v16  ;;  %v4854_v22 = vpop.f32.mrb[91].mxu1 }
 0x270   : > { %v4855_v55 = vadd.f32 %v4854_v22, %v4853_v39 }
 0x271   : > { %v6429_v25 = vadd.f32 %v4852_v17, %v3503_v42  ;;  %v3506_v7 = vadd.f32 %v4791_v20, %v6384_v29 }
 0x273   : > { %v6432_v46 = vadd.f32 %v4855_v55, %v3506_v7  ;;  %v4792_v26 = vpop.f32.mrb[92].mxu0 }
 0x274   : > { %v4856_v27 = vpop.f32.mrb[92].mxu1  ;;  %v4793_v51 = vpop.f32.mrb[93].mxu0 }
 0x275   : > { %v4794_v47 = vadd.f32 %v4793_v51, %v4792_v26  ;;  %v4857_v33 = vpop.f32.mrb[93].mxu1  ;;  %v4795_v34 = vpop.f32.mrb[94].mxu0 }
 0x276   : > { %v4858_v35 = vadd.f32 %v4857_v33, %v4856_v27  ;;  %v4859_v57 = vpop.f32.mrb[94].mxu1  ;;  %v4796_v38 = vpop.f32.mrb[95].mxu0 }
 0x277   : > { %v3511_v62 = vadd.f32 %v4794_v47, %v6387_v18  ;;  %v4797_v40 = vadd.f32 %v4796_v38, %v4795_v34  ;;  %v4860_v41 = vpop.f32.mrb[95].mxu1 }
 0x278   : > { %v4861_v8 = vadd.f32 %v4860_v41, %v4859_v57 }
 0x279   : > { %v6435_v43 = vadd.f32 %v4858_v35, %v3511_v62  ;;  %v3514_v29 = vadd.f32 %v4797_v40, %v6390_v53 }
 0x27b   : > { %v6438_v2 = vadd.f32 %v4861_v8, %v3514_v29  ;;  %v4878_v44 = vpop.f32.mrb[96].mxu0 }
 0x27c   : > { %v4942_v45 = vpop.f32.mrb[96].mxu1  ;;  %v4879_v9 = vpop.f32.mrb[97].mxu0 }
 0x27d   : > { %v4880_v3 = vadd.f32 %v4879_v9, %v4878_v44  ;;  %v4943_v50 = vpop.f32.mrb[97].mxu1  ;;  %v4881_v52 = vpop.f32.mrb[98].mxu0 }
 0x27e   : > { %v4944_v56 = vadd.f32 %v4943_v50, %v4942_v45  ;;  %v4945_v13 = vpop.f32.mrb[98].mxu1  ;;  %v4882_v59 = vpop.f32.mrb[99].mxu0 }
 0x27f   : > { %v3649_v18 = vadd.f32 %v4880_v3, %v6393_v36  ;;  %v4883_v60 = vadd.f32 %v4882_v59, %v4881_v52  ;;  %v4946_v61 = vpop.f32.mrb[99].mxu1 }
 0x280   : > { %v4947_v23 = vadd.f32 %v4946_v61, %v4945_v13 }
 0x281   : > { %v3746_v63 = vadd.f32 %v4944_v56, %v3649_v18  ;;  %v3652_v53 = vadd.f32 %v4883_v60, %v6396_v5 }
 0x283   : > { %v3824_v24 = vmul.f32 0.2, %v3746_v63  ;;  %v3749_v0 = vadd.f32 %v4947_v23, %v3652_v53  ;;  %v4884_v1 = vpop.f32.mrb[100].mxu0  ;;  %vm3808_vm0 = vcmp.gt.f32.partialorder %v3746_v63, 0.0 }
 0x284   : > { %v4948_v31 = vpop.f32.mrb[100].mxu1  ;;  %v4885_v49 = vpop.f32.mrb[101].mxu0 }
 0x285   : > { %vm3809_vm1 = vcmp.gt.f32.partialorder %v3749_v0, 0.0  ;;  %v3825_v6 = vmul.f32 0.2, %v3749_v0  ;;  %v4886_v10 = vadd.f32 %v4885_v49, %v4884_v1  ;;  %v4949_v12 = vpop.f32.mrb[101].mxu1  ;;  %v4887_v30 = vpop.f32.mrb[102].mxu0  ;;  %v3840_v17 = vsel %vm3808_vm0, %v3746_v63, %v3824_v24 }
 0x286   : > { %v4950_v36 = vadd.f32 %v4949_v12, %v4948_v31  ;;  %v4951_v15 = vpop.f32.mrb[102].mxu1  ;;  %v4888_v16 = vpop.f32.mrb[103].mxu0 }
 0x287   : > { %v3841_v39 = vsel %vm3809_vm1, %v3749_v0, %v3825_v6  ;;  %v3657_v5 = vadd.f32 %v4886_v10, %v6399_v58  ;;  %v4889_v19 = vadd.f32 %v4888_v16, %v4887_v30  ;;  %v4952_v42 = vpop.f32.mrb[103].mxu1 }
 0x288   : > { %v4434_v20 = vpack.c.bf16 %v3841_v39, %v3840_v17  ;;  %v4953_v22 = vadd.f32 %v4952_v42, %v4951_v15 }
 0x289   : > { %v3754_v55 = vadd.f32 %v4950_v36, %v3657_v5  ;;  %v3660_v7 = vadd.f32 %v4889_v19, %v6402_v21 }
 0x28a   : > { %4435 = vst [vmem:[%s6446_s9] sm:$0xff] %v4434_v20  }
 0x28b   : > { %v3826_v26 = vmul.f32 0.2, %v3754_v55  ;;  %v3757_v27 = vadd.f32 %v4953_v22, %v3660_v7  ;;  %v4890_v51 = vpop.f32.mrb[104].mxu0  ;;  %vm3810_vm2 = vcmp.gt.f32.partialorder %v3754_v55, 0.0 }
 0x28c   : > { %v4954_v47 = vpop.f32.mrb[104].mxu1  ;;  %v4891_v33 = vpop.f32.mrb[105].mxu0 }
 0x28d   : > { %vm3811_vm3 = vcmp.gt.f32.partialorder %v3757_v27, 0.0  ;;  %v3827_v34 = vmul.f32 0.2, %v3757_v27  ;;  %v4892_v58 = vadd.f32 %v4891_v33, %v4890_v51  ;;  %v4955_v35 = vpop.f32.mrb[105].mxu1  ;;  %v4893_v57 = vpop.f32.mrb[106].mxu0  ;;  %v3842_v21 = vsel %vm3810_vm2, %v3754_v55, %v3826_v26 }
 0x28e   : > { %v4956_v38 = vadd.f32 %v4955_v35, %v4954_v47  ;;  %v4957_v62 = vpop.f32.mrb[106].mxu1  ;;  %v4894_v40 = vpop.f32.mrb[107].mxu0 }
 0x28f   : > { %v3843_v41 = vsel %vm3811_vm3, %v3757_v27, %v3827_v34  ;;  %v3665_v8 = vadd.f32 %v4892_v58, %v6405_v14  ;;  %v4895_v29 = vadd.f32 %v4894_v40, %v4893_v57  ;;  %v4958_v44 = vpop.f32.mrb[107].mxu1 }
 0x290   : > { %v4439_v45 = vpack.c.bf16 %v3843_v41, %v3842_v21  ;;  %v4959_v9 = vadd.f32 %v4958_v44, %v4957_v62 }
 0x291   : > { %v3762_v3 = vadd.f32 %v4956_v38, %v3665_v8  ;;  %v3668_v50 = vadd.f32 %v4895_v29, %v6408_v37 }
 0x292   : > { %4471 = vst [vmem:[%s6446_s9 + $0x8] sm:$0xff] %v4439_v45  }
 0x293   : > { %v3828_v52 = vmul.f32 0.2, %v3762_v3  ;;  %v3765_v56 = vadd.f32 %v4959_v9, %v3668_v50  ;;  %v4896_v13 = vpop.f32.mrb[108].mxu0  ;;  %vm3812_vm4 = vcmp.gt.f32.partialorder %v3762_v3, 0.0 }
 0x294   : > { %v4960_v59 = vpop.f32.mrb[108].mxu1  ;;  %v4897_v18 = vpop.f32.mrb[109].mxu0 }
 0x295   : > { %vm3813_vm5 = vcmp.gt.f32.partialorder %v3765_v56, 0.0  ;;  %v3829_v60 = vmul.f32 0.2, %v3765_v56  ;;  %v4898_v61 = vadd.f32 %v4897_v18, %v4896_v13  ;;  %v4961_v23 = vpop.f32.mrb[109].mxu1  ;;  %v4899_v14 = vpop.f32.mrb[110].mxu0  ;;  %v3844_v0 = vsel %vm3812_vm4, %v3762_v3, %v3828_v52 }
 0x296   : > { %v4962_v63 = vadd.f32 %v4961_v23, %v4960_v59  ;;  %v4963_v53 = vpop.f32.mrb[110].mxu1  ;;  %v4900_v24 = vpop.f32.mrb[111].mxu0 }
 0x297   : > { %v3845_v1 = vsel %vm3813_vm5, %v3765_v56, %v3829_v60  ;;  %v3673_v37 = vadd.f32 %v4898_v61, %v6411_v32  ;;  %v4901_v31 = vadd.f32 %v4900_v24, %v4899_v14  ;;  %v4964_v49 = vpop.f32.mrb[111].mxu1 }
 0x298   : > { %v4444_v6 = vpack.c.bf16 %v3845_v1, %v3844_v0  ;;  %v4965_v10 = vadd.f32 %v4964_v49, %v4963_v53 }
 0x299   : > { %v3770_v12 = vadd.f32 %v4962_v63, %v3673_v37  ;;  %v3676_v30 = vadd.f32 %v4901_v31, %v6414_v54 }
 0x29a   : > { %4472 = vst [vmem:[%s6446_s9 + $0x10] sm:$0xff] %v4444_v6  }
 0x29b   : > { %v3830_v36 = vmul.f32 0.2, %v3770_v12  ;;  %v3773_v15 = vadd.f32 %v4965_v10, %v3676_v30  ;;  %v4902_v16 = vpop.f32.mrb[112].mxu0  ;;  %vm3814_vm6 = vcmp.gt.f32.partialorder %v3770_v12, 0.0 }
 0x29c   : > { %v4966_v17 = vpop.f32.mrb[112].mxu1  ;;  %v4903_v39 = vpop.f32.mrb[113].mxu0 }
 0x29d   : > { %vm3815_vm7 = vcmp.gt.f32.partialorder %v3773_v15, 0.0  ;;  %v3831_v5 = vmul.f32 0.2, %v3773_v15  ;;  %v4904_v19 = vadd.f32 %v4903_v39, %v4902_v16  ;;  %v4967_v42 = vpop.f32.mrb[113].mxu1  ;;  %v4905_v32 = vpop.f32.mrb[114].mxu0  ;;  %v3846_v7 = vsel %vm3814_vm6, %v3770_v12, %v3830_v36 }
 0x29e   : > { %v4968_v20 = vadd.f32 %v4967_v42, %v4966_v17  ;;  %v4969_v22 = vpop.f32.mrb[114].mxu1  ;;  %v4906_v55 = vpop.f32.mrb[115].mxu0 }
 0x29f   : > { %v3847_v26 = vsel %vm3815_vm7, %v3773_v15, %v3831_v5  ;;  %v3681_v54 = vadd.f32 %v4904_v19, %v6417_v48  ;;  %v4907_v27 = vadd.f32 %v4906_v55, %v4905_v32  ;;  %v4970_v51 = vpop.f32.mrb[115].mxu1 }
 0x2a0   : > { %v4449_v47 = vpack.c.bf16 %v3847_v26, %v3846_v7  ;;  %v4971_v33 = vadd.f32 %v4970_v51, %v4969_v22 }
 0x2a1   : > { %v3778_v34 = vadd.f32 %v4968_v20, %v3681_v54  ;;  %v3684_v58 = vadd.f32 %v4907_v27, %v6420_v11 }
 0x2a2   : > { %4473 = vst [vmem:[%s6446_s9 + $0x18] sm:$0xff] %v4449_v47  }
 0x2a3   : > { %v3832_v35 = vmul.f32 0.2, %v3778_v34  ;;  %v3781_v57 = vadd.f32 %v4971_v33, %v3684_v58  ;;  %v4908_v38 = vpop.f32.mrb[116].mxu0  ;;  %vm3816_vm8 = vcmp.gt.f32.partialorder %v3778_v34, 0.0 }
 0x2a4   : > { %v4972_v62 = vpop.f32.mrb[116].mxu1  ;;  %v4909_v40 = vpop.f32.mrb[117].mxu0 }
 0x2a5   : > { %vm3817_vm9 = vcmp.gt.f32.partialorder %v3781_v57, 0.0  ;;  %v3833_v21 = vmul.f32 0.2, %v3781_v57  ;;  %v4910_v41 = vadd.f32 %v4909_v40, %v4908_v38  ;;  %v4973_v8 = vpop.f32.mrb[117].mxu1  ;;  %v4911_v48 = vpop.f32.mrb[118].mxu0  ;;  %v3848_v9 = vsel %vm3816_vm8, %v3778_v34, %v3832_v35 }
 0x2a6   : > { %v4974_v29 = vadd.f32 %v4973_v8, %v4972_v62  ;;  %v4975_v44 = vpop.f32.mrb[118].mxu1  ;;  %v4912_v45 = vpop.f32.mrb[119].mxu0  ;;  %v3967_v8 = vld [vmem:[%s6446_s9 + $0x8] sm:$0xf] (%p5248_p6) }
 0x2a7   : > { %v3849_v3 = vsel %vm3817_vm9, %v3781_v57, %v3833_v21  ;;  %v3689_v11 = vadd.f32 %v4910_v41, %v6423_v4  ;;  %v4913_v50 = vadd.f32 %v4912_v45, %v4911_v48  ;;  %v4976_v52 = vpop.f32.mrb[119].mxu1  ;;  %v3969_v48 = vld [vmem:[%s6446_s9 + $0xc] sm:$0xf] (%p5248_p6)  ;;  %3968 = vst [vmem:[%s3947_s3 + $0x10] sm:$0xf] (%p5248_p6), %v3967_v8 }
 0x2a8   : > { %v4454_v56 = vpack.c.bf16 %v3849_v3, %v3848_v9  ;;  %v4977_v13 = vadd.f32 %v4976_v52, %v4975_v44  ;;  %3970 = vst [vmem:[%s3947_s3 + $0x18] sm:$0xf] (%p5248_p6), %v3969_v48  ;;  %v3973_v44 = vld [vmem:[%s6446_s9 + $0x14] sm:$0xf] (%p5248_p6) }
 0x2a9   : > { %v3786_v59 = vadd.f32 %v4974_v29, %v3689_v11  ;;  %v3692_v18 = vadd.f32 %v4913_v50, %v6426_v28  ;;  %v3971_v29 = vld [vmem:[%s6446_s9 + $0x10] sm:$0xf] (%p5248_p6)  ;;  %v3975_v45 = vld [vmem:[%s6446_s9 + $0x18] sm:$0xf] (%p5248_p6)  ;;  %v3977_v9 = vld [vmem:[%s6446_s9 + $0x1c] sm:$0xf] (%p5248_p6) }
 0x2aa   : > { %4474 = vst [vmem:[%s6446_s9 + $0x20] sm:$0xff] %v4454_v56   ;;  %3972 = vst [vmem:[%s3947_s3 + $0x20] sm:$0xf] (%p5248_p6), %v3971_v29 }
 0x2ab   : > { %v3834_v60 = vmul.f32 0.2, %v3786_v59  ;;  %v3789_v61 = vadd.f32 %v4977_v13, %v3692_v18  ;;  %v4914_v23 = vpop.f32.mrb[120].mxu0  ;;  %vm3818_vm10 = vcmp.gt.f32.partialorder %v3786_v59, 0.0  ;;  %3974 = vst [vmem:[%s3947_s3 + $0x28] sm:$0xf] (%p5248_p6), %v3973_v44 }
 0x2ac   : > { %v4978_v14 = vpop.f32.mrb[120].mxu1  ;;  %v4915_v63 = vpop.f32.mrb[121].mxu0  ;;  %3976 = vst [vmem:[%s3947_s3 + $0x30] sm:$0xf] (%p5248_p6), %v3975_v45  ;;  %3978 = vst [vmem:[%s3947_s3 + $0x38] sm:$0xf] (%p5248_p6), %v3977_v9 }
 0x2ad   : > { %vm3819_vm11 = vcmp.gt.f32.partialorder %v3789_v61, 0.0  ;;  %v3835_v53 = vmul.f32 0.2, %v3789_v61  ;;  %v4916_v24 = vadd.f32 %v4915_v63, %v4914_v23  ;;  %v4979_v0 = vpop.f32.mrb[121].mxu1  ;;  %v4917_v4 = vpop.f32.mrb[122].mxu0  ;;  %v3850_v49 = vsel %vm3818_vm10, %v3786_v59, %v3834_v60 }
 0x2ae   : > { %v4980_v1 = vadd.f32 %v4979_v0, %v4978_v14  ;;  %v4981_v37 = vpop.f32.mrb[122].mxu1  ;;  %v4918_v31 = vpop.f32.mrb[123].mxu0 }
 0x2af   : > { %v3851_v6 = vsel %vm3819_vm11, %v3789_v61, %v3835_v53  ;;  %v3697_v28 = vadd.f32 %v4916_v24, %v6429_v25  ;;  %v4919_v10 = vadd.f32 %v4918_v31, %v4917_v4  ;;  %v4982_v12 = vpop.f32.mrb[123].mxu1 }
 0x2b0   : > { %v4459_v30 = vpack.c.bf16 %v3851_v6, %v3850_v49  ;;  %v4983_v36 = vadd.f32 %v4982_v12, %v4981_v37 }
 0x2b1   : > { %v3794_v15 = vadd.f32 %v4980_v1, %v3697_v28  ;;  %v3700_v16 = vadd.f32 %v4919_v10, %v6432_v46  ;;  %v3979_v3 = vld [vmem:[%s6446_s9 + $0x20] sm:$0xf] (%p5248_p6)  ;;  %v3981_v11 = vld [vmem:[%s6446_s9 + $0x24] sm:$0xf] (%p5248_p6) }
 0x2b2   : > { %4475 = vst [vmem:[%s6446_s9 + $0x28] sm:$0xff] %v4459_v30   ;;  %3980 = vst [vmem:[%s3947_s3 + $0x40] sm:$0xf] (%p5248_p6), %v3979_v3 }
 0x2b3   : > { %v3836_v17 = vmul.f32 0.2, %v3794_v15  ;;  %v3797_v39 = vadd.f32 %v4983_v36, %v3700_v16  ;;  %v4920_v5 = vpop.f32.mrb[124].mxu0  ;;  %vm3820_vm12 = vcmp.gt.f32.partialorder %v3794_v15, 0.0  ;;  %3982 = vst [vmem:[%s3947_s3 + $0x48] sm:$0xf] (%p5248_p6), %v3981_v11 }
 0x2b4   : > { %v4984_v19 = vpop.f32.mrb[124].mxu1  ;;  %v4921_v42 = vpop.f32.mrb[125].mxu0 }
 0x2b5   : > { %vm3821_vm13 = vcmp.gt.f32.partialorder %v3797_v39, 0.0  ;;  %v3837_v32 = vmul.f32 0.2, %v3797_v39  ;;  %v4922_v20 = vadd.f32 %v4921_v42, %v4920_v5  ;;  %v4985_v22 = vpop.f32.mrb[125].mxu1  ;;  %v4923_v25 = vpop.f32.mrb[126].mxu0  ;;  %v3852_v54 = vsel %vm3820_vm12, %v3794_v15, %v3836_v17 }
 0x2b6   : > { %v4986_v55 = vadd.f32 %v4985_v22, %v4984_v19  ;;  %v4987_v7 = vpop.f32.mrb[126].mxu1  ;;  %v4924_v26 = vpop.f32.mrb[127].mxu0 }
 0x2b7   : > { %v3853_v27 = vsel %vm3821_vm13, %v3797_v39, %v3837_v32  ;;  %v3705_v46 = vadd.f32 %v4922_v20, %v6435_v43  ;;  %v4925_v51 = vadd.f32 %v4924_v26, %v4923_v25  ;;  %v4988_v47 = vpop.f32.mrb[127].mxu1  ;;  %v3963_v43 = vld [vmem:[%s6446_s9] sm:$0xf] (%p5248_p6) }
 0x2b8   : > { %v4464_v33 = vpack.c.bf16 %v3853_v27, %v3852_v54  ;;  %v4989_v34 = vadd.f32 %v4988_v47, %v4987_v7  ;;  %3964 = vst [vmem:[%s3947_s3] sm:$0xf] (%p5248_p6), %v3963_v43 }
 0x2b9   : > { %v3802_v58 = vadd.f32 %v4986_v55, %v3705_v46  ;;  %v3708_v35 = vadd.f32 %v4925_v51, %v6438_v2  ;;  %v3965_v2 = vld [vmem:[%s6446_s9 + $0x4] sm:$0xf] (%p5248_p6)  ;;  %v3983_v50 = vld [vmem:[%s6446_s9 + $0x28] sm:$0xf] (%p5248_p6)  ;;  %v3985_v52 = vld [vmem:[%s6446_s9 + $0x2c] sm:$0xf] (%p5248_p6) }
 0x2ba   : > { %4476 = vst [vmem:[%s6446_s9 + $0x30] sm:$0xff] %v4464_v33   ;;  %3966 = vst [vmem:[%s3947_s3 + $0x8] sm:$0xf] (%p5248_p6), %v3965_v2 }
 0x2bb   : > { %v3838_v57 = vmul.f32 0.2, %v3802_v58  ;;  %v3805_v38 = vadd.f32 %v4989_v34, %v3708_v35  ;;  %vm3822_vm14 = vcmp.gt.f32.partialorder %v3802_v58, 0.0  ;;  %3984 = vst [vmem:[%s3947_s3 + $0x50] sm:$0xf] (%p5248_p6), %v3983_v50 }
 0x2bc   : > { %3942 = sbr.rel (!%p5248_p6) target bundleno = 715 (0x2cb), region = 73  ;;  %3986 = vst [vmem:[%s3947_s3 + $0x58] sm:$0xf] (%p5248_p6), %v3985_v52 }
 0x2bd   : > { %vm3823_vm15 = vcmp.gt.f32.partialorder %v3805_v38, 0.0  ;;  %v3839_v62 = vmul.f32 0.2, %v3805_v38  ;;  %v3854_v40 = vsel %vm3822_vm14, %v3802_v58, %v3838_v57 }
 0x2bf   : > { %v3855_v21 = vsel %vm3823_vm15, %v3805_v38, %v3839_v62 }
 0x2c0   : > { %v4469_v41 = vpack.c.bf16 %v3855_v21, %v3854_v40 }
 0x2c1   : > { %v3987_v56 = vld [vmem:[%s6446_s9 + $0x30] sm:$0xf] (%p5248_p6)  ;;  %v3989_v13 = vld [vmem:[%s6446_s9 + $0x34] sm:$0xf] (%p5248_p6) }
 0x2c2   : > { %4477 = vst [vmem:[%s6446_s9 + $0x38] sm:$0xff] %v4469_v41   ;;  %3988 = vst [vmem:[%s3947_s3 + $0x60] sm:$0xf] (%p5248_p6), %v3987_v56 }
 0x2c3   : > { %3990 = vst [vmem:[%s3947_s3 + $0x68] sm:$0xf] %v3989_v13 }
 0x2c9   : > { %v3991_v59 = vld [vmem:[%s6446_s9 + $0x38] sm:$0xf]  ;;  %v3993_v18 = vld [vmem:[%s6446_s9 + $0x3c] sm:$0xf] }
 0x2ca   : > { %3992 = vst [vmem:[%s3947_s3 + $0x70] sm:$0xf] %v3991_v59  ;;  %3994 = vst [vmem:[%s3947_s3 + $0x78] sm:$0xf] %v3993_v18 }
 0x2cb PF: > { %s12_s13 = sadd.s32 1, %s5196_s13   ;;  %s6509_s9 = smov %s5184_s10 }
 0x2cc   : > { %p9_p11 = scmp.ge.s32.totalorder %s12_s13, 4   ;;  %s6510_s10 = smov %s5253_s19 }
 0x2cd   : > { %s6511_s11 = smov %s5192_s12  ;;  %s6512_s12 = smov %s6514_s14 }
 0x2ce   :  { %11 = sbr.rel (!%p9_p11) target bundleno = 3 (0x3), region = 148 }

// kernel: discriminator_forward.7
= control target key start
LH: loop header
LB: loop body
LE: loop exit
PB: predicated region body
PF: predicated region fallthrough
CT: control target
= control target key end

     0   :  { %s14827_s0 = inlined_call_operand.vmem [shape: bf16[32,4096], index: 0, kind: input, shape index: {}]   ;;  %s14828_s1 = inlined_call_operand.vmem [shape: bf16[4096,512], index: 1, kind: input, shape index: {}]   ;;  %s14829_s2 = inlined_call_operand.vmem [shape: f32[16,512], index: 2, kind: input, shape index: {}]   ;;  %s14830_s3 = inlined_call_operand.vmem [shape: f32[2,32], index: 3, kind: input, shape index: {}]   ;;  %s14831_s4 = inlined_call_operand.vmem [shape: f32[1,32], index: 4, kind: input, shape index: {}]   ;;  %s14832_s5 = inlined_call_operand.vmem [shape: f32[32,512], index: 5, kind: output, shape index: {0}]   ;;  %s14833_s6 = inlined_call_operand.hbm [shape: f32[1,1], index: 6, kind: output, shape index: {1}]  }
   0x1   :  { %v9736_v0 = vld [vmem:[%s14828_s1 + $0x4] ss:$16 sps:$4 sm:$0xff]   ;;  %v9738_v1 = vld [vmem:[%s14828_s1 + $0xc] ss:$16 sps:$4 sm:$0xff]   ;;  %v9740_v2 = vld [vmem:[%s14828_s1] ss:$16 sps:$4 sm:$0xff]  }
   0x2   :  { %6551 = vmatprep.subr.bf16.mxu0 %v9736_v0  ;;  %v9741_v3 = vld [vmem:[%s14828_s1 + $0x8] ss:$16 sps:$4 sm:$0xff]   ;;  %7399 = vmatprep.subr.bf16.mxu1 %v9738_v1  ;;  %v9742_v4 = vld [vmem:[%s14828_s1 + $0x24] ss:$16 sps:$4 sm:$0xff]   ;;  %v9744_v5 = vld [vmem:[%s14828_s1 + $0x2c] ss:$16 sps:$4 sm:$0xff]  }
   0x3   :  { %6552 = vmatpush1.bf16.msra.mxu0 %v9740_v2  ;;  %7400 = vmatpush1.bf16.msra.mxu1 %v9741_v3  ;;  %v9746_v6 = vld [vmem:[%s14828_s1 + $0x20] ss:$16 sps:$4 sm:$0xff]   ;;  %v9747_v7 = vld [vmem:[%s14828_s1 + $0x28] ss:$16 sps:$4 sm:$0xff]   ;;  %v9748_v8 = vld [vmem:[%s14828_s1 + $0x44] ss:$16 sps:$4 sm:$0xff]  }
   0x4   :  { %6553 = vmatprep.subr.bf16.mxu0 %v9742_v4  ;;  %7401 = vmatprep.subr.bf16.mxu1 %v9744_v5  ;;  %v9750_v9 = vld [vmem:[%s14828_s1 + $0x4c] ss:$16 sps:$4 sm:$0xff]   ;;  %v9752_v10 = vld [vmem:[%s14828_s1 + $0x40] ss:$16 sps:$4 sm:$0xff]   ;;  %v9753_v11 = vld [vmem:[%s14828_s1 + $0x48] ss:$16 sps:$4 sm:$0xff]  }
   0x5   :  { %v9754_v12 = vld [vmem:[%s14828_s1 + $0x64] ss:$16 sps:$4 sm:$0xff]   ;;  %v9756_v13 = vld [vmem:[%s14828_s1 + $0x6c] ss:$16 sps:$4 sm:$0xff]   ;;  %v9758_v14 = vld [vmem:[%s14828_s1 + $0x60] ss:$16 sps:$4 sm:$0xff]  }
   0x6   :  { %v9759_v15 = vld [vmem:[%s14828_s1 + $0x68] ss:$16 sps:$4 sm:$0xff]   ;;  %v9760_v16 = vld [vmem:[%s14828_s1 + $0x84] ss:$16 sps:$4 sm:$0xff]   ;;  %v9762_v17 = vld [vmem:[%s14828_s1 + $0x8c] ss:$16 sps:$4 sm:$0xff]  }
   0x7   :  { %6554 = vmatpush1.bf16.msra.mxu0 %v9746_v6  ;;  %7402 = vmatpush1.bf16.msra.mxu1 %v9747_v7  ;;  %v9764_v18 = vld [vmem:[%s14828_s1 + $0x80] ss:$16 sps:$4 sm:$0xff]   ;;  %v9765_v19 = vld [vmem:[%s14828_s1 + $0x88] ss:$16 sps:$4 sm:$0xff]   ;;  %v9766_v20 = vld [vmem:[%s14828_s1 + $0xa4] ss:$16 sps:$4 sm:$0xff]  }
   0x8   :  { %6555 = vmatprep.subr.bf16.mxu0 %v9748_v8  ;;  %7403 = vmatprep.subr.bf16.mxu1 %v9750_v9  ;;  %v9768_v21 = vld [vmem:[%s14828_s1 + $0xac] ss:$16 sps:$4 sm:$0xff]   ;;  %v9770_v22 = vld [vmem:[%s14828_s1 + $0xa0] ss:$16 sps:$4 sm:$0xff]   ;;  %v9771_v23 = vld [vmem:[%s14828_s1 + $0xa8] ss:$16 sps:$4 sm:$0xff]  }
   0x9   :  { %v9772_v24 = vld [vmem:[%s14828_s1 + $0xc4] ss:$16 sps:$4 sm:$0xff]   ;;  %v9774_v25 = vld [vmem:[%s14828_s1 + $0xcc] ss:$16 sps:$4 sm:$0xff]   ;;  %v9776_v26 = vld [vmem:[%s14828_s1 + $0xc0] ss:$16 sps:$4 sm:$0xff]  }
   0xa   :  { %v9777_v27 = vld [vmem:[%s14828_s1 + $0xc8] ss:$16 sps:$4 sm:$0xff]   ;;  %v9778_v28 = vld [vmem:[%s14828_s1 + $0xe4] ss:$16 sps:$4 sm:$0xff]   ;;  %v9780_v29 = vld [vmem:[%s14828_s1 + $0xec] ss:$16 sps:$4 sm:$0xff]  }
   0xb   :  { %6556 = vmatpush1.bf16.msra.mxu0 %v9752_v10  ;;  %7404 = vmatpush1.bf16.msra.mxu1 %v9753_v11  ;;  %v9782_v30 = vld [vmem:[%s14828_s1 + $0xe0] ss:$16 sps:$4 sm:$0xff]   ;;  %v9783_v31 = vld [vmem:[%s14828_s1 + $0xe8] ss:$16 sps:$4 sm:$0xff]   ;;  %v9784_v32 = vld [vmem:[%s14828_s1 + $0x104] ss:$16 sps:$4 sm:$0xff]  }
   0xc   :  { %6557 = vmatprep.subr.bf16.mxu0 %v9754_v12  ;;  %7405 = vmatprep.subr.bf16.mxu1 %v9756_v13  ;;  %v9786_v33 = vld [vmem:[%s14828_s1 + $0x10c] ss:$16 sps:$4 sm:$0xff]   ;;  %v9788_v34 = vld [vmem:[%s14828_s1 + $0x100] ss:$16 sps:$4 sm:$0xff]   ;;  %v9789_v35 = vld [vmem:[%s14828_s1 + $0x108] ss:$16 sps:$4 sm:$0xff]  }
   0xd   :  { %v9790_v36 = vld [vmem:[%s14828_s1 + $0x124] ss:$16 sps:$4 sm:$0xff]   ;;  %v9792_v37 = vld [vmem:[%s14828_s1 + $0x12c] ss:$16 sps:$4 sm:$0xff]   ;;  %v9794_v38 = vld [vmem:[%s14828_s1 + $0x120] ss:$16 sps:$4 sm:$0xff]  }
   0xe   :  { %v9795_v39 = vld [vmem:[%s14828_s1 + $0x128] ss:$16 sps:$4 sm:$0xff]   ;;  %v9796_v40 = vld [vmem:[%s14828_s1 + $0x144] ss:$16 sps:$4 sm:$0xff]   ;;  %v9798_v41 = vld [vmem:[%s14828_s1 + $0x14c] ss:$16 sps:$4 sm:$0xff]  }
   0xf   :  { %6558 = vmatpush1.bf16.msra.mxu0 %v9758_v14  ;;  %7406 = vmatpush1.bf16.msra.mxu1 %v9759_v15  ;;  %v9800_v42 = vld [vmem:[%s14828_s1 + $0x140] ss:$16 sps:$4 sm:$0xff]   ;;  %v9801_v43 = vld [vmem:[%s14828_s1 + $0x148] ss:$16 sps:$4 sm:$0xff]   ;;  %v9802_v44 = vld [vmem:[%s14828_s1 + $0x164] ss:$16 sps:$4 sm:$0xff]  }
  0x10   :  { %6559 = vmatprep.subr.bf16.mxu0 %v9760_v16  ;;  %7407 = vmatprep.subr.bf16.mxu1 %v9762_v17  ;;  %v9804_v45 = vld [vmem:[%s14828_s1 + $0x16c] ss:$16 sps:$4 sm:$0xff]   ;;  %v23_v46 = vld [vmem:[%s14827_s0] sm:$0xff]  ;;  %v9807_v49 = vld [vmem:[%s14828_s1 + $0x168] ss:$16 sps:$4 sm:$0xff]  }
  0x11   :  { %v39_v47 = vld [vmem:[%s14827_s0 + $0x80] sm:$0xff]  ;;  %v9810_v52 = vld [vmem:[%s14828_s1 + $0x18c] ss:$16 sps:$4 sm:$0xff]   ;;  %v9813_v54 = vld [vmem:[%s14828_s1 + $0x188] ss:$16 sps:$4 sm:$0xff]  }
  0x12   :  { %v9806_v48 = vld [vmem:[%s14828_s1 + $0x160] ss:$16 sps:$4 sm:$0xff]   ;;  %v8403_v50 = vcombine.high %v23_v46, %v39_v47  ;;  %v9808_v51 = vld [vmem:[%s14828_s1 + $0x184] ss:$16 sps:$4 sm:$0xff]   ;;  %v9816_v56 = vld [vmem:[%s14828_s1 + $0x1ac] ss:$16 sps:$4 sm:$0xff]   ;;  %v8402_v5 = vcombine.low %v23_v46, %v39_v47 }
  0x13   :  { %6560 = vmatpush1.bf16.msra.mxu0 %v9764_v18  ;;  %7408 = vmatpush1.bf16.msra.mxu1 %v9765_v19  ;;  %v9812_v53 = vld [vmem:[%s14828_s1 + $0x180] ss:$16 sps:$4 sm:$0xff]   ;;  %v9814_v55 = vld [vmem:[%s14828_s1 + $0x1a4] ss:$16 sps:$4 sm:$0xff]   ;;  %v9819_v58 = vld [vmem:[%s14828_s1 + $0x1a8] ss:$16 sps:$4 sm:$0xff]  }
  0x14   :  { %6561 = vmatprep.subr.bf16.mxu0 %v9766_v20  ;;  %7409 = vmatprep.subr.bf16.mxu1 %v9768_v21  ;;  %v9818_v57 = vld [vmem:[%s14828_s1 + $0x1a0] ss:$16 sps:$4 sm:$0xff]   ;;  %v9820_v59 = vld [vmem:[%s14828_s1 + $0x1c4] ss:$16 sps:$4 sm:$0xff]   ;;  %v9822_v60 = vld [vmem:[%s14828_s1 + $0x1cc] ss:$16 sps:$4 sm:$0xff]  }
  0x15   :  { %6583 = vmatprep.mubr.bf16.mxu0 %v8403_v50  ;;  %7431 = vmatprep.mubr.bf16.mxu1 %v8403_v50  ;;  %v9824_v61 = vld [vmem:[%s14828_s1 + $0x1c0] ss:$16 sps:$4 sm:$0xff]   ;;  %v9825_v62 = vld [vmem:[%s14828_s1 + $0x1c8] ss:$16 sps:$4 sm:$0xff]   ;;  %v9826_v63 = vld [vmem:[%s14828_s1 + $0x1e4] ss:$16 sps:$4 sm:$0xff]  }
  0x16   :  { %v9828_v0 = vld [vmem:[%s14828_s1 + $0x1ec] ss:$16 sps:$4 sm:$0xff]   ;;  %v9830_v1 = vld [vmem:[%s14828_s1 + $0x1e0] ss:$16 sps:$4 sm:$0xff]   ;;  %v9831_v2 = vld [vmem:[%s14828_s1 + $0x1e8] ss:$16 sps:$4 sm:$0xff]  }
  0x17   :  { %6562 = vmatpush1.bf16.msra.mxu0 %v9770_v22  ;;  %7410 = vmatpush1.bf16.msra.mxu1 %v9771_v23  ;;  %v9834_v3 = vld [vmem:[%s14828_s1 + $0x204] ss:$16 sps:$4 sm:$0xff]   ;;  %v9837_v4 = vld [vmem:[%s14828_s1 + $0x20c] ss:$16 sps:$4 sm:$0xff]   ;;  %v9832_v6 = vld [vmem:[%s14828_s1 + $0x200] ss:$16 sps:$4 sm:$0xff]  }
  0x18   :  { %6563 = vmatprep.subr.bf16.mxu0 %v9772_v24  ;;  %7411 = vmatprep.subr.bf16.mxu1 %v9774_v25  ;;  %v9835_v7 = vld [vmem:[%s14828_s1 + $0x208] ss:$16 sps:$4 sm:$0xff]   ;;  %v9840_v8 = vld [vmem:[%s14828_s1 + $0x224] ss:$16 sps:$4 sm:$0xff]   ;;  %v9843_v9 = vld [vmem:[%s14828_s1 + $0x22c] ss:$16 sps:$4 sm:$0xff]  }
  0x19   :  { %v9838_v10 = vld [vmem:[%s14828_s1 + $0x220] ss:$16 sps:$4 sm:$0xff]   ;;  %v9841_v11 = vld [vmem:[%s14828_s1 + $0x228] ss:$16 sps:$4 sm:$0xff]   ;;  %v9846_v12 = vld [vmem:[%s14828_s1 + $0x244] ss:$16 sps:$4 sm:$0xff]  }
  0x1a   :  { %v9849_v13 = vld [vmem:[%s14828_s1 + $0x24c] ss:$16 sps:$4 sm:$0xff]   ;;  %v9844_v14 = vld [vmem:[%s14828_s1 + $0x240] ss:$16 sps:$4 sm:$0xff]   ;;  %v9847_v15 = vld [vmem:[%s14828_s1 + $0x248] ss:$16 sps:$4 sm:$0xff]  }
  0x1b   :  { %6564 = vmatpush1.bf16.msra.mxu0 %v9776_v26  ;;  %7412 = vmatpush1.bf16.msra.mxu1 %v9777_v27  ;;  %v9852_v16 = vld [vmem:[%s14828_s1 + $0x264] ss:$16 sps:$4 sm:$0xff]   ;;  %v9855_v17 = vld [vmem:[%s14828_s1 + $0x26c] ss:$16 sps:$4 sm:$0xff]   ;;  %v9850_v18 = vld [vmem:[%s14828_s1 + $0x260] ss:$16 sps:$4 sm:$0xff]  }
  0x1c   :  { %6565 = vmatprep.subr.bf16.mxu0 %v9778_v28  ;;  %7413 = vmatprep.subr.bf16.mxu1 %v9780_v29  ;;  %v9853_v19 = vld [vmem:[%s14828_s1 + $0x268] ss:$16 sps:$4 sm:$0xff]   ;;  %v9858_v20 = vld [vmem:[%s14828_s1 + $0x284] ss:$16 sps:$4 sm:$0xff]   ;;  %v9861_v21 = vld [vmem:[%s14828_s1 + $0x28c] ss:$16 sps:$4 sm:$0xff]  }
  0x1d   :  { %v9856_v22 = vld [vmem:[%s14828_s1 + $0x280] ss:$16 sps:$4 sm:$0xff]   ;;  %v9859_v23 = vld [vmem:[%s14828_s1 + $0x288] ss:$16 sps:$4 sm:$0xff]   ;;  %v9864_v24 = vld [vmem:[%s14828_s1 + $0x2a4] ss:$16 sps:$4 sm:$0xff]  }
  0x1e   :  { %v9867_v25 = vld [vmem:[%s14828_s1 + $0x2ac] ss:$16 sps:$4 sm:$0xff]   ;;  %v55_v26 = vld [vmem:[%s14827_s0 + $0x100] sm:$0xff]  ;;  %v9883_v46 = vld [vmem:[%s14828_s1 + $0x308] ss:$16 sps:$4 sm:$0xff]  }
  0x1f   :  { %6566 = vmatpush1.bf16.msra.mxu0 %v9782_v30  ;;  %7414 = vmatpush1.bf16.msra.mxu1 %v9783_v31  ;;  %v71_v27 = vld [vmem:[%s14827_s0 + $0x180] sm:$0xff]  ;;  %v9865_v30 = vld [vmem:[%s14828_s1 + $0x2a8] ss:$16 sps:$4 sm:$0xff]  }
  0x20   :  { %6567 = vmatprep.subr.bf16.mxu0 %v9784_v32  ;;  %7415 = vmatprep.subr.bf16.mxu1 %v9786_v33  ;;  %v8435_v28 = vcombine.high %v55_v26, %v71_v27  ;;  %v9862_v29 = vld [vmem:[%s14828_s1 + $0x2a0] ss:$16 sps:$4 sm:$0xff]   ;;  %v8434_v31 = vcombine.low %v55_v26, %v71_v27  ;;  %v9870_v32 = vld [vmem:[%s14828_s1 + $0x2c4] ss:$16 sps:$4 sm:$0xff]   ;;  %v9873_v33 = vld [vmem:[%s14828_s1 + $0x2cc] ss:$16 sps:$4 sm:$0xff]  }
  0x21   :  { %v9888_v47 = vld [vmem:[%s14828_s1 + $0x324] ss:$16 sps:$4 sm:$0xff]   ;;  %v9889_v50 = vld [vmem:[%s14828_s1 + $0x328] ss:$16 sps:$4 sm:$0xff]  }
  0x22   :  { %v11786_v27 = vld [vmem:[%s14827_s0 + $0x90] sm:$0xff] }
  0x23   :  { %6568 = vmatpush1.bf16.msra.mxu0 %v9788_v34  ;;  %7416 = vmatpush1.bf16.msra.mxu1 %v9789_v35  ;;  %v11617_v34 = vld [vmem:[%s14827_s0 + $0x8] sm:$0xff] }
  0x24   :  { %6569 = vmatprep.subr.bf16.mxu0 %v9790_v36  ;;  %7417 = vmatprep.subr.bf16.mxu1 %v9792_v37  ;;  %v11622_v35 = vld [vmem:[%s14827_s0 + $0x88] sm:$0xff]  ;;  %v9868_v36 = vld [vmem:[%s14828_s1 + $0x2c0] ss:$16 sps:$4 sm:$0xff]  }
  0x25   :  { %v9871_v37 = vld [vmem:[%s14828_s1 + $0x2c8] ss:$16 sps:$4 sm:$0xff]  }
  0x27   :  { %6570 = vmatpush1.bf16.msra.mxu0 %v9794_v38  ;;  %7418 = vmatpush1.bf16.msra.mxu1 %v9795_v39  ;;  %v8405_v38 = vcombine.high %v11617_v34, %v11622_v35  ;;  %v9876_v39 = vld [vmem:[%s14828_s1 + $0x2e4] ss:$16 sps:$4 sm:$0xff]  }
  0x28   :  { %6571 = vmatprep.subr.bf16.mxu0 %v9796_v40  ;;  %7419 = vmatprep.subr.bf16.mxu1 %v9798_v41  ;;  %v9879_v40 = vld [vmem:[%s14828_s1 + $0x2ec] ss:$16 sps:$4 sm:$0xff]   ;;  %v9874_v41 = vld [vmem:[%s14828_s1 + $0x2e0] ss:$16 sps:$4 sm:$0xff]  }
  0x2b   :  { %6572 = vmatpush1.bf16.msra.mxu0 %v9800_v42  ;;  %7420 = vmatpush1.bf16.msra.mxu1 %v9801_v43  ;;  %v9877_v42 = vld [vmem:[%s14828_s1 + $0x2e8] ss:$16 sps:$4 sm:$0xff]   ;;  %v9882_v43 = vld [vmem:[%s14828_s1 + $0x304] ss:$16 sps:$4 sm:$0xff]  }
  0x2c   :  { %6573 = vmatprep.subr.bf16.mxu0 %v9802_v44  ;;  %7421 = vmatprep.subr.bf16.mxu1 %v9804_v45  ;;  %v9885_v44 = vld [vmem:[%s14828_s1 + $0x30c] ss:$16 sps:$4 sm:$0xff]   ;;  %v9880_v45 = vld [vmem:[%s14828_s1 + $0x300] ss:$16 sps:$4 sm:$0xff]  }
  0x2f   :  { %6574 = vmatpush1.bf16.msra.mxu0 %v9806_v48  ;;  %7422 = vmatpush1.bf16.msra.mxu1 %v9807_v49  ;;  %v9891_v48 = vld [vmem:[%s14828_s1 + $0x32c] ss:$16 sps:$4 sm:$0xff]   ;;  %v9886_v49 = vld [vmem:[%s14828_s1 + $0x320] ss:$16 sps:$4 sm:$0xff]  }
  0x30   :  { %6575 = vmatprep.subr.bf16.mxu0 %v9808_v51  ;;  %7423 = vmatprep.subr.bf16.mxu1 %v9810_v52  ;;  %v9894_v51 = vld [vmem:[%s14828_s1 + $0x344] ss:$16 sps:$4 sm:$0xff]   ;;  %v9897_v52 = vld [vmem:[%s14828_s1 + $0x34c] ss:$16 sps:$4 sm:$0xff]  }
  0x33   :  { %6576 = vmatpush1.bf16.msra.mxu0 %v9812_v53  ;;  %7424 = vmatpush1.bf16.msra.mxu1 %v9813_v54  ;;  %v9892_v53 = vld [vmem:[%s14828_s1 + $0x340] ss:$16 sps:$4 sm:$0xff]   ;;  %v9895_v54 = vld [vmem:[%s14828_s1 + $0x348] ss:$16 sps:$4 sm:$0xff]  }
  0x34   :  { %6577 = vmatprep.subr.bf16.mxu0 %v9814_v55  ;;  %7425 = vmatprep.subr.bf16.mxu1 %v9816_v56  ;;  %v9900_v55 = vld [vmem:[%s14828_s1 + $0x364] ss:$16 sps:$4 sm:$0xff]   ;;  %v9903_v56 = vld [vmem:[%s14828_s1 + $0x36c] ss:$16 sps:$4 sm:$0xff]  }
  0x37   :  { %6578 = vmatpush1.bf16.msra.mxu0 %v9818_v57  ;;  %7426 = vmatpush1.bf16.msra.mxu1 %v9819_v58  ;;  %v9898_v57 = vld [vmem:[%s14828_s1 + $0x360] ss:$16 sps:$4 sm:$0xff]   ;;  %v9901_v58 = vld [vmem:[%s14828_s1 + $0x368] ss:$16 sps:$4 sm:$0xff]  }
  0x38   :  { %6579 = vmatprep.subr.bf16.mxu0 %v9820_v59  ;;  %7427 = vmatprep.subr.bf16.mxu1 %v9822_v60  ;;  %v9906_v59 = vld [vmem:[%s14828_s1 + $0x384] ss:$16 sps:$4 sm:$0xff]   ;;  %v9909_v60 = vld [vmem:[%s14828_s1 + $0x38c] ss:$16 sps:$4 sm:$0xff]  }
  0x3b   :  { %6580 = vmatpush1.bf16.msra.mxu0 %v9824_v61  ;;  %7428 = vmatpush1.bf16.msra.mxu1 %v9825_v62  ;;  %v9904_v61 = vld [vmem:[%s14828_s1 + $0x380] ss:$16 sps:$4 sm:$0xff]   ;;  %v9907_v62 = vld [vmem:[%s14828_s1 + $0x388] ss:$16 sps:$4 sm:$0xff]  }
  0x3c   :  { %6581 = vmatprep.subr.bf16.mxu0 %v9826_v63  ;;  %7429 = vmatprep.subr.bf16.mxu1 %v9828_v0  ;;  %v9912_v63 = vld [vmem:[%s14828_s1 + $0x3a4] ss:$16 sps:$4 sm:$0xff]   ;;  %v9915_v0 = vld [vmem:[%s14828_s1 + $0x3ac] ss:$16 sps:$4 sm:$0xff]  }
  0x3f   :  { %6582 = vmatpush1.bf16.msra.mxu0 %v9830_v1  ;;  %7430 = vmatpush1.bf16.msra.mxu1 %v9831_v2  ;;  %v9910_v1 = vld [vmem:[%s14828_s1 + $0x3a0] ss:$16 sps:$4 sm:$0xff]   ;;  %v9913_v2 = vld [vmem:[%s14828_s1 + $0x3a8] ss:$16 sps:$4 sm:$0xff]  }
  0x40   :  { %6604 = vmatprep.subr.bf16.mxu0 %v9834_v3  ;;  %7452 = vmatprep.subr.bf16.mxu1 %v9837_v4  ;;  %v9918_v3 = vld [vmem:[%s14828_s1 + $0x3c4] ss:$16 sps:$4 sm:$0xff]   ;;  %v9921_v4 = vld [vmem:[%s14828_s1 + $0x3cc] ss:$16 sps:$4 sm:$0xff]  }
  0x42   :  { %6584 = vmatmul.mubr.bf16.vlgmr.msra.gmra.mrb[0].mxu0 %v8402_v5  ;;  %7432 = vmatmul.mubr.bf16.vlgmr.msra.gmra.mrb[0].mxu1 %v8402_v5  ;;  %v9916_v5 = vld [vmem:[%s14828_s1 + $0x3c0] ss:$16 sps:$4 sm:$0xff]  }
  0x43   :  { %6605 = vmatpush1.bf16.msra.mxu0 %v9832_v6  ;;  %7453 = vmatpush1.bf16.msra.mxu1 %v9835_v7  ;;  %v9919_v6 = vld [vmem:[%s14828_s1 + $0x3c8] ss:$16 sps:$4 sm:$0xff]   ;;  %v9924_v7 = vld [vmem:[%s14828_s1 + $0x3e4] ss:$16 sps:$4 sm:$0xff]  }
  0x44   :  { %6606 = vmatprep.subr.bf16.mxu0 %v9840_v8  ;;  %7454 = vmatprep.subr.bf16.mxu1 %v9843_v9  ;;  %v9927_v8 = vld [vmem:[%s14828_s1 + $0x3ec] ss:$16 sps:$4 sm:$0xff]   ;;  %v9922_v9 = vld [vmem:[%s14828_s1 + $0x3e0] ss:$16 sps:$4 sm:$0xff]  }
  0x45   :  { %6593 = vmatprep.mubr.bf16.mxu0 %v8435_v28  ;;  %7441 = vmatprep.mubr.bf16.mxu1 %v8435_v28  ;;  %v9940_v28 = vld [vmem:[%s14828_s1 + $0x440] ss:$16 sps:$4 sm:$0xff]  }
  0x47   :  { %6607 = vmatpush1.bf16.msra.mxu0 %v9838_v10  ;;  %7455 = vmatpush1.bf16.msra.mxu1 %v9841_v11  ;;  %v9925_v10 = vld [vmem:[%s14828_s1 + $0x3e8] ss:$16 sps:$4 sm:$0xff]   ;;  %v9930_v11 = vld [vmem:[%s14828_s1 + $0x404] ss:$16 sps:$4 sm:$0xff]  }
  0x48   :  { %6608 = vmatprep.subr.bf16.mxu0 %v9846_v12  ;;  %7456 = vmatprep.subr.bf16.mxu1 %v9849_v13  ;;  %v9933_v12 = vld [vmem:[%s14828_s1 + $0x40c] ss:$16 sps:$4 sm:$0xff]   ;;  %v9928_v13 = vld [vmem:[%s14828_s1 + $0x400] ss:$16 sps:$4 sm:$0xff]  }
  0x4a   :  { %6594 = vmatmul.mubr.bf16.gmra.mrb[4].mxu0 %v8434_v31  ;;  %7442 = vmatmul.mubr.bf16.gmra.mrb[4].mxu1 %v8434_v31  ;;  %v9951_v31 = vld [vmem:[%s14828_s1 + $0x46c] ss:$16 sps:$4 sm:$0xff]  }
  0x4b   :  { %6609 = vmatpush1.bf16.msra.mxu0 %v9844_v14  ;;  %7457 = vmatpush1.bf16.msra.mxu1 %v9847_v15  ;;  %v9931_v14 = vld [vmem:[%s14828_s1 + $0x408] ss:$16 sps:$4 sm:$0xff]   ;;  %v8404_v15 = vcombine.low %v11617_v34, %v11622_v35  ;;  %v9954_v35 = vld [vmem:[%s14828_s1 + $0x484] ss:$16 sps:$4 sm:$0xff]  }
  0x4c   :  { %6610 = vmatprep.subr.bf16.mxu0 %v9852_v16  ;;  %7458 = vmatprep.subr.bf16.mxu1 %v9855_v17  ;;  %v56_v16 = vld [vmem:[%s14827_s0 + $0x108] sm:$0xff] }
  0x4d   :  { %6636 = vmatprep.mubr.bf16.mxu0 %v8405_v38  ;;  %7484 = vmatprep.mubr.bf16.mxu1 %v8405_v38  ;;  %v72_v17 = vld [vmem:[%s14827_s0 + $0x188] sm:$0xff] }
  0x4e   :  { %v8436_v26 = vcombine.low %v56_v16, %v72_v17  ;;  %v9949_v34 = vld [vmem:[%s14828_s1 + $0x468] ss:$16 sps:$4 sm:$0xff]  }
  0x4f   :  { %6611 = vmatpush1.bf16.msra.mxu0 %v9850_v18  ;;  %7459 = vmatpush1.bf16.msra.mxu1 %v9853_v19  ;;  %v9936_v18 = vld [vmem:[%s14828_s1 + $0x424] ss:$16 sps:$4 sm:$0xff]   ;;  %v9939_v19 = vld [vmem:[%s14828_s1 + $0x42c] ss:$16 sps:$4 sm:$0xff]   ;;  %v9955_v38 = vld [vmem:[%s14828_s1 + $0x488] ss:$16 sps:$4 sm:$0xff]  }
  0x50   :  { %6612 = vmatprep.subr.bf16.mxu0 %v9858_v20  ;;  %7460 = vmatprep.subr.bf16.mxu1 %v9861_v21  ;;  %v8437_v20 = vcombine.high %v56_v16, %v72_v17  ;;  %v9934_v21 = vld [vmem:[%s14828_s1 + $0x420] ss:$16 sps:$4 sm:$0xff]   ;;  %v10023_v16 = vld [vmem:[%s14828_s1 + $0x5ec] ss:$16 sps:$4 sm:$0xff]  }
  0x51   :  { %v10018_v17 = vld [vmem:[%s14828_s1 + $0x5e0] ss:$16 sps:$4 sm:$0xff]  }
  0x53   :  { %6613 = vmatpush1.bf16.msra.mxu0 %v9856_v22  ;;  %7461 = vmatpush1.bf16.msra.mxu1 %v9859_v23  ;;  %v9937_v22 = vld [vmem:[%s14828_s1 + $0x428] ss:$16 sps:$4 sm:$0xff]   ;;  %v9942_v23 = vld [vmem:[%s14828_s1 + $0x444] ss:$16 sps:$4 sm:$0xff]  }
  0x54   :  { %6614 = vmatprep.subr.bf16.mxu0 %v9864_v24  ;;  %7462 = vmatprep.subr.bf16.mxu1 %v9867_v25  ;;  %v9945_v24 = vld [vmem:[%s14828_s1 + $0x44c] ss:$16 sps:$4 sm:$0xff]   ;;  %v11781_v25 = vld [vmem:[%s14827_s0 + $0x10] sm:$0xff] }
  0x57   :  { %6615 = vmatpush1.bf16.msra.mxu0 %v9862_v29  ;;  %7463 = vmatpush1.bf16.msra.mxu1 %v9865_v30  ;;  %v9943_v29 = vld [vmem:[%s14828_s1 + $0x448] ss:$16 sps:$4 sm:$0xff]   ;;  %v9948_v30 = vld [vmem:[%s14828_s1 + $0x464] ss:$16 sps:$4 sm:$0xff]  }
  0x58   :  { %6616 = vmatprep.subr.bf16.mxu0 %v9870_v32  ;;  %7464 = vmatprep.subr.bf16.mxu1 %v9873_v33  ;;  %v8407_v32 = vcombine.high %v11781_v25, %v11786_v27  ;;  %v9946_v33 = vld [vmem:[%s14828_s1 + $0x460] ss:$16 sps:$4 sm:$0xff]  }
  0x5b   :  { %6617 = vmatpush1.bf16.msra.mxu0 %v9868_v36  ;;  %7465 = vmatpush1.bf16.msra.mxu1 %v9871_v37  ;;  %v9957_v36 = vld [vmem:[%s14828_s1 + $0x48c] ss:$16 sps:$4 sm:$0xff]   ;;  %v9952_v37 = vld [vmem:[%s14828_s1 + $0x480] ss:$16 sps:$4 sm:$0xff]  }
  0x5c   :  { %6618 = vmatprep.subr.bf16.mxu0 %v9876_v39  ;;  %7466 = vmatprep.subr.bf16.mxu1 %v9879_v40  ;;  %v9960_v39 = vld [vmem:[%s14828_s1 + $0x4a4] ss:$16 sps:$4 sm:$0xff]   ;;  %v9963_v40 = vld [vmem:[%s14828_s1 + $0x4ac] ss:$16 sps:$4 sm:$0xff]  }
  0x5f   :  { %6619 = vmatpush1.bf16.msra.mxu0 %v9874_v41  ;;  %7467 = vmatpush1.bf16.msra.mxu1 %v9877_v42  ;;  %v9958_v41 = vld [vmem:[%s14828_s1 + $0x4a0] ss:$16 sps:$4 sm:$0xff]   ;;  %v9961_v42 = vld [vmem:[%s14828_s1 + $0x4a8] ss:$16 sps:$4 sm:$0xff]  }
  0x60   :  { %6620 = vmatprep.subr.bf16.mxu0 %v9882_v43  ;;  %7468 = vmatprep.subr.bf16.mxu1 %v9885_v44  ;;  %v9966_v43 = vld [vmem:[%s14828_s1 + $0x4c4] ss:$16 sps:$4 sm:$0xff]   ;;  %v9969_v44 = vld [vmem:[%s14828_s1 + $0x4cc] ss:$16 sps:$4 sm:$0xff]  }
  0x63   :  { %6621 = vmatpush1.bf16.msra.mxu0 %v9880_v45  ;;  %7469 = vmatpush1.bf16.msra.mxu1 %v9883_v46  ;;  %v9964_v45 = vld [vmem:[%s14828_s1 + $0x4c0] ss:$16 sps:$4 sm:$0xff]   ;;  %v9967_v46 = vld [vmem:[%s14828_s1 + $0x4c8] ss:$16 sps:$4 sm:$0xff]  }
  0x64   :  { %6622 = vmatprep.subr.bf16.mxu0 %v9888_v47  ;;  %7470 = vmatprep.subr.bf16.mxu1 %v9891_v48  ;;  %v9972_v47 = vld [vmem:[%s14828_s1 + $0x4e4] ss:$16 sps:$4 sm:$0xff]   ;;  %v9975_v48 = vld [vmem:[%s14828_s1 + $0x4ec] ss:$16 sps:$4 sm:$0xff]  }
  0x67   :  { %6623 = vmatpush1.bf16.msra.mxu0 %v9886_v49  ;;  %7471 = vmatpush1.bf16.msra.mxu1 %v9889_v50  ;;  %v9970_v49 = vld [vmem:[%s14828_s1 + $0x4e0] ss:$16 sps:$4 sm:$0xff]   ;;  %v9973_v50 = vld [vmem:[%s14828_s1 + $0x4e8] ss:$16 sps:$4 sm:$0xff]  }
  0x68   :  { %6624 = vmatprep.subr.bf16.mxu0 %v9894_v51  ;;  %7472 = vmatprep.subr.bf16.mxu1 %v9897_v52  ;;  %v9978_v51 = vld [vmem:[%s14828_s1 + $0x504] ss:$16 sps:$4 sm:$0xff]   ;;  %v9981_v52 = vld [vmem:[%s14828_s1 + $0x50c] ss:$16 sps:$4 sm:$0xff]  }
  0x6b   :  { %6625 = vmatpush1.bf16.msra.mxu0 %v9892_v53  ;;  %7473 = vmatpush1.bf16.msra.mxu1 %v9895_v54  ;;  %v9976_v53 = vld [vmem:[%s14828_s1 + $0x500] ss:$16 sps:$4 sm:$0xff]   ;;  %v9979_v54 = vld [vmem:[%s14828_s1 + $0x508] ss:$16 sps:$4 sm:$0xff]  }
  0x6c   :  { %6626 = vmatprep.subr.bf16.mxu0 %v9900_v55  ;;  %7474 = vmatprep.subr.bf16.mxu1 %v9903_v56  ;;  %v9984_v55 = vld [vmem:[%s14828_s1 + $0x524] ss:$16 sps:$4 sm:$0xff]   ;;  %v9987_v56 = vld [vmem:[%s14828_s1 + $0x52c] ss:$16 sps:$4 sm:$0xff]  }
  0x6f   :  { %6627 = vmatpush1.bf16.msra.mxu0 %v9898_v57  ;;  %7475 = vmatpush1.bf16.msra.mxu1 %v9901_v58  ;;  %v9982_v57 = vld [vmem:[%s14828_s1 + $0x520] ss:$16 sps:$4 sm:$0xff]   ;;  %v9985_v58 = vld [vmem:[%s14828_s1 + $0x528] ss:$16 sps:$4 sm:$0xff]  }
  0x70   :  { %6628 = vmatprep.subr.bf16.mxu0 %v9906_v59  ;;  %7476 = vmatprep.subr.bf16.mxu1 %v9909_v60  ;;  %v9990_v59 = vld [vmem:[%s14828_s1 + $0x544] ss:$16 sps:$4 sm:$0xff]   ;;  %v9993_v60 = vld [vmem:[%s14828_s1 + $0x54c] ss:$16 sps:$4 sm:$0xff]  }
  0x73   :  { %6629 = vmatpush1.bf16.msra.mxu0 %v9904_v61  ;;  %7477 = vmatpush1.bf16.msra.mxu1 %v9907_v62  ;;  %v9988_v61 = vld [vmem:[%s14828_s1 + $0x540] ss:$16 sps:$4 sm:$0xff]   ;;  %v9991_v62 = vld [vmem:[%s14828_s1 + $0x548] ss:$16 sps:$4 sm:$0xff]  }
  0x74   :  { %6630 = vmatprep.subr.bf16.mxu0 %v9912_v63  ;;  %7478 = vmatprep.subr.bf16.mxu1 %v9915_v0  ;;  %v9996_v63 = vld [vmem:[%s14828_s1 + $0x564] ss:$16 sps:$4 sm:$0xff]   ;;  %v9999_v0 = vld [vmem:[%s14828_s1 + $0x56c] ss:$16 sps:$4 sm:$0xff]  }
  0x77   :  { %6631 = vmatpush1.bf16.msra.mxu0 %v9910_v1  ;;  %7479 = vmatpush1.bf16.msra.mxu1 %v9913_v2  ;;  %v9994_v1 = vld [vmem:[%s14828_s1 + $0x560] ss:$16 sps:$4 sm:$0xff]   ;;  %v9997_v2 = vld [vmem:[%s14828_s1 + $0x568] ss:$16 sps:$4 sm:$0xff]  }
  0x78   :  { %6632 = vmatprep.subr.bf16.mxu0 %v9918_v3  ;;  %7480 = vmatprep.subr.bf16.mxu1 %v9921_v4  ;;  %v10002_v3 = vld [vmem:[%s14828_s1 + $0x584] ss:$16 sps:$4 sm:$0xff]   ;;  %v10005_v4 = vld [vmem:[%s14828_s1 + $0x58c] ss:$16 sps:$4 sm:$0xff]  }
  0x7b   :  { %6633 = vmatpush1.bf16.msra.mxu0 %v9916_v5  ;;  %7481 = vmatpush1.bf16.msra.mxu1 %v9919_v6  ;;  %v10000_v5 = vld [vmem:[%s14828_s1 + $0x580] ss:$16 sps:$4 sm:$0xff]   ;;  %v10003_v6 = vld [vmem:[%s14828_s1 + $0x588] ss:$16 sps:$4 sm:$0xff]  }
  0x7c   :  { %6634 = vmatprep.subr.bf16.mxu0 %v9924_v7  ;;  %7482 = vmatprep.subr.bf16.mxu1 %v9927_v8  ;;  %v10008_v7 = vld [vmem:[%s14828_s1 + $0x5a4] ss:$16 sps:$4 sm:$0xff]   ;;  %v10011_v8 = vld [vmem:[%s14828_s1 + $0x5ac] ss:$16 sps:$4 sm:$0xff]  }
  0x7f   :  { %6635 = vmatpush1.bf16.msra.mxu0 %v9922_v9  ;;  %7483 = vmatpush1.bf16.msra.mxu1 %v9925_v10  ;;  %v10006_v9 = vld [vmem:[%s14828_s1 + $0x5a0] ss:$16 sps:$4 sm:$0xff]   ;;  %v10009_v10 = vld [vmem:[%s14828_s1 + $0x5a8] ss:$16 sps:$4 sm:$0xff]  }
  0x80   :  { %6657 = vmatprep.subr.bf16.mxu0 %v9930_v11  ;;  %7505 = vmatprep.subr.bf16.mxu1 %v9933_v12  ;;  %v10014_v11 = vld [vmem:[%s14828_s1 + $0x5c4] ss:$16 sps:$4 sm:$0xff]   ;;  %v10017_v12 = vld [vmem:[%s14828_s1 + $0x5cc] ss:$16 sps:$4 sm:$0xff]  }
  0x82   :  { %6637 = vmatmul.mubr.bf16.vlgmr.msra.gmra.mrb[0].mxu0 %v8404_v15  ;;  %7485 = vmatmul.mubr.bf16.vlgmr.msra.gmra.mrb[0].mxu1 %v8404_v15  ;;  %v10020_v15 = vld [vmem:[%s14828_s1 + $0x5e4] ss:$16 sps:$4 sm:$0xff]  }
  0x83   :  { %6658 = vmatpush1.bf16.msra.mxu0 %v9928_v13  ;;  %7506 = vmatpush1.bf16.msra.mxu1 %v9931_v14  ;;  %v10012_v13 = vld [vmem:[%s14828_s1 + $0x5c0] ss:$16 sps:$4 sm:$0xff]   ;;  %v10015_v14 = vld [vmem:[%s14828_s1 + $0x5c8] ss:$16 sps:$4 sm:$0xff]  }
  0x84   :  { %6659 = vmatprep.subr.bf16.mxu0 %v9936_v18  ;;  %7507 = vmatprep.subr.bf16.mxu1 %v9939_v19  ;;  %v10021_v18 = vld [vmem:[%s14828_s1 + $0x5e8] ss:$16 sps:$4 sm:$0xff]   ;;  %v10026_v19 = vld [vmem:[%s14828_s1 + $0x604] ss:$16 sps:$4 sm:$0xff]  }
  0x85   :  { %6646 = vmatprep.mubr.bf16.mxu0 %v8437_v20  ;;  %7494 = vmatprep.mubr.bf16.mxu1 %v8437_v20  ;;  %v10029_v20 = vld [vmem:[%s14828_s1 + $0x60c] ss:$16 sps:$4 sm:$0xff]  }
  0x87   :  { %6660 = vmatpush1.bf16.msra.mxu0 %v9934_v21  ;;  %7508 = vmatpush1.bf16.msra.mxu1 %v9937_v22  ;;  %v57_v21 = vld [vmem:[%s14827_s0 + $0x110] sm:$0xff]  ;;  %v8406_v22 = vcombine.low %v11781_v25, %v11786_v27  ;;  %v10035_v27 = vld [vmem:[%s14828_s1 + $0x62c] ss:$16 sps:$4 sm:$0xff]  }
  0x88   :  { %6661 = vmatprep.subr.bf16.mxu0 %v9942_v23  ;;  %7509 = vmatprep.subr.bf16.mxu1 %v9945_v24  ;;  %v73_v23 = vld [vmem:[%s14827_s0 + $0x190] sm:$0xff] }
  0x89   :  { %v10024_v24 = vld [vmem:[%s14828_s1 + $0x600] ss:$16 sps:$4 sm:$0xff]   ;;  %v10032_v25 = vld [vmem:[%s14828_s1 + $0x624] ss:$16 sps:$4 sm:$0xff]  }
  0x8a   :  { %6647 = vmatmul.mubr.bf16.gmra.mrb[4].mxu0 %v8436_v26  ;;  %7495 = vmatmul.mubr.bf16.gmra.mrb[4].mxu1 %v8436_v26  ;;  %v10027_v26 = vld [vmem:[%s14828_s1 + $0x608] ss:$16 sps:$4 sm:$0xff]  }
  0x8b   :  { %6662 = vmatpush1.bf16.msra.mxu0 %v9940_v28  ;;  %7510 = vmatpush1.bf16.msra.mxu1 %v9943_v29  ;;  %v8439_v28 = vcombine.high %v57_v21, %v73_v23  ;;  %v10030_v29 = vld [vmem:[%s14828_s1 + $0x620] ss:$16 sps:$4 sm:$0xff]  }
  0x8c   :  { %6663 = vmatprep.subr.bf16.mxu0 %v9948_v30  ;;  %7511 = vmatprep.subr.bf16.mxu1 %v9951_v31  ;;  %v10033_v30 = vld [vmem:[%s14828_s1 + $0x628] ss:$16 sps:$4 sm:$0xff]   ;;  %v10038_v31 = vld [vmem:[%s14828_s1 + $0x644] ss:$16 sps:$4 sm:$0xff]  }
  0x8d   :  { %6689 = vmatprep.mubr.bf16.mxu0 %v8407_v32  ;;  %7537 = vmatprep.mubr.bf16.mxu1 %v8407_v32  ;;  %v10041_v32 = vld [vmem:[%s14828_s1 + $0x64c] ss:$16 sps:$4 sm:$0xff]  }
  0x8f   :  { %6664 = vmatpush1.bf16.msra.mxu0 %v9946_v33  ;;  %7512 = vmatpush1.bf16.msra.mxu1 %v9949_v34  ;;  %v11993_v33 = vld [vmem:[%s14827_s0 + $0x18] sm:$0xff]  ;;  %v8438_v34 = vcombine.low %v57_v21, %v73_v23  ;;  %v10108_v21 = vld [vmem:[%s14828_s1 + $0x7c0] ss:$16 sps:$4 sm:$0xff]   ;;  %v10116_v23 = vld [vmem:[%s14828_s1 + $0x7e4] ss:$16 sps:$4 sm:$0xff]  }
  0x90   :  { %6665 = vmatprep.subr.bf16.mxu0 %v9954_v35  ;;  %7513 = vmatprep.subr.bf16.mxu1 %v9957_v36  ;;  %v11998_v35 = vld [vmem:[%s14827_s0 + $0x98] sm:$0xff]  ;;  %v10036_v36 = vld [vmem:[%s14828_s1 + $0x640] ss:$16 sps:$4 sm:$0xff]  }
  0x93   :  { %6666 = vmatpush1.bf16.msra.mxu0 %v9952_v37  ;;  %7514 = vmatpush1.bf16.msra.mxu1 %v9955_v38  ;;  %v10039_v37 = vld [vmem:[%s14828_s1 + $0x648] ss:$16 sps:$4 sm:$0xff]   ;;  %v10044_v38 = vld [vmem:[%s14828_s1 + $0x664] ss:$16 sps:$4 sm:$0xff]  }
  0x94   :  { %6667 = vmatprep.subr.bf16.mxu0 %v9960_v39  ;;  %7515 = vmatprep.subr.bf16.mxu1 %v9963_v40  ;;  %v10047_v39 = vld [vmem:[%s14828_s1 + $0x66c] ss:$16 sps:$4 sm:$0xff]   ;;  %v8409_v40 = vcombine.high %v11993_v33, %v11998_v35 }
  0x97   :  { %6668 = vmatpush1.bf16.msra.mxu0 %v9958_v41  ;;  %7516 = vmatpush1.bf16.msra.mxu1 %v9961_v42  ;;  %v10042_v41 = vld [vmem:[%s14828_s1 + $0x660] ss:$16 sps:$4 sm:$0xff]   ;;  %v10045_v42 = vld [vmem:[%s14828_s1 + $0x668] ss:$16 sps:$4 sm:$0xff]  }
  0x98   :  { %6669 = vmatprep.subr.bf16.mxu0 %v9966_v43  ;;  %7517 = vmatprep.subr.bf16.mxu1 %v9969_v44  ;;  %v10050_v43 = vld [vmem:[%s14828_s1 + $0x684] ss:$16 sps:$4 sm:$0xff]   ;;  %v10053_v44 = vld [vmem:[%s14828_s1 + $0x68c] ss:$16 sps:$4 sm:$0xff]  }
  0x9b   :  { %6670 = vmatpush1.bf16.msra.mxu0 %v9964_v45  ;;  %7518 = vmatpush1.bf16.msra.mxu1 %v9967_v46  ;;  %v10048_v45 = vld [vmem:[%s14828_s1 + $0x680] ss:$16 sps:$4 sm:$0xff]   ;;  %v10051_v46 = vld [vmem:[%s14828_s1 + $0x688] ss:$16 sps:$4 sm:$0xff]  }
  0x9c   :  { %6671 = vmatprep.subr.bf16.mxu0 %v9972_v47  ;;  %7519 = vmatprep.subr.bf16.mxu1 %v9975_v48  ;;  %v10056_v47 = vld [vmem:[%s14828_s1 + $0x6a4] ss:$16 sps:$4 sm:$0xff]   ;;  %v10059_v48 = vld [vmem:[%s14828_s1 + $0x6ac] ss:$16 sps:$4 sm:$0xff]  }
  0x9f   :  { %6672 = vmatpush1.bf16.msra.mxu0 %v9970_v49  ;;  %7520 = vmatpush1.bf16.msra.mxu1 %v9973_v50  ;;  %v10054_v49 = vld [vmem:[%s14828_s1 + $0x6a0] ss:$16 sps:$4 sm:$0xff]   ;;  %v10057_v50 = vld [vmem:[%s14828_s1 + $0x6a8] ss:$16 sps:$4 sm:$0xff]  }
  0xa0   :  { %6673 = vmatprep.subr.bf16.mxu0 %v9978_v51  ;;  %7521 = vmatprep.subr.bf16.mxu1 %v9981_v52  ;;  %v10062_v51 = vld [vmem:[%s14828_s1 + $0x6c4] ss:$16 sps:$4 sm:$0xff]   ;;  %v10065_v52 = vld [vmem:[%s14828_s1 + $0x6cc] ss:$16 sps:$4 sm:$0xff]  }
  0xa3   :  { %6674 = vmatpush1.bf16.msra.mxu0 %v9976_v53  ;;  %7522 = vmatpush1.bf16.msra.mxu1 %v9979_v54  ;;  %v10060_v53 = vld [vmem:[%s14828_s1 + $0x6c0] ss:$16 sps:$4 sm:$0xff]   ;;  %v10063_v54 = vld [vmem:[%s14828_s1 + $0x6c8] ss:$16 sps:$4 sm:$0xff]  }
  0xa4   :  { %6675 = vmatprep.subr.bf16.mxu0 %v9984_v55  ;;  %7523 = vmatprep.subr.bf16.mxu1 %v9987_v56  ;;  %v10068_v55 = vld [vmem:[%s14828_s1 + $0x6e4] ss:$16 sps:$4 sm:$0xff]   ;;  %v10071_v56 = vld [vmem:[%s14828_s1 + $0x6ec] ss:$16 sps:$4 sm:$0xff]  }
  0xa7   :  { %6676 = vmatpush1.bf16.msra.mxu0 %v9982_v57  ;;  %7524 = vmatpush1.bf16.msra.mxu1 %v9985_v58  ;;  %v10066_v57 = vld [vmem:[%s14828_s1 + $0x6e0] ss:$16 sps:$4 sm:$0xff]   ;;  %v10069_v58 = vld [vmem:[%s14828_s1 + $0x6e8] ss:$16 sps:$4 sm:$0xff]  }
  0xa8   :  { %6677 = vmatprep.subr.bf16.mxu0 %v9990_v59  ;;  %7525 = vmatprep.subr.bf16.mxu1 %v9993_v60  ;;  %v10074_v59 = vld [vmem:[%s14828_s1 + $0x704] ss:$16 sps:$4 sm:$0xff]   ;;  %v10077_v60 = vld [vmem:[%s14828_s1 + $0x70c] ss:$16 sps:$4 sm:$0xff]  }
  0xab   :  { %6678 = vmatpush1.bf16.msra.mxu0 %v9988_v61  ;;  %7526 = vmatpush1.bf16.msra.mxu1 %v9991_v62  ;;  %v10072_v61 = vld [vmem:[%s14828_s1 + $0x700] ss:$16 sps:$4 sm:$0xff]   ;;  %v10075_v62 = vld [vmem:[%s14828_s1 + $0x708] ss:$16 sps:$4 sm:$0xff]  }
  0xac   :  { %6679 = vmatprep.subr.bf16.mxu0 %v9996_v63  ;;  %7527 = vmatprep.subr.bf16.mxu1 %v9999_v0  ;;  %v10080_v63 = vld [vmem:[%s14828_s1 + $0x724] ss:$16 sps:$4 sm:$0xff]   ;;  %v10083_v0 = vld [vmem:[%s14828_s1 + $0x72c] ss:$16 sps:$4 sm:$0xff]  }
  0xaf   :  { %6680 = vmatpush1.bf16.msra.mxu0 %v9994_v1  ;;  %7528 = vmatpush1.bf16.msra.mxu1 %v9997_v2  ;;  %v10078_v1 = vld [vmem:[%s14828_s1 + $0x720] ss:$16 sps:$4 sm:$0xff]   ;;  %v10081_v2 = vld [vmem:[%s14828_s1 + $0x728] ss:$16 sps:$4 sm:$0xff]  }
  0xb0   :  { %6681 = vmatprep.subr.bf16.mxu0 %v10002_v3  ;;  %7529 = vmatprep.subr.bf16.mxu1 %v10005_v4  ;;  %v10086_v3 = vld [vmem:[%s14828_s1 + $0x744] ss:$16 sps:$4 sm:$0xff]   ;;  %v10089_v4 = vld [vmem:[%s14828_s1 + $0x74c] ss:$16 sps:$4 sm:$0xff]  }
  0xb3   :  { %6682 = vmatpush1.bf16.msra.mxu0 %v10000_v5  ;;  %7530 = vmatpush1.bf16.msra.mxu1 %v10003_v6  ;;  %v10084_v5 = vld [vmem:[%s14828_s1 + $0x740] ss:$16 sps:$4 sm:$0xff]   ;;  %v10087_v6 = vld [vmem:[%s14828_s1 + $0x748] ss:$16 sps:$4 sm:$0xff]  }
  0xb4   :  { %6683 = vmatprep.subr.bf16.mxu0 %v10008_v7  ;;  %7531 = vmatprep.subr.bf16.mxu1 %v10011_v8  ;;  %v10092_v7 = vld [vmem:[%s14828_s1 + $0x764] ss:$16 sps:$4 sm:$0xff]   ;;  %v10095_v8 = vld [vmem:[%s14828_s1 + $0x76c] ss:$16 sps:$4 sm:$0xff]  }
  0xb7   :  { %6684 = vmatpush1.bf16.msra.mxu0 %v10006_v9  ;;  %7532 = vmatpush1.bf16.msra.mxu1 %v10009_v10  ;;  %v10090_v9 = vld [vmem:[%s14828_s1 + $0x760] ss:$16 sps:$4 sm:$0xff]   ;;  %v10093_v10 = vld [vmem:[%s14828_s1 + $0x768] ss:$16 sps:$4 sm:$0xff]  }
  0xb8   :  { %6685 = vmatprep.subr.bf16.mxu0 %v10014_v11  ;;  %7533 = vmatprep.subr.bf16.mxu1 %v10017_v12  ;;  %v10098_v11 = vld [vmem:[%s14828_s1 + $0x784] ss:$16 sps:$4 sm:$0xff]   ;;  %v10101_v12 = vld [vmem:[%s14828_s1 + $0x78c] ss:$16 sps:$4 sm:$0xff]  }
  0xbb   :  { %6686 = vmatpush1.bf16.msra.mxu0 %v10012_v13  ;;  %7534 = vmatpush1.bf16.msra.mxu1 %v10015_v14  ;;  %v10096_v13 = vld [vmem:[%s14828_s1 + $0x780] ss:$16 sps:$4 sm:$0xff]   ;;  %v10099_v14 = vld [vmem:[%s14828_s1 + $0x788] ss:$16 sps:$4 sm:$0xff]  }
  0xbc   :  { %6687 = vmatprep.subr.bf16.mxu0 %v10020_v15  ;;  %7535 = vmatprep.subr.bf16.mxu1 %v10023_v16  ;;  %v10104_v15 = vld [vmem:[%s14828_s1 + $0x7a4] ss:$16 sps:$4 sm:$0xff]   ;;  %v10107_v16 = vld [vmem:[%s14828_s1 + $0x7ac] ss:$16 sps:$4 sm:$0xff]  }
  0xbf   :  { %6688 = vmatpush1.bf16.msra.mxu0 %v10018_v17  ;;  %7536 = vmatpush1.bf16.msra.mxu1 %v10021_v18  ;;  %v10102_v17 = vld [vmem:[%s14828_s1 + $0x7a0] ss:$16 sps:$4 sm:$0xff]   ;;  %v10105_v18 = vld [vmem:[%s14828_s1 + $0x7a8] ss:$16 sps:$4 sm:$0xff]  }
  0xc0   :  { %6710 = vmatprep.subr.bf16.mxu0 %v10026_v19  ;;  %7558 = vmatprep.subr.bf16.mxu1 %v10029_v20  ;;  %v10110_v19 = vld [vmem:[%s14828_s1 + $0x7c4] ss:$16 sps:$4 sm:$0xff]   ;;  %v10113_v20 = vld [vmem:[%s14828_s1 + $0x7cc] ss:$16 sps:$4 sm:$0xff]  }
  0xc2   :  { %6690 = vmatmul.mubr.bf16.vlgmr.msra.gmra.mrb[0].mxu0 %v8406_v22  ;;  %7538 = vmatmul.mubr.bf16.vlgmr.msra.gmra.mrb[0].mxu1 %v8406_v22  ;;  %v10111_v22 = vld [vmem:[%s14828_s1 + $0x7c8] ss:$16 sps:$4 sm:$0xff]  }
  0xc3   :  { %6711 = vmatpush1.bf16.msra.mxu0 %v10024_v24  ;;  %7559 = vmatpush1.bf16.msra.mxu1 %v10027_v26  ;;  %v10119_v24 = vld [vmem:[%s14828_s1 + $0x7ec] ss:$16 sps:$4 sm:$0xff]   ;;  %v10114_v26 = vld [vmem:[%s14828_s1 + $0x7e0] ss:$16 sps:$4 sm:$0xff]  }
  0xc4   :  { %6712 = vmatprep.subr.bf16.mxu0 %v10032_v25  ;;  %7560 = vmatprep.subr.bf16.mxu1 %v10035_v27  ;;  %v10117_v25 = vld [vmem:[%s14828_s1 + $0x7e8] ss:$16 sps:$4 sm:$0xff]   ;;  %v10122_v27 = vld [vmem:[%s14828_s1 + $0x804] ss:$16 sps:$4 sm:$0xff]  }
  0xc5   :  { %6699 = vmatprep.mubr.bf16.mxu0 %v8439_v28  ;;  %7547 = vmatprep.mubr.bf16.mxu1 %v8439_v28  ;;  %v10125_v28 = vld [vmem:[%s14828_s1 + $0x80c] ss:$16 sps:$4 sm:$0xff]  }
  0xc7   :  { %6713 = vmatpush1.bf16.msra.mxu0 %v10030_v29  ;;  %7561 = vmatpush1.bf16.msra.mxu1 %v10033_v30  ;;  %v58_v29 = vld [vmem:[%s14827_s0 + $0x118] sm:$0xff]  ;;  %v8408_v30 = vcombine.low %v11993_v33, %v11998_v35 }
  0xc8   :  { %6714 = vmatprep.subr.bf16.mxu0 %v10038_v31  ;;  %7562 = vmatprep.subr.bf16.mxu1 %v10041_v32  ;;  %v74_v31 = vld [vmem:[%s14827_s0 + $0x198] sm:$0xff]  ;;  %v10120_v32 = vld [vmem:[%s14828_s1 + $0x800] ss:$16 sps:$4 sm:$0xff]  }
  0xc9   :  { %v10131_v33 = vld [vmem:[%s14828_s1 + $0x82c] ss:$16 sps:$4 sm:$0xff]   ;;  %v8441_v35 = vcombine.high %v58_v29, %v74_v31 }
  0xca   :  { %6700 = vmatmul.mubr.bf16.gmra.mrb[4].mxu0 %v8438_v34  ;;  %7548 = vmatmul.mubr.bf16.gmra.mrb[4].mxu1 %v8438_v34  ;;  %v10123_v34 = vld [vmem:[%s14828_s1 + $0x808] ss:$16 sps:$4 sm:$0xff]  }
  0xcb   :  { %6715 = vmatpush1.bf16.msra.mxu0 %v10036_v36  ;;  %7563 = vmatpush1.bf16.msra.mxu1 %v10039_v37  ;;  %v10128_v36 = vld [vmem:[%s14828_s1 + $0x824] ss:$16 sps:$4 sm:$0xff]   ;;  %v10126_v37 = vld [vmem:[%s14828_s1 + $0x820] ss:$16 sps:$4 sm:$0xff]  }
  0xcc   :  { %6716 = vmatprep.subr.bf16.mxu0 %v10044_v38  ;;  %7564 = vmatprep.subr.bf16.mxu1 %v10047_v39  ;;  %v10129_v38 = vld [vmem:[%s14828_s1 + $0x828] ss:$16 sps:$4 sm:$0xff]   ;;  %v10134_v39 = vld [vmem:[%s14828_s1 + $0x844] ss:$16 sps:$4 sm:$0xff]  }
  0xcd   :  { %6742 = vmatprep.mubr.bf16.mxu0 %v8409_v40  ;;  %7590 = vmatprep.mubr.bf16.mxu1 %v8409_v40  ;;  %v10137_v40 = vld [vmem:[%s14828_s1 + $0x84c] ss:$16 sps:$4 sm:$0xff]  }
  0xcf   :  { %6717 = vmatpush1.bf16.msra.mxu0 %v10042_v41  ;;  %7565 = vmatpush1.bf16.msra.mxu1 %v10045_v42  ;;  %v12205_v41 = vld [vmem:[%s14827_s0 + $0x20] sm:$0xff]  ;;  %v8440_v42 = vcombine.low %v58_v29, %v74_v31 }
  0xd0   :  { %6718 = vmatprep.subr.bf16.mxu0 %v10050_v43  ;;  %7566 = vmatprep.subr.bf16.mxu1 %v10053_v44  ;;  %v12210_v43 = vld [vmem:[%s14827_s0 + $0xa0] sm:$0xff] }
  0xd1   :  { %v10132_v44 = vld [vmem:[%s14828_s1 + $0x840] ss:$16 sps:$4 sm:$0xff]   ;;  %v10212_v31 = vld [vmem:[%s14828_s1 + $0x9e4] ss:$16 sps:$4 sm:$0xff]  }
  0xd2   :  { %v10204_v29 = vld [vmem:[%s14828_s1 + $0x9c0] ss:$16 sps:$4 sm:$0xff]  }
  0xd3   :  { %6719 = vmatpush1.bf16.msra.mxu0 %v10048_v45  ;;  %7567 = vmatpush1.bf16.msra.mxu1 %v10051_v46  ;;  %v10135_v45 = vld [vmem:[%s14828_s1 + $0x848] ss:$16 sps:$4 sm:$0xff]   ;;  %v10140_v46 = vld [vmem:[%s14828_s1 + $0x864] ss:$16 sps:$4 sm:$0xff]  }
  0xd4   :  { %6720 = vmatprep.subr.bf16.mxu0 %v10056_v47  ;;  %7568 = vmatprep.subr.bf16.mxu1 %v10059_v48  ;;  %v10143_v47 = vld [vmem:[%s14828_s1 + $0x86c] ss:$16 sps:$4 sm:$0xff]   ;;  %v8411_v48 = vcombine.high %v12205_v41, %v12210_v43 }
  0xd7   :  { %6721 = vmatpush1.bf16.msra.mxu0 %v10054_v49  ;;  %7569 = vmatpush1.bf16.msra.mxu1 %v10057_v50  ;;  %v10138_v49 = vld [vmem:[%s14828_s1 + $0x860] ss:$16 sps:$4 sm:$0xff]   ;;  %v10141_v50 = vld [vmem:[%s14828_s1 + $0x868] ss:$16 sps:$4 sm:$0xff]  }
  0xd8   :  { %6722 = vmatprep.subr.bf16.mxu0 %v10062_v51  ;;  %7570 = vmatprep.subr.bf16.mxu1 %v10065_v52  ;;  %v10146_v51 = vld [vmem:[%s14828_s1 + $0x884] ss:$16 sps:$4 sm:$0xff]   ;;  %v10149_v52 = vld [vmem:[%s14828_s1 + $0x88c] ss:$16 sps:$4 sm:$0xff]  }
  0xdb   :  { %6723 = vmatpush1.bf16.msra.mxu0 %v10060_v53  ;;  %7571 = vmatpush1.bf16.msra.mxu1 %v10063_v54  ;;  %v10144_v53 = vld [vmem:[%s14828_s1 + $0x880] ss:$16 sps:$4 sm:$0xff]   ;;  %v10147_v54 = vld [vmem:[%s14828_s1 + $0x888] ss:$16 sps:$4 sm:$0xff]  }
  0xdc   :  { %6724 = vmatprep.subr.bf16.mxu0 %v10068_v55  ;;  %7572 = vmatprep.subr.bf16.mxu1 %v10071_v56  ;;  %v10152_v55 = vld [vmem:[%s14828_s1 + $0x8a4] ss:$16 sps:$4 sm:$0xff]   ;;  %v10155_v56 = vld [vmem:[%s14828_s1 + $0x8ac] ss:$16 sps:$4 sm:$0xff]  }
  0xdf   :  { %6725 = vmatpush1.bf16.msra.mxu0 %v10066_v57  ;;  %7573 = vmatpush1.bf16.msra.mxu1 %v10069_v58  ;;  %v10150_v57 = vld [vmem:[%s14828_s1 + $0x8a0] ss:$16 sps:$4 sm:$0xff]   ;;  %v10153_v58 = vld [vmem:[%s14828_s1 + $0x8a8] ss:$16 sps:$4 sm:$0xff]  }
  0xe0   :  { %6726 = vmatprep.subr.bf16.mxu0 %v10074_v59  ;;  %7574 = vmatprep.subr.bf16.mxu1 %v10077_v60  ;;  %v10158_v59 = vld [vmem:[%s14828_s1 + $0x8c4] ss:$16 sps:$4 sm:$0xff]   ;;  %v10161_v60 = vld [vmem:[%s14828_s1 + $0x8cc] ss:$16 sps:$4 sm:$0xff]  }
  0xe3   :  { %6727 = vmatpush1.bf16.msra.mxu0 %v10072_v61  ;;  %7575 = vmatpush1.bf16.msra.mxu1 %v10075_v62  ;;  %v10156_v61 = vld [vmem:[%s14828_s1 + $0x8c0] ss:$16 sps:$4 sm:$0xff]   ;;  %v10159_v62 = vld [vmem:[%s14828_s1 + $0x8c8] ss:$16 sps:$4 sm:$0xff]  }
  0xe4   :  { %6728 = vmatprep.subr.bf16.mxu0 %v10080_v63  ;;  %7576 = vmatprep.subr.bf16.mxu1 %v10083_v0  ;;  %v10164_v63 = vld [vmem:[%s14828_s1 + $0x8e4] ss:$16 sps:$4 sm:$0xff]   ;;  %v10167_v0 = vld [vmem:[%s14828_s1 + $0x8ec] ss:$16 sps:$4 sm:$0xff]  }
  0xe7   :  { %6729 = vmatpush1.bf16.msra.mxu0 %v10078_v1  ;;  %7577 = vmatpush1.bf16.msra.mxu1 %v10081_v2  ;;  %v10162_v1 = vld [vmem:[%s14828_s1 + $0x8e0] ss:$16 sps:$4 sm:$0xff]   ;;  %v10165_v2 = vld [vmem:[%s14828_s1 + $0x8e8] ss:$16 sps:$4 sm:$0xff]  }
  0xe8   :  { %6730 = vmatprep.subr.bf16.mxu0 %v10086_v3  ;;  %7578 = vmatprep.subr.bf16.mxu1 %v10089_v4  ;;  %v10170_v3 = vld [vmem:[%s14828_s1 + $0x904] ss:$16 sps:$4 sm:$0xff]   ;;  %v10173_v4 = vld [vmem:[%s14828_s1 + $0x90c] ss:$16 sps:$4 sm:$0xff]  }
  0xeb   :  { %6731 = vmatpush1.bf16.msra.mxu0 %v10084_v5  ;;  %7579 = vmatpush1.bf16.msra.mxu1 %v10087_v6  ;;  %v10168_v5 = vld [vmem:[%s14828_s1 + $0x900] ss:$16 sps:$4 sm:$0xff]   ;;  %v10171_v6 = vld [vmem:[%s14828_s1 + $0x908] ss:$16 sps:$4 sm:$0xff]  }
  0xec   :  { %6732 = vmatprep.subr.bf16.mxu0 %v10092_v7  ;;  %7580 = vmatprep.subr.bf16.mxu1 %v10095_v8  ;;  %v10176_v7 = vld [vmem:[%s14828_s1 + $0x924] ss:$16 sps:$4 sm:$0xff]   ;;  %v10179_v8 = vld [vmem:[%s14828_s1 + $0x92c] ss:$16 sps:$4 sm:$0xff]  }
  0xef   :  { %6733 = vmatpush1.bf16.msra.mxu0 %v10090_v9  ;;  %7581 = vmatpush1.bf16.msra.mxu1 %v10093_v10  ;;  %v10174_v9 = vld [vmem:[%s14828_s1 + $0x920] ss:$16 sps:$4 sm:$0xff]   ;;  %v10177_v10 = vld [vmem:[%s14828_s1 + $0x928] ss:$16 sps:$4 sm:$0xff]  }
  0xf0   :  { %6734 = vmatprep.subr.bf16.mxu0 %v10098_v11  ;;  %7582 = vmatprep.subr.bf16.mxu1 %v10101_v12  ;;  %v10182_v11 = vld [vmem:[%s14828_s1 + $0x944] ss:$16 sps:$4 sm:$0xff]   ;;  %v10185_v12 = vld [vmem:[%s14828_s1 + $0x94c] ss:$16 sps:$4 sm:$0xff]  }
  0xf3   :  { %6735 = vmatpush1.bf16.msra.mxu0 %v10096_v13  ;;  %7583 = vmatpush1.bf16.msra.mxu1 %v10099_v14  ;;  %v10180_v13 = vld [vmem:[%s14828_s1 + $0x940] ss:$16 sps:$4 sm:$0xff]   ;;  %v10183_v14 = vld [vmem:[%s14828_s1 + $0x948] ss:$16 sps:$4 sm:$0xff]  }
  0xf4   :  { %6736 = vmatprep.subr.bf16.mxu0 %v10104_v15  ;;  %7584 = vmatprep.subr.bf16.mxu1 %v10107_v16  ;;  %v10188_v15 = vld [vmem:[%s14828_s1 + $0x964] ss:$16 sps:$4 sm:$0xff]   ;;  %v10191_v16 = vld [vmem:[%s14828_s1 + $0x96c] ss:$16 sps:$4 sm:$0xff]  }
  0xf7   :  { %6737 = vmatpush1.bf16.msra.mxu0 %v10102_v17  ;;  %7585 = vmatpush1.bf16.msra.mxu1 %v10105_v18  ;;  %v10186_v17 = vld [vmem:[%s14828_s1 + $0x960] ss:$16 sps:$4 sm:$0xff]   ;;  %v10189_v18 = vld [vmem:[%s14828_s1 + $0x968] ss:$16 sps:$4 sm:$0xff]  }
  0xf8   :  { %6738 = vmatprep.subr.bf16.mxu0 %v10110_v19  ;;  %7586 = vmatprep.subr.bf16.mxu1 %v10113_v20  ;;  %v10194_v19 = vld [vmem:[%s14828_s1 + $0x984] ss:$16 sps:$4 sm:$0xff]   ;;  %v10197_v20 = vld [vmem:[%s14828_s1 + $0x98c] ss:$16 sps:$4 sm:$0xff]  }
  0xfb   :  { %6739 = vmatpush1.bf16.msra.mxu0 %v10108_v21  ;;  %7587 = vmatpush1.bf16.msra.mxu1 %v10111_v22  ;;  %v10192_v21 = vld [vmem:[%s14828_s1 + $0x980] ss:$16 sps:$4 sm:$0xff]   ;;  %v10195_v22 = vld [vmem:[%s14828_s1 + $0x988] ss:$16 sps:$4 sm:$0xff]  }
  0xfc   :  { %6740 = vmatprep.subr.bf16.mxu0 %v10116_v23  ;;  %7588 = vmatprep.subr.bf16.mxu1 %v10119_v24  ;;  %v10200_v23 = vld [vmem:[%s14828_s1 + $0x9a4] ss:$16 sps:$4 sm:$0xff]   ;;  %v10203_v24 = vld [vmem:[%s14828_s1 + $0x9ac] ss:$16 sps:$4 sm:$0xff]  }
  0xff   :  { %6741 = vmatpush1.bf16.msra.mxu0 %v10114_v26  ;;  %7589 = vmatpush1.bf16.msra.mxu1 %v10117_v25  ;;  %v10198_v26 = vld [vmem:[%s14828_s1 + $0x9a0] ss:$16 sps:$4 sm:$0xff]   ;;  %v10201_v25 = vld [vmem:[%s14828_s1 + $0x9a8] ss:$16 sps:$4 sm:$0xff]  }
 0x100   :  { %6763 = vmatprep.subr.bf16.mxu0 %v10122_v27  ;;  %7611 = vmatprep.subr.bf16.mxu1 %v10125_v28  ;;  %v10206_v27 = vld [vmem:[%s14828_s1 + $0x9c4] ss:$16 sps:$4 sm:$0xff]   ;;  %v10209_v28 = vld [vmem:[%s14828_s1 + $0x9cc] ss:$16 sps:$4 sm:$0xff]  }
 0x102   :  { %6743 = vmatmul.mubr.bf16.vlgmr.msra.gmra.mrb[0].mxu0 %v8408_v30  ;;  %7591 = vmatmul.mubr.bf16.vlgmr.msra.gmra.mrb[0].mxu1 %v8408_v30  ;;  %v10207_v30 = vld [vmem:[%s14828_s1 + $0x9c8] ss:$16 sps:$4 sm:$0xff]  }
 0x103   :  { %6764 = vmatpush1.bf16.msra.mxu0 %v10120_v32  ;;  %7612 = vmatpush1.bf16.msra.mxu1 %v10123_v34  ;;  %v10215_v32 = vld [vmem:[%s14828_s1 + $0x9ec] ss:$16 sps:$4 sm:$0xff]   ;;  %v10210_v34 = vld [vmem:[%s14828_s1 + $0x9e0] ss:$16 sps:$4 sm:$0xff]  }
 0x104   :  { %6765 = vmatprep.subr.bf16.mxu0 %v10128_v36  ;;  %7613 = vmatprep.subr.bf16.mxu1 %v10131_v33  ;;  %v10213_v36 = vld [vmem:[%s14828_s1 + $0x9e8] ss:$16 sps:$4 sm:$0xff]   ;;  %v10218_v33 = vld [vmem:[%s14828_s1 + $0xa04] ss:$16 sps:$4 sm:$0xff]  }
 0x105   :  { %6752 = vmatprep.mubr.bf16.mxu0 %v8441_v35  ;;  %7600 = vmatprep.mubr.bf16.mxu1 %v8441_v35  ;;  %v10221_v35 = vld [vmem:[%s14828_s1 + $0xa0c] ss:$16 sps:$4 sm:$0xff]  }
 0x107   :  { %6766 = vmatpush1.bf16.msra.mxu0 %v10126_v37  ;;  %7614 = vmatpush1.bf16.msra.mxu1 %v10129_v38  ;;  %v59_v37 = vld [vmem:[%s14827_s0 + $0x120] sm:$0xff] }
 0x108   :  { %6767 = vmatprep.subr.bf16.mxu0 %v10134_v39  ;;  %7615 = vmatprep.subr.bf16.mxu1 %v10137_v40  ;;  %v75_v38 = vld [vmem:[%s14827_s0 + $0x1a0] sm:$0xff]  ;;  %v8410_v39 = vcombine.low %v12205_v41, %v12210_v43  ;;  %v10227_v41 = vld [vmem:[%s14828_s1 + $0xa2c] ss:$16 sps:$4 sm:$0xff]  }
 0x109   :  { %v10216_v40 = vld [vmem:[%s14828_s1 + $0xa00] ss:$16 sps:$4 sm:$0xff]  }
 0x10a   :  { %6753 = vmatmul.mubr.bf16.gmra.mrb[4].mxu0 %v8440_v42  ;;  %7601 = vmatmul.mubr.bf16.gmra.mrb[4].mxu1 %v8440_v42  ;;  %v10219_v42 = vld [vmem:[%s14828_s1 + $0xa08] ss:$16 sps:$4 sm:$0xff]   ;;  %v10222_v43 = vld [vmem:[%s14828_s1 + $0xa20] ss:$16 sps:$4 sm:$0xff]  }
 0x10b   :  { %6768 = vmatpush1.bf16.msra.mxu0 %v10132_v44  ;;  %7616 = vmatpush1.bf16.msra.mxu1 %v10135_v45  ;;  %v10224_v44 = vld [vmem:[%s14828_s1 + $0xa24] ss:$16 sps:$4 sm:$0xff]   ;;  %v10225_v45 = vld [vmem:[%s14828_s1 + $0xa28] ss:$16 sps:$4 sm:$0xff]  }
 0x10c   :  { %6769 = vmatprep.subr.bf16.mxu0 %v10140_v46  ;;  %7617 = vmatprep.subr.bf16.mxu1 %v10143_v47  ;;  %v8443_v46 = vcombine.high %v59_v37, %v75_v38  ;;  %v10230_v47 = vld [vmem:[%s14828_s1 + $0xa44] ss:$16 sps:$4 sm:$0xff]  }
 0x10d   :  { %6795 = vmatprep.mubr.bf16.mxu0 %v8411_v48  ;;  %7643 = vmatprep.mubr.bf16.mxu1 %v8411_v48  ;;  %v10233_v48 = vld [vmem:[%s14828_s1 + $0xa4c] ss:$16 sps:$4 sm:$0xff]  }
 0x10f   :  { %6770 = vmatpush1.bf16.msra.mxu0 %v10138_v49  ;;  %7618 = vmatpush1.bf16.msra.mxu1 %v10141_v50  ;;  %v12417_v49 = vld [vmem:[%s14827_s0 + $0x28] sm:$0xff] }
 0x110   :  { %6771 = vmatprep.subr.bf16.mxu0 %v10146_v51  ;;  %7619 = vmatprep.subr.bf16.mxu1 %v10149_v52  ;;  %v12422_v50 = vld [vmem:[%s14827_s0 + $0xa8] sm:$0xff]  ;;  %v8442_v51 = vcombine.low %v59_v37, %v75_v38  ;;  %v10228_v52 = vld [vmem:[%s14828_s1 + $0xa40] ss:$16 sps:$4 sm:$0xff]  }
 0x111   :  { %v10300_v37 = vld [vmem:[%s14828_s1 + $0xbc0] ss:$16 sps:$4 sm:$0xff]   ;;  %v10303_v38 = vld [vmem:[%s14828_s1 + $0xbc8] ss:$16 sps:$4 sm:$0xff]  }
 0x113   :  { %6772 = vmatpush1.bf16.msra.mxu0 %v10144_v53  ;;  %7620 = vmatpush1.bf16.msra.mxu1 %v10147_v54  ;;  %v10231_v53 = vld [vmem:[%s14828_s1 + $0xa48] ss:$16 sps:$4 sm:$0xff]   ;;  %v10236_v54 = vld [vmem:[%s14828_s1 + $0xa64] ss:$16 sps:$4 sm:$0xff]  }
 0x114   :  { %6773 = vmatprep.subr.bf16.mxu0 %v10152_v55  ;;  %7621 = vmatprep.subr.bf16.mxu1 %v10155_v56  ;;  %v10239_v55 = vld [vmem:[%s14828_s1 + $0xa6c] ss:$16 sps:$4 sm:$0xff]   ;;  %v8413_v56 = vcombine.high %v12417_v49, %v12422_v50 }
 0x117   :  { %6774 = vmatpush1.bf16.msra.mxu0 %v10150_v57  ;;  %7622 = vmatpush1.bf16.msra.mxu1 %v10153_v58  ;;  %v10234_v57 = vld [vmem:[%s14828_s1 + $0xa60] ss:$16 sps:$4 sm:$0xff]   ;;  %v10237_v58 = vld [vmem:[%s14828_s1 + $0xa68] ss:$16 sps:$4 sm:$0xff]  }
 0x118   :  { %6775 = vmatprep.subr.bf16.mxu0 %v10158_v59  ;;  %7623 = vmatprep.subr.bf16.mxu1 %v10161_v60  ;;  %v10242_v59 = vld [vmem:[%s14828_s1 + $0xa84] ss:$16 sps:$4 sm:$0xff]   ;;  %v10245_v60 = vld [vmem:[%s14828_s1 + $0xa8c] ss:$16 sps:$4 sm:$0xff]  }
 0x11b   :  { %6776 = vmatpush1.bf16.msra.mxu0 %v10156_v61  ;;  %7624 = vmatpush1.bf16.msra.mxu1 %v10159_v62  ;;  %v10240_v61 = vld [vmem:[%s14828_s1 + $0xa80] ss:$16 sps:$4 sm:$0xff]   ;;  %v10243_v62 = vld [vmem:[%s14828_s1 + $0xa88] ss:$16 sps:$4 sm:$0xff]  }
 0x11c   :  { %6777 = vmatprep.subr.bf16.mxu0 %v10164_v63  ;;  %7625 = vmatprep.subr.bf16.mxu1 %v10167_v0  ;;  %v10248_v63 = vld [vmem:[%s14828_s1 + $0xaa4] ss:$16 sps:$4 sm:$0xff]   ;;  %v10251_v0 = vld [vmem:[%s14828_s1 + $0xaac] ss:$16 sps:$4 sm:$0xff]  }
 0x11f   :  { %6778 = vmatpush1.bf16.msra.mxu0 %v10162_v1  ;;  %7626 = vmatpush1.bf16.msra.mxu1 %v10165_v2  ;;  %v10246_v1 = vld [vmem:[%s14828_s1 + $0xaa0] ss:$16 sps:$4 sm:$0xff]   ;;  %v10249_v2 = vld [vmem:[%s14828_s1 + $0xaa8] ss:$16 sps:$4 sm:$0xff]  }
 0x120   :  { %6779 = vmatprep.subr.bf16.mxu0 %v10170_v3  ;;  %7627 = vmatprep.subr.bf16.mxu1 %v10173_v4  ;;  %v10254_v3 = vld [vmem:[%s14828_s1 + $0xac4] ss:$16 sps:$4 sm:$0xff]   ;;  %v10257_v4 = vld [vmem:[%s14828_s1 + $0xacc] ss:$16 sps:$4 sm:$0xff]  }
 0x123   :  { %6780 = vmatpush1.bf16.msra.mxu0 %v10168_v5  ;;  %7628 = vmatpush1.bf16.msra.mxu1 %v10171_v6  ;;  %v10252_v5 = vld [vmem:[%s14828_s1 + $0xac0] ss:$16 sps:$4 sm:$0xff]   ;;  %v10255_v6 = vld [vmem:[%s14828_s1 + $0xac8] ss:$16 sps:$4 sm:$0xff]  }
 0x124   :  { %6781 = vmatprep.subr.bf16.mxu0 %v10176_v7  ;;  %7629 = vmatprep.subr.bf16.mxu1 %v10179_v8  ;;  %v10260_v7 = vld [vmem:[%s14828_s1 + $0xae4] ss:$16 sps:$4 sm:$0xff]   ;;  %v10263_v8 = vld [vmem:[%s14828_s1 + $0xaec] ss:$16 sps:$4 sm:$0xff]  }
 0x127   :  { %6782 = vmatpush1.bf16.msra.mxu0 %v10174_v9  ;;  %7630 = vmatpush1.bf16.msra.mxu1 %v10177_v10  ;;  %v10258_v9 = vld [vmem:[%s14828_s1 + $0xae0] ss:$16 sps:$4 sm:$0xff]   ;;  %v10261_v10 = vld [vmem:[%s14828_s1 + $0xae8] ss:$16 sps:$4 sm:$0xff]  }
 0x128   :  { %6783 = vmatprep.subr.bf16.mxu0 %v10182_v11  ;;  %7631 = vmatprep.subr.bf16.mxu1 %v10185_v12  ;;  %v10266_v11 = vld [vmem:[%s14828_s1 + $0xb04] ss:$16 sps:$4 sm:$0xff]   ;;  %v10269_v12 = vld [vmem:[%s14828_s1 + $0xb0c] ss:$16 sps:$4 sm:$0xff]  }
 0x12b   :  { %6784 = vmatpush1.bf16.msra.mxu0 %v10180_v13  ;;  %7632 = vmatpush1.bf16.msra.mxu1 %v10183_v14  ;;  %v10264_v13 = vld [vmem:[%s14828_s1 + $0xb00] ss:$16 sps:$4 sm:$0xff]   ;;  %v10267_v14 = vld [vmem:[%s14828_s1 + $0xb08] ss:$16 sps:$4 sm:$0xff]  }
 0x12c   :  { %6785 = vmatprep.subr.bf16.mxu0 %v10188_v15  ;;  %7633 = vmatprep.subr.bf16.mxu1 %v10191_v16  ;;  %v10272_v15 = vld [vmem:[%s14828_s1 + $0xb24] ss:$16 sps:$4 sm:$0xff]   ;;  %v10275_v16 = vld [vmem:[%s14828_s1 + $0xb2c] ss:$16 sps:$4 sm:$0xff]  }
 0x12f   :  { %6786 = vmatpush1.bf16.msra.mxu0 %v10186_v17  ;;  %7634 = vmatpush1.bf16.msra.mxu1 %v10189_v18  ;;  %v10270_v17 = vld [vmem:[%s14828_s1 + $0xb20] ss:$16 sps:$4 sm:$0xff]   ;;  %v10273_v18 = vld [vmem:[%s14828_s1 + $0xb28] ss:$16 sps:$4 sm:$0xff]  }
 0x130   :  { %6787 = vmatprep.subr.bf16.mxu0 %v10194_v19  ;;  %7635 = vmatprep.subr.bf16.mxu1 %v10197_v20  ;;  %v10278_v19 = vld [vmem:[%s14828_s1 + $0xb44] ss:$16 sps:$4 sm:$0xff]   ;;  %v10281_v20 = vld [vmem:[%s14828_s1 + $0xb4c] ss:$16 sps:$4 sm:$0xff]  }
 0x133   :  { %6788 = vmatpush1.bf16.msra.mxu0 %v10192_v21  ;;  %7636 = vmatpush1.bf16.msra.mxu1 %v10195_v22  ;;  %v10276_v21 = vld [vmem:[%s14828_s1 + $0xb40] ss:$16 sps:$4 sm:$0xff]   ;;  %v10279_v22 = vld [vmem:[%s14828_s1 + $0xb48] ss:$16 sps:$4 sm:$0xff]  }
 0x134   :  { %6789 = vmatprep.subr.bf16.mxu0 %v10200_v23  ;;  %7637 = vmatprep.subr.bf16.mxu1 %v10203_v24  ;;  %v10284_v23 = vld [vmem:[%s14828_s1 + $0xb64] ss:$16 sps:$4 sm:$0xff]   ;;  %v10287_v24 = vld [vmem:[%s14828_s1 + $0xb6c] ss:$16 sps:$4 sm:$0xff]  }
 0x137   :  { %6790 = vmatpush1.bf16.msra.mxu0 %v10198_v26  ;;  %7638 = vmatpush1.bf16.msra.mxu1 %v10201_v25  ;;  %v10282_v26 = vld [vmem:[%s14828_s1 + $0xb60] ss:$16 sps:$4 sm:$0xff]   ;;  %v10285_v25 = vld [vmem:[%s14828_s1 + $0xb68] ss:$16 sps:$4 sm:$0xff]  }
 0x138   :  { %6791 = vmatprep.subr.bf16.mxu0 %v10206_v27  ;;  %7639 = vmatprep.subr.bf16.mxu1 %v10209_v28  ;;  %v10290_v27 = vld [vmem:[%s14828_s1 + $0xb84] ss:$16 sps:$4 sm:$0xff]   ;;  %v10293_v28 = vld [vmem:[%s14828_s1 + $0xb8c] ss:$16 sps:$4 sm:$0xff]  }
 0x13b   :  { %6792 = vmatpush1.bf16.msra.mxu0 %v10204_v29  ;;  %7640 = vmatpush1.bf16.msra.mxu1 %v10207_v30  ;;  %v10288_v29 = vld [vmem:[%s14828_s1 + $0xb80] ss:$16 sps:$4 sm:$0xff]   ;;  %v10291_v30 = vld [vmem:[%s14828_s1 + $0xb88] ss:$16 sps:$4 sm:$0xff]  }
 0x13c   :  { %6793 = vmatprep.subr.bf16.mxu0 %v10212_v31  ;;  %7641 = vmatprep.subr.bf16.mxu1 %v10215_v32  ;;  %v10296_v31 = vld [vmem:[%s14828_s1 + $0xba4] ss:$16 sps:$4 sm:$0xff]   ;;  %v10299_v32 = vld [vmem:[%s14828_s1 + $0xbac] ss:$16 sps:$4 sm:$0xff]  }
 0x13f   :  { %6794 = vmatpush1.bf16.msra.mxu0 %v10210_v34  ;;  %7642 = vmatpush1.bf16.msra.mxu1 %v10213_v36  ;;  %v10294_v34 = vld [vmem:[%s14828_s1 + $0xba0] ss:$16 sps:$4 sm:$0xff]   ;;  %v10297_v36 = vld [vmem:[%s14828_s1 + $0xba8] ss:$16 sps:$4 sm:$0xff]  }
 0x140   :  { %6816 = vmatprep.subr.bf16.mxu0 %v10218_v33  ;;  %7664 = vmatprep.subr.bf16.mxu1 %v10221_v35  ;;  %v10302_v33 = vld [vmem:[%s14828_s1 + $0xbc4] ss:$16 sps:$4 sm:$0xff]   ;;  %v10305_v35 = vld [vmem:[%s14828_s1 + $0xbcc] ss:$16 sps:$4 sm:$0xff]  }
 0x142   :  { %6796 = vmatmul.mubr.bf16.vlgmr.msra.gmra.mrb[0].mxu0 %v8410_v39  ;;  %7644 = vmatmul.mubr.bf16.vlgmr.msra.gmra.mrb[0].mxu1 %v8410_v39  ;;  %v10308_v39 = vld [vmem:[%s14828_s1 + $0xbe4] ss:$16 sps:$4 sm:$0xff]  }
 0x143   :  { %6817 = vmatpush1.bf16.msra.mxu0 %v10216_v40  ;;  %7665 = vmatpush1.bf16.msra.mxu1 %v10219_v42  ;;  %v10311_v40 = vld [vmem:[%s14828_s1 + $0xbec] ss:$16 sps:$4 sm:$0xff]   ;;  %v10306_v42 = vld [vmem:[%s14828_s1 + $0xbe0] ss:$16 sps:$4 sm:$0xff]  }
 0x144   :  { %6818 = vmatprep.subr.bf16.mxu0 %v10224_v44  ;;  %7666 = vmatprep.subr.bf16.mxu1 %v10227_v41  ;;  %v10309_v44 = vld [vmem:[%s14828_s1 + $0xbe8] ss:$16 sps:$4 sm:$0xff]   ;;  %v10314_v41 = vld [vmem:[%s14828_s1 + $0xc04] ss:$16 sps:$4 sm:$0xff]  }
 0x145   :  { %6805 = vmatprep.mubr.bf16.mxu0 %v8443_v46  ;;  %7653 = vmatprep.mubr.bf16.mxu1 %v8443_v46  ;;  %v76_v46 = vld [vmem:[%s14827_s0 + $0x1a8] sm:$0xff] }
 0x147   :  { %6819 = vmatpush1.bf16.msra.mxu0 %v10222_v43  ;;  %7667 = vmatpush1.bf16.msra.mxu1 %v10225_v45  ;;  %v10317_v43 = vld [vmem:[%s14828_s1 + $0xc0c] ss:$16 sps:$4 sm:$0xff]  }
 0x148   :  { %6820 = vmatprep.subr.bf16.mxu0 %v10230_v47  ;;  %7668 = vmatprep.subr.bf16.mxu1 %v10233_v48  ;;  %v60_v45 = vld [vmem:[%s14827_s0 + $0x128] sm:$0xff]  ;;  %v8412_v47 = vcombine.low %v12417_v49, %v12422_v50  ;;  %v10312_v48 = vld [vmem:[%s14828_s1 + $0xc00] ss:$16 sps:$4 sm:$0xff]  }
 0x149   :  { %v10323_v49 = vld [vmem:[%s14828_s1 + $0xc2c] ss:$16 sps:$4 sm:$0xff]   ;;  %v10318_v50 = vld [vmem:[%s14828_s1 + $0xc20] ss:$16 sps:$4 sm:$0xff]  }
 0x14a   :  { %6806 = vmatmul.mubr.bf16.gmra.mrb[4].mxu0 %v8442_v51  ;;  %7654 = vmatmul.mubr.bf16.gmra.mrb[4].mxu1 %v8442_v51  ;;  %v10315_v51 = vld [vmem:[%s14828_s1 + $0xc08] ss:$16 sps:$4 sm:$0xff]  }
 0x14b   :  { %6821 = vmatpush1.bf16.msra.mxu0 %v10228_v52  ;;  %7669 = vmatpush1.bf16.msra.mxu1 %v10231_v53  ;;  %v10320_v52 = vld [vmem:[%s14828_s1 + $0xc24] ss:$16 sps:$4 sm:$0xff]   ;;  %v10321_v53 = vld [vmem:[%s14828_s1 + $0xc28] ss:$16 sps:$4 sm:$0xff]  }
 0x14c   :  { %6822 = vmatprep.subr.bf16.mxu0 %v10236_v54  ;;  %7670 = vmatprep.subr.bf16.mxu1 %v10239_v55  ;;  %v8445_v54 = vcombine.high %v60_v45, %v76_v46  ;;  %v10326_v55 = vld [vmem:[%s14828_s1 + $0xc44] ss:$16 sps:$4 sm:$0xff]  }
 0x14d   :  { %6848 = vmatprep.mubr.bf16.mxu0 %v8413_v56  ;;  %7696 = vmatprep.mubr.bf16.mxu1 %v8413_v56  ;;  %v10329_v56 = vld [vmem:[%s14828_s1 + $0xc4c] ss:$16 sps:$4 sm:$0xff]  }
 0x14f   :  { %6823 = vmatpush1.bf16.msra.mxu0 %v10234_v57  ;;  %7671 = vmatpush1.bf16.msra.mxu1 %v10237_v58  ;;  %v12629_v57 = vld [vmem:[%s14827_s0 + $0x30] sm:$0xff] }
 0x150   :  { %6824 = vmatprep.subr.bf16.mxu0 %v10242_v59  ;;  %7672 = vmatprep.subr.bf16.mxu1 %v10245_v60  ;;  %v12634_v58 = vld [vmem:[%s14827_s0 + $0xb0] sm:$0xff]  ;;  %v8444_v59 = vcombine.low %v60_v45, %v76_v46  ;;  %v10399_v46 = vld [vmem:[%s14828_s1 + $0xdc8] ss:$16 sps:$4 sm:$0xff]  }
 0x151   :  { %v10324_v60 = vld [vmem:[%s14828_s1 + $0xc40] ss:$16 sps:$4 sm:$0xff]  }
 0x152   :  { %v10396_v45 = vld [vmem:[%s14828_s1 + $0xdc0] ss:$16 sps:$4 sm:$0xff]  }
 0x153   :  { %6825 = vmatpush1.bf16.msra.mxu0 %v10240_v61  ;;  %7673 = vmatpush1.bf16.msra.mxu1 %v10243_v62  ;;  %v10327_v61 = vld [vmem:[%s14828_s1 + $0xc48] ss:$16 sps:$4 sm:$0xff]   ;;  %v10332_v62 = vld [vmem:[%s14828_s1 + $0xc64] ss:$16 sps:$4 sm:$0xff]  }
 0x154   :  { %6826 = vmatprep.subr.bf16.mxu0 %v10248_v63  ;;  %7674 = vmatprep.subr.bf16.mxu1 %v10251_v0  ;;  %v10335_v63 = vld [vmem:[%s14828_s1 + $0xc6c] ss:$16 sps:$4 sm:$0xff]   ;;  %v8415_v0 = vcombine.high %v12629_v57, %v12634_v58 }
 0x157   :  { %6827 = vmatpush1.bf16.msra.mxu0 %v10246_v1  ;;  %7675 = vmatpush1.bf16.msra.mxu1 %v10249_v2  ;;  %v10330_v1 = vld [vmem:[%s14828_s1 + $0xc60] ss:$16 sps:$4 sm:$0xff]   ;;  %v10333_v2 = vld [vmem:[%s14828_s1 + $0xc68] ss:$16 sps:$4 sm:$0xff]  }
 0x158   :  { %6828 = vmatprep.subr.bf16.mxu0 %v10254_v3  ;;  %7676 = vmatprep.subr.bf16.mxu1 %v10257_v4  ;;  %v10338_v3 = vld [vmem:[%s14828_s1 + $0xc84] ss:$16 sps:$4 sm:$0xff]   ;;  %v10341_v4 = vld [vmem:[%s14828_s1 + $0xc8c] ss:$16 sps:$4 sm:$0xff]  }
 0x15b   :  { %6829 = vmatpush1.bf16.msra.mxu0 %v10252_v5  ;;  %7677 = vmatpush1.bf16.msra.mxu1 %v10255_v6  ;;  %v10336_v5 = vld [vmem:[%s14828_s1 + $0xc80] ss:$16 sps:$4 sm:$0xff]   ;;  %v10339_v6 = vld [vmem:[%s14828_s1 + $0xc88] ss:$16 sps:$4 sm:$0xff]  }
 0x15c   :  { %6830 = vmatprep.subr.bf16.mxu0 %v10260_v7  ;;  %7678 = vmatprep.subr.bf16.mxu1 %v10263_v8  ;;  %v10344_v7 = vld [vmem:[%s14828_s1 + $0xca4] ss:$16 sps:$4 sm:$0xff]   ;;  %v10347_v8 = vld [vmem:[%s14828_s1 + $0xcac] ss:$16 sps:$4 sm:$0xff]  }
 0x15f   :  { %6831 = vmatpush1.bf16.msra.mxu0 %v10258_v9  ;;  %7679 = vmatpush1.bf16.msra.mxu1 %v10261_v10  ;;  %v10342_v9 = vld [vmem:[%s14828_s1 + $0xca0] ss:$16 sps:$4 sm:$0xff]   ;;  %v10345_v10 = vld [vmem:[%s14828_s1 + $0xca8] ss:$16 sps:$4 sm:$0xff]  }
 0x160   :  { %6832 = vmatprep.subr.bf16.mxu0 %v10266_v11  ;;  %7680 = vmatprep.subr.bf16.mxu1 %v10269_v12  ;;  %v10350_v11 = vld [vmem:[%s14828_s1 + $0xcc4] ss:$16 sps:$4 sm:$0xff]   ;;  %v10353_v12 = vld [vmem:[%s14828_s1 + $0xccc] ss:$16 sps:$4 sm:$0xff]  }
 0x163   :  { %6833 = vmatpush1.bf16.msra.mxu0 %v10264_v13  ;;  %7681 = vmatpush1.bf16.msra.mxu1 %v10267_v14  ;;  %v10348_v13 = vld [vmem:[%s14828_s1 + $0xcc0] ss:$16 sps:$4 sm:$0xff]   ;;  %v10351_v14 = vld [vmem:[%s14828_s1 + $0xcc8] ss:$16 sps:$4 sm:$0xff]  }
 0x164   :  { %6834 = vmatprep.subr.bf16.mxu0 %v10272_v15  ;;  %7682 = vmatprep.subr.bf16.mxu1 %v10275_v16  ;;  %v10356_v15 = vld [vmem:[%s14828_s1 + $0xce4] ss:$16 sps:$4 sm:$0xff]   ;;  %v10359_v16 = vld [vmem:[%s14828_s1 + $0xcec] ss:$16 sps:$4 sm:$0xff]  }
 0x167   :  { %6835 = vmatpush1.bf16.msra.mxu0 %v10270_v17  ;;  %7683 = vmatpush1.bf16.msra.mxu1 %v10273_v18  ;;  %v10354_v17 = vld [vmem:[%s14828_s1 + $0xce0] ss:$16 sps:$4 sm:$0xff]   ;;  %v10357_v18 = vld [vmem:[%s14828_s1 + $0xce8] ss:$16 sps:$4 sm:$0xff]  }
 0x168   :  { %6836 = vmatprep.subr.bf16.mxu0 %v10278_v19  ;;  %7684 = vmatprep.subr.bf16.mxu1 %v10281_v20  ;;  %v10362_v19 = vld [vmem:[%s14828_s1 + $0xd04] ss:$16 sps:$4 sm:$0xff]   ;;  %v10365_v20 = vld [vmem:[%s14828_s1 + $0xd0c] ss:$16 sps:$4 sm:$0xff]  }
 0x16b   :  { %6837 = vmatpush1.bf16.msra.mxu0 %v10276_v21  ;;  %7685 = vmatpush1.bf16.msra.mxu1 %v10279_v22  ;;  %v10360_v21 = vld [vmem:[%s14828_s1 + $0xd00] ss:$16 sps:$4 sm:$0xff]   ;;  %v10363_v22 = vld [vmem:[%s14828_s1 + $0xd08] ss:$16 sps:$4 sm:$0xff]  }
 0x16c   :  { %6838 = vmatprep.subr.bf16.mxu0 %v10284_v23  ;;  %7686 = vmatprep.subr.bf16.mxu1 %v10287_v24  ;;  %v10368_v23 = vld [vmem:[%s14828_s1 + $0xd24] ss:$16 sps:$4 sm:$0xff]   ;;  %v10371_v24 = vld [vmem:[%s14828_s1 + $0xd2c] ss:$16 sps:$4 sm:$0xff]  }
 0x16f   :  { %6839 = vmatpush1.bf16.msra.mxu0 %v10282_v26  ;;  %7687 = vmatpush1.bf16.msra.mxu1 %v10285_v25  ;;  %v10366_v26 = vld [vmem:[%s14828_s1 + $0xd20] ss:$16 sps:$4 sm:$0xff]   ;;  %v10369_v25 = vld [vmem:[%s14828_s1 + $0xd28] ss:$16 sps:$4 sm:$0xff]  }
 0x170   :  { %6840 = vmatprep.subr.bf16.mxu0 %v10290_v27  ;;  %7688 = vmatprep.subr.bf16.mxu1 %v10293_v28  ;;  %v10374_v27 = vld [vmem:[%s14828_s1 + $0xd44] ss:$16 sps:$4 sm:$0xff]   ;;  %v10377_v28 = vld [vmem:[%s14828_s1 + $0xd4c] ss:$16 sps:$4 sm:$0xff]  }
 0x173   :  { %6841 = vmatpush1.bf16.msra.mxu0 %v10288_v29  ;;  %7689 = vmatpush1.bf16.msra.mxu1 %v10291_v30  ;;  %v10372_v29 = vld [vmem:[%s14828_s1 + $0xd40] ss:$16 sps:$4 sm:$0xff]   ;;  %v10375_v30 = vld [vmem:[%s14828_s1 + $0xd48] ss:$16 sps:$4 sm:$0xff]  }
 0x174   :  { %6842 = vmatprep.subr.bf16.mxu0 %v10296_v31  ;;  %7690 = vmatprep.subr.bf16.mxu1 %v10299_v32  ;;  %v10380_v31 = vld [vmem:[%s14828_s1 + $0xd64] ss:$16 sps:$4 sm:$0xff]   ;;  %v10383_v32 = vld [vmem:[%s14828_s1 + $0xd6c] ss:$16 sps:$4 sm:$0xff]  }
 0x177   :  { %6843 = vmatpush1.bf16.msra.mxu0 %v10294_v34  ;;  %7691 = vmatpush1.bf16.msra.mxu1 %v10297_v36  ;;  %v10378_v34 = vld [vmem:[%s14828_s1 + $0xd60] ss:$16 sps:$4 sm:$0xff]   ;;  %v10381_v36 = vld [vmem:[%s14828_s1 + $0xd68] ss:$16 sps:$4 sm:$0xff]  }
 0x178   :  { %6844 = vmatprep.subr.bf16.mxu0 %v10302_v33  ;;  %7692 = vmatprep.subr.bf16.mxu1 %v10305_v35  ;;  %v10386_v33 = vld [vmem:[%s14828_s1 + $0xd84] ss:$16 sps:$4 sm:$0xff]   ;;  %v10389_v35 = vld [vmem:[%s14828_s1 + $0xd8c] ss:$16 sps:$4 sm:$0xff]  }
 0x17b   :  { %6845 = vmatpush1.bf16.msra.mxu0 %v10300_v37  ;;  %7693 = vmatpush1.bf16.msra.mxu1 %v10303_v38  ;;  %v10384_v37 = vld [vmem:[%s14828_s1 + $0xd80] ss:$16 sps:$4 sm:$0xff]   ;;  %v10387_v38 = vld [vmem:[%s14828_s1 + $0xd88] ss:$16 sps:$4 sm:$0xff]  }
 0x17c   :  { %6846 = vmatprep.subr.bf16.mxu0 %v10308_v39  ;;  %7694 = vmatprep.subr.bf16.mxu1 %v10311_v40  ;;  %v10392_v39 = vld [vmem:[%s14828_s1 + $0xda4] ss:$16 sps:$4 sm:$0xff]   ;;  %v10395_v40 = vld [vmem:[%s14828_s1 + $0xdac] ss:$16 sps:$4 sm:$0xff]  }
 0x17f   :  { %6847 = vmatpush1.bf16.msra.mxu0 %v10306_v42  ;;  %7695 = vmatpush1.bf16.msra.mxu1 %v10309_v44  ;;  %v10390_v42 = vld [vmem:[%s14828_s1 + $0xda0] ss:$16 sps:$4 sm:$0xff]   ;;  %v10393_v44 = vld [vmem:[%s14828_s1 + $0xda8] ss:$16 sps:$4 sm:$0xff]  }
 0x180   :  { %6869 = vmatprep.subr.bf16.mxu0 %v10314_v41  ;;  %7717 = vmatprep.subr.bf16.mxu1 %v10317_v43  ;;  %v10398_v41 = vld [vmem:[%s14828_s1 + $0xdc4] ss:$16 sps:$4 sm:$0xff]   ;;  %v10401_v43 = vld [vmem:[%s14828_s1 + $0xdcc] ss:$16 sps:$4 sm:$0xff]  }
 0x182   :  { %6849 = vmatmul.mubr.bf16.vlgmr.msra.gmra.mrb[0].mxu0 %v8412_v47  ;;  %7697 = vmatmul.mubr.bf16.vlgmr.msra.gmra.mrb[0].mxu1 %v8412_v47  ;;  %v10404_v47 = vld [vmem:[%s14828_s1 + $0xde4] ss:$16 sps:$4 sm:$0xff]  }
 0x183   :  { %6870 = vmatpush1.bf16.msra.mxu0 %v10312_v48  ;;  %7718 = vmatpush1.bf16.msra.mxu1 %v10315_v51  ;;  %v10407_v48 = vld [vmem:[%s14828_s1 + $0xdec] ss:$16 sps:$4 sm:$0xff]   ;;  %v10402_v51 = vld [vmem:[%s14828_s1 + $0xde0] ss:$16 sps:$4 sm:$0xff]  }
 0x184   :  { %6871 = vmatprep.subr.bf16.mxu0 %v10320_v52  ;;  %7719 = vmatprep.subr.bf16.mxu1 %v10323_v49  ;;  %v10405_v52 = vld [vmem:[%s14828_s1 + $0xde8] ss:$16 sps:$4 sm:$0xff]   ;;  %v10410_v49 = vld [vmem:[%s14828_s1 + $0xe04] ss:$16 sps:$4 sm:$0xff]  }
 0x185   :  { %6858 = vmatprep.mubr.bf16.mxu0 %v8445_v54  ;;  %7706 = vmatprep.mubr.bf16.mxu1 %v8445_v54  ;;  %v77_v54 = vld [vmem:[%s14827_s0 + $0x1b0] sm:$0xff] }
 0x187   :  { %6872 = vmatpush1.bf16.msra.mxu0 %v10318_v50  ;;  %7720 = vmatpush1.bf16.msra.mxu1 %v10321_v53  ;;  %v10413_v50 = vld [vmem:[%s14828_s1 + $0xe0c] ss:$16 sps:$4 sm:$0xff]   ;;  %v61_v53 = vld [vmem:[%s14827_s0 + $0x130] sm:$0xff] }
 0x188   :  { %6873 = vmatprep.subr.bf16.mxu0 %v10326_v55  ;;  %7721 = vmatprep.subr.bf16.mxu1 %v10329_v56  ;;  %v8414_v55 = vcombine.low %v12629_v57, %v12634_v58  ;;  %v10408_v56 = vld [vmem:[%s14828_s1 + $0xe00] ss:$16 sps:$4 sm:$0xff]   ;;  %v10419_v57 = vld [vmem:[%s14828_s1 + $0xe2c] ss:$16 sps:$4 sm:$0xff]  }
 0x189   :  { %v10414_v58 = vld [vmem:[%s14828_s1 + $0xe20] ss:$16 sps:$4 sm:$0xff]  }
 0x18a   :  { %6859 = vmatmul.mubr.bf16.gmra.mrb[4].mxu0 %v8444_v59  ;;  %7707 = vmatmul.mubr.bf16.gmra.mrb[4].mxu1 %v8444_v59  ;;  %v10411_v59 = vld [vmem:[%s14828_s1 + $0xe08] ss:$16 sps:$4 sm:$0xff]  }
 0x18b   :  { %6874 = vmatpush1.bf16.msra.mxu0 %v10324_v60  ;;  %7722 = vmatpush1.bf16.msra.mxu1 %v10327_v61  ;;  %v10416_v60 = vld [vmem:[%s14828_s1 + $0xe24] ss:$16 sps:$4 sm:$0xff]   ;;  %v10417_v61 = vld [vmem:[%s14828_s1 + $0xe28] ss:$16 sps:$4 sm:$0xff]  }
 0x18c   :  { %6875 = vmatprep.subr.bf16.mxu0 %v10332_v62  ;;  %7723 = vmatprep.subr.bf16.mxu1 %v10335_v63  ;;  %v8447_v62 = vcombine.high %v61_v53, %v77_v54  ;;  %v10422_v63 = vld [vmem:[%s14828_s1 + $0xe44] ss:$16 sps:$4 sm:$0xff]  }
 0x18d   :  { %6901 = vmatprep.mubr.bf16.mxu0 %v8415_v0  ;;  %7749 = vmatprep.mubr.bf16.mxu1 %v8415_v0  ;;  %v10425_v0 = vld [vmem:[%s14828_s1 + $0xe4c] ss:$16 sps:$4 sm:$0xff]  }
 0x18f   :  { %6876 = vmatpush1.bf16.msra.mxu0 %v10330_v1  ;;  %7724 = vmatpush1.bf16.msra.mxu1 %v10333_v2  ;;  %v12841_v1 = vld [vmem:[%s14827_s0 + $0x38] sm:$0xff] }
 0x190   :  { %6877 = vmatprep.subr.bf16.mxu0 %v10338_v3  ;;  %7725 = vmatprep.subr.bf16.mxu1 %v10341_v4  ;;  %v12846_v2 = vld [vmem:[%s14827_s0 + $0xb8] sm:$0xff]  ;;  %v8446_v3 = vcombine.low %v61_v53, %v77_v54  ;;  %v10420_v4 = vld [vmem:[%s14828_s1 + $0xe40] ss:$16 sps:$4 sm:$0xff]  }
 0x191   :  { %v10492_v53 = vld [vmem:[%s14828_s1 + $0xfc0] ss:$16 sps:$4 sm:$0xff]   ;;  %v10495_v54 = vld [vmem:[%s14828_s1 + $0xfc8] ss:$16 sps:$4 sm:$0xff]  }
 0x193   :  { %6878 = vmatpush1.bf16.msra.mxu0 %v10336_v5  ;;  %7726 = vmatpush1.bf16.msra.mxu1 %v10339_v6  ;;  %v10423_v5 = vld [vmem:[%s14828_s1 + $0xe48] ss:$16 sps:$4 sm:$0xff]   ;;  %v10428_v6 = vld [vmem:[%s14828_s1 + $0xe64] ss:$16 sps:$4 sm:$0xff]  }
 0x194   :  { %6879 = vmatprep.subr.bf16.mxu0 %v10344_v7  ;;  %7727 = vmatprep.subr.bf16.mxu1 %v10347_v8  ;;  %v10431_v7 = vld [vmem:[%s14828_s1 + $0xe6c] ss:$16 sps:$4 sm:$0xff]   ;;  %v8417_v8 = vcombine.high %v12841_v1, %v12846_v2 }
 0x197   :  { %6880 = vmatpush1.bf16.msra.mxu0 %v10342_v9  ;;  %7728 = vmatpush1.bf16.msra.mxu1 %v10345_v10  ;;  %v10426_v9 = vld [vmem:[%s14828_s1 + $0xe60] ss:$16 sps:$4 sm:$0xff]   ;;  %v10429_v10 = vld [vmem:[%s14828_s1 + $0xe68] ss:$16 sps:$4 sm:$0xff]  }
 0x198   :  { %6881 = vmatprep.subr.bf16.mxu0 %v10350_v11  ;;  %7729 = vmatprep.subr.bf16.mxu1 %v10353_v12  ;;  %v10434_v11 = vld [vmem:[%s14828_s1 + $0xe84] ss:$16 sps:$4 sm:$0xff]   ;;  %v10437_v12 = vld [vmem:[%s14828_s1 + $0xe8c] ss:$16 sps:$4 sm:$0xff]  }
 0x19b   :  { %6882 = vmatpush1.bf16.msra.mxu0 %v10348_v13  ;;  %7730 = vmatpush1.bf16.msra.mxu1 %v10351_v14  ;;  %v10432_v13 = vld [vmem:[%s14828_s1 + $0xe80] ss:$16 sps:$4 sm:$0xff]   ;;  %v10435_v14 = vld [vmem:[%s14828_s1 + $0xe88] ss:$16 sps:$4 sm:$0xff]  }
 0x19c   :  { %6883 = vmatprep.subr.bf16.mxu0 %v10356_v15  ;;  %7731 = vmatprep.subr.bf16.mxu1 %v10359_v16  ;;  %v10440_v15 = vld [vmem:[%s14828_s1 + $0xea4] ss:$16 sps:$4 sm:$0xff]   ;;  %v10443_v16 = vld [vmem:[%s14828_s1 + $0xeac] ss:$16 sps:$4 sm:$0xff]  }
 0x19f   :  { %6884 = vmatpush1.bf16.msra.mxu0 %v10354_v17  ;;  %7732 = vmatpush1.bf16.msra.mxu1 %v10357_v18  ;;  %v10438_v17 = vld [vmem:[%s14828_s1 + $0xea0] ss:$16 sps:$4 sm:$0xff]   ;;  %v10441_v18 = vld [vmem:[%s14828_s1 + $0xea8] ss:$16 sps:$4 sm:$0xff]  }
 0x1a0   :  { %6885 = vmatprep.subr.bf16.mxu0 %v10362_v19  ;;  %7733 = vmatprep.subr.bf16.mxu1 %v10365_v20  ;;  %v10446_v19 = vld [vmem:[%s14828_s1 + $0xec4] ss:$16 sps:$4 sm:$0xff]   ;;  %v10449_v20 = vld [vmem:[%s14828_s1 + $0xecc] ss:$16 sps:$4 sm:$0xff]  }
 0x1a3   :  { %6886 = vmatpush1.bf16.msra.mxu0 %v10360_v21  ;;  %7734 = vmatpush1.bf16.msra.mxu1 %v10363_v22  ;;  %v10444_v21 = vld [vmem:[%s14828_s1 + $0xec0] ss:$16 sps:$4 sm:$0xff]   ;;  %v10447_v22 = vld [vmem:[%s14828_s1 + $0xec8] ss:$16 sps:$4 sm:$0xff]  }
 0x1a4   :  { %6887 = vmatprep.subr.bf16.mxu0 %v10368_v23  ;;  %7735 = vmatprep.subr.bf16.mxu1 %v10371_v24  ;;  %v10452_v23 = vld [vmem:[%s14828_s1 + $0xee4] ss:$16 sps:$4 sm:$0xff]   ;;  %v10455_v24 = vld [vmem:[%s14828_s1 + $0xeec] ss:$16 sps:$4 sm:$0xff]  }
 0x1a7   :  { %6888 = vmatpush1.bf16.msra.mxu0 %v10366_v26  ;;  %7736 = vmatpush1.bf16.msra.mxu1 %v10369_v25  ;;  %v10450_v26 = vld [vmem:[%s14828_s1 + $0xee0] ss:$16 sps:$4 sm:$0xff]   ;;  %v10453_v25 = vld [vmem:[%s14828_s1 + $0xee8] ss:$16 sps:$4 sm:$0xff]  }
 0x1a8   :  { %6889 = vmatprep.subr.bf16.mxu0 %v10374_v27  ;;  %7737 = vmatprep.subr.bf16.mxu1 %v10377_v28  ;;  %v10458_v27 = vld [vmem:[%s14828_s1 + $0xf04] ss:$16 sps:$4 sm:$0xff]   ;;  %v10461_v28 = vld [vmem:[%s14828_s1 + $0xf0c] ss:$16 sps:$4 sm:$0xff]  }
 0x1ab   :  { %6890 = vmatpush1.bf16.msra.mxu0 %v10372_v29  ;;  %7738 = vmatpush1.bf16.msra.mxu1 %v10375_v30  ;;  %v10456_v29 = vld [vmem:[%s14828_s1 + $0xf00] ss:$16 sps:$4 sm:$0xff]   ;;  %v10459_v30 = vld [vmem:[%s14828_s1 + $0xf08] ss:$16 sps:$4 sm:$0xff]  }
 0x1ac   :  { %6891 = vmatprep.subr.bf16.mxu0 %v10380_v31  ;;  %7739 = vmatprep.subr.bf16.mxu1 %v10383_v32  ;;  %v10464_v31 = vld [vmem:[%s14828_s1 + $0xf24] ss:$16 sps:$4 sm:$0xff]   ;;  %v10467_v32 = vld [vmem:[%s14828_s1 + $0xf2c] ss:$16 sps:$4 sm:$0xff]  }
 0x1af   :  { %6892 = vmatpush1.bf16.msra.mxu0 %v10378_v34  ;;  %7740 = vmatpush1.bf16.msra.mxu1 %v10381_v36  ;;  %v10462_v34 = vld [vmem:[%s14828_s1 + $0xf20] ss:$16 sps:$4 sm:$0xff]   ;;  %v10465_v36 = vld [vmem:[%s14828_s1 + $0xf28] ss:$16 sps:$4 sm:$0xff]  }
 0x1b0   :  { %6893 = vmatprep.subr.bf16.mxu0 %v10386_v33  ;;  %7741 = vmatprep.subr.bf16.mxu1 %v10389_v35  ;;  %v10470_v33 = vld [vmem:[%s14828_s1 + $0xf44] ss:$16 sps:$4 sm:$0xff]   ;;  %v10473_v35 = vld [vmem:[%s14828_s1 + $0xf4c] ss:$16 sps:$4 sm:$0xff]  }
 0x1b3   :  { %6894 = vmatpush1.bf16.msra.mxu0 %v10384_v37  ;;  %7742 = vmatpush1.bf16.msra.mxu1 %v10387_v38  ;;  %v10468_v37 = vld [vmem:[%s14828_s1 + $0xf40] ss:$16 sps:$4 sm:$0xff]   ;;  %v10471_v38 = vld [vmem:[%s14828_s1 + $0xf48] ss:$16 sps:$4 sm:$0xff]  }
 0x1b4   :  { %6895 = vmatprep.subr.bf16.mxu0 %v10392_v39  ;;  %7743 = vmatprep.subr.bf16.mxu1 %v10395_v40  ;;  %v10476_v39 = vld [vmem:[%s14828_s1 + $0xf64] ss:$16 sps:$4 sm:$0xff]   ;;  %v10479_v40 = vld [vmem:[%s14828_s1 + $0xf6c] ss:$16 sps:$4 sm:$0xff]  }
 0x1b7   :  { %6896 = vmatpush1.bf16.msra.mxu0 %v10390_v42  ;;  %7744 = vmatpush1.bf16.msra.mxu1 %v10393_v44  ;;  %v10474_v42 = vld [vmem:[%s14828_s1 + $0xf60] ss:$16 sps:$4 sm:$0xff]   ;;  %v10477_v44 = vld [vmem:[%s14828_s1 + $0xf68] ss:$16 sps:$4 sm:$0xff]  }
 0x1b8   :  { %6897 = vmatprep.subr.bf16.mxu0 %v10398_v41  ;;  %7745 = vmatprep.subr.bf16.mxu1 %v10401_v43  ;;  %v10482_v41 = vld [vmem:[%s14828_s1 + $0xf84] ss:$16 sps:$4 sm:$0xff]   ;;  %v10485_v43 = vld [vmem:[%s14828_s1 + $0xf8c] ss:$16 sps:$4 sm:$0xff]  }
 0x1bb   :  { %6898 = vmatpush1.bf16.msra.mxu0 %v10396_v45  ;;  %7746 = vmatpush1.bf16.msra.mxu1 %v10399_v46  ;;  %v10480_v45 = vld [vmem:[%s14828_s1 + $0xf80] ss:$16 sps:$4 sm:$0xff]   ;;  %v10483_v46 = vld [vmem:[%s14828_s1 + $0xf88] ss:$16 sps:$4 sm:$0xff]  }
 0x1bc   :  { %6899 = vmatprep.subr.bf16.mxu0 %v10404_v47  ;;  %7747 = vmatprep.subr.bf16.mxu1 %v10407_v48  ;;  %v10488_v47 = vld [vmem:[%s14828_s1 + $0xfa4] ss:$16 sps:$4 sm:$0xff]   ;;  %v10491_v48 = vld [vmem:[%s14828_s1 + $0xfac] ss:$16 sps:$4 sm:$0xff]  }
 0x1bf   :  { %6900 = vmatpush1.bf16.msra.mxu0 %v10402_v51  ;;  %7748 = vmatpush1.bf16.msra.mxu1 %v10405_v52  ;;  %v10486_v51 = vld [vmem:[%s14828_s1 + $0xfa0] ss:$16 sps:$4 sm:$0xff]   ;;  %v10489_v52 = vld [vmem:[%s14828_s1 + $0xfa8] ss:$16 sps:$4 sm:$0xff]  }
 0x1c0   :  { %6922 = vmatprep.subr.bf16.mxu0 %v10410_v49  ;;  %7770 = vmatprep.subr.bf16.mxu1 %v10413_v50  ;;  %v10494_v49 = vld [vmem:[%s14828_s1 + $0xfc4] ss:$16 sps:$4 sm:$0xff]   ;;  %v10497_v50 = vld [vmem:[%s14828_s1 + $0xfcc] ss:$16 sps:$4 sm:$0xff]  }
 0x1c2   :  { %6902 = vmatmul.mubr.bf16.vlgmr.msra.gmra.mrb[0].mxu0 %v8414_v55  ;;  %7750 = vmatmul.mubr.bf16.vlgmr.msra.gmra.mrb[0].mxu1 %v8414_v55  ;;  %v10500_v55 = vld [vmem:[%s14828_s1 + $0xfe4] ss:$16 sps:$4 sm:$0xff]  }
 0x1c3   :  { %6923 = vmatpush1.bf16.msra.mxu0 %v10408_v56  ;;  %7771 = vmatpush1.bf16.msra.mxu1 %v10411_v59  ;;  %v10503_v56 = vld [vmem:[%s14828_s1 + $0xfec] ss:$16 sps:$4 sm:$0xff]   ;;  %v10498_v59 = vld [vmem:[%s14828_s1 + $0xfe0] ss:$16 sps:$4 sm:$0xff]  }
 0x1c4   :  { %6924 = vmatprep.subr.bf16.mxu0 %v10416_v60  ;;  %7772 = vmatprep.subr.bf16.mxu1 %v10419_v57  ;;  %v10501_v60 = vld [vmem:[%s14828_s1 + $0xfe8] ss:$16 sps:$4 sm:$0xff]   ;;  %v10506_v57 = vld [vmem:[%s14828_s1 + $0x1004] ss:$16 sps:$4 sm:$0xff]  }
 0x1c5   :  { %6911 = vmatprep.mubr.bf16.mxu0 %v8447_v62  ;;  %7759 = vmatprep.mubr.bf16.mxu1 %v8447_v62  ;;  %v78_v62 = vld [vmem:[%s14827_s0 + $0x1b8] sm:$0xff] }
 0x1c7   :  { %6925 = vmatpush1.bf16.msra.mxu0 %v10414_v58  ;;  %7773 = vmatpush1.bf16.msra.mxu1 %v10417_v61  ;;  %v10509_v58 = vld [vmem:[%s14828_s1 + $0x100c] ss:$16 sps:$4 sm:$0xff]  }
 0x1c8   :  { %6926 = vmatprep.subr.bf16.mxu0 %v10422_v63  ;;  %7774 = vmatprep.subr.bf16.mxu1 %v10425_v0  ;;  %v62_v61 = vld [vmem:[%s14827_s0 + $0x138] sm:$0xff]  ;;  %v8416_v63 = vcombine.low %v12841_v1, %v12846_v2  ;;  %v10504_v0 = vld [vmem:[%s14828_s1 + $0x1000] ss:$16 sps:$4 sm:$0xff]  }
 0x1c9   :  { %v10515_v1 = vld [vmem:[%s14828_s1 + $0x102c] ss:$16 sps:$4 sm:$0xff]   ;;  %v10510_v2 = vld [vmem:[%s14828_s1 + $0x1020] ss:$16 sps:$4 sm:$0xff]  }
 0x1ca   :  { %6912 = vmatmul.mubr.bf16.gmra.mrb[4].mxu0 %v8446_v3  ;;  %7760 = vmatmul.mubr.bf16.gmra.mrb[4].mxu1 %v8446_v3  ;;  %v10507_v3 = vld [vmem:[%s14828_s1 + $0x1008] ss:$16 sps:$4 sm:$0xff]  }
 0x1cb   :  { %6927 = vmatpush1.bf16.msra.mxu0 %v10420_v4  ;;  %7775 = vmatpush1.bf16.msra.mxu1 %v10423_v5  ;;  %v10512_v4 = vld [vmem:[%s14828_s1 + $0x1024] ss:$16 sps:$4 sm:$0xff]   ;;  %v10513_v5 = vld [vmem:[%s14828_s1 + $0x1028] ss:$16 sps:$4 sm:$0xff]  }
 0x1cc   :  { %6928 = vmatprep.subr.bf16.mxu0 %v10428_v6  ;;  %7776 = vmatprep.subr.bf16.mxu1 %v10431_v7  ;;  %v8449_v6 = vcombine.high %v62_v61, %v78_v62  ;;  %v10518_v7 = vld [vmem:[%s14828_s1 + $0x1044] ss:$16 sps:$4 sm:$0xff]  }
 0x1cd   :  { %6954 = vmatprep.mubr.bf16.mxu0 %v8417_v8  ;;  %7802 = vmatprep.mubr.bf16.mxu1 %v8417_v8  ;;  %v10521_v8 = vld [vmem:[%s14828_s1 + $0x104c] ss:$16 sps:$4 sm:$0xff]  }
 0x1cf   :  { %6929 = vmatpush1.bf16.msra.mxu0 %v10426_v9  ;;  %7777 = vmatpush1.bf16.msra.mxu1 %v10429_v10  ;;  %v13053_v9 = vld [vmem:[%s14827_s0 + $0x40] sm:$0xff] }
 0x1d0   :  { %6930 = vmatprep.subr.bf16.mxu0 %v10434_v11  ;;  %7778 = vmatprep.subr.bf16.mxu1 %v10437_v12  ;;  %v13058_v10 = vld [vmem:[%s14827_s0 + $0xc0] sm:$0xff]  ;;  %v8448_v11 = vcombine.low %v62_v61, %v78_v62  ;;  %v10591_v62 = vld [vmem:[%s14828_s1 + $0x11c8] ss:$16 sps:$4 sm:$0xff]  }
 0x1d1   :  { %v10516_v12 = vld [vmem:[%s14828_s1 + $0x1040] ss:$16 sps:$4 sm:$0xff]  }
 0x1d2   :  { %v10588_v61 = vld [vmem:[%s14828_s1 + $0x11c0] ss:$16 sps:$4 sm:$0xff]  }
 0x1d3   :  { %6931 = vmatpush1.bf16.msra.mxu0 %v10432_v13  ;;  %7779 = vmatpush1.bf16.msra.mxu1 %v10435_v14  ;;  %v10519_v13 = vld [vmem:[%s14828_s1 + $0x1048] ss:$16 sps:$4 sm:$0xff]   ;;  %v10524_v14 = vld [vmem:[%s14828_s1 + $0x1064] ss:$16 sps:$4 sm:$0xff]  }
 0x1d4   :  { %6932 = vmatprep.subr.bf16.mxu0 %v10440_v15  ;;  %7780 = vmatprep.subr.bf16.mxu1 %v10443_v16  ;;  %v10527_v15 = vld [vmem:[%s14828_s1 + $0x106c] ss:$16 sps:$4 sm:$0xff]   ;;  %v8419_v16 = vcombine.high %v13053_v9, %v13058_v10 }
 0x1d7   :  { %6933 = vmatpush1.bf16.msra.mxu0 %v10438_v17  ;;  %7781 = vmatpush1.bf16.msra.mxu1 %v10441_v18  ;;  %v10522_v17 = vld [vmem:[%s14828_s1 + $0x1060] ss:$16 sps:$4 sm:$0xff]   ;;  %v10525_v18 = vld [vmem:[%s14828_s1 + $0x1068] ss:$16 sps:$4 sm:$0xff]  }
 0x1d8   :  { %6934 = vmatprep.subr.bf16.mxu0 %v10446_v19  ;;  %7782 = vmatprep.subr.bf16.mxu1 %v10449_v20  ;;  %v10530_v19 = vld [vmem:[%s14828_s1 + $0x1084] ss:$16 sps:$4 sm:$0xff]   ;;  %v10533_v20 = vld [vmem:[%s14828_s1 + $0x108c] ss:$16 sps:$4 sm:$0xff]  }
 0x1db   :  { %6935 = vmatpush1.bf16.msra.mxu0 %v10444_v21  ;;  %7783 = vmatpush1.bf16.msra.mxu1 %v10447_v22  ;;  %v10528_v21 = vld [vmem:[%s14828_s1 + $0x1080] ss:$16 sps:$4 sm:$0xff]   ;;  %v10531_v22 = vld [vmem:[%s14828_s1 + $0x1088] ss:$16 sps:$4 sm:$0xff]  }
 0x1dc   :  { %6936 = vmatprep.subr.bf16.mxu0 %v10452_v23  ;;  %7784 = vmatprep.subr.bf16.mxu1 %v10455_v24  ;;  %v10536_v23 = vld [vmem:[%s14828_s1 + $0x10a4] ss:$16 sps:$4 sm:$0xff]   ;;  %v10539_v24 = vld [vmem:[%s14828_s1 + $0x10ac] ss:$16 sps:$4 sm:$0xff]  }
 0x1df   :  { %6937 = vmatpush1.bf16.msra.mxu0 %v10450_v26  ;;  %7785 = vmatpush1.bf16.msra.mxu1 %v10453_v25  ;;  %v10534_v26 = vld [vmem:[%s14828_s1 + $0x10a0] ss:$16 sps:$4 sm:$0xff]   ;;  %v10537_v25 = vld [vmem:[%s14828_s1 + $0x10a8] ss:$16 sps:$4 sm:$0xff]  }
 0x1e0   :  { %6938 = vmatprep.subr.bf16.mxu0 %v10458_v27  ;;  %7786 = vmatprep.subr.bf16.mxu1 %v10461_v28  ;;  %v10542_v27 = vld [vmem:[%s14828_s1 + $0x10c4] ss:$16 sps:$4 sm:$0xff]   ;;  %v10545_v28 = vld [vmem:[%s14828_s1 + $0x10cc] ss:$16 sps:$4 sm:$0xff]  }
 0x1e3   :  { %6939 = vmatpush1.bf16.msra.mxu0 %v10456_v29  ;;  %7787 = vmatpush1.bf16.msra.mxu1 %v10459_v30  ;;  %v10540_v29 = vld [vmem:[%s14828_s1 + $0x10c0] ss:$16 sps:$4 sm:$0xff]   ;;  %v10543_v30 = vld [vmem:[%s14828_s1 + $0x10c8] ss:$16 sps:$4 sm:$0xff]  }
 0x1e4   :  { %6940 = vmatprep.subr.bf16.mxu0 %v10464_v31  ;;  %7788 = vmatprep.subr.bf16.mxu1 %v10467_v32  ;;  %v10548_v31 = vld [vmem:[%s14828_s1 + $0x10e4] ss:$16 sps:$4 sm:$0xff]   ;;  %v10551_v32 = vld [vmem:[%s14828_s1 + $0x10ec] ss:$16 sps:$4 sm:$0xff]  }
 0x1e7   :  { %6941 = vmatpush1.bf16.msra.mxu0 %v10462_v34  ;;  %7789 = vmatpush1.bf16.msra.mxu1 %v10465_v36  ;;  %v10546_v34 = vld [vmem:[%s14828_s1 + $0x10e0] ss:$16 sps:$4 sm:$0xff]   ;;  %v10549_v36 = vld [vmem:[%s14828_s1 + $0x10e8] ss:$16 sps:$4 sm:$0xff]  }
 0x1e8   :  { %6942 = vmatprep.subr.bf16.mxu0 %v10470_v33  ;;  %7790 = vmatprep.subr.bf16.mxu1 %v10473_v35  ;;  %v10554_v33 = vld [vmem:[%s14828_s1 + $0x1104] ss:$16 sps:$4 sm:$0xff]   ;;  %v10557_v35 = vld [vmem:[%s14828_s1 + $0x110c] ss:$16 sps:$4 sm:$0xff]  }
 0x1eb   :  { %6943 = vmatpush1.bf16.msra.mxu0 %v10468_v37  ;;  %7791 = vmatpush1.bf16.msra.mxu1 %v10471_v38  ;;  %v10552_v37 = vld [vmem:[%s14828_s1 + $0x1100] ss:$16 sps:$4 sm:$0xff]   ;;  %v10555_v38 = vld [vmem:[%s14828_s1 + $0x1108] ss:$16 sps:$4 sm:$0xff]  }
 0x1ec   :  { %6944 = vmatprep.subr.bf16.mxu0 %v10476_v39  ;;  %7792 = vmatprep.subr.bf16.mxu1 %v10479_v40  ;;  %v10560_v39 = vld [vmem:[%s14828_s1 + $0x1124] ss:$16 sps:$4 sm:$0xff]   ;;  %v10563_v40 = vld [vmem:[%s14828_s1 + $0x112c] ss:$16 sps:$4 sm:$0xff]  }
 0x1ef   :  { %6945 = vmatpush1.bf16.msra.mxu0 %v10474_v42  ;;  %7793 = vmatpush1.bf16.msra.mxu1 %v10477_v44  ;;  %v10558_v42 = vld [vmem:[%s14828_s1 + $0x1120] ss:$16 sps:$4 sm:$0xff]   ;;  %v10561_v44 = vld [vmem:[%s14828_s1 + $0x1128] ss:$16 sps:$4 sm:$0xff]  }
 0x1f0   :  { %6946 = vmatprep.subr.bf16.mxu0 %v10482_v41  ;;  %7794 = vmatprep.subr.bf16.mxu1 %v10485_v43  ;;  %v10566_v41 = vld [vmem:[%s14828_s1 + $0x1144] ss:$16 sps:$4 sm:$0xff]   ;;  %v10569_v43 = vld [vmem:[%s14828_s1 + $0x114c] ss:$16 sps:$4 sm:$0xff]  }
 0x1f3   :  { %6947 = vmatpush1.bf16.msra.mxu0 %v10480_v45  ;;  %7795 = vmatpush1.bf16.msra.mxu1 %v10483_v46  ;;  %v10564_v45 = vld [vmem:[%s14828_s1 + $0x1140] ss:$16 sps:$4 sm:$0xff]   ;;  %v10567_v46 = vld [vmem:[%s14828_s1 + $0x1148] ss:$16 sps:$4 sm:$0xff]  }
 0x1f4   :  { %6948 = vmatprep.subr.bf16.mxu0 %v10488_v47  ;;  %7796 = vmatprep.subr.bf16.mxu1 %v10491_v48  ;;  %v10572_v47 = vld [vmem:[%s14828_s1 + $0x1164] ss:$16 sps:$4 sm:$0xff]   ;;  %v10575_v48 = vld [vmem:[%s14828_s1 + $0x116c] ss:$16 sps:$4 sm:$0xff]  }
 0x1f7   :  { %6949 = vmatpush1.bf16.msra.mxu0 %v10486_v51  ;;  %7797 = vmatpush1.bf16.msra.mxu1 %v10489_v52  ;;  %v10570_v51 = vld [vmem:[%s14828_s1 + $0x1160] ss:$16 sps:$4 sm:$0xff]   ;;  %v10573_v52 = vld [vmem:[%s14828_s1 + $0x1168] ss:$16 sps:$4 sm:$0xff]  }
 0x1f8   :  { %6950 = vmatprep.subr.bf16.mxu0 %v10494_v49  ;;  %7798 = vmatprep.subr.bf16.mxu1 %v10497_v50  ;;  %v10578_v49 = vld [vmem:[%s14828_s1 + $0x1184] ss:$16 sps:$4 sm:$0xff]   ;;  %v10581_v50 = vld [vmem:[%s14828_s1 + $0x118c] ss:$16 sps:$4 sm:$0xff]  }
 0x1fb   :  { %6951 = vmatpush1.bf16.msra.mxu0 %v10492_v53  ;;  %7799 = vmatpush1.bf16.msra.mxu1 %v10495_v54  ;;  %v10576_v53 = vld [vmem:[%s14828_s1 + $0x1180] ss:$16 sps:$4 sm:$0xff]   ;;  %v10579_v54 = vld [vmem:[%s14828_s1 + $0x1188] ss:$16 sps:$4 sm:$0xff]  }
 0x1fc   :  { %6952 = vmatprep.subr.bf16.mxu0 %v10500_v55  ;;  %7800 = vmatprep.subr.bf16.mxu1 %v10503_v56  ;;  %v10584_v55 = vld [vmem:[%s14828_s1 + $0x11a4] ss:$16 sps:$4 sm:$0xff]   ;;  %v10587_v56 = vld [vmem:[%s14828_s1 + $0x11ac] ss:$16 sps:$4 sm:$0xff]  }
 0x1ff   :  { %6953 = vmatpush1.bf16.msra.mxu0 %v10498_v59  ;;  %7801 = vmatpush1.bf16.msra.mxu1 %v10501_v60  ;;  %v10582_v59 = vld [vmem:[%s14828_s1 + $0x11a0] ss:$16 sps:$4 sm:$0xff]   ;;  %v10585_v60 = vld [vmem:[%s14828_s1 + $0x11a8] ss:$16 sps:$4 sm:$0xff]  }
 0x200   :  { %6975 = vmatprep.subr.bf16.mxu0 %v10506_v57  ;;  %7823 = vmatprep.subr.bf16.mxu1 %v10509_v58  ;;  %v10590_v57 = vld [vmem:[%s14828_s1 + $0x11c4] ss:$16 sps:$4 sm:$0xff]   ;;  %v10593_v58 = vld [vmem:[%s14828_s1 + $0x11cc] ss:$16 sps:$4 sm:$0xff]  }
 0x202   :  { %6955 = vmatmul.mubr.bf16.vlgmr.msra.gmra.mrb[0].mxu0 %v8416_v63  ;;  %7803 = vmatmul.mubr.bf16.vlgmr.msra.gmra.mrb[0].mxu1 %v8416_v63  ;;  %v10596_v63 = vld [vmem:[%s14828_s1 + $0x11e4] ss:$16 sps:$4 sm:$0xff]  }
 0x203   :  { %6976 = vmatpush1.bf16.msra.mxu0 %v10504_v0  ;;  %7824 = vmatpush1.bf16.msra.mxu1 %v10507_v3  ;;  %v10599_v0 = vld [vmem:[%s14828_s1 + $0x11ec] ss:$16 sps:$4 sm:$0xff]   ;;  %v10594_v3 = vld [vmem:[%s14828_s1 + $0x11e0] ss:$16 sps:$4 sm:$0xff]  }
 0x204   :  { %6977 = vmatprep.subr.bf16.mxu0 %v10512_v4  ;;  %7825 = vmatprep.subr.bf16.mxu1 %v10515_v1  ;;  %v10597_v4 = vld [vmem:[%s14828_s1 + $0x11e8] ss:$16 sps:$4 sm:$0xff]   ;;  %v10602_v1 = vld [vmem:[%s14828_s1 + $0x1204] ss:$16 sps:$4 sm:$0xff]  }
 0x205   :  { %6964 = vmatprep.mubr.bf16.mxu0 %v8449_v6  ;;  %7812 = vmatprep.mubr.bf16.mxu1 %v8449_v6  ;;  %v79_v6 = vld [vmem:[%s14827_s0 + $0x1c0] sm:$0xff] }
 0x207   :  { %6978 = vmatpush1.bf16.msra.mxu0 %v10510_v2  ;;  %7826 = vmatpush1.bf16.msra.mxu1 %v10513_v5  ;;  %v10605_v2 = vld [vmem:[%s14828_s1 + $0x120c] ss:$16 sps:$4 sm:$0xff]   ;;  %v63_v5 = vld [vmem:[%s14827_s0 + $0x140] sm:$0xff] }
 0x208   :  { %6979 = vmatprep.subr.bf16.mxu0 %v10518_v7  ;;  %7827 = vmatprep.subr.bf16.mxu1 %v10521_v8  ;;  %v8418_v7 = vcombine.low %v13053_v9, %v13058_v10  ;;  %v10600_v8 = vld [vmem:[%s14828_s1 + $0x1200] ss:$16 sps:$4 sm:$0xff]   ;;  %v10611_v9 = vld [vmem:[%s14828_s1 + $0x122c] ss:$16 sps:$4 sm:$0xff]  }
 0x209   :  { %v10606_v10 = vld [vmem:[%s14828_s1 + $0x1220] ss:$16 sps:$4 sm:$0xff]  }
 0x20a   :  { %6965 = vmatmul.mubr.bf16.gmra.mrb[4].mxu0 %v8448_v11  ;;  %7813 = vmatmul.mubr.bf16.gmra.mrb[4].mxu1 %v8448_v11  ;;  %v10603_v11 = vld [vmem:[%s14828_s1 + $0x1208] ss:$16 sps:$4 sm:$0xff]  }
 0x20b   :  { %6980 = vmatpush1.bf16.msra.mxu0 %v10516_v12  ;;  %7828 = vmatpush1.bf16.msra.mxu1 %v10519_v13  ;;  %v10608_v12 = vld [vmem:[%s14828_s1 + $0x1224] ss:$16 sps:$4 sm:$0xff]   ;;  %v10609_v13 = vld [vmem:[%s14828_s1 + $0x1228] ss:$16 sps:$4 sm:$0xff]  }
 0x20c   :  { %6981 = vmatprep.subr.bf16.mxu0 %v10524_v14  ;;  %7829 = vmatprep.subr.bf16.mxu1 %v10527_v15  ;;  %v8451_v14 = vcombine.high %v63_v5, %v79_v6  ;;  %v10614_v15 = vld [vmem:[%s14828_s1 + $0x1244] ss:$16 sps:$4 sm:$0xff]  }
 0x20d   :  { %7007 = vmatprep.mubr.bf16.mxu0 %v8419_v16  ;;  %7855 = vmatprep.mubr.bf16.mxu1 %v8419_v16  ;;  %v10617_v16 = vld [vmem:[%s14828_s1 + $0x124c] ss:$16 sps:$4 sm:$0xff]  }
 0x20f   :  { %6982 = vmatpush1.bf16.msra.mxu0 %v10522_v17  ;;  %7830 = vmatpush1.bf16.msra.mxu1 %v10525_v18  ;;  %v13265_v17 = vld [vmem:[%s14827_s0 + $0x48] sm:$0xff] }
 0x210   :  { %6983 = vmatprep.subr.bf16.mxu0 %v10530_v19  ;;  %7831 = vmatprep.subr.bf16.mxu1 %v10533_v20  ;;  %v13270_v18 = vld [vmem:[%s14827_s0 + $0xc8] sm:$0xff]  ;;  %v8450_v19 = vcombine.low %v63_v5, %v79_v6  ;;  %v10612_v20 = vld [vmem:[%s14828_s1 + $0x1240] ss:$16 sps:$4 sm:$0xff]  }
 0x213   :  { %6984 = vmatpush1.bf16.msra.mxu0 %v10528_v21  ;;  %7832 = vmatpush1.bf16.msra.mxu1 %v10531_v22  ;;  %v10615_v21 = vld [vmem:[%s14828_s1 + $0x1248] ss:$16 sps:$4 sm:$0xff]   ;;  %v10620_v22 = vld [vmem:[%s14828_s1 + $0x1264] ss:$16 sps:$4 sm:$0xff]  }
 0x214   :  { %6985 = vmatprep.subr.bf16.mxu0 %v10536_v23  ;;  %7833 = vmatprep.subr.bf16.mxu1 %v10539_v24  ;;  %v10623_v23 = vld [vmem:[%s14828_s1 + $0x126c] ss:$16 sps:$4 sm:$0xff]   ;;  %v8421_v24 = vcombine.high %v13265_v17, %v13270_v18 }
 0x217   :  { %6986 = vmatpush1.bf16.msra.mxu0 %v10534_v26  ;;  %7834 = vmatpush1.bf16.msra.mxu1 %v10537_v25  ;;  %v10618_v26 = vld [vmem:[%s14828_s1 + $0x1260] ss:$16 sps:$4 sm:$0xff]   ;;  %v10621_v25 = vld [vmem:[%s14828_s1 + $0x1268] ss:$16 sps:$4 sm:$0xff]  }
 0x218   :  { %6987 = vmatprep.subr.bf16.mxu0 %v10542_v27  ;;  %7835 = vmatprep.subr.bf16.mxu1 %v10545_v28  ;;  %v10626_v27 = vld [vmem:[%s14828_s1 + $0x1284] ss:$16 sps:$4 sm:$0xff]   ;;  %v10629_v28 = vld [vmem:[%s14828_s1 + $0x128c] ss:$16 sps:$4 sm:$0xff]  }
 0x21b   :  { %6988 = vmatpush1.bf16.msra.mxu0 %v10540_v29  ;;  %7836 = vmatpush1.bf16.msra.mxu1 %v10543_v30  ;;  %v10624_v29 = vld [vmem:[%s14828_s1 + $0x1280] ss:$16 sps:$4 sm:$0xff]   ;;  %v10627_v30 = vld [vmem:[%s14828_s1 + $0x1288] ss:$16 sps:$4 sm:$0xff]  }
 0x21c   :  { %6989 = vmatprep.subr.bf16.mxu0 %v10548_v31  ;;  %7837 = vmatprep.subr.bf16.mxu1 %v10551_v32  ;;  %v10632_v31 = vld [vmem:[%s14828_s1 + $0x12a4] ss:$16 sps:$4 sm:$0xff]   ;;  %v10635_v32 = vld [vmem:[%s14828_s1 + $0x12ac] ss:$16 sps:$4 sm:$0xff]  }
 0x21f   :  { %6990 = vmatpush1.bf16.msra.mxu0 %v10546_v34  ;;  %7838 = vmatpush1.bf16.msra.mxu1 %v10549_v36  ;;  %v10630_v34 = vld [vmem:[%s14828_s1 + $0x12a0] ss:$16 sps:$4 sm:$0xff]   ;;  %v10633_v36 = vld [vmem:[%s14828_s1 + $0x12a8] ss:$16 sps:$4 sm:$0xff]  }
 0x220   :  { %6991 = vmatprep.subr.bf16.mxu0 %v10554_v33  ;;  %7839 = vmatprep.subr.bf16.mxu1 %v10557_v35  ;;  %v10638_v33 = vld [vmem:[%s14828_s1 + $0x12c4] ss:$16 sps:$4 sm:$0xff]   ;;  %v10641_v35 = vld [vmem:[%s14828_s1 + $0x12cc] ss:$16 sps:$4 sm:$0xff]  }
 0x223   :  { %6992 = vmatpush1.bf16.msra.mxu0 %v10552_v37  ;;  %7840 = vmatpush1.bf16.msra.mxu1 %v10555_v38 }
 0x224   :  { %6993 = vmatprep.subr.bf16.mxu0 %v10560_v39  ;;  %7841 = vmatprep.subr.bf16.mxu1 %v10563_v40 }
 0x227   :  { %6994 = vmatpush1.bf16.msra.mxu0 %v10558_v42  ;;  %7842 = vmatpush1.bf16.msra.mxu1 %v10561_v44 }
 0x228   :  { %6995 = vmatprep.subr.bf16.mxu0 %v10566_v41  ;;  %7843 = vmatprep.subr.bf16.mxu1 %v10569_v43 }
 0x22b   :  { %6996 = vmatpush1.bf16.msra.mxu0 %v10564_v45  ;;  %7844 = vmatpush1.bf16.msra.mxu1 %v10567_v46 }
 0x22c   :  { %6997 = vmatprep.subr.bf16.mxu0 %v10572_v47  ;;  %7845 = vmatprep.subr.bf16.mxu1 %v10575_v48 }
 0x22f   :  { %6998 = vmatpush1.bf16.msra.mxu0 %v10570_v51  ;;  %7846 = vmatpush1.bf16.msra.mxu1 %v10573_v52 }
 0x230   :  { %6999 = vmatprep.subr.bf16.mxu0 %v10578_v49  ;;  %7847 = vmatprep.subr.bf16.mxu1 %v10581_v50 }
 0x233   :  { %7000 = vmatpush1.bf16.msra.mxu0 %v10576_v53  ;;  %7848 = vmatpush1.bf16.msra.mxu1 %v10579_v54 }
 0x234   :  { %7001 = vmatprep.subr.bf16.mxu0 %v10584_v55  ;;  %7849 = vmatprep.subr.bf16.mxu1 %v10587_v56 }
 0x237   :  { %7002 = vmatpush1.bf16.msra.mxu0 %v10582_v59  ;;  %7850 = vmatpush1.bf16.msra.mxu1 %v10585_v60 }
 0x238   :  { %7003 = vmatprep.subr.bf16.mxu0 %v10590_v57  ;;  %7851 = vmatprep.subr.bf16.mxu1 %v10593_v58 }
 0x23b   :  { %7004 = vmatpush1.bf16.msra.mxu0 %v10588_v61  ;;  %7852 = vmatpush1.bf16.msra.mxu1 %v10591_v62 }
 0x23c   :  { %7005 = vmatprep.subr.bf16.mxu0 %v10596_v63  ;;  %7853 = vmatprep.subr.bf16.mxu1 %v10599_v0 }
 0x23f   :  { %7006 = vmatpush1.bf16.msra.mxu0 %v10594_v3  ;;  %7854 = vmatpush1.bf16.msra.mxu1 %v10597_v4 }
 0x240   :  { %7028 = vmatprep.subr.bf16.mxu0 %v10602_v1  ;;  %7876 = vmatprep.subr.bf16.mxu1 %v10605_v2 }
 0x242   :  { %7008 = vmatmul.mubr.bf16.vlgmr.msra.gmra.mrb[0].mxu0 %v8418_v7  ;;  %7856 = vmatmul.mubr.bf16.vlgmr.msra.gmra.mrb[0].mxu1 %v8418_v7 }
 0x243   :  { %7029 = vmatpush1.bf16.msra.mxu0 %v10600_v8  ;;  %7877 = vmatpush1.bf16.msra.mxu1 %v10603_v11 }
 0x244   :  { %7030 = vmatprep.subr.bf16.mxu0 %v10608_v12  ;;  %7878 = vmatprep.subr.bf16.mxu1 %v10611_v9 }
 0x245   :  { %7017 = vmatprep.mubr.bf16.mxu0 %v8451_v14  ;;  %7865 = vmatprep.mubr.bf16.mxu1 %v8451_v14 }
 0x247   :  { %7031 = vmatpush1.bf16.msra.mxu0 %v10606_v10  ;;  %7879 = vmatpush1.bf16.msra.mxu1 %v10609_v13 }
 0x248   :  { %7032 = vmatprep.subr.bf16.mxu0 %v10614_v15  ;;  %7880 = vmatprep.subr.bf16.mxu1 %v10617_v16 }
 0x24a   :  { %7018 = vmatmul.mubr.bf16.gmra.mrb[4].mxu0 %v8450_v19  ;;  %7866 = vmatmul.mubr.bf16.gmra.mrb[4].mxu1 %v8450_v19 }
 0x24b   :  { %7033 = vmatpush1.bf16.msra.mxu0 %v10612_v20  ;;  %7881 = vmatpush1.bf16.msra.mxu1 %v10615_v21 }
 0x24c   :  { %7034 = vmatprep.subr.bf16.mxu0 %v10620_v22  ;;  %7882 = vmatprep.subr.bf16.mxu1 %v10623_v23 }
 0x24d   :  { %7060 = vmatprep.mubr.bf16.mxu0 %v8421_v24  ;;  %7908 = vmatprep.mubr.bf16.mxu1 %v8421_v24 }
 0x24f   :  { %7035 = vmatpush1.bf16.msra.mxu0 %v10618_v26  ;;  %7883 = vmatpush1.bf16.msra.mxu1 %v10621_v25 }
 0x250   :  { %7036 = vmatprep.subr.bf16.mxu0 %v10626_v27  ;;  %7884 = vmatprep.subr.bf16.mxu1 %v10629_v28 }
 0x253   :  { %7037 = vmatpush1.bf16.msra.mxu0 %v10624_v29  ;;  %7885 = vmatpush1.bf16.msra.mxu1 %v10627_v30 }
 0x254   :  { %7038 = vmatprep.subr.bf16.mxu0 %v10632_v31  ;;  %7886 = vmatprep.subr.bf16.mxu1 %v10635_v32 }
 0x255   :  { %12 = vsyncpa [#allocation3], 0  ;;  %v10636_v37 = vld [vmem:[%s14828_s1 + $0x12c0] ss:$16 sps:$4 sm:$0xff]   ;;  %v10639_v38 = vld [vmem:[%s14828_s1 + $0x12c8] ss:$16 sps:$4 sm:$0xff]   ;;  %v8420_v13 = vcombine.low %v13265_v17, %v13270_v18 }
 0x256   :  { %v10644_v39 = vld [vmem:[%s14828_s1 + $0x12e4] ss:$16 sps:$4 sm:$0xff]   ;;  %v10647_v40 = vld [vmem:[%s14828_s1 + $0x12ec] ss:$16 sps:$4 sm:$0xff]   ;;  %v10642_v42 = vld [vmem:[%s14828_s1 + $0x12e0] ss:$16 sps:$4 sm:$0xff]  }
 0x257   :  { %7039 = vmatpush1.bf16.msra.mxu0 %v10630_v34  ;;  %7887 = vmatpush1.bf16.msra.mxu1 %v10633_v36  ;;  %v10645_v44 = vld [vmem:[%s14828_s1 + $0x12e8] ss:$16 sps:$4 sm:$0xff]   ;;  %v10650_v41 = vld [vmem:[%s14828_s1 + $0x1304] ss:$16 sps:$4 sm:$0xff]   ;;  %v10653_v43 = vld [vmem:[%s14828_s1 + $0x130c] ss:$16 sps:$4 sm:$0xff]  }
 0x258   :  { %7040 = vmatprep.subr.bf16.mxu0 %v10638_v33  ;;  %7888 = vmatprep.subr.bf16.mxu1 %v10641_v35  ;;  %v10648_v45 = vld [vmem:[%s14828_s1 + $0x1300] ss:$16 sps:$4 sm:$0xff]   ;;  %v10651_v46 = vld [vmem:[%s14828_s1 + $0x1308] ss:$16 sps:$4 sm:$0xff]   ;;  %v10656_v47 = vld [vmem:[%s14828_s1 + $0x1324] ss:$16 sps:$4 sm:$0xff]  }
 0x259   :  { %v10659_v48 = vld [vmem:[%s14828_s1 + $0x132c] ss:$16 sps:$4 sm:$0xff]   ;;  %v10654_v51 = vld [vmem:[%s14828_s1 + $0x1320] ss:$16 sps:$4 sm:$0xff]   ;;  %v10657_v52 = vld [vmem:[%s14828_s1 + $0x1328] ss:$16 sps:$4 sm:$0xff]  }
 0x25a   :  { %v10662_v49 = vld [vmem:[%s14828_s1 + $0x1344] ss:$16 sps:$4 sm:$0xff]   ;;  %v10665_v50 = vld [vmem:[%s14828_s1 + $0x134c] ss:$16 sps:$4 sm:$0xff]   ;;  %v10660_v53 = vld [vmem:[%s14828_s1 + $0x1340] ss:$16 sps:$4 sm:$0xff]  }
 0x25b   :  { %7041 = vmatpush1.bf16.msra.mxu0 %v10636_v37  ;;  %7889 = vmatpush1.bf16.msra.mxu1 %v10639_v38  ;;  %v10663_v54 = vld [vmem:[%s14828_s1 + $0x1348] ss:$16 sps:$4 sm:$0xff]   ;;  %v10668_v55 = vld [vmem:[%s14828_s1 + $0x1364] ss:$16 sps:$4 sm:$0xff]   ;;  %v10671_v56 = vld [vmem:[%s14828_s1 + $0x136c] ss:$16 sps:$4 sm:$0xff]  }
 0x25c   :  { %7042 = vmatprep.subr.bf16.mxu0 %v10644_v39  ;;  %7890 = vmatprep.subr.bf16.mxu1 %v10647_v40  ;;  %v10666_v59 = vld [vmem:[%s14828_s1 + $0x1360] ss:$16 sps:$4 sm:$0xff]   ;;  %v10669_v60 = vld [vmem:[%s14828_s1 + $0x1368] ss:$16 sps:$4 sm:$0xff]   ;;  %v10674_v57 = vld [vmem:[%s14828_s1 + $0x1384] ss:$16 sps:$4 sm:$0xff]  }
 0x25d   :  { %v10677_v58 = vld [vmem:[%s14828_s1 + $0x138c] ss:$16 sps:$4 sm:$0xff]   ;;  %v10672_v61 = vld [vmem:[%s14828_s1 + $0x1380] ss:$16 sps:$4 sm:$0xff]   ;;  %v10675_v62 = vld [vmem:[%s14828_s1 + $0x1388] ss:$16 sps:$4 sm:$0xff]  }
 0x25e   :  { %v10680_v63 = vld [vmem:[%s14828_s1 + $0x13a4] ss:$16 sps:$4 sm:$0xff]   ;;  %v10683_v0 = vld [vmem:[%s14828_s1 + $0x13ac] ss:$16 sps:$4 sm:$0xff]   ;;  %v10678_v3 = vld [vmem:[%s14828_s1 + $0x13a0] ss:$16 sps:$4 sm:$0xff]  }
 0x25f   :  { %7043 = vmatpush1.bf16.msra.mxu0 %v10642_v42  ;;  %7891 = vmatpush1.bf16.msra.mxu1 %v10645_v44  ;;  %v10681_v4 = vld [vmem:[%s14828_s1 + $0x13a8] ss:$16 sps:$4 sm:$0xff]   ;;  %v10686_v1 = vld [vmem:[%s14828_s1 + $0x13c4] ss:$16 sps:$4 sm:$0xff]   ;;  %v10689_v2 = vld [vmem:[%s14828_s1 + $0x13cc] ss:$16 sps:$4 sm:$0xff]  }
 0x260   :  { %7044 = vmatprep.subr.bf16.mxu0 %v10650_v41  ;;  %7892 = vmatprep.subr.bf16.mxu1 %v10653_v43  ;;  %v10684_v5 = vld [vmem:[%s14828_s1 + $0x13c0] ss:$16 sps:$4 sm:$0xff]   ;;  %v10687_v6 = vld [vmem:[%s14828_s1 + $0x13c8] ss:$16 sps:$4 sm:$0xff]   ;;  %v10692_v7 = vld [vmem:[%s14828_s1 + $0x13e4] ss:$16 sps:$4 sm:$0xff]  }
 0x261   :  { %v10695_v8 = vld [vmem:[%s14828_s1 + $0x13ec] ss:$16 sps:$4 sm:$0xff]   ;;  %v10690_v11 = vld [vmem:[%s14828_s1 + $0x13e0] ss:$16 sps:$4 sm:$0xff]   ;;  %v10693_v12 = vld [vmem:[%s14828_s1 + $0x13e8] ss:$16 sps:$4 sm:$0xff]  }
 0x262   :  { %v10698_v9 = vld [vmem:[%s14828_s1 + $0x1404] ss:$16 sps:$4 sm:$0xff]   ;;  %v10701_v10 = vld [vmem:[%s14828_s1 + $0x140c] ss:$16 sps:$4 sm:$0xff]   ;;  %v10696_v16 = vld [vmem:[%s14828_s1 + $0x1400] ss:$16 sps:$4 sm:$0xff]  }
 0x263   :  { %7045 = vmatpush1.bf16.msra.mxu0 %v10648_v45  ;;  %7893 = vmatpush1.bf16.msra.mxu1 %v10651_v46  ;;  %v64_v14 = vld [vmem:[%s14827_s0 + $0x148] sm:$0xff]  ;;  %v10704_v17 = vld [vmem:[%s14828_s1 + $0x1424] ss:$16 sps:$4 sm:$0xff]   ;;  %v10702_v21 = vld [vmem:[%s14828_s1 + $0x1420] ss:$16 sps:$4 sm:$0xff]   ;;  %s11296_s12 = smov [#allocation2]  }
 0x264   :  { %7046 = vmatprep.subr.bf16.mxu0 %v10656_v47  ;;  %7894 = vmatprep.subr.bf16.mxu1 %v10659_v48  ;;  %v80_v15 = vld [vmem:[%s14827_s0 + $0x1c8] sm:$0xff]  ;;  %v10710_v23 = vld [vmem:[%s14828_s1 + $0x1444] ss:$16 sps:$4 sm:$0xff]   ;;  %v10708_v28 = vld [vmem:[%s14828_s1 + $0x1440] ss:$16 sps:$4 sm:$0xff]  }
 0x265   :  { %v10699_v19 = vld [vmem:[%s14828_s1 + $0x1408] ss:$16 sps:$4 sm:$0xff]   ;;  %v10707_v18 = vld [vmem:[%s14828_s1 + $0x142c] ss:$16 sps:$4 sm:$0xff]   ;;  %v8453_v20 = vcombine.high %v64_v14, %v80_v15  ;;  %v8452_v26 = vcombine.low %v64_v14, %v80_v15  ;;  %v13477_v25 = vld [vmem:[%s14827_s0 + $0x50] sm:$0xff] }
 0x266   :  { %v10705_v22 = vld [vmem:[%s14828_s1 + $0x1428] ss:$16 sps:$4 sm:$0xff]   ;;  %v10713_v24 = vld [vmem:[%s14828_s1 + $0x144c] ss:$16 sps:$4 sm:$0xff]   ;;  %v13482_v27 = vld [vmem:[%s14827_s0 + $0xd0] sm:$0xff] }
 0x267   :  { %7047 = vmatpush1.bf16.msra.mxu0 %v10654_v51  ;;  %7895 = vmatpush1.bf16.msra.mxu1 %v10657_v52  ;;  %v10711_v29 = vld [vmem:[%s14828_s1 + $0x1448] ss:$16 sps:$4 sm:$0xff]   ;;  %v10716_v30 = vld [vmem:[%s14828_s1 + $0x1464] ss:$16 sps:$4 sm:$0xff]   ;;  %v10719_v31 = vld [vmem:[%s14828_s1 + $0x146c] ss:$16 sps:$4 sm:$0xff]   ;;  %v8423_v32 = vcombine.high %v13477_v25, %v13482_v27 }
 0x268   :  { %7048 = vmatprep.subr.bf16.mxu0 %v10662_v49  ;;  %7896 = vmatprep.subr.bf16.mxu1 %v10665_v50  ;;  %v10714_v34 = vld [vmem:[%s14828_s1 + $0x1460] ss:$16 sps:$4 sm:$0xff]   ;;  %v10717_v36 = vld [vmem:[%s14828_s1 + $0x1468] ss:$16 sps:$4 sm:$0xff]   ;;  %v10722_v33 = vld [vmem:[%s14828_s1 + $0x1484] ss:$16 sps:$4 sm:$0xff]  }
 0x269   :  { %v10725_v35 = vld [vmem:[%s14828_s1 + $0x148c] ss:$16 sps:$4 sm:$0xff]   ;;  %v10720_v37 = vld [vmem:[%s14828_s1 + $0x1480] ss:$16 sps:$4 sm:$0xff]   ;;  %v10723_v38 = vld [vmem:[%s14828_s1 + $0x1488] ss:$16 sps:$4 sm:$0xff]  }
 0x26a   :  { %v10728_v39 = vld [vmem:[%s14828_s1 + $0x14a4] ss:$16 sps:$4 sm:$0xff]   ;;  %v10731_v40 = vld [vmem:[%s14828_s1 + $0x14ac] ss:$16 sps:$4 sm:$0xff]   ;;  %v10726_v42 = vld [vmem:[%s14828_s1 + $0x14a0] ss:$16 sps:$4 sm:$0xff]  }
 0x26b   :  { %7049 = vmatpush1.bf16.msra.mxu0 %v10660_v53  ;;  %7897 = vmatpush1.bf16.msra.mxu1 %v10663_v54  ;;  %v10729_v44 = vld [vmem:[%s14828_s1 + $0x14a8] ss:$16 sps:$4 sm:$0xff]   ;;  %v10734_v41 = vld [vmem:[%s14828_s1 + $0x14c4] ss:$16 sps:$4 sm:$0xff]   ;;  %v10737_v43 = vld [vmem:[%s14828_s1 + $0x14cc] ss:$16 sps:$4 sm:$0xff]  }
 0x26c   :  { %7050 = vmatprep.subr.bf16.mxu0 %v10668_v55  ;;  %7898 = vmatprep.subr.bf16.mxu1 %v10671_v56  ;;  %v10732_v45 = vld [vmem:[%s14828_s1 + $0x14c0] ss:$16 sps:$4 sm:$0xff]   ;;  %v10735_v46 = vld [vmem:[%s14828_s1 + $0x14c8] ss:$16 sps:$4 sm:$0xff]   ;;  %v10740_v47 = vld [vmem:[%s14828_s1 + $0x14e4] ss:$16 sps:$4 sm:$0xff]  }
 0x26d   :  { %v10743_v48 = vld [vmem:[%s14828_s1 + $0x14ec] ss:$16 sps:$4 sm:$0xff]   ;;  %v10738_v51 = vld [vmem:[%s14828_s1 + $0x14e0] ss:$16 sps:$4 sm:$0xff]   ;;  %v10741_v52 = vld [vmem:[%s14828_s1 + $0x14e8] ss:$16 sps:$4 sm:$0xff]  }
 0x26e   :  { %v10746_v49 = vld [vmem:[%s14828_s1 + $0x1504] ss:$16 sps:$4 sm:$0xff]   ;;  %v10749_v50 = vld [vmem:[%s14828_s1 + $0x150c] ss:$16 sps:$4 sm:$0xff]   ;;  %v10744_v53 = vld [vmem:[%s14828_s1 + $0x1500] ss:$16 sps:$4 sm:$0xff]  }
 0x26f   :  { %7051 = vmatpush1.bf16.msra.mxu0 %v10666_v59  ;;  %7899 = vmatpush1.bf16.msra.mxu1 %v10669_v60  ;;  %v10747_v54 = vld [vmem:[%s14828_s1 + $0x1508] ss:$16 sps:$4 sm:$0xff]   ;;  %v10752_v55 = vld [vmem:[%s14828_s1 + $0x1524] ss:$16 sps:$4 sm:$0xff]   ;;  %v10755_v56 = vld [vmem:[%s14828_s1 + $0x152c] ss:$16 sps:$4 sm:$0xff]  }
 0x270   :  { %7052 = vmatprep.subr.bf16.mxu0 %v10674_v57  ;;  %7900 = vmatprep.subr.bf16.mxu1 %v10677_v58  ;;  %v10750_v59 = vld [vmem:[%s14828_s1 + $0x1520] ss:$16 sps:$4 sm:$0xff]   ;;  %v10753_v60 = vld [vmem:[%s14828_s1 + $0x1528] ss:$16 sps:$4 sm:$0xff]   ;;  %v10758_v57 = vld [vmem:[%s14828_s1 + $0x1544] ss:$16 sps:$4 sm:$0xff]  }
 0x271   :  { %v10761_v58 = vld [vmem:[%s14828_s1 + $0x154c] ss:$16 sps:$4 sm:$0xff]   ;;  %v10783_v14 = vld [vmem:[%s14828_s1 + $0x15c8] ss:$16 sps:$4 sm:$0xff]   ;;  %v10788_v15 = vld [vmem:[%s14828_s1 + $0x15e4] ss:$16 sps:$4 sm:$0xff]  }
 0x273   :  { %7053 = vmatpush1.bf16.msra.mxu0 %v10672_v61  ;;  %7901 = vmatpush1.bf16.msra.mxu1 %v10675_v62  ;;  %v10756_v61 = vld [vmem:[%s14828_s1 + $0x1540] ss:$16 sps:$4 sm:$0xff]   ;;  %v10759_v62 = vld [vmem:[%s14828_s1 + $0x1548] ss:$16 sps:$4 sm:$0xff]  }
 0x274   :  { %7054 = vmatprep.subr.bf16.mxu0 %v10680_v63  ;;  %7902 = vmatprep.subr.bf16.mxu1 %v10683_v0  ;;  %v10764_v63 = vld [vmem:[%s14828_s1 + $0x1564] ss:$16 sps:$4 sm:$0xff]   ;;  %v10767_v0 = vld [vmem:[%s14828_s1 + $0x156c] ss:$16 sps:$4 sm:$0xff]  }
 0x277   :  { %7055 = vmatpush1.bf16.msra.mxu0 %v10678_v3  ;;  %7903 = vmatpush1.bf16.msra.mxu1 %v10681_v4  ;;  %v10762_v3 = vld [vmem:[%s14828_s1 + $0x1560] ss:$16 sps:$4 sm:$0xff]   ;;  %v10765_v4 = vld [vmem:[%s14828_s1 + $0x1568] ss:$16 sps:$4 sm:$0xff]  }
 0x278   :  { %7056 = vmatprep.subr.bf16.mxu0 %v10686_v1  ;;  %7904 = vmatprep.subr.bf16.mxu1 %v10689_v2  ;;  %v10770_v1 = vld [vmem:[%s14828_s1 + $0x1584] ss:$16 sps:$4 sm:$0xff]   ;;  %v10773_v2 = vld [vmem:[%s14828_s1 + $0x158c] ss:$16 sps:$4 sm:$0xff]  }
 0x27b   :  { %7057 = vmatpush1.bf16.msra.mxu0 %v10684_v5  ;;  %7905 = vmatpush1.bf16.msra.mxu1 %v10687_v6  ;;  %v10768_v5 = vld [vmem:[%s14828_s1 + $0x1580] ss:$16 sps:$4 sm:$0xff]   ;;  %v10771_v6 = vld [vmem:[%s14828_s1 + $0x1588] ss:$16 sps:$4 sm:$0xff]  }
 0x27c   :  { %7058 = vmatprep.subr.bf16.mxu0 %v10692_v7  ;;  %7906 = vmatprep.subr.bf16.mxu1 %v10695_v8  ;;  %v10776_v7 = vld [vmem:[%s14828_s1 + $0x15a4] ss:$16 sps:$4 sm:$0xff]   ;;  %v10779_v8 = vld [vmem:[%s14828_s1 + $0x15ac] ss:$16 sps:$4 sm:$0xff]  }
 0x27f   :  { %7059 = vmatpush1.bf16.msra.mxu0 %v10690_v11  ;;  %7907 = vmatpush1.bf16.msra.mxu1 %v10693_v12  ;;  %v10774_v11 = vld [vmem:[%s14828_s1 + $0x15a0] ss:$16 sps:$4 sm:$0xff]   ;;  %v10777_v12 = vld [vmem:[%s14828_s1 + $0x15a8] ss:$16 sps:$4 sm:$0xff]  }
 0x280   :  { %7081 = vmatprep.subr.bf16.mxu0 %v10698_v9  ;;  %7929 = vmatprep.subr.bf16.mxu1 %v10701_v10  ;;  %v10782_v9 = vld [vmem:[%s14828_s1 + $0x15c4] ss:$16 sps:$4 sm:$0xff]   ;;  %v10785_v10 = vld [vmem:[%s14828_s1 + $0x15cc] ss:$16 sps:$4 sm:$0xff]  }
 0x282   :  { %7061 = vmatmul.mubr.bf16.vlgmr.msra.gmra.mrb[0].mxu0 %v8420_v13  ;;  %7909 = vmatmul.mubr.bf16.vlgmr.msra.gmra.mrb[0].mxu1 %v8420_v13  ;;  %v10780_v13 = vld [vmem:[%s14828_s1 + $0x15c0] ss:$16 sps:$4 sm:$0xff]  }
 0x283   :  { %7082 = vmatpush1.bf16.msra.mxu0 %v10696_v16  ;;  %7930 = vmatpush1.bf16.msra.mxu1 %v10699_v19  ;;  %v10791_v16 = vld [vmem:[%s14828_s1 + $0x15ec] ss:$16 sps:$4 sm:$0xff]   ;;  %v10786_v19 = vld [vmem:[%s14828_s1 + $0x15e0] ss:$16 sps:$4 sm:$0xff]  }
 0x284   :  { %7083 = vmatprep.subr.bf16.mxu0 %v10704_v17  ;;  %7931 = vmatprep.subr.bf16.mxu1 %v10707_v18  ;;  %v10789_v17 = vld [vmem:[%s14828_s1 + $0x15e8] ss:$16 sps:$4 sm:$0xff]   ;;  %v10794_v18 = vld [vmem:[%s14828_s1 + $0x1604] ss:$16 sps:$4 sm:$0xff]  }
 0x285   :  { %7070 = vmatprep.mubr.bf16.mxu0 %v8453_v20  ;;  %7918 = vmatprep.mubr.bf16.mxu1 %v8453_v20  ;;  %v10797_v20 = vld [vmem:[%s14828_s1 + $0x160c] ss:$16 sps:$4 sm:$0xff]  }
 0x287   :  { %7084 = vmatpush1.bf16.msra.mxu0 %v10702_v21  ;;  %7932 = vmatpush1.bf16.msra.mxu1 %v10705_v22  ;;  %v8422_v21 = vcombine.low %v13477_v25, %v13482_v27  ;;  %v65_v22 = vld [vmem:[%s14827_s0 + $0x150] sm:$0xff]  ;;  %v10803_v27 = vld [vmem:[%s14828_s1 + $0x162c] ss:$16 sps:$4 sm:$0xff]  }
 0x288   :  { %7085 = vmatprep.subr.bf16.mxu0 %v10710_v23  ;;  %7933 = vmatprep.subr.bf16.mxu1 %v10713_v24  ;;  %v81_v23 = vld [vmem:[%s14827_s0 + $0x1d0] sm:$0xff] }
 0x289   :  { %v10792_v24 = vld [vmem:[%s14828_s1 + $0x1600] ss:$16 sps:$4 sm:$0xff]   ;;  %v10800_v25 = vld [vmem:[%s14828_s1 + $0x1624] ss:$16 sps:$4 sm:$0xff]  }
 0x28a   :  { %7071 = vmatmul.mubr.bf16.gmra.mrb[4].mxu0 %v8452_v26  ;;  %7919 = vmatmul.mubr.bf16.gmra.mrb[4].mxu1 %v8452_v26  ;;  %v10795_v26 = vld [vmem:[%s14828_s1 + $0x1608] ss:$16 sps:$4 sm:$0xff]  }
 0x28b   :  { %7086 = vmatpush1.bf16.msra.mxu0 %v10708_v28  ;;  %7934 = vmatpush1.bf16.msra.mxu1 %v10711_v29  ;;  %v8455_v28 = vcombine.high %v65_v22, %v81_v23  ;;  %v10798_v29 = vld [vmem:[%s14828_s1 + $0x1620] ss:$16 sps:$4 sm:$0xff]  }
 0x28c   :  { %7087 = vmatprep.subr.bf16.mxu0 %v10716_v30  ;;  %7935 = vmatprep.subr.bf16.mxu1 %v10719_v31  ;;  %v10801_v30 = vld [vmem:[%s14828_s1 + $0x1628] ss:$16 sps:$4 sm:$0xff]   ;;  %v10806_v31 = vld [vmem:[%s14828_s1 + $0x1644] ss:$16 sps:$4 sm:$0xff]  }
 0x28d   :  { %7113 = vmatprep.mubr.bf16.mxu0 %v8423_v32  ;;  %7961 = vmatprep.mubr.bf16.mxu1 %v8423_v32  ;;  %v10809_v32 = vld [vmem:[%s14828_s1 + $0x164c] ss:$16 sps:$4 sm:$0xff]  }
 0x28f   :  { %7088 = vmatpush1.bf16.msra.mxu0 %v10714_v34  ;;  %7936 = vmatpush1.bf16.msra.mxu1 %v10717_v36  ;;  %v8454_v34 = vcombine.low %v65_v22, %v81_v23  ;;  %v13689_v36 = vld [vmem:[%s14827_s0 + $0x58] sm:$0xff]  ;;  %v10884_v23 = vld [vmem:[%s14828_s1 + $0x17e4] ss:$16 sps:$4 sm:$0xff]  }
 0x290   :  { %7089 = vmatprep.subr.bf16.mxu0 %v10722_v33  ;;  %7937 = vmatprep.subr.bf16.mxu1 %v10725_v35  ;;  %v13694_v33 = vld [vmem:[%s14827_s0 + $0xd8] sm:$0xff]  ;;  %v10804_v35 = vld [vmem:[%s14828_s1 + $0x1640] ss:$16 sps:$4 sm:$0xff]  }
 0x291   :  { %v10879_v22 = vld [vmem:[%s14828_s1 + $0x17c8] ss:$16 sps:$4 sm:$0xff]  }
 0x293   :  { %7090 = vmatpush1.bf16.msra.mxu0 %v10720_v37  ;;  %7938 = vmatpush1.bf16.msra.mxu1 %v10723_v38  ;;  %v10807_v37 = vld [vmem:[%s14828_s1 + $0x1648] ss:$16 sps:$4 sm:$0xff]   ;;  %v10812_v38 = vld [vmem:[%s14828_s1 + $0x1664] ss:$16 sps:$4 sm:$0xff]  }
 0x294   :  { %7091 = vmatprep.subr.bf16.mxu0 %v10728_v39  ;;  %7939 = vmatprep.subr.bf16.mxu1 %v10731_v40  ;;  %v10815_v39 = vld [vmem:[%s14828_s1 + $0x166c] ss:$16 sps:$4 sm:$0xff]   ;;  %v8425_v40 = vcombine.high %v13689_v36, %v13694_v33 }
 0x297   :  { %7092 = vmatpush1.bf16.msra.mxu0 %v10726_v42  ;;  %7940 = vmatpush1.bf16.msra.mxu1 %v10729_v44  ;;  %v10810_v42 = vld [vmem:[%s14828_s1 + $0x1660] ss:$16 sps:$4 sm:$0xff]   ;;  %v10813_v44 = vld [vmem:[%s14828_s1 + $0x1668] ss:$16 sps:$4 sm:$0xff]  }
 0x298   :  { %7093 = vmatprep.subr.bf16.mxu0 %v10734_v41  ;;  %7941 = vmatprep.subr.bf16.mxu1 %v10737_v43  ;;  %v10818_v41 = vld [vmem:[%s14828_s1 + $0x1684] ss:$16 sps:$4 sm:$0xff]   ;;  %v10821_v43 = vld [vmem:[%s14828_s1 + $0x168c] ss:$16 sps:$4 sm:$0xff]  }
 0x29b   :  { %7094 = vmatpush1.bf16.msra.mxu0 %v10732_v45  ;;  %7942 = vmatpush1.bf16.msra.mxu1 %v10735_v46  ;;  %v10816_v45 = vld [vmem:[%s14828_s1 + $0x1680] ss:$16 sps:$4 sm:$0xff]   ;;  %v10819_v46 = vld [vmem:[%s14828_s1 + $0x1688] ss:$16 sps:$4 sm:$0xff]  }
 0x29c   :  { %7095 = vmatprep.subr.bf16.mxu0 %v10740_v47  ;;  %7943 = vmatprep.subr.bf16.mxu1 %v10743_v48  ;;  %v10824_v47 = vld [vmem:[%s14828_s1 + $0x16a4] ss:$16 sps:$4 sm:$0xff]   ;;  %v10827_v48 = vld [vmem:[%s14828_s1 + $0x16ac] ss:$16 sps:$4 sm:$0xff]  }
 0x29f   :  { %7096 = vmatpush1.bf16.msra.mxu0 %v10738_v51  ;;  %7944 = vmatpush1.bf16.msra.mxu1 %v10741_v52  ;;  %v10822_v51 = vld [vmem:[%s14828_s1 + $0x16a0] ss:$16 sps:$4 sm:$0xff]   ;;  %v10825_v52 = vld [vmem:[%s14828_s1 + $0x16a8] ss:$16 sps:$4 sm:$0xff]  }
 0x2a0   :  { %7097 = vmatprep.subr.bf16.mxu0 %v10746_v49  ;;  %7945 = vmatprep.subr.bf16.mxu1 %v10749_v50  ;;  %v10830_v49 = vld [vmem:[%s14828_s1 + $0x16c4] ss:$16 sps:$4 sm:$0xff]   ;;  %v10833_v50 = vld [vmem:[%s14828_s1 + $0x16cc] ss:$16 sps:$4 sm:$0xff]  }
 0x2a3   :  { %7098 = vmatpush1.bf16.msra.mxu0 %v10744_v53  ;;  %7946 = vmatpush1.bf16.msra.mxu1 %v10747_v54  ;;  %v10828_v53 = vld [vmem:[%s14828_s1 + $0x16c0] ss:$16 sps:$4 sm:$0xff]   ;;  %v10831_v54 = vld [vmem:[%s14828_s1 + $0x16c8] ss:$16 sps:$4 sm:$0xff]  }
 0x2a4   :  { %7099 = vmatprep.subr.bf16.mxu0 %v10752_v55  ;;  %7947 = vmatprep.subr.bf16.mxu1 %v10755_v56  ;;  %v10836_v55 = vld [vmem:[%s14828_s1 + $0x16e4] ss:$16 sps:$4 sm:$0xff]   ;;  %v10839_v56 = vld [vmem:[%s14828_s1 + $0x16ec] ss:$16 sps:$4 sm:$0xff]  }
 0x2a7   :  { %7100 = vmatpush1.bf16.msra.mxu0 %v10750_v59  ;;  %7948 = vmatpush1.bf16.msra.mxu1 %v10753_v60  ;;  %v10834_v59 = vld [vmem:[%s14828_s1 + $0x16e0] ss:$16 sps:$4 sm:$0xff]   ;;  %v10837_v60 = vld [vmem:[%s14828_s1 + $0x16e8] ss:$16 sps:$4 sm:$0xff]  }
 0x2a8   :  { %7101 = vmatprep.subr.bf16.mxu0 %v10758_v57  ;;  %7949 = vmatprep.subr.bf16.mxu1 %v10761_v58  ;;  %v10842_v57 = vld [vmem:[%s14828_s1 + $0x1704] ss:$16 sps:$4 sm:$0xff]   ;;  %v10845_v58 = vld [vmem:[%s14828_s1 + $0x170c] ss:$16 sps:$4 sm:$0xff]  }
 0x2ab   :  { %7102 = vmatpush1.bf16.msra.mxu0 %v10756_v61  ;;  %7950 = vmatpush1.bf16.msra.mxu1 %v10759_v62  ;;  %v10840_v61 = vld [vmem:[%s14828_s1 + $0x1700] ss:$16 sps:$4 sm:$0xff]   ;;  %v10843_v62 = vld [vmem:[%s14828_s1 + $0x1708] ss:$16 sps:$4 sm:$0xff]  }
 0x2ac   :  { %7103 = vmatprep.subr.bf16.mxu0 %v10764_v63  ;;  %7951 = vmatprep.subr.bf16.mxu1 %v10767_v0  ;;  %v10848_v63 = vld [vmem:[%s14828_s1 + $0x1724] ss:$16 sps:$4 sm:$0xff]   ;;  %v10851_v0 = vld [vmem:[%s14828_s1 + $0x172c] ss:$16 sps:$4 sm:$0xff]  }
 0x2af   :  { %7104 = vmatpush1.bf16.msra.mxu0 %v10762_v3  ;;  %7952 = vmatpush1.bf16.msra.mxu1 %v10765_v4  ;;  %v10846_v3 = vld [vmem:[%s14828_s1 + $0x1720] ss:$16 sps:$4 sm:$0xff]   ;;  %v10849_v4 = vld [vmem:[%s14828_s1 + $0x1728] ss:$16 sps:$4 sm:$0xff]  }
 0x2b0   :  { %7105 = vmatprep.subr.bf16.mxu0 %v10770_v1  ;;  %7953 = vmatprep.subr.bf16.mxu1 %v10773_v2  ;;  %v10854_v1 = vld [vmem:[%s14828_s1 + $0x1744] ss:$16 sps:$4 sm:$0xff]   ;;  %v10857_v2 = vld [vmem:[%s14828_s1 + $0x174c] ss:$16 sps:$4 sm:$0xff]  }
 0x2b3   :  { %7106 = vmatpush1.bf16.msra.mxu0 %v10768_v5  ;;  %7954 = vmatpush1.bf16.msra.mxu1 %v10771_v6  ;;  %v10852_v5 = vld [vmem:[%s14828_s1 + $0x1740] ss:$16 sps:$4 sm:$0xff]   ;;  %v10855_v6 = vld [vmem:[%s14828_s1 + $0x1748] ss:$16 sps:$4 sm:$0xff]  }
 0x2b4   :  { %7107 = vmatprep.subr.bf16.mxu0 %v10776_v7  ;;  %7955 = vmatprep.subr.bf16.mxu1 %v10779_v8  ;;  %v10860_v7 = vld [vmem:[%s14828_s1 + $0x1764] ss:$16 sps:$4 sm:$0xff]   ;;  %v10863_v8 = vld [vmem:[%s14828_s1 + $0x176c] ss:$16 sps:$4 sm:$0xff]  }
 0x2b7   :  { %7108 = vmatpush1.bf16.msra.mxu0 %v10774_v11  ;;  %7956 = vmatpush1.bf16.msra.mxu1 %v10777_v12  ;;  %v10858_v11 = vld [vmem:[%s14828_s1 + $0x1760] ss:$16 sps:$4 sm:$0xff]   ;;  %v10861_v12 = vld [vmem:[%s14828_s1 + $0x1768] ss:$16 sps:$4 sm:$0xff]  }
 0x2b8   :  { %7109 = vmatprep.subr.bf16.mxu0 %v10782_v9  ;;  %7957 = vmatprep.subr.bf16.mxu1 %v10785_v10  ;;  %v10866_v9 = vld [vmem:[%s14828_s1 + $0x1784] ss:$16 sps:$4 sm:$0xff]   ;;  %v10869_v10 = vld [vmem:[%s14828_s1 + $0x178c] ss:$16 sps:$4 sm:$0xff]  }
 0x2bb   :  { %7110 = vmatpush1.bf16.msra.mxu0 %v10780_v13  ;;  %7958 = vmatpush1.bf16.msra.mxu1 %v10783_v14  ;;  %v10864_v13 = vld [vmem:[%s14828_s1 + $0x1780] ss:$16 sps:$4 sm:$0xff]   ;;  %v10867_v14 = vld [vmem:[%s14828_s1 + $0x1788] ss:$16 sps:$4 sm:$0xff]  }
 0x2bc   :  { %7111 = vmatprep.subr.bf16.mxu0 %v10788_v15  ;;  %7959 = vmatprep.subr.bf16.mxu1 %v10791_v16  ;;  %v10872_v15 = vld [vmem:[%s14828_s1 + $0x17a4] ss:$16 sps:$4 sm:$0xff]   ;;  %v10875_v16 = vld [vmem:[%s14828_s1 + $0x17ac] ss:$16 sps:$4 sm:$0xff]  }
 0x2bf   :  { %7112 = vmatpush1.bf16.msra.mxu0 %v10786_v19  ;;  %7960 = vmatpush1.bf16.msra.mxu1 %v10789_v17  ;;  %v10870_v19 = vld [vmem:[%s14828_s1 + $0x17a0] ss:$16 sps:$4 sm:$0xff]   ;;  %v10873_v17 = vld [vmem:[%s14828_s1 + $0x17a8] ss:$16 sps:$4 sm:$0xff]  }
 0x2c0   :  { %7134 = vmatprep.subr.bf16.mxu0 %v10794_v18  ;;  %7982 = vmatprep.subr.bf16.mxu1 %v10797_v20  ;;  %v10878_v18 = vld [vmem:[%s14828_s1 + $0x17c4] ss:$16 sps:$4 sm:$0xff]   ;;  %v10881_v20 = vld [vmem:[%s14828_s1 + $0x17cc] ss:$16 sps:$4 sm:$0xff]  }
 0x2c2   :  { %7114 = vmatmul.mubr.bf16.vlgmr.msra.gmra.mrb[0].mxu0 %v8422_v21  ;;  %7962 = vmatmul.mubr.bf16.vlgmr.msra.gmra.mrb[0].mxu1 %v8422_v21  ;;  %v10876_v21 = vld [vmem:[%s14828_s1 + $0x17c0] ss:$16 sps:$4 sm:$0xff]  }
 0x2c3   :  { %7135 = vmatpush1.bf16.msra.mxu0 %v10792_v24  ;;  %7983 = vmatpush1.bf16.msra.mxu1 %v10795_v26  ;;  %v10887_v24 = vld [vmem:[%s14828_s1 + $0x17ec] ss:$16 sps:$4 sm:$0xff]   ;;  %v10882_v26 = vld [vmem:[%s14828_s1 + $0x17e0] ss:$16 sps:$4 sm:$0xff]  }
 0x2c4   :  { %7136 = vmatprep.subr.bf16.mxu0 %v10800_v25  ;;  %7984 = vmatprep.subr.bf16.mxu1 %v10803_v27  ;;  %v10885_v25 = vld [vmem:[%s14828_s1 + $0x17e8] ss:$16 sps:$4 sm:$0xff]   ;;  %v10890_v27 = vld [vmem:[%s14828_s1 + $0x1804] ss:$16 sps:$4 sm:$0xff]  }
 0x2c5   :  { %7123 = vmatprep.mubr.bf16.mxu0 %v8455_v28  ;;  %7971 = vmatprep.mubr.bf16.mxu1 %v8455_v28  ;;  %v10893_v28 = vld [vmem:[%s14828_s1 + $0x180c] ss:$16 sps:$4 sm:$0xff]  }
 0x2c7   :  { %7137 = vmatpush1.bf16.msra.mxu0 %v10798_v29  ;;  %7985 = vmatpush1.bf16.msra.mxu1 %v10801_v30  ;;  %v8424_v29 = vcombine.low %v13689_v36, %v13694_v33  ;;  %v66_v30 = vld [vmem:[%s14827_s0 + $0x158] sm:$0xff]  ;;  %v10896_v36 = vld [vmem:[%s14828_s1 + $0x1824] ss:$16 sps:$4 sm:$0xff]  }
 0x2c8   :  { %7138 = vmatprep.subr.bf16.mxu0 %v10806_v31  ;;  %7986 = vmatprep.subr.bf16.mxu1 %v10809_v32  ;;  %v82_v31 = vld [vmem:[%s14827_s0 + $0x1d8] sm:$0xff]  ;;  %v10888_v32 = vld [vmem:[%s14828_s1 + $0x1800] ss:$16 sps:$4 sm:$0xff]  }
 0x2c9   :  { %v10899_v33 = vld [vmem:[%s14828_s1 + $0x182c] ss:$16 sps:$4 sm:$0xff]  }
 0x2ca   :  { %7124 = vmatmul.mubr.bf16.gmra.mrb[4].mxu0 %v8454_v34  ;;  %7972 = vmatmul.mubr.bf16.gmra.mrb[4].mxu1 %v8454_v34  ;;  %v10891_v34 = vld [vmem:[%s14828_s1 + $0x1808] ss:$16 sps:$4 sm:$0xff]  }
 0x2cb   :  { %7139 = vmatpush1.bf16.msra.mxu0 %v10804_v35  ;;  %7987 = vmatpush1.bf16.msra.mxu1 %v10807_v37  ;;  %v8457_v35 = vcombine.high %v66_v30, %v82_v31  ;;  %v10894_v37 = vld [vmem:[%s14828_s1 + $0x1820] ss:$16 sps:$4 sm:$0xff]  }
 0x2cc   :  { %7140 = vmatprep.subr.bf16.mxu0 %v10812_v38  ;;  %7988 = vmatprep.subr.bf16.mxu1 %v10815_v39  ;;  %v10897_v38 = vld [vmem:[%s14828_s1 + $0x1828] ss:$16 sps:$4 sm:$0xff]   ;;  %v10902_v39 = vld [vmem:[%s14828_s1 + $0x1844] ss:$16 sps:$4 sm:$0xff]  }
 0x2cd   :  { %7166 = vmatprep.mubr.bf16.mxu0 %v8425_v40  ;;  %8014 = vmatprep.mubr.bf16.mxu1 %v8425_v40  ;;  %v10905_v40 = vld [vmem:[%s14828_s1 + $0x184c] ss:$16 sps:$4 sm:$0xff]  }
 0x2cf   :  { %7141 = vmatpush1.bf16.msra.mxu0 %v10810_v42  ;;  %7989 = vmatpush1.bf16.msra.mxu1 %v10813_v44  ;;  %v8456_v42 = vcombine.low %v66_v30, %v82_v31  ;;  %v13901_v44 = vld [vmem:[%s14827_s0 + $0x60] sm:$0xff]  ;;  %v10975_v30 = vld [vmem:[%s14828_s1 + $0x19c8] ss:$16 sps:$4 sm:$0xff]  }
 0x2d0   :  { %7142 = vmatprep.subr.bf16.mxu0 %v10818_v41  ;;  %7990 = vmatprep.subr.bf16.mxu1 %v10821_v43  ;;  %v13906_v41 = vld [vmem:[%s14827_s0 + $0xe0] sm:$0xff] }
 0x2d1   :  { %v10900_v43 = vld [vmem:[%s14828_s1 + $0x1840] ss:$16 sps:$4 sm:$0xff]   ;;  %v10980_v31 = vld [vmem:[%s14828_s1 + $0x19e4] ss:$16 sps:$4 sm:$0xff]  }
 0x2d3   :  { %7143 = vmatpush1.bf16.msra.mxu0 %v10816_v45  ;;  %7991 = vmatpush1.bf16.msra.mxu1 %v10819_v46  ;;  %v10903_v45 = vld [vmem:[%s14828_s1 + $0x1848] ss:$16 sps:$4 sm:$0xff]   ;;  %v10908_v46 = vld [vmem:[%s14828_s1 + $0x1864] ss:$16 sps:$4 sm:$0xff]  }
 0x2d4   :  { %7144 = vmatprep.subr.bf16.mxu0 %v10824_v47  ;;  %7992 = vmatprep.subr.bf16.mxu1 %v10827_v48  ;;  %v10911_v47 = vld [vmem:[%s14828_s1 + $0x186c] ss:$16 sps:$4 sm:$0xff]   ;;  %v8427_v48 = vcombine.high %v13901_v44, %v13906_v41 }
 0x2d7   :  { %7145 = vmatpush1.bf16.msra.mxu0 %v10822_v51  ;;  %7993 = vmatpush1.bf16.msra.mxu1 %v10825_v52  ;;  %v10906_v51 = vld [vmem:[%s14828_s1 + $0x1860] ss:$16 sps:$4 sm:$0xff]   ;;  %v10909_v52 = vld [vmem:[%s14828_s1 + $0x1868] ss:$16 sps:$4 sm:$0xff]  }
 0x2d8   :  { %7146 = vmatprep.subr.bf16.mxu0 %v10830_v49  ;;  %7994 = vmatprep.subr.bf16.mxu1 %v10833_v50  ;;  %v10914_v49 = vld [vmem:[%s14828_s1 + $0x1884] ss:$16 sps:$4 sm:$0xff]   ;;  %v10917_v50 = vld [vmem:[%s14828_s1 + $0x188c] ss:$16 sps:$4 sm:$0xff]  }
 0x2db   :  { %7147 = vmatpush1.bf16.msra.mxu0 %v10828_v53  ;;  %7995 = vmatpush1.bf16.msra.mxu1 %v10831_v54  ;;  %v10912_v53 = vld [vmem:[%s14828_s1 + $0x1880] ss:$16 sps:$4 sm:$0xff]   ;;  %v10915_v54 = vld [vmem:[%s14828_s1 + $0x1888] ss:$16 sps:$4 sm:$0xff]  }
 0x2dc   :  { %7148 = vmatprep.subr.bf16.mxu0 %v10836_v55  ;;  %7996 = vmatprep.subr.bf16.mxu1 %v10839_v56  ;;  %v10920_v55 = vld [vmem:[%s14828_s1 + $0x18a4] ss:$16 sps:$4 sm:$0xff]   ;;  %v10923_v56 = vld [vmem:[%s14828_s1 + $0x18ac] ss:$16 sps:$4 sm:$0xff]  }
 0x2df   :  { %7149 = vmatpush1.bf16.msra.mxu0 %v10834_v59  ;;  %7997 = vmatpush1.bf16.msra.mxu1 %v10837_v60  ;;  %v10918_v59 = vld [vmem:[%s14828_s1 + $0x18a0] ss:$16 sps:$4 sm:$0xff]   ;;  %v10921_v60 = vld [vmem:[%s14828_s1 + $0x18a8] ss:$16 sps:$4 sm:$0xff]  }
 0x2e0   :  { %7150 = vmatprep.subr.bf16.mxu0 %v10842_v57  ;;  %7998 = vmatprep.subr.bf16.mxu1 %v10845_v58  ;;  %v10926_v57 = vld [vmem:[%s14828_s1 + $0x18c4] ss:$16 sps:$4 sm:$0xff]   ;;  %v10929_v58 = vld [vmem:[%s14828_s1 + $0x18cc] ss:$16 sps:$4 sm:$0xff]  }
 0x2e3   :  { %7151 = vmatpush1.bf16.msra.mxu0 %v10840_v61  ;;  %7999 = vmatpush1.bf16.msra.mxu1 %v10843_v62  ;;  %v10924_v61 = vld [vmem:[%s14828_s1 + $0x18c0] ss:$16 sps:$4 sm:$0xff]   ;;  %v10927_v62 = vld [vmem:[%s14828_s1 + $0x18c8] ss:$16 sps:$4 sm:$0xff]  }
 0x2e4   :  { %7152 = vmatprep.subr.bf16.mxu0 %v10848_v63  ;;  %8000 = vmatprep.subr.bf16.mxu1 %v10851_v0  ;;  %v10932_v63 = vld [vmem:[%s14828_s1 + $0x18e4] ss:$16 sps:$4 sm:$0xff]   ;;  %v10935_v0 = vld [vmem:[%s14828_s1 + $0x18ec] ss:$16 sps:$4 sm:$0xff]  }
 0x2e7   :  { %7153 = vmatpush1.bf16.msra.mxu0 %v10846_v3  ;;  %8001 = vmatpush1.bf16.msra.mxu1 %v10849_v4  ;;  %v10930_v3 = vld [vmem:[%s14828_s1 + $0x18e0] ss:$16 sps:$4 sm:$0xff]   ;;  %v10933_v4 = vld [vmem:[%s14828_s1 + $0x18e8] ss:$16 sps:$4 sm:$0xff]  }
 0x2e8   :  { %7154 = vmatprep.subr.bf16.mxu0 %v10854_v1  ;;  %8002 = vmatprep.subr.bf16.mxu1 %v10857_v2  ;;  %v10938_v1 = vld [vmem:[%s14828_s1 + $0x1904] ss:$16 sps:$4 sm:$0xff]   ;;  %v10941_v2 = vld [vmem:[%s14828_s1 + $0x190c] ss:$16 sps:$4 sm:$0xff]  }
 0x2eb   :  { %7155 = vmatpush1.bf16.msra.mxu0 %v10852_v5  ;;  %8003 = vmatpush1.bf16.msra.mxu1 %v10855_v6  ;;  %v10936_v5 = vld [vmem:[%s14828_s1 + $0x1900] ss:$16 sps:$4 sm:$0xff]   ;;  %v10939_v6 = vld [vmem:[%s14828_s1 + $0x1908] ss:$16 sps:$4 sm:$0xff]  }
 0x2ec   :  { %7156 = vmatprep.subr.bf16.mxu0 %v10860_v7  ;;  %8004 = vmatprep.subr.bf16.mxu1 %v10863_v8  ;;  %v10944_v7 = vld [vmem:[%s14828_s1 + $0x1924] ss:$16 sps:$4 sm:$0xff]   ;;  %v10947_v8 = vld [vmem:[%s14828_s1 + $0x192c] ss:$16 sps:$4 sm:$0xff]  }
 0x2ef   :  { %7157 = vmatpush1.bf16.msra.mxu0 %v10858_v11  ;;  %8005 = vmatpush1.bf16.msra.mxu1 %v10861_v12  ;;  %v10942_v11 = vld [vmem:[%s14828_s1 + $0x1920] ss:$16 sps:$4 sm:$0xff]   ;;  %v10945_v12 = vld [vmem:[%s14828_s1 + $0x1928] ss:$16 sps:$4 sm:$0xff]  }
 0x2f0   :  { %7158 = vmatprep.subr.bf16.mxu0 %v10866_v9  ;;  %8006 = vmatprep.subr.bf16.mxu1 %v10869_v10  ;;  %v10950_v9 = vld [vmem:[%s14828_s1 + $0x1944] ss:$16 sps:$4 sm:$0xff]   ;;  %v10953_v10 = vld [vmem:[%s14828_s1 + $0x194c] ss:$16 sps:$4 sm:$0xff]  }
 0x2f3   :  { %7159 = vmatpush1.bf16.msra.mxu0 %v10864_v13  ;;  %8007 = vmatpush1.bf16.msra.mxu1 %v10867_v14  ;;  %v10948_v13 = vld [vmem:[%s14828_s1 + $0x1940] ss:$16 sps:$4 sm:$0xff]   ;;  %v10951_v14 = vld [vmem:[%s14828_s1 + $0x1948] ss:$16 sps:$4 sm:$0xff]  }
 0x2f4   :  { %7160 = vmatprep.subr.bf16.mxu0 %v10872_v15  ;;  %8008 = vmatprep.subr.bf16.mxu1 %v10875_v16  ;;  %v10956_v15 = vld [vmem:[%s14828_s1 + $0x1964] ss:$16 sps:$4 sm:$0xff]   ;;  %v10959_v16 = vld [vmem:[%s14828_s1 + $0x196c] ss:$16 sps:$4 sm:$0xff]  }
 0x2f7   :  { %7161 = vmatpush1.bf16.msra.mxu0 %v10870_v19  ;;  %8009 = vmatpush1.bf16.msra.mxu1 %v10873_v17  ;;  %v10954_v19 = vld [vmem:[%s14828_s1 + $0x1960] ss:$16 sps:$4 sm:$0xff]   ;;  %v10957_v17 = vld [vmem:[%s14828_s1 + $0x1968] ss:$16 sps:$4 sm:$0xff]  }
 0x2f8   :  { %7162 = vmatprep.subr.bf16.mxu0 %v10878_v18  ;;  %8010 = vmatprep.subr.bf16.mxu1 %v10881_v20  ;;  %v10962_v18 = vld [vmem:[%s14828_s1 + $0x1984] ss:$16 sps:$4 sm:$0xff]   ;;  %v10965_v20 = vld [vmem:[%s14828_s1 + $0x198c] ss:$16 sps:$4 sm:$0xff]  }
 0x2fb   :  { %7163 = vmatpush1.bf16.msra.mxu0 %v10876_v21  ;;  %8011 = vmatpush1.bf16.msra.mxu1 %v10879_v22  ;;  %v10960_v21 = vld [vmem:[%s14828_s1 + $0x1980] ss:$16 sps:$4 sm:$0xff]   ;;  %v10963_v22 = vld [vmem:[%s14828_s1 + $0x1988] ss:$16 sps:$4 sm:$0xff]  }
 0x2fc   :  { %7164 = vmatprep.subr.bf16.mxu0 %v10884_v23  ;;  %8012 = vmatprep.subr.bf16.mxu1 %v10887_v24  ;;  %v10968_v23 = vld [vmem:[%s14828_s1 + $0x19a4] ss:$16 sps:$4 sm:$0xff]   ;;  %v10971_v24 = vld [vmem:[%s14828_s1 + $0x19ac] ss:$16 sps:$4 sm:$0xff]  }
 0x2ff   :  { %7165 = vmatpush1.bf16.msra.mxu0 %v10882_v26  ;;  %8013 = vmatpush1.bf16.msra.mxu1 %v10885_v25  ;;  %v10966_v26 = vld [vmem:[%s14828_s1 + $0x19a0] ss:$16 sps:$4 sm:$0xff]   ;;  %v10969_v25 = vld [vmem:[%s14828_s1 + $0x19a8] ss:$16 sps:$4 sm:$0xff]  }
 0x300   :  { %7187 = vmatprep.subr.bf16.mxu0 %v10890_v27  ;;  %8035 = vmatprep.subr.bf16.mxu1 %v10893_v28  ;;  %v10974_v27 = vld [vmem:[%s14828_s1 + $0x19c4] ss:$16 sps:$4 sm:$0xff]   ;;  %v10977_v28 = vld [vmem:[%s14828_s1 + $0x19cc] ss:$16 sps:$4 sm:$0xff]  }
 0x302   :  { %7167 = vmatmul.mubr.bf16.vlgmr.msra.gmra.mrb[0].mxu0 %v8424_v29  ;;  %8015 = vmatmul.mubr.bf16.vlgmr.msra.gmra.mrb[0].mxu1 %v8424_v29  ;;  %v10972_v29 = vld [vmem:[%s14828_s1 + $0x19c0] ss:$16 sps:$4 sm:$0xff]  }
 0x303   :  { %7188 = vmatpush1.bf16.msra.mxu0 %v10888_v32  ;;  %8036 = vmatpush1.bf16.msra.mxu1 %v10891_v34  ;;  %v10983_v32 = vld [vmem:[%s14828_s1 + $0x19ec] ss:$16 sps:$4 sm:$0xff]   ;;  %v10978_v34 = vld [vmem:[%s14828_s1 + $0x19e0] ss:$16 sps:$4 sm:$0xff]  }
 0x304   :  { %7189 = vmatprep.subr.bf16.mxu0 %v10896_v36  ;;  %8037 = vmatprep.subr.bf16.mxu1 %v10899_v33  ;;  %v10981_v36 = vld [vmem:[%s14828_s1 + $0x19e8] ss:$16 sps:$4 sm:$0xff]   ;;  %v10986_v33 = vld [vmem:[%s14828_s1 + $0x1a04] ss:$16 sps:$4 sm:$0xff]  }
 0x305   :  { %7176 = vmatprep.mubr.bf16.mxu0 %v8457_v35  ;;  %8024 = vmatprep.mubr.bf16.mxu1 %v8457_v35  ;;  %v10989_v35 = vld [vmem:[%s14828_s1 + $0x1a0c] ss:$16 sps:$4 sm:$0xff]  }
 0x307   :  { %7190 = vmatpush1.bf16.msra.mxu0 %v10894_v37  ;;  %8038 = vmatpush1.bf16.msra.mxu1 %v10897_v38  ;;  %v8426_v37 = vcombine.low %v13901_v44, %v13906_v41  ;;  %v67_v38 = vld [vmem:[%s14827_s0 + $0x160] sm:$0xff]  ;;  %v10995_v41 = vld [vmem:[%s14828_s1 + $0x1a2c] ss:$16 sps:$4 sm:$0xff]  }
 0x308   :  { %7191 = vmatprep.subr.bf16.mxu0 %v10902_v39  ;;  %8039 = vmatprep.subr.bf16.mxu1 %v10905_v40  ;;  %v83_v39 = vld [vmem:[%s14827_s0 + $0x1e0] sm:$0xff] }
 0x309   :  { %v10984_v40 = vld [vmem:[%s14828_s1 + $0x1a00] ss:$16 sps:$4 sm:$0xff]   ;;  %v10992_v44 = vld [vmem:[%s14828_s1 + $0x1a24] ss:$16 sps:$4 sm:$0xff]  }
 0x30a   :  { %7177 = vmatmul.mubr.bf16.gmra.mrb[4].mxu0 %v8456_v42  ;;  %8025 = vmatmul.mubr.bf16.gmra.mrb[4].mxu1 %v8456_v42  ;;  %v10987_v42 = vld [vmem:[%s14828_s1 + $0x1a08] ss:$16 sps:$4 sm:$0xff]  }
 0x30b   :  { %7192 = vmatpush1.bf16.msra.mxu0 %v10900_v43  ;;  %8040 = vmatpush1.bf16.msra.mxu1 %v10903_v45  ;;  %v8459_v43 = vcombine.high %v67_v38, %v83_v39  ;;  %v10990_v45 = vld [vmem:[%s14828_s1 + $0x1a20] ss:$16 sps:$4 sm:$0xff]  }
 0x30c   :  { %7193 = vmatprep.subr.bf16.mxu0 %v10908_v46  ;;  %8041 = vmatprep.subr.bf16.mxu1 %v10911_v47  ;;  %v10993_v46 = vld [vmem:[%s14828_s1 + $0x1a28] ss:$16 sps:$4 sm:$0xff]   ;;  %v10998_v47 = vld [vmem:[%s14828_s1 + $0x1a44] ss:$16 sps:$4 sm:$0xff]  }
 0x30d   :  { %7219 = vmatprep.mubr.bf16.mxu0 %v8427_v48  ;;  %8067 = vmatprep.mubr.bf16.mxu1 %v8427_v48  ;;  %v11001_v48 = vld [vmem:[%s14828_s1 + $0x1a4c] ss:$16 sps:$4 sm:$0xff]  }
 0x30f   :  { %7194 = vmatpush1.bf16.msra.mxu0 %v10906_v51  ;;  %8042 = vmatpush1.bf16.msra.mxu1 %v10909_v52  ;;  %v8458_v51 = vcombine.low %v67_v38, %v83_v39  ;;  %v14113_v52 = vld [vmem:[%s14827_s0 + $0x68] sm:$0xff]  ;;  %v11076_v39 = vld [vmem:[%s14828_s1 + $0x1be4] ss:$16 sps:$4 sm:$0xff]  }
 0x310   :  { %7195 = vmatprep.subr.bf16.mxu0 %v10914_v49  ;;  %8043 = vmatprep.subr.bf16.mxu1 %v10917_v50  ;;  %v14118_v49 = vld [vmem:[%s14827_s0 + $0xe8] sm:$0xff]  ;;  %v10996_v50 = vld [vmem:[%s14828_s1 + $0x1a40] ss:$16 sps:$4 sm:$0xff]  }
 0x311   :  { %v11071_v38 = vld [vmem:[%s14828_s1 + $0x1bc8] ss:$16 sps:$4 sm:$0xff]  }
 0x313   :  { %7196 = vmatpush1.bf16.msra.mxu0 %v10912_v53  ;;  %8044 = vmatpush1.bf16.msra.mxu1 %v10915_v54  ;;  %v10999_v53 = vld [vmem:[%s14828_s1 + $0x1a48] ss:$16 sps:$4 sm:$0xff]   ;;  %v11004_v54 = vld [vmem:[%s14828_s1 + $0x1a64] ss:$16 sps:$4 sm:$0xff]  }
 0x314   :  { %7197 = vmatprep.subr.bf16.mxu0 %v10920_v55  ;;  %8045 = vmatprep.subr.bf16.mxu1 %v10923_v56  ;;  %v11007_v55 = vld [vmem:[%s14828_s1 + $0x1a6c] ss:$16 sps:$4 sm:$0xff]   ;;  %v8429_v56 = vcombine.high %v14113_v52, %v14118_v49 }
 0x317   :  { %7198 = vmatpush1.bf16.msra.mxu0 %v10918_v59  ;;  %8046 = vmatpush1.bf16.msra.mxu1 %v10921_v60  ;;  %v11002_v59 = vld [vmem:[%s14828_s1 + $0x1a60] ss:$16 sps:$4 sm:$0xff]   ;;  %v11005_v60 = vld [vmem:[%s14828_s1 + $0x1a68] ss:$16 sps:$4 sm:$0xff]  }
 0x318   :  { %7199 = vmatprep.subr.bf16.mxu0 %v10926_v57  ;;  %8047 = vmatprep.subr.bf16.mxu1 %v10929_v58  ;;  %v11010_v57 = vld [vmem:[%s14828_s1 + $0x1a84] ss:$16 sps:$4 sm:$0xff]   ;;  %v11013_v58 = vld [vmem:[%s14828_s1 + $0x1a8c] ss:$16 sps:$4 sm:$0xff]  }
 0x31b   :  { %7200 = vmatpush1.bf16.msra.mxu0 %v10924_v61  ;;  %8048 = vmatpush1.bf16.msra.mxu1 %v10927_v62  ;;  %v11008_v61 = vld [vmem:[%s14828_s1 + $0x1a80] ss:$16 sps:$4 sm:$0xff]   ;;  %v11011_v62 = vld [vmem:[%s14828_s1 + $0x1a88] ss:$16 sps:$4 sm:$0xff]  }
 0x31c   :  { %7201 = vmatprep.subr.bf16.mxu0 %v10932_v63  ;;  %8049 = vmatprep.subr.bf16.mxu1 %v10935_v0  ;;  %v11016_v63 = vld [vmem:[%s14828_s1 + $0x1aa4] ss:$16 sps:$4 sm:$0xff]   ;;  %v11019_v0 = vld [vmem:[%s14828_s1 + $0x1aac] ss:$16 sps:$4 sm:$0xff]  }
 0x31f   :  { %7202 = vmatpush1.bf16.msra.mxu0 %v10930_v3  ;;  %8050 = vmatpush1.bf16.msra.mxu1 %v10933_v4  ;;  %v11014_v3 = vld [vmem:[%s14828_s1 + $0x1aa0] ss:$16 sps:$4 sm:$0xff]   ;;  %v11017_v4 = vld [vmem:[%s14828_s1 + $0x1aa8] ss:$16 sps:$4 sm:$0xff]  }
 0x320   :  { %7203 = vmatprep.subr.bf16.mxu0 %v10938_v1  ;;  %8051 = vmatprep.subr.bf16.mxu1 %v10941_v2  ;;  %v11022_v1 = vld [vmem:[%s14828_s1 + $0x1ac4] ss:$16 sps:$4 sm:$0xff]   ;;  %v11025_v2 = vld [vmem:[%s14828_s1 + $0x1acc] ss:$16 sps:$4 sm:$0xff]  }
 0x323   :  { %7204 = vmatpush1.bf16.msra.mxu0 %v10936_v5  ;;  %8052 = vmatpush1.bf16.msra.mxu1 %v10939_v6  ;;  %v11020_v5 = vld [vmem:[%s14828_s1 + $0x1ac0] ss:$16 sps:$4 sm:$0xff]   ;;  %v11023_v6 = vld [vmem:[%s14828_s1 + $0x1ac8] ss:$16 sps:$4 sm:$0xff]  }
 0x324   :  { %7205 = vmatprep.subr.bf16.mxu0 %v10944_v7  ;;  %8053 = vmatprep.subr.bf16.mxu1 %v10947_v8  ;;  %v11028_v7 = vld [vmem:[%s14828_s1 + $0x1ae4] ss:$16 sps:$4 sm:$0xff]   ;;  %v11031_v8 = vld [vmem:[%s14828_s1 + $0x1aec] ss:$16 sps:$4 sm:$0xff]  }
 0x327   :  { %7206 = vmatpush1.bf16.msra.mxu0 %v10942_v11  ;;  %8054 = vmatpush1.bf16.msra.mxu1 %v10945_v12  ;;  %v11026_v11 = vld [vmem:[%s14828_s1 + $0x1ae0] ss:$16 sps:$4 sm:$0xff]   ;;  %v11029_v12 = vld [vmem:[%s14828_s1 + $0x1ae8] ss:$16 sps:$4 sm:$0xff]  }
 0x328   :  { %7207 = vmatprep.subr.bf16.mxu0 %v10950_v9  ;;  %8055 = vmatprep.subr.bf16.mxu1 %v10953_v10  ;;  %v11034_v9 = vld [vmem:[%s14828_s1 + $0x1b04] ss:$16 sps:$4 sm:$0xff]   ;;  %v11037_v10 = vld [vmem:[%s14828_s1 + $0x1b0c] ss:$16 sps:$4 sm:$0xff]  }
 0x32b   :  { %7208 = vmatpush1.bf16.msra.mxu0 %v10948_v13  ;;  %8056 = vmatpush1.bf16.msra.mxu1 %v10951_v14  ;;  %v11032_v13 = vld [vmem:[%s14828_s1 + $0x1b00] ss:$16 sps:$4 sm:$0xff]   ;;  %v11035_v14 = vld [vmem:[%s14828_s1 + $0x1b08] ss:$16 sps:$4 sm:$0xff]  }
 0x32c   :  { %7209 = vmatprep.subr.bf16.mxu0 %v10956_v15  ;;  %8057 = vmatprep.subr.bf16.mxu1 %v10959_v16  ;;  %v11040_v15 = vld [vmem:[%s14828_s1 + $0x1b24] ss:$16 sps:$4 sm:$0xff]   ;;  %v11043_v16 = vld [vmem:[%s14828_s1 + $0x1b2c] ss:$16 sps:$4 sm:$0xff]  }
 0x32f   :  { %7210 = vmatpush1.bf16.msra.mxu0 %v10954_v19  ;;  %8058 = vmatpush1.bf16.msra.mxu1 %v10957_v17  ;;  %v11038_v19 = vld [vmem:[%s14828_s1 + $0x1b20] ss:$16 sps:$4 sm:$0xff]   ;;  %v11041_v17 = vld [vmem:[%s14828_s1 + $0x1b28] ss:$16 sps:$4 sm:$0xff]  }
 0x330   :  { %7211 = vmatprep.subr.bf16.mxu0 %v10962_v18  ;;  %8059 = vmatprep.subr.bf16.mxu1 %v10965_v20  ;;  %v11046_v18 = vld [vmem:[%s14828_s1 + $0x1b44] ss:$16 sps:$4 sm:$0xff]   ;;  %v11049_v20 = vld [vmem:[%s14828_s1 + $0x1b4c] ss:$16 sps:$4 sm:$0xff]  }
 0x333   :  { %7212 = vmatpush1.bf16.msra.mxu0 %v10960_v21  ;;  %8060 = vmatpush1.bf16.msra.mxu1 %v10963_v22  ;;  %v11044_v21 = vld [vmem:[%s14828_s1 + $0x1b40] ss:$16 sps:$4 sm:$0xff]   ;;  %v11047_v22 = vld [vmem:[%s14828_s1 + $0x1b48] ss:$16 sps:$4 sm:$0xff]  }
 0x334   :  { %7213 = vmatprep.subr.bf16.mxu0 %v10968_v23  ;;  %8061 = vmatprep.subr.bf16.mxu1 %v10971_v24  ;;  %v11052_v23 = vld [vmem:[%s14828_s1 + $0x1b64] ss:$16 sps:$4 sm:$0xff]   ;;  %v11055_v24 = vld [vmem:[%s14828_s1 + $0x1b6c] ss:$16 sps:$4 sm:$0xff]  }
 0x337   :  { %7214 = vmatpush1.bf16.msra.mxu0 %v10966_v26  ;;  %8062 = vmatpush1.bf16.msra.mxu1 %v10969_v25  ;;  %v11050_v26 = vld [vmem:[%s14828_s1 + $0x1b60] ss:$16 sps:$4 sm:$0xff]   ;;  %v11053_v25 = vld [vmem:[%s14828_s1 + $0x1b68] ss:$16 sps:$4 sm:$0xff]  }
 0x338   :  { %7215 = vmatprep.subr.bf16.mxu0 %v10974_v27  ;;  %8063 = vmatprep.subr.bf16.mxu1 %v10977_v28  ;;  %v11058_v27 = vld [vmem:[%s14828_s1 + $0x1b84] ss:$16 sps:$4 sm:$0xff]   ;;  %v11061_v28 = vld [vmem:[%s14828_s1 + $0x1b8c] ss:$16 sps:$4 sm:$0xff]  }
 0x33b   :  { %7216 = vmatpush1.bf16.msra.mxu0 %v10972_v29  ;;  %8064 = vmatpush1.bf16.msra.mxu1 %v10975_v30  ;;  %v11056_v29 = vld [vmem:[%s14828_s1 + $0x1b80] ss:$16 sps:$4 sm:$0xff]   ;;  %v11059_v30 = vld [vmem:[%s14828_s1 + $0x1b88] ss:$16 sps:$4 sm:$0xff]  }
 0x33c   :  { %7217 = vmatprep.subr.bf16.mxu0 %v10980_v31  ;;  %8065 = vmatprep.subr.bf16.mxu1 %v10983_v32  ;;  %v11064_v31 = vld [vmem:[%s14828_s1 + $0x1ba4] ss:$16 sps:$4 sm:$0xff]   ;;  %v11067_v32 = vld [vmem:[%s14828_s1 + $0x1bac] ss:$16 sps:$4 sm:$0xff]  }
 0x33f   :  { %7218 = vmatpush1.bf16.msra.mxu0 %v10978_v34  ;;  %8066 = vmatpush1.bf16.msra.mxu1 %v10981_v36  ;;  %v11062_v34 = vld [vmem:[%s14828_s1 + $0x1ba0] ss:$16 sps:$4 sm:$0xff]   ;;  %v11065_v36 = vld [vmem:[%s14828_s1 + $0x1ba8] ss:$16 sps:$4 sm:$0xff]  }
 0x340   :  { %7240 = vmatprep.subr.bf16.mxu0 %v10986_v33  ;;  %8088 = vmatprep.subr.bf16.mxu1 %v10989_v35  ;;  %v11070_v33 = vld [vmem:[%s14828_s1 + $0x1bc4] ss:$16 sps:$4 sm:$0xff]   ;;  %v11073_v35 = vld [vmem:[%s14828_s1 + $0x1bcc] ss:$16 sps:$4 sm:$0xff]  }
 0x342   :  { %7220 = vmatmul.mubr.bf16.vlgmr.msra.gmra.mrb[0].mxu0 %v8426_v37  ;;  %8068 = vmatmul.mubr.bf16.vlgmr.msra.gmra.mrb[0].mxu1 %v8426_v37  ;;  %v11068_v37 = vld [vmem:[%s14828_s1 + $0x1bc0] ss:$16 sps:$4 sm:$0xff]  }
 0x343   :  { %7241 = vmatpush1.bf16.msra.mxu0 %v10984_v40  ;;  %8089 = vmatpush1.bf16.msra.mxu1 %v10987_v42  ;;  %v11079_v40 = vld [vmem:[%s14828_s1 + $0x1bec] ss:$16 sps:$4 sm:$0xff]   ;;  %v11074_v42 = vld [vmem:[%s14828_s1 + $0x1be0] ss:$16 sps:$4 sm:$0xff]  }
 0x344   :  { %7242 = vmatprep.subr.bf16.mxu0 %v10992_v44  ;;  %8090 = vmatprep.subr.bf16.mxu1 %v10995_v41  ;;  %v11077_v44 = vld [vmem:[%s14828_s1 + $0x1be8] ss:$16 sps:$4 sm:$0xff]   ;;  %v11082_v41 = vld [vmem:[%s14828_s1 + $0x1c04] ss:$16 sps:$4 sm:$0xff]  }
 0x345   :  { %7229 = vmatprep.mubr.bf16.mxu0 %v8459_v43  ;;  %8077 = vmatprep.mubr.bf16.mxu1 %v8459_v43  ;;  %v11085_v43 = vld [vmem:[%s14828_s1 + $0x1c0c] ss:$16 sps:$4 sm:$0xff]  }
 0x347   :  { %7243 = vmatpush1.bf16.msra.mxu0 %v10990_v45  ;;  %8091 = vmatpush1.bf16.msra.mxu1 %v10993_v46  ;;  %v8428_v45 = vcombine.low %v14113_v52, %v14118_v49  ;;  %v68_v46 = vld [vmem:[%s14827_s0 + $0x168] sm:$0xff]  ;;  %v11088_v52 = vld [vmem:[%s14828_s1 + $0x1c24] ss:$16 sps:$4 sm:$0xff]  }
 0x348   :  { %7244 = vmatprep.subr.bf16.mxu0 %v10998_v47  ;;  %8092 = vmatprep.subr.bf16.mxu1 %v11001_v48  ;;  %v84_v47 = vld [vmem:[%s14827_s0 + $0x1e8] sm:$0xff]  ;;  %v11080_v48 = vld [vmem:[%s14828_s1 + $0x1c00] ss:$16 sps:$4 sm:$0xff]  }
 0x349   :  { %v11091_v49 = vld [vmem:[%s14828_s1 + $0x1c2c] ss:$16 sps:$4 sm:$0xff]  }
 0x34a   :  { %7230 = vmatmul.mubr.bf16.gmra.mrb[4].mxu0 %v8458_v51  ;;  %8078 = vmatmul.mubr.bf16.gmra.mrb[4].mxu1 %v8458_v51  ;;  %v11083_v51 = vld [vmem:[%s14828_s1 + $0x1c08] ss:$16 sps:$4 sm:$0xff]  }
 0x34b   :  { %7245 = vmatpush1.bf16.msra.mxu0 %v10996_v50  ;;  %8093 = vmatpush1.bf16.msra.mxu1 %v10999_v53  ;;  %v8461_v50 = vcombine.high %v68_v46, %v84_v47  ;;  %v11086_v53 = vld [vmem:[%s14828_s1 + $0x1c20] ss:$16 sps:$4 sm:$0xff]  }
 0x34c   :  { %7246 = vmatprep.subr.bf16.mxu0 %v11004_v54  ;;  %8094 = vmatprep.subr.bf16.mxu1 %v11007_v55  ;;  %v11089_v54 = vld [vmem:[%s14828_s1 + $0x1c28] ss:$16 sps:$4 sm:$0xff]   ;;  %v11094_v55 = vld [vmem:[%s14828_s1 + $0x1c44] ss:$16 sps:$4 sm:$0xff]  }
 0x34d   :  { %7272 = vmatprep.mubr.bf16.mxu0 %v8429_v56  ;;  %8120 = vmatprep.mubr.bf16.mxu1 %v8429_v56  ;;  %v11097_v56 = vld [vmem:[%s14828_s1 + $0x1c4c] ss:$16 sps:$4 sm:$0xff]  }
 0x34f   :  { %7247 = vmatpush1.bf16.msra.mxu0 %v11002_v59  ;;  %8095 = vmatpush1.bf16.msra.mxu1 %v11005_v60  ;;  %v8460_v59 = vcombine.low %v68_v46, %v84_v47  ;;  %v14325_v60 = vld [vmem:[%s14827_s0 + $0x70] sm:$0xff]  ;;  %v11167_v46 = vld [vmem:[%s14828_s1 + $0x1dc8] ss:$16 sps:$4 sm:$0xff]  }
 0x350   :  { %7248 = vmatprep.subr.bf16.mxu0 %v11010_v57  ;;  %8096 = vmatprep.subr.bf16.mxu1 %v11013_v58  ;;  %v14330_v57 = vld [vmem:[%s14827_s0 + $0xf0] sm:$0xff] }
 0x351   :  { %v11092_v58 = vld [vmem:[%s14828_s1 + $0x1c40] ss:$16 sps:$4 sm:$0xff]   ;;  %v11172_v47 = vld [vmem:[%s14828_s1 + $0x1de4] ss:$16 sps:$4 sm:$0xff]  }
 0x353   :  { %7249 = vmatpush1.bf16.msra.mxu0 %v11008_v61  ;;  %8097 = vmatpush1.bf16.msra.mxu1 %v11011_v62  ;;  %v11095_v61 = vld [vmem:[%s14828_s1 + $0x1c48] ss:$16 sps:$4 sm:$0xff]   ;;  %v11100_v62 = vld [vmem:[%s14828_s1 + $0x1c64] ss:$16 sps:$4 sm:$0xff]  }
 0x354   :  { %7250 = vmatprep.subr.bf16.mxu0 %v11016_v63  ;;  %8098 = vmatprep.subr.bf16.mxu1 %v11019_v0  ;;  %v11103_v63 = vld [vmem:[%s14828_s1 + $0x1c6c] ss:$16 sps:$4 sm:$0xff]   ;;  %v8431_v0 = vcombine.high %v14325_v60, %v14330_v57 }
 0x357   :  { %7251 = vmatpush1.bf16.msra.mxu0 %v11014_v3  ;;  %8099 = vmatpush1.bf16.msra.mxu1 %v11017_v4  ;;  %v11098_v3 = vld [vmem:[%s14828_s1 + $0x1c60] ss:$16 sps:$4 sm:$0xff]   ;;  %v11101_v4 = vld [vmem:[%s14828_s1 + $0x1c68] ss:$16 sps:$4 sm:$0xff]  }
 0x358   :  { %7252 = vmatprep.subr.bf16.mxu0 %v11022_v1  ;;  %8100 = vmatprep.subr.bf16.mxu1 %v11025_v2  ;;  %v11106_v1 = vld [vmem:[%s14828_s1 + $0x1c84] ss:$16 sps:$4 sm:$0xff]   ;;  %v11109_v2 = vld [vmem:[%s14828_s1 + $0x1c8c] ss:$16 sps:$4 sm:$0xff]  }
 0x35b   :  { %7253 = vmatpush1.bf16.msra.mxu0 %v11020_v5  ;;  %8101 = vmatpush1.bf16.msra.mxu1 %v11023_v6  ;;  %v11104_v5 = vld [vmem:[%s14828_s1 + $0x1c80] ss:$16 sps:$4 sm:$0xff]   ;;  %v11107_v6 = vld [vmem:[%s14828_s1 + $0x1c88] ss:$16 sps:$4 sm:$0xff]  }
 0x35c   :  { %7254 = vmatprep.subr.bf16.mxu0 %v11028_v7  ;;  %8102 = vmatprep.subr.bf16.mxu1 %v11031_v8  ;;  %v11112_v7 = vld [vmem:[%s14828_s1 + $0x1ca4] ss:$16 sps:$4 sm:$0xff]   ;;  %v11115_v8 = vld [vmem:[%s14828_s1 + $0x1cac] ss:$16 sps:$4 sm:$0xff]  }
 0x35f   :  { %7255 = vmatpush1.bf16.msra.mxu0 %v11026_v11  ;;  %8103 = vmatpush1.bf16.msra.mxu1 %v11029_v12  ;;  %v11110_v11 = vld [vmem:[%s14828_s1 + $0x1ca0] ss:$16 sps:$4 sm:$0xff]   ;;  %v11113_v12 = vld [vmem:[%s14828_s1 + $0x1ca8] ss:$16 sps:$4 sm:$0xff]  }
 0x360   :  { %7256 = vmatprep.subr.bf16.mxu0 %v11034_v9  ;;  %8104 = vmatprep.subr.bf16.mxu1 %v11037_v10  ;;  %v11118_v9 = vld [vmem:[%s14828_s1 + $0x1cc4] ss:$16 sps:$4 sm:$0xff]   ;;  %v11121_v10 = vld [vmem:[%s14828_s1 + $0x1ccc] ss:$16 sps:$4 sm:$0xff]  }
 0x363   :  { %7257 = vmatpush1.bf16.msra.mxu0 %v11032_v13  ;;  %8105 = vmatpush1.bf16.msra.mxu1 %v11035_v14  ;;  %v11116_v13 = vld [vmem:[%s14828_s1 + $0x1cc0] ss:$16 sps:$4 sm:$0xff]   ;;  %v11119_v14 = vld [vmem:[%s14828_s1 + $0x1cc8] ss:$16 sps:$4 sm:$0xff]  }
 0x364   :  { %7258 = vmatprep.subr.bf16.mxu0 %v11040_v15  ;;  %8106 = vmatprep.subr.bf16.mxu1 %v11043_v16  ;;  %v11124_v15 = vld [vmem:[%s14828_s1 + $0x1ce4] ss:$16 sps:$4 sm:$0xff]   ;;  %v11127_v16 = vld [vmem:[%s14828_s1 + $0x1cec] ss:$16 sps:$4 sm:$0xff]  }
 0x367   :  { %7259 = vmatpush1.bf16.msra.mxu0 %v11038_v19  ;;  %8107 = vmatpush1.bf16.msra.mxu1 %v11041_v17  ;;  %v11122_v19 = vld [vmem:[%s14828_s1 + $0x1ce0] ss:$16 sps:$4 sm:$0xff]   ;;  %v11125_v17 = vld [vmem:[%s14828_s1 + $0x1ce8] ss:$16 sps:$4 sm:$0xff]  }
 0x368   :  { %7260 = vmatprep.subr.bf16.mxu0 %v11046_v18  ;;  %8108 = vmatprep.subr.bf16.mxu1 %v11049_v20  ;;  %v11130_v18 = vld [vmem:[%s14828_s1 + $0x1d04] ss:$16 sps:$4 sm:$0xff]   ;;  %v11133_v20 = vld [vmem:[%s14828_s1 + $0x1d0c] ss:$16 sps:$4 sm:$0xff]  }
 0x36b   :  { %7261 = vmatpush1.bf16.msra.mxu0 %v11044_v21  ;;  %8109 = vmatpush1.bf16.msra.mxu1 %v11047_v22  ;;  %v11128_v21 = vld [vmem:[%s14828_s1 + $0x1d00] ss:$16 sps:$4 sm:$0xff]   ;;  %v11131_v22 = vld [vmem:[%s14828_s1 + $0x1d08] ss:$16 sps:$4 sm:$0xff]  }
 0x36c   :  { %7262 = vmatprep.subr.bf16.mxu0 %v11052_v23  ;;  %8110 = vmatprep.subr.bf16.mxu1 %v11055_v24  ;;  %v11136_v23 = vld [vmem:[%s14828_s1 + $0x1d24] ss:$16 sps:$4 sm:$0xff]   ;;  %v11139_v24 = vld [vmem:[%s14828_s1 + $0x1d2c] ss:$16 sps:$4 sm:$0xff]  }
 0x36f   :  { %7263 = vmatpush1.bf16.msra.mxu0 %v11050_v26  ;;  %8111 = vmatpush1.bf16.msra.mxu1 %v11053_v25  ;;  %v11134_v26 = vld [vmem:[%s14828_s1 + $0x1d20] ss:$16 sps:$4 sm:$0xff]   ;;  %v11137_v25 = vld [vmem:[%s14828_s1 + $0x1d28] ss:$16 sps:$4 sm:$0xff]  }
 0x370   :  { %7264 = vmatprep.subr.bf16.mxu0 %v11058_v27  ;;  %8112 = vmatprep.subr.bf16.mxu1 %v11061_v28  ;;  %v11142_v27 = vld [vmem:[%s14828_s1 + $0x1d44] ss:$16 sps:$4 sm:$0xff]   ;;  %v11145_v28 = vld [vmem:[%s14828_s1 + $0x1d4c] ss:$16 sps:$4 sm:$0xff]  }
 0x373   :  { %7265 = vmatpush1.bf16.msra.mxu0 %v11056_v29  ;;  %8113 = vmatpush1.bf16.msra.mxu1 %v11059_v30  ;;  %v11140_v29 = vld [vmem:[%s14828_s1 + $0x1d40] ss:$16 sps:$4 sm:$0xff]   ;;  %v11143_v30 = vld [vmem:[%s14828_s1 + $0x1d48] ss:$16 sps:$4 sm:$0xff]  }
 0x374   :  { %7266 = vmatprep.subr.bf16.mxu0 %v11064_v31  ;;  %8114 = vmatprep.subr.bf16.mxu1 %v11067_v32  ;;  %v11148_v31 = vld [vmem:[%s14828_s1 + $0x1d64] ss:$16 sps:$4 sm:$0xff]   ;;  %v11151_v32 = vld [vmem:[%s14828_s1 + $0x1d6c] ss:$16 sps:$4 sm:$0xff]  }
 0x377   :  { %7267 = vmatpush1.bf16.msra.mxu0 %v11062_v34  ;;  %8115 = vmatpush1.bf16.msra.mxu1 %v11065_v36  ;;  %v11146_v34 = vld [vmem:[%s14828_s1 + $0x1d60] ss:$16 sps:$4 sm:$0xff]   ;;  %v11149_v36 = vld [vmem:[%s14828_s1 + $0x1d68] ss:$16 sps:$4 sm:$0xff]  }
 0x378   :  { %7268 = vmatprep.subr.bf16.mxu0 %v11070_v33  ;;  %8116 = vmatprep.subr.bf16.mxu1 %v11073_v35  ;;  %v11154_v33 = vld [vmem:[%s14828_s1 + $0x1d84] ss:$16 sps:$4 sm:$0xff]   ;;  %v11157_v35 = vld [vmem:[%s14828_s1 + $0x1d8c] ss:$16 sps:$4 sm:$0xff]  }
 0x37b   :  { %7269 = vmatpush1.bf16.msra.mxu0 %v11068_v37  ;;  %8117 = vmatpush1.bf16.msra.mxu1 %v11071_v38  ;;  %v11152_v37 = vld [vmem:[%s14828_s1 + $0x1d80] ss:$16 sps:$4 sm:$0xff]   ;;  %v11155_v38 = vld [vmem:[%s14828_s1 + $0x1d88] ss:$16 sps:$4 sm:$0xff]  }
 0x37c   :  { %7270 = vmatprep.subr.bf16.mxu0 %v11076_v39  ;;  %8118 = vmatprep.subr.bf16.mxu1 %v11079_v40  ;;  %v11160_v39 = vld [vmem:[%s14828_s1 + $0x1da4] ss:$16 sps:$4 sm:$0xff]   ;;  %v11163_v40 = vld [vmem:[%s14828_s1 + $0x1dac] ss:$16 sps:$4 sm:$0xff]  }
 0x37f   :  { %7271 = vmatpush1.bf16.msra.mxu0 %v11074_v42  ;;  %8119 = vmatpush1.bf16.msra.mxu1 %v11077_v44  ;;  %v11158_v42 = vld [vmem:[%s14828_s1 + $0x1da0] ss:$16 sps:$4 sm:$0xff]   ;;  %v11161_v44 = vld [vmem:[%s14828_s1 + $0x1da8] ss:$16 sps:$4 sm:$0xff]  }
 0x380   :  { %7293 = vmatprep.subr.bf16.mxu0 %v11082_v41  ;;  %8141 = vmatprep.subr.bf16.mxu1 %v11085_v43  ;;  %v11166_v41 = vld [vmem:[%s14828_s1 + $0x1dc4] ss:$16 sps:$4 sm:$0xff]   ;;  %v11169_v43 = vld [vmem:[%s14828_s1 + $0x1dcc] ss:$16 sps:$4 sm:$0xff]  }
 0x382   :  { %7273 = vmatmul.mubr.bf16.vlgmr.msra.gmra.mrb[0].mxu0 %v8428_v45  ;;  %8121 = vmatmul.mubr.bf16.vlgmr.msra.gmra.mrb[0].mxu1 %v8428_v45  ;;  %v11164_v45 = vld [vmem:[%s14828_s1 + $0x1dc0] ss:$16 sps:$4 sm:$0xff]  }
 0x383   :  { %7294 = vmatpush1.bf16.msra.mxu0 %v11080_v48  ;;  %8142 = vmatpush1.bf16.msra.mxu1 %v11083_v51  ;;  %v11175_v48 = vld [vmem:[%s14828_s1 + $0x1dec] ss:$16 sps:$4 sm:$0xff]   ;;  %v11170_v51 = vld [vmem:[%s14828_s1 + $0x1de0] ss:$16 sps:$4 sm:$0xff]  }
 0x384   :  { %7295 = vmatprep.subr.bf16.mxu0 %v11088_v52  ;;  %8143 = vmatprep.subr.bf16.mxu1 %v11091_v49  ;;  %v11173_v52 = vld [vmem:[%s14828_s1 + $0x1de8] ss:$16 sps:$4 sm:$0xff]   ;;  %v11178_v49 = vld [vmem:[%s14828_s1 + $0x1e04] ss:$16 sps:$4 sm:$0xff]  }
 0x385   :  { %7282 = vmatprep.mubr.bf16.mxu0 %v8461_v50  ;;  %8130 = vmatprep.mubr.bf16.mxu1 %v8461_v50  ;;  %v11181_v50 = vld [vmem:[%s14828_s1 + $0x1e0c] ss:$16 sps:$4 sm:$0xff]  }
 0x387   :  { %7296 = vmatpush1.bf16.msra.mxu0 %v11086_v53  ;;  %8144 = vmatpush1.bf16.msra.mxu1 %v11089_v54  ;;  %v8430_v53 = vcombine.low %v14325_v60, %v14330_v57  ;;  %v69_v54 = vld [vmem:[%s14827_s0 + $0x170] sm:$0xff]  ;;  %v11187_v57 = vld [vmem:[%s14828_s1 + $0x1e2c] ss:$16 sps:$4 sm:$0xff]  }
 0x388   :  { %7297 = vmatprep.subr.bf16.mxu0 %v11094_v55  ;;  %8145 = vmatprep.subr.bf16.mxu1 %v11097_v56  ;;  %v85_v55 = vld [vmem:[%s14827_s0 + $0x1f0] sm:$0xff] }
 0x389   :  { %v11176_v56 = vld [vmem:[%s14828_s1 + $0x1e00] ss:$16 sps:$4 sm:$0xff]   ;;  %v11184_v60 = vld [vmem:[%s14828_s1 + $0x1e24] ss:$16 sps:$4 sm:$0xff]  }
 0x38a   :  { %7283 = vmatmul.mubr.bf16.gmra.mrb[4].mxu0 %v8460_v59  ;;  %8131 = vmatmul.mubr.bf16.gmra.mrb[4].mxu1 %v8460_v59  ;;  %v11179_v59 = vld [vmem:[%s14828_s1 + $0x1e08] ss:$16 sps:$4 sm:$0xff]  }
 0x38b   :  { %7298 = vmatpush1.bf16.msra.mxu0 %v11092_v58  ;;  %8146 = vmatpush1.bf16.msra.mxu1 %v11095_v61  ;;  %v8463_v58 = vcombine.high %v69_v54, %v85_v55  ;;  %v11182_v61 = vld [vmem:[%s14828_s1 + $0x1e20] ss:$16 sps:$4 sm:$0xff]  }
 0x38c   :  { %7299 = vmatprep.subr.bf16.mxu0 %v11100_v62  ;;  %8147 = vmatprep.subr.bf16.mxu1 %v11103_v63  ;;  %v11185_v62 = vld [vmem:[%s14828_s1 + $0x1e28] ss:$16 sps:$4 sm:$0xff]   ;;  %v11190_v63 = vld [vmem:[%s14828_s1 + $0x1e44] ss:$16 sps:$4 sm:$0xff]  }
 0x38d   :  { %7325 = vmatprep.mubr.bf16.mxu0 %v8431_v0  ;;  %8173 = vmatprep.mubr.bf16.mxu1 %v8431_v0  ;;  %v11193_v0 = vld [vmem:[%s14828_s1 + $0x1e4c] ss:$16 sps:$4 sm:$0xff]  }
 0x38f   :  { %7300 = vmatpush1.bf16.msra.mxu0 %v11098_v3  ;;  %8148 = vmatpush1.bf16.msra.mxu1 %v11101_v4  ;;  %v8462_v3 = vcombine.low %v69_v54, %v85_v55  ;;  %v14537_v4 = vld [vmem:[%s14827_s0 + $0x78] sm:$0xff]  ;;  %v11268_v55 = vld [vmem:[%s14828_s1 + $0x1fe4] ss:$16 sps:$4 sm:$0xff]  }
 0x390   :  { %7301 = vmatprep.subr.bf16.mxu0 %v11106_v1  ;;  %8149 = vmatprep.subr.bf16.mxu1 %v11109_v2  ;;  %v14542_v1 = vld [vmem:[%s14827_s0 + $0xf8] sm:$0xff]  ;;  %v11188_v2 = vld [vmem:[%s14828_s1 + $0x1e40] ss:$16 sps:$4 sm:$0xff]  }
 0x391   :  { %v11263_v54 = vld [vmem:[%s14828_s1 + $0x1fc8] ss:$16 sps:$4 sm:$0xff]  }
 0x393   :  { %7302 = vmatpush1.bf16.msra.mxu0 %v11104_v5  ;;  %8150 = vmatpush1.bf16.msra.mxu1 %v11107_v6  ;;  %v11191_v5 = vld [vmem:[%s14828_s1 + $0x1e48] ss:$16 sps:$4 sm:$0xff]   ;;  %v11196_v6 = vld [vmem:[%s14828_s1 + $0x1e64] ss:$16 sps:$4 sm:$0xff]  }
 0x394   :  { %7303 = vmatprep.subr.bf16.mxu0 %v11112_v7  ;;  %8151 = vmatprep.subr.bf16.mxu1 %v11115_v8  ;;  %v11199_v7 = vld [vmem:[%s14828_s1 + $0x1e6c] ss:$16 sps:$4 sm:$0xff]   ;;  %v8433_v8 = vcombine.high %v14537_v4, %v14542_v1 }
 0x397   :  { %7304 = vmatpush1.bf16.msra.mxu0 %v11110_v11  ;;  %8152 = vmatpush1.bf16.msra.mxu1 %v11113_v12  ;;  %v11194_v11 = vld [vmem:[%s14828_s1 + $0x1e60] ss:$16 sps:$4 sm:$0xff]   ;;  %v11197_v12 = vld [vmem:[%s14828_s1 + $0x1e68] ss:$16 sps:$4 sm:$0xff]  }
 0x398   :  { %7305 = vmatprep.subr.bf16.mxu0 %v11118_v9  ;;  %8153 = vmatprep.subr.bf16.mxu1 %v11121_v10  ;;  %v11202_v9 = vld [vmem:[%s14828_s1 + $0x1e84] ss:$16 sps:$4 sm:$0xff]   ;;  %v11205_v10 = vld [vmem:[%s14828_s1 + $0x1e8c] ss:$16 sps:$4 sm:$0xff]  }
 0x39b   :  { %7306 = vmatpush1.bf16.msra.mxu0 %v11116_v13  ;;  %8154 = vmatpush1.bf16.msra.mxu1 %v11119_v14  ;;  %v11200_v13 = vld [vmem:[%s14828_s1 + $0x1e80] ss:$16 sps:$4 sm:$0xff]   ;;  %v11203_v14 = vld [vmem:[%s14828_s1 + $0x1e88] ss:$16 sps:$4 sm:$0xff]  }
 0x39c   :  { %7307 = vmatprep.subr.bf16.mxu0 %v11124_v15  ;;  %8155 = vmatprep.subr.bf16.mxu1 %v11127_v16  ;;  %v11208_v15 = vld [vmem:[%s14828_s1 + $0x1ea4] ss:$16 sps:$4 sm:$0xff]   ;;  %v11211_v16 = vld [vmem:[%s14828_s1 + $0x1eac] ss:$16 sps:$4 sm:$0xff]  }
 0x39f   :  { %7308 = vmatpush1.bf16.msra.mxu0 %v11122_v19  ;;  %8156 = vmatpush1.bf16.msra.mxu1 %v11125_v17  ;;  %v11206_v19 = vld [vmem:[%s14828_s1 + $0x1ea0] ss:$16 sps:$4 sm:$0xff]   ;;  %v11209_v17 = vld [vmem:[%s14828_s1 + $0x1ea8] ss:$16 sps:$4 sm:$0xff]  }
 0x3a0   :  { %7309 = vmatprep.subr.bf16.mxu0 %v11130_v18  ;;  %8157 = vmatprep.subr.bf16.mxu1 %v11133_v20  ;;  %v11214_v18 = vld [vmem:[%s14828_s1 + $0x1ec4] ss:$16 sps:$4 sm:$0xff]   ;;  %v11217_v20 = vld [vmem:[%s14828_s1 + $0x1ecc] ss:$16 sps:$4 sm:$0xff]  }
 0x3a3   :  { %7310 = vmatpush1.bf16.msra.mxu0 %v11128_v21  ;;  %8158 = vmatpush1.bf16.msra.mxu1 %v11131_v22  ;;  %v11212_v21 = vld [vmem:[%s14828_s1 + $0x1ec0] ss:$16 sps:$4 sm:$0xff]   ;;  %v11215_v22 = vld [vmem:[%s14828_s1 + $0x1ec8] ss:$16 sps:$4 sm:$0xff]  }
 0x3a4   :  { %7311 = vmatprep.subr.bf16.mxu0 %v11136_v23  ;;  %8159 = vmatprep.subr.bf16.mxu1 %v11139_v24  ;;  %v11220_v23 = vld [vmem:[%s14828_s1 + $0x1ee4] ss:$16 sps:$4 sm:$0xff]   ;;  %v11223_v24 = vld [vmem:[%s14828_s1 + $0x1eec] ss:$16 sps:$4 sm:$0xff]  }
 0x3a7   :  { %7312 = vmatpush1.bf16.msra.mxu0 %v11134_v26  ;;  %8160 = vmatpush1.bf16.msra.mxu1 %v11137_v25  ;;  %v11218_v26 = vld [vmem:[%s14828_s1 + $0x1ee0] ss:$16 sps:$4 sm:$0xff]   ;;  %v11221_v25 = vld [vmem:[%s14828_s1 + $0x1ee8] ss:$16 sps:$4 sm:$0xff]  }
 0x3a8   :  { %7313 = vmatprep.subr.bf16.mxu0 %v11142_v27  ;;  %8161 = vmatprep.subr.bf16.mxu1 %v11145_v28  ;;  %v11226_v27 = vld [vmem:[%s14828_s1 + $0x1f04] ss:$16 sps:$4 sm:$0xff]   ;;  %v11229_v28 = vld [vmem:[%s14828_s1 + $0x1f0c] ss:$16 sps:$4 sm:$0xff]  }
 0x3ab   :  { %7314 = vmatpush1.bf16.msra.mxu0 %v11140_v29  ;;  %8162 = vmatpush1.bf16.msra.mxu1 %v11143_v30  ;;  %v11224_v29 = vld [vmem:[%s14828_s1 + $0x1f00] ss:$16 sps:$4 sm:$0xff]   ;;  %v11227_v30 = vld [vmem:[%s14828_s1 + $0x1f08] ss:$16 sps:$4 sm:$0xff]  }
 0x3ac   :  { %7315 = vmatprep.subr.bf16.mxu0 %v11148_v31  ;;  %8163 = vmatprep.subr.bf16.mxu1 %v11151_v32  ;;  %v11232_v31 = vld [vmem:[%s14828_s1 + $0x1f24] ss:$16 sps:$4 sm:$0xff]   ;;  %v11235_v32 = vld [vmem:[%s14828_s1 + $0x1f2c] ss:$16 sps:$4 sm:$0xff]  }
 0x3af   :  { %7316 = vmatpush1.bf16.msra.mxu0 %v11146_v34  ;;  %8164 = vmatpush1.bf16.msra.mxu1 %v11149_v36  ;;  %v11230_v34 = vld [vmem:[%s14828_s1 + $0x1f20] ss:$16 sps:$4 sm:$0xff]   ;;  %v11233_v36 = vld [vmem:[%s14828_s1 + $0x1f28] ss:$16 sps:$4 sm:$0xff]  }
 0x3b0   :  { %7317 = vmatprep.subr.bf16.mxu0 %v11154_v33  ;;  %8165 = vmatprep.subr.bf16.mxu1 %v11157_v35  ;;  %v11238_v33 = vld [vmem:[%s14828_s1 + $0x1f44] ss:$16 sps:$4 sm:$0xff]   ;;  %v11241_v35 = vld [vmem:[%s14828_s1 + $0x1f4c] ss:$16 sps:$4 sm:$0xff]  }
 0x3b3   :  { %7318 = vmatpush1.bf16.msra.mxu0 %v11152_v37  ;;  %8166 = vmatpush1.bf16.msra.mxu1 %v11155_v38  ;;  %v11236_v37 = vld [vmem:[%s14828_s1 + $0x1f40] ss:$16 sps:$4 sm:$0xff]   ;;  %v11239_v38 = vld [vmem:[%s14828_s1 + $0x1f48] ss:$16 sps:$4 sm:$0xff]  }
 0x3b4   :  { %7319 = vmatprep.subr.bf16.mxu0 %v11160_v39  ;;  %8167 = vmatprep.subr.bf16.mxu1 %v11163_v40  ;;  %v11244_v39 = vld [vmem:[%s14828_s1 + $0x1f64] ss:$16 sps:$4 sm:$0xff]   ;;  %v11247_v40 = vld [vmem:[%s14828_s1 + $0x1f6c] ss:$16 sps:$4 sm:$0xff]  }
 0x3b7   :  { %7320 = vmatpush1.bf16.msra.mxu0 %v11158_v42  ;;  %8168 = vmatpush1.bf16.msra.mxu1 %v11161_v44  ;;  %v11242_v42 = vld [vmem:[%s14828_s1 + $0x1f60] ss:$16 sps:$4 sm:$0xff]   ;;  %v11245_v44 = vld [vmem:[%s14828_s1 + $0x1f68] ss:$16 sps:$4 sm:$0xff]  }
 0x3b8   :  { %7321 = vmatprep.subr.bf16.mxu0 %v11166_v41  ;;  %8169 = vmatprep.subr.bf16.mxu1 %v11169_v43  ;;  %v11250_v41 = vld [vmem:[%s14828_s1 + $0x1f84] ss:$16 sps:$4 sm:$0xff]   ;;  %v11253_v43 = vld [vmem:[%s14828_s1 + $0x1f8c] ss:$16 sps:$4 sm:$0xff]  }
 0x3bb   :  { %7322 = vmatpush1.bf16.msra.mxu0 %v11164_v45  ;;  %8170 = vmatpush1.bf16.msra.mxu1 %v11167_v46  ;;  %v11248_v45 = vld [vmem:[%s14828_s1 + $0x1f80] ss:$16 sps:$4 sm:$0xff]   ;;  %v11251_v46 = vld [vmem:[%s14828_s1 + $0x1f88] ss:$16 sps:$4 sm:$0xff]  }
 0x3bc   :  { %7323 = vmatprep.subr.bf16.mxu0 %v11172_v47  ;;  %8171 = vmatprep.subr.bf16.mxu1 %v11175_v48  ;;  %v11256_v47 = vld [vmem:[%s14828_s1 + $0x1fa4] ss:$16 sps:$4 sm:$0xff]   ;;  %v11259_v48 = vld [vmem:[%s14828_s1 + $0x1fac] ss:$16 sps:$4 sm:$0xff]  }
 0x3bf   :  { %7324 = vmatpush1.bf16.msra.mxu0 %v11170_v51  ;;  %8172 = vmatpush1.bf16.msra.mxu1 %v11173_v52  ;;  %v11254_v51 = vld [vmem:[%s14828_s1 + $0x1fa0] ss:$16 sps:$4 sm:$0xff]   ;;  %v11257_v52 = vld [vmem:[%s14828_s1 + $0x1fa8] ss:$16 sps:$4 sm:$0xff]  }
 0x3c0   :  { %7346 = vmatprep.subr.bf16.mxu0 %v11178_v49  ;;  %8194 = vmatprep.subr.bf16.mxu1 %v11181_v50  ;;  %v11262_v49 = vld [vmem:[%s14828_s1 + $0x1fc4] ss:$16 sps:$4 sm:$0xff]   ;;  %v11265_v50 = vld [vmem:[%s14828_s1 + $0x1fcc] ss:$16 sps:$4 sm:$0xff]  }
 0x3c2   :  { %7326 = vmatmul.mubr.bf16.vlgmr.msra.gmra.mrb[0].mxu0 %v8430_v53  ;;  %8174 = vmatmul.mubr.bf16.vlgmr.msra.gmra.mrb[0].mxu1 %v8430_v53  ;;  %v11260_v53 = vld [vmem:[%s14828_s1 + $0x1fc0] ss:$16 sps:$4 sm:$0xff]  }
 0x3c3   :  { %7347 = vmatpush1.bf16.msra.mxu0 %v11176_v56  ;;  %8195 = vmatpush1.bf16.msra.mxu1 %v11179_v59  ;;  %v11271_v56 = vld [vmem:[%s14828_s1 + $0x1fec] ss:$16 sps:$4 sm:$0xff]   ;;  %v11266_v59 = vld [vmem:[%s14828_s1 + $0x1fe0] ss:$16 sps:$4 sm:$0xff]  }
 0x3c4   :  { %7348 = vmatprep.subr.bf16.mxu0 %v11184_v60  ;;  %8196 = vmatprep.subr.bf16.mxu1 %v11187_v57  ;;  %v11269_v60 = vld [vmem:[%s14828_s1 + $0x1fe8] ss:$16 sps:$4 sm:$0xff]   ;;  %s8392_s1 = sshll.u32 %s11296_s12, 4  ;;  %s8393_s1 = int_to_ptr.vmem [resolvable:$true] %s8392_s1 }
 0x3c5   :  { %7335 = vmatprep.mubr.bf16.mxu0 %v8463_v58  ;;  %8183 = vmatprep.mubr.bf16.mxu1 %v8463_v58  ;;  %v70_v57 = vld [vmem:[%s14827_s0 + $0x178] sm:$0xff]  ;;  %s11276_s14 = scalar_lea.vmem %s8393_s1, 32  ;;  %p11277_p1 = scmp.lt.s32.totalorder %s8393_s1, %s8393_s1 }
 0x3c6   :  { %v86_v58 = vld [vmem:[%s14827_s0 + $0x1f8] sm:$0xff]  ;;  %s11272_s0 = scalar_lea.vmem %s8393_s1, 16 }
 0x3c7   :  { %7349 = vmatpush1.bf16.msra.mxu0 %v11182_v61  ;;  %8197 = vmatpush1.bf16.msra.mxu1 %v11185_v62  ;;  %v8432_v61 = vcombine.low %v14537_v4, %v14542_v1  ;;  %v8465_v62 = vcombine.high %v70_v57, %v86_v58  ;;  %p11273_p0 = scmp.ne.s32.totalorder %s8393_s1, %s11272_s0  ;;  %p11278_p2 = scmp.lt.s32.totalorder %s11276_s14, %s11272_s0 }
 0x3c8   :  { %7350 = vmatprep.subr.bf16.mxu0 %v11190_v63  ;;  %8198 = vmatprep.subr.bf16.mxu1 %v11193_v0  ;;  %v8464_v63 = vcombine.low %v70_v57, %v86_v58 }
 0x3c9   :  { %p11279_p3 = por %p11278_p2, %p11277_p1 }
 0x3ca   :  { %7336 = vmatmul.mubr.bf16.gmra.mrb[4].mxu0 %v8462_v3  ;;  %8184 = vmatmul.mubr.bf16.gmra.mrb[4].mxu1 %v8462_v3  ;;  %v14719_v3 = vld [vmem:[%s14829_s2] sm:$0xff] }
 0x3cb   :  { %7351 = vmatpush1.bf16.msra.mxu0 %v11188_v2  ;;  %8199 = vmatpush1.bf16.msra.mxu1 %v11191_v5  ;;  %p11280_p4 = pnand %p11279_p3, %p11273_p0 }
 0x3cc   :  { %7352 = vmatprep.subr.bf16.mxu0 %v11196_v6  ;;  %8200 = vmatprep.subr.bf16.mxu1 %v11199_v7 }
 0x3cd   :  { %7378 = vmatprep.mubr.bf16.mxu0 %v8433_v8  ;;  %8226 = vmatprep.mubr.bf16.mxu1 %v8433_v8 }
 0x3cf   :  { %7353 = vmatpush1.bf16.msra.mxu0 %v11194_v11  ;;  %8201 = vmatpush1.bf16.msra.mxu1 %v11197_v12  ;;  %v14724_v12 = vld [vmem:[%s14829_s2 + $0x8] sm:$0xff] }
 0x3d0   :  { %7354 = vmatprep.subr.bf16.mxu0 %v11202_v9  ;;  %8202 = vmatprep.subr.bf16.mxu1 %v11205_v10 }
 0x3d3   :  { %7355 = vmatpush1.bf16.msra.mxu0 %v11200_v13  ;;  %8203 = vmatpush1.bf16.msra.mxu1 %v11203_v14 }
 0x3d4   :  { %7356 = vmatprep.subr.bf16.mxu0 %v11208_v15  ;;  %8204 = vmatprep.subr.bf16.mxu1 %v11211_v16 }
 0x3d7   :  { %7357 = vmatpush1.bf16.msra.mxu0 %v11206_v19  ;;  %8205 = vmatpush1.bf16.msra.mxu1 %v11209_v17  ;;  %v14736_v19 = vld [vmem:[%s14829_s2 + $0x10] sm:$0xff] }
 0x3d8   :  { %7358 = vmatprep.subr.bf16.mxu0 %v11214_v18  ;;  %8206 = vmatprep.subr.bf16.mxu1 %v11217_v20 }
 0x3db   :  { %7359 = vmatpush1.bf16.msra.mxu0 %v11212_v21  ;;  %8207 = vmatpush1.bf16.msra.mxu1 %v11215_v22  ;;  %v14745_v22 = vld [vmem:[%s14829_s2 + $0x18] sm:$0xff] }
 0x3dc   :  { %7360 = vmatprep.subr.bf16.mxu0 %v11220_v23  ;;  %8208 = vmatprep.subr.bf16.mxu1 %v11223_v24 }
 0x3df   :  { %7361 = vmatpush1.bf16.msra.mxu0 %v11218_v26  ;;  %8209 = vmatpush1.bf16.msra.mxu1 %v11221_v25 }
 0x3e0   :  { %7362 = vmatprep.subr.bf16.mxu0 %v11226_v27  ;;  %8210 = vmatprep.subr.bf16.mxu1 %v11229_v28 }
 0x3e3   :  { %7363 = vmatpush1.bf16.msra.mxu0 %v11224_v29  ;;  %8211 = vmatpush1.bf16.msra.mxu1 %v11227_v30 }
 0x3e4   :  { %7364 = vmatprep.subr.bf16.mxu0 %v11232_v31  ;;  %8212 = vmatprep.subr.bf16.mxu1 %v11235_v32 }
 0x3e7   :  { %7365 = vmatpush1.bf16.msra.mxu0 %v11230_v34  ;;  %8213 = vmatpush1.bf16.msra.mxu1 %v11233_v36  ;;  %v14758_v34 = vld [vmem:[%s14829_s2 + $0x20] sm:$0xff] }
 0x3e8   :  { %7366 = vmatprep.subr.bf16.mxu0 %v11238_v33  ;;  %8214 = vmatprep.subr.bf16.mxu1 %v11241_v35 }
 0x3eb   :  { %7367 = vmatpush1.bf16.msra.mxu0 %v11236_v37  ;;  %8215 = vmatpush1.bf16.msra.mxu1 %v11239_v38 }
 0x3ec   :  { %7368 = vmatprep.subr.bf16.mxu0 %v11244_v39  ;;  %8216 = vmatprep.subr.bf16.mxu1 %v11247_v40 }
 0x3ef   :  { %7369 = vmatpush1.bf16.msra.mxu0 %v11242_v42  ;;  %8217 = vmatpush1.bf16.msra.mxu1 %v11245_v44 }
 0x3f0   :  { %7370 = vmatprep.subr.bf16.mxu0 %v11250_v41  ;;  %8218 = vmatprep.subr.bf16.mxu1 %v11253_v43 }
 0x3f3   :  { %7371 = vmatpush1.bf16.msra.mxu0 %v11248_v45  ;;  %8219 = vmatpush1.bf16.msra.mxu1 %v11251_v46 }
 0x3f4   :  { %7372 = vmatprep.subr.bf16.mxu0 %v11256_v47  ;;  %8220 = vmatprep.subr.bf16.mxu1 %v11259_v48 }
 0x3f7   :  { %7373 = vmatpush1.bf16.msra.mxu0 %v11254_v51  ;;  %8221 = vmatpush1.bf16.msra.mxu1 %v11257_v52 }
 0x3f8   :  { %7374 = vmatprep.subr.bf16.mxu0 %v11262_v49  ;;  %8222 = vmatprep.subr.bf16.mxu1 %v11265_v50 }
 0x3fb   :  { %7375 = vmatpush1.bf16.msra.mxu0 %v11260_v53  ;;  %8223 = vmatpush1.bf16.msra.mxu1 %v11263_v54  ;;  %v8316_v53 = vld [vmem:[%s14829_s2 + $0x28] sm:$0xff] }
 0x3fc   :  { %7376 = vmatprep.subr.bf16.mxu0 %v11268_v55  ;;  %8224 = vmatprep.subr.bf16.mxu1 %v11271_v56  ;;  %v8317_v56 = vld [vmem:[%s14829_s2 + $0x30] sm:$0xff] }
 0x3ff   :  { %7377 = vmatpush1.bf16.msra.mxu0 %v11266_v59  ;;  %8225 = vmatpush1.bf16.msra.mxu1 %v11269_v60 }
 0x402   :  { %7379 = vmatmul.mubr.bf16.vlgmr.msra.gmra.mrb[0].mxu0 %v8432_v61  ;;  %8227 = vmatmul.mubr.bf16.vlgmr.msra.gmra.mrb[0].mxu1 %v8432_v61 }
 0x403   :  { %7388 = vmatprep.mubr.bf16.mxu0 %v8465_v62  ;;  %8236 = vmatprep.mubr.bf16.mxu1 %v8465_v62 }
 0x40a   :  { %7389 = vmatmul.mubr.bf16.gmra.mrb[4].mxu0 %v8464_v63  ;;  %8237 = vmatmul.mubr.bf16.gmra.mrb[4].mxu1 %v8464_v63  ;;  %v8318_v63 = vld [vmem:[%s14829_s2 + $0x38] sm:$0xff] }
 0x4d5   :  { %v7380_v0 = vpop.f32.mrb[0].mxu0  ;;  %v8228_v2 = vpop.f32.mrb[0].mxu1 }
 0x4d6   :  { %vm8247_vm0 = vcmp.gt.f32.partialorder %v7380_v0, 0.0  ;;  %v8263_v5 = vmul.f32 0.2, %v7380_v0  ;;  %vm8249_vm1 = vcmp.gt.f32.partialorder %v8228_v2, 0.0  ;;  %v8265_v4 = vmul.f32 0.2, %v8228_v2 }
 0x4d7   :  { %v7382_v1 = vpop.f32.mrb[1].mxu0  ;;  %v8230_v6 = vpop.f32.mrb[1].mxu1 }
 0x4d8   :  { %v8279_v7 = vsel %vm8247_vm0, %v7380_v0, %v8263_v5  ;;  %v8281_v8 = vsel %vm8249_vm1, %v8228_v2, %v8265_v4  ;;  %vm8248_vm2 = vcmp.gt.f32.partialorder %v7382_v1, 0.0  ;;  %v8264_v11 = vmul.f32 0.2, %v7382_v1  ;;  %v7384_v9 = vpop.f32.mrb[2].mxu0  ;;  %v8232_v10 = vpop.f32.mrb[2].mxu1 }
 0x4d9   :  { %8295 = vst [vmem:[%s14832_s5] sm:$0xff] %v8279_v7  ;;  %v8319_v13 = vmul.f32 %v14719_v3, %v8279_v7  ;;  %8297 = vst [vmem:[%s14832_s5 + $0x10] sm:$0xff] %v8281_v8  ;;  %vm8250_vm3 = vcmp.gt.f32.partialorder %v8230_v6, 0.0  ;;  %v8266_v14 = vmul.f32 0.2, %v8230_v6  ;;  %v7386_v15 = vpop.f32.mrb[3].mxu0  ;;  %v8234_v16 = vpop.f32.mrb[3].mxu1  ;;  %v8321_v25 = vmul.f32 %v14736_v19, %v8281_v8 }
 0x4da   :  { %v8280_v17 = vsel %vm8248_vm2, %v7382_v1, %v8264_v11  ;;  %vm8251_vm4 = vcmp.gt.f32.partialorder %v7384_v9, 0.0  ;;  %v8267_v18 = vmul.f32 0.2, %v7384_v9  ;;  %vm8253_vm5 = vcmp.gt.f32.partialorder %v8232_v10, 0.0 }
 0x4db   :  { %8296 = vst [vmem:[%s14832_s5 + $0x8] sm:$0xff] %v8280_v17  ;;  %v8320_v20 = vmul.f32 %v14724_v12, %v8280_v17  ;;  %v8282_v21 = vsel %vm8250_vm3, %v8230_v6, %v8266_v14  ;;  %v8269_v23 = vmul.f32 0.2, %v8232_v10  ;;  %vm8252_vm6 = vcmp.gt.f32.partialorder %v7386_v15, 0.0 }
 0x4dc   :  { %8298 = vst [vmem:[%s14832_s5 + $0x18] sm:$0xff] %v8282_v21  ;;  %v8283_v24 = vsel %vm8251_vm4, %v7384_v9, %v8267_v18  ;;  %v8268_v26 = vmul.f32 0.2, %v7386_v15  ;;  %vm8254_vm7 = vcmp.gt.f32.partialorder %v8234_v16, 0.0  ;;  %v8270_v29 = vmul.f32 0.2, %v8234_v16 }
 0x4dd   :  { %v8335_v27 = vadd.f32 %v8320_v20, %v8319_v13  ;;  %8299 = vst [vmem:[%s14832_s5 + $0x20] sm:$0xff] %v8283_v24  ;;  %v8285_v28 = vsel %vm8253_vm5, %v8232_v10, %v8269_v23  ;;  %v7390_v30 = vpop.f32.mrb[4].mxu0  ;;  %v8238_v31 = vpop.f32.mrb[4].mxu1  ;;  %v8322_v32 = vmul.f32 %v14745_v22, %v8282_v21  ;;  %v8323_v48 = vmul.f32 %v14758_v34, %v8283_v24 }
 0x4de   :  { %8301 = vst [vmem:[%s14832_s5 + $0x30] sm:$0xff] %v8285_v28  ;;  %v8284_v36 = vsel %vm8252_vm6, %v7386_v15, %v8268_v26  ;;  %vm8255_vm8 = vcmp.gt.f32.partialorder %v7390_v30, 0.0  ;;  %v8271_v33 = vmul.f32 0.2, %v7390_v30  ;;  %v7392_v35 = vpop.f32.mrb[5].mxu0  ;;  %v8240_v37 = vpop.f32.mrb[5].mxu1  ;;  %v8286_v39 = vsel %vm8254_vm7, %v8234_v16, %v8270_v29 }
 0x4df   :  { %v8336_v38 = vadd.f32 %v8335_v27, %v8321_v25  ;;  %8300 = vst [vmem:[%s14832_s5 + $0x28] sm:$0xff] %v8284_v36  ;;  %vm8257_vm9 = vcmp.gt.f32.partialorder %v8238_v31, 0.0  ;;  %v8273_v40 = vmul.f32 0.2, %v8238_v31  ;;  %v7394_v42 = vpop.f32.mrb[6].mxu0  ;;  %v8242_v44 = vpop.f32.mrb[6].mxu1  ;;  %v8324_v58 = vmul.f32 %v8316_v53, %v8284_v36 }
 0x4e0   :  { %8302 = vst [vmem:[%s14832_s5 + $0x38] sm:$0xff] %v8286_v39  ;;  %v8287_v41 = vsel %vm8255_vm8, %v7390_v30, %v8271_v33  ;;  %vm8256_vm10 = vcmp.gt.f32.partialorder %v7392_v35, 0.0  ;;  %v8272_v43 = vmul.f32 0.2, %v7392_v35  ;;  %vm8258_vm11 = vcmp.gt.f32.partialorder %v8240_v37, 0.0  ;;  %v7396_v45 = vpop.f32.mrb[7].mxu0 }
 0x4e1   :  { %v8244_v46 = vpop.f32.mrb[7].mxu1  ;;  %v8337_v47 = vadd.f32 %v8336_v38, %v8322_v32  ;;  %8303 = vst [vmem:[%s14832_s5 + $0x40] sm:$0xff] %v8287_v41  ;;  %v8289_v51 = vsel %vm8257_vm9, %v8238_v31, %v8273_v40  ;;  %v8274_v52 = vmul.f32 0.2, %v8240_v37  ;;  %vm8259_vm12 = vcmp.gt.f32.partialorder %v7394_v42, 0.0 }
 0x4e2   :  { %8305 = vst [vmem:[%s14832_s5 + $0x50] sm:$0xff] %v8289_v51  ;;  %v8288_v49 = vsel %vm8256_vm10, %v7392_v35, %v8272_v43  ;;  %v8275_v50 = vmul.f32 0.2, %v7394_v42  ;;  %vm8261_vm13 = vcmp.gt.f32.partialorder %v8242_v44, 0.0  ;;  %v8277_v60 = vmul.f32 0.2, %v8242_v44 }
 0x4e3   :  { %v8338_v54 = vadd.f32 %v8337_v47, %v8323_v48  ;;  %8304 = vst [vmem:[%s14832_s5 + $0x48] sm:$0xff] %v8288_v49  ;;  %v8290_v55 = vsel %vm8258_vm11, %v8240_v37, %v8274_v52  ;;  %vm8260_vm14 = vcmp.gt.f32.partialorder %v7396_v45, 0.0  ;;  %v8276_v57 = vmul.f32 0.2, %v7396_v45 }
 0x4e4   :  { %8306 = vst [vmem:[%s14832_s5 + $0x58] sm:$0xff] %v8290_v55  ;;  %v8291_v59 = vsel %vm8259_vm12, %v7394_v42, %v8275_v50  ;;  %vm8262_vm15 = vcmp.gt.f32.partialorder %v8244_v46, 0.0  ;;  %v8293_v61 = vsel %vm8261_vm13, %v8242_v44, %v8277_v60  ;;  %v8278_v62 = vmul.f32 0.2, %v8244_v46 }
 0x4e5   :  { %8307 = vst [vmem:[%s14832_s5 + $0x60] sm:$0xff] %v8291_v59  ;;  %v8325_v0 = vmul.f32 %v8317_v56, %v8285_v28  ;;  %8309 = vst [vmem:[%s14832_s5 + $0x70] sm:$0xff] %v8293_v61  ;;  %v8292_v2 = vsel %vm8260_vm14, %v7396_v45, %v8276_v57  ;;  %v8339_v5 = vadd.f32 %v8338_v54, %v8324_v58  ;;  %vm8368_vm0 = vcmask 254976  }
 0x4e6   :  { %8308 = vst [vmem:[%s14832_s5 + $0x68] sm:$0xff] %v8292_v2  ;;  %v8294_v4 = vsel %vm8262_vm15, %v8244_v46, %v8278_v62  ;;  %v8326_v1 = vmul.f32 %v8318_v63, %v8286_v39  ;;  %v8327_v7 = vmul.f32 %v14719_v3, %v8287_v41  ;;  %v8328_v11 = vmul.f32 %v14724_v12, %v8288_v49  ;;  %v8359_v3 = vld [vmem:[%s14830_s3] sm:$0x3] }
 0x4e7   :  { %8310 = vst [vmem:[%s14832_s5 + $0x78] sm:$0xff] %v8294_v4  ;;  %v8340_v6 = vadd.f32 %v8339_v5, %v8325_v0  ;;  %v8329_v10 = vmul.f32 %v14736_v19, %v8289_v51  ;;  %v8330_v14 = vmul.f32 %v14745_v22, %v8290_v55  ;;  %v8331_v16 = vmul.f32 %v14758_v34, %v8291_v59  ;;  %v9490_v12 = vld [vmem:[%s14831_s4] ss:$0 sm:$0xff] }
 0x4e8   :  { %v8332_v18 = vmul.f32 %v8316_v53, %v8292_v2  ;;  %v8333_v21 = vmul.f32 %v8317_v56, %v8293_v61  ;;  %v8334_v19 = vmul.f32 %v8318_v63, %v8294_v4  ;;  %v8367_v26 = vmul.f32 %v9490_v12, %v8359_v3 }
 0x4e9   :  { %v8341_v8 = vadd.f32 %v8340_v6, %v8326_v1  ;;  %vm8382_vm1 = vcmask 0  }
 0x4ea   :  { %v8369_v25 = vsel %vm8368_vm0, %v8367_v26, 0.0 }
 0x4eb   :  { %v8342_v9 = vadd.f32 %v8341_v8, %v8327_v7 }
 0x4ed   :  { %v8343_v13 = vadd.f32 %v8342_v9, %v8328_v11 }
 0x4ef   :  { %v8344_v15 = vadd.f32 %v8343_v13, %v8329_v10 }
 0x4f1   :  { %v8345_v17 = vadd.f32 %v8344_v15, %v8330_v14 }
 0x4f3   :  { %v8346_v20 = vadd.f32 %v8345_v17, %v8331_v16 }
 0x4f5   :  { %v8347_v23 = vadd.f32 %v8346_v20, %v8332_v18 }
 0x4f7   :  { %v8348_v24 = vadd.f32 %v8347_v23, %v8333_v21 }
 0x4f9   :  { %v8349_v22 = vadd.f32 %v8348_v24, %v8334_v19 }
 0x4fb   :  { %8350 = vadd.xlane.f32.xlu0 %v8349_v22 }
 0x4ff   :  { %8370 = vadd.xlane.f32.xlu0 %v8369_v25 }
 0x588   :  { %v8351_v27 = vpop.xlane.xlu0 %8350 }
 0x589   :  { %v8352_v28 = vrot.slane %v8351_v27, 4 }
 0x58b   :  { %v8353_v29 = vadd.f32 %v8352_v28, %v8351_v27 }
 0x58c   :  { %v8371_v30 = vpop.xlane.xlu0 %8370 }
 0x58d   :  { %v8354_v31 = vrot.slane %v8353_v29, 2  ;;  %v8372_v32 = vrot.slane %v8371_v30, 4 }
 0x58f   :  { %v8373_v34 = vadd.f32 %v8372_v32, %v8371_v30  ;;  %v8355_v36 = vadd.f32 %v8354_v31, %v8353_v29 }
 0x591   :  { %v8374_v33 = vrot.slane %v8373_v34, 2  ;;  %v8356_v35 = vrot.slane %v8355_v36, 1 }
 0x593   :  { %v8375_v37 = vadd.f32 %v8374_v33, %v8373_v34  ;;  %v8357_v38 = vadd.f32 %v8356_v35, %v8355_v36 }
 0x595   :  { %9731 = vpush %v8357_v38  ;;  %v8376_v39 = vrot.slane %v8375_v37, 1 }
 0x597   :  { %v8377_v40 = vadd.f32 %v8376_v39, %v8375_v37 }
 0x599   :  { %9733 = vpush %v8377_v40 }
 0x5c6   :  { %s9732_s3 = spop %9731 }
 0x5ca   :  { %s9734_s4 = spop %9733 }
 0x5cb   :  { %s8379_s11 = sadd.f32 %s9734_s4, %s9732_s3 }
 0x5cd   :  { %s8380_s13 = smul.f32 0.5, %s8379_s11 }
 0x5cf   :  { %v8381_v42 = vstv %s8380_s13 }
 0x5d0   :  { %8383 = vst.msk [vmem:[#allocation2] sm:$0x1] %vm8382_vm1, %v8381_v42 }
 0x5d1   :  { %11283 = shalt.err (!%p11280_p4)
}
 0x5d2   :  { %s11284_s17 = scalar_lea.hbm %s14833_s6, 16 }
 0x5d3   :  { %p11285_p5 = scmp.ne.s32.totalorder %s14833_s6, %s11284_s17  ;;  %p11288_p6 = scmp.lt.u32.totalorder %s11284_s17, %s14833_s6 }
 0x5d5   :  { %p11290_p7 = pnand %p11288_p6, %p11285_p5 }
 0x5d7   :  { %11293 = shalt.err (!%p11290_p7)
}
 0x5d8   :  { %8395 = dma.vmem_to_hbm [thread:$0]  %s8393_s1, 16, %s14833_s6, [#allocation3]  }
 0x5d9   :  { %11294 = dma.done.wait [#allocation3], 16  }
 0x5da   :  { %11295 = vsyncadd [#allocation3], 4294967280 }
 0x5db   :  { %8401 = vsyncpa [#allocation3], 1 }

</bundles_post_ra>
